<compile_context>
chip_gen: v5e
topology: v5e:2x2
jax: 0.10.0
libtpu: 0.0.40
codegen_flags: <defaults>
</compile_context>

<pallas_src>
import functools
import re

import jax
import jax.numpy as jnp
from jax.experimental import pallas as pl
from jax.experimental.pallas import tpu as pltpu


def _round_up(x, m):
    return (x + m - 1) // m * m


def _sigmoid(x):
    # sigma(x) = 0.5 * (tanh(x/2) + 1): transcendental goes to the EUP slot,
    # no multi-cycle VPU divide on the critical VALU path.
    return 0.5 * (jnp.tanh(0.5 * x) + 1.0)


def _tpu_generation():
    try:
        kind = jax.devices()[0].device_kind
        m = re.search(r"v(\d+)", kind.lower())
        if m:
            return int(m.group(1))
    except Exception:
        pass
    return 0


def _gate_dtype_for(gen):
    # v6e/v7x have bf16 EUP/VPU -> run the gate nonlinearities in bf16 there;
    # keep f32 on v5e and unknown chips.
    return jnp.bfloat16 if gen >= 6 else jnp.float32


# ---------------------------------------------------------------------------
# Kernel
# ---------------------------------------------------------------------------
def make_lstm_kernel(num_layers, hidden_pad, time_block, seq_len, gate_dtype):
    L, Hp, Tb, T = num_layers, hidden_pad, time_block, seq_len
    has_tail = (T % Tb) != 0

    def kernel(*refs):
        # refs = [x, (wih, whh, b) * L, wfc, bfc, out, h_sc, c_sc, proj_sc, inp_sc]
        x_ref = refs[0]
        w_refs = refs[1:1 + 3 * L]
        wfc_ref = refs[1 + 3 * L]
        bfc_ref = refs[2 + 3 * L]
        out_ref = refs[3 + 3 * L]
        h_sc = refs[4 + 3 * L]
        c_sc = refs[5 + 3 * L]
        proj_sc = refs[6 + 3 * L]   # (Tb*Bt, 4Hp) f32
        inp_sc = refs[7 + 3 * L]    # (2, Tb*Bt, Hp) bf16 ping-pong

        ti = pl.program_id(1)       # time-block index (inner, sequential)

        @pl.when(ti == 0)
        def _():
            h_sc[...] = jnp.zeros_like(h_sc)
            c_sc[...] = jnp.zeros_like(c_sc)

        Bt = x_ref.shape[1]
        in_feat = x_ref.shape[2]

        for l in range(L):
            wih_ref = w_refs[3 * l]       # (K, 4Hp)  bf16
            whh_ref = w_refs[3 * l + 1]   # (Hp, 4Hp) bf16
            b_ref = w_refs[3 * l + 2]     # (1, 4Hp)  f32

            if l == 0:
                inp2d = x_ref[...].reshape(Tb * Bt, in_feat)   # already bf16
            else:
                inp2d = inp_sc[(l - 1) % 2]                    # (Tb*Bt, Hp) bf16

            # Non-recurrent projection for ALL timesteps of the block: one big
            # MXU GEMM, staged into VMEM scratch so it is not a long-lived
            # value across the unrolled timestep loop.
            proj_sc[...] = (
                jnp.dot(inp2d, wih_ref[...],
                        preferred_element_type=jnp.float32) + b_ref[...])

            h = h_sc[l]   # (Bt, Hp) f32
            c = c_sc[l]
            collect = (l + 1 < L)
            wslot = l % 2

            # Sequential recurrence: only the small h @ whh matmul per step.
            for t in range(Tb):
                gates = proj_sc[pl.ds(t * Bt, Bt), :] + jnp.dot(
                    h.astype(jnp.bfloat16), whh_ref[...],
                    preferred_element_type=jnp.float32)
                ga = gates.astype(gate_dtype)
                # Lane-aligned gate slices (Hp is a multiple of 128).
                i_g = _sigmoid(ga[:, 0 * Hp:1 * Hp])
                f_g = _sigmoid(ga[:, 1 * Hp:2 * Hp])
                g_g = jnp.tanh(ga[:, 2 * Hp:3 * Hp])
                o_g = _sigmoid(ga[:, 3 * Hp:4 * Hp])
                c_new = f_g * c + i_g * g_g                       # f32
                h_new = (o_g * jnp.tanh(c_new.astype(gate_dtype))
                         ).astype(jnp.float32)
                if has_tail:
                    valid = (ti * Tb + t) < T
                    c = jnp.where(valid, c_new, c)
                    h = jnp.where(valid, h_new, h)
                else:
                    c, h = c_new, h_new
                if collect:
                    inp_sc[wslot, pl.ds(t * Bt, Bt), :] = h.astype(jnp.bfloat16)

            h_sc[l] = h
            c_sc[l] = c

        @pl.when(ti == pl.num_programs(1) - 1)
        def _():
            h_top = h_sc[L - 1].astype(jnp.bfloat16)   # last step, top layer
            out_ref[...] = (
                jnp.dot(h_top, wfc_ref[...],
                        preferred_element_type=jnp.float32) + bfc_ref[...]
            ).astype(out_ref.dtype)

    return kernel


# ---------------------------------------------------------------------------
# Host-side helpers
# ---------------------------------------------------------------------------
def _pad_gate_cols(w, H, Hp):
    """(..., 4H) -> (..., 4Hp): zero-pad each of the i/f/g/o blocks to Hp."""
    if Hp == H:
        return w
    pad = [(0, 0)] * (w.ndim - 1) + [(0, Hp - H)]
    parts = [jnp.pad(w[..., g * H:(g + 1) * H], pad) for g in range(4)]
    return jnp.concatenate(parts, axis=-1)


def _weight_bytes(I, H, Hp, Cp, L):
    wb = 0
    for l in range(L):
        k = I if l == 0 else Hp
        wb += (k * 4 * Hp + Hp * 4 * Hp) * 2 + 4 * Hp * 4
    wb += Hp * Cp * 2 + Cp * 4
    return wb


def _block_bytes(tb, Bt, I, Hp, Cp, L):
    x_blk = 2 * tb * Bt * I * 2            # double-buffered bf16 input block
    proj = tb * Bt * 4 * Hp * 4            # f32 projection scratch
    hseq = 2 * tb * Bt * Hp * 2            # bf16 ping-pong layer-output scratch
    state = 2 * L * Bt * Hp * 4            # h/c state
    outb = 2 * Bt * Cp * 4
    return x_blk + proj + hseq + state + outb


def _pick_batch_tile(Bp, gen):
    # v7x: 2 TensorCores -> make sure the "parallel" batch axis has >= 2 tiles
    # whenever the padded batch allows it so both cores get work.
    if gen >= 7 and Bp >= 16 and (Bp // 2) % 8 == 0:
        bt = Bp // 2
        while bt > 256 and bt % 16 == 0:
            bt //= 2
        return bt
    # single-TensorCore chips: one large tile keeps the MXU rows full.
    if Bp <= 512:
        return Bp
    for cand in (512, 256, 128, 64, 32, 16, 8):
        if Bp % cand == 0:
            return cand
    return 8


def _pick_time_block(T, fits, max_tb=64):
    """Largest time block that fits the VMEM budget; prefer exact divisors,
    otherwise use a masked tail block (never Tb=1 degeneration)."""
    best = None
    for tb in range(min(T, max_tb), 0, -1):
        if not fits(tb):
            continue
        if best is None:
            best = tb
        if T % tb == 0:
            if 2 * tb >= best:
                return tb
            break
    return best if best is not None else 1


def _const_spec(shape, buffered):
    idx = lambda *_: (0,) * len(shape)
    if buffered:
        try:
            # Constant-index blocks are DMA'd once -> single-buffer them.
            return pl.BlockSpec(shape, idx, pipeline_mode=pl.Buffered(1))
        except (AttributeError, TypeError):
            pass
    return pl.BlockSpec(shape, idx)


# ---------------------------------------------------------------------------
# Forward
# ---------------------------------------------------------------------------
@functools.partial(
    jax.jit,
    static_argnames=("hidden_size", "num_layers", "num_classes", "bf16_gates",
                     "vmem_cap", "tpu_gen", "use_buffered"))
def _lstm_forward_impl(x, layer_params, fc_params, *, hidden_size, num_layers,
                       num_classes, bf16_gates, vmem_cap, tpu_gen,
                       use_buffered):
    B, T, I = x.shape
    H = hidden_size
    Hp = _round_up(H, 128)              # lane-aligned per-gate blocks
    Bp = _round_up(max(B, 8), 8)        # sublane-aligned batch
    Cp = _round_up(num_classes, 128)    # lane-dense output store

    Bt = _pick_batch_tile(Bp, tpu_gen)
    n_btiles = Bp // Bt

    wbytes = _weight_bytes(I, H, Hp, Cp, num_layers)
    budget = int(vmem_cap * 0.6)

    def fits(tb):
        return wbytes + _block_bytes(tb, Bt, I, Hp, Cp, num_layers) <= budget

    Tb = _pick_time_block(T, fits)
    n_tblocks = -(-T // Tb)
    Tp = n_tblocks * Tb
    gate_dtype = jnp.bfloat16 if bf16_gates else jnp.float32

    # time-major, batch/time padded, bf16 input (only array streamed per step)
    xt = jnp.transpose(x, (1, 0, 2))                              # (T, B, I)
    xt = jnp.pad(xt, ((0, Tp - T), (0, Bp - B), (0, 0)))          # (Tp, Bp, I)
    xt = xt.astype(jnp.bfloat16)

    inputs = [xt]
    in_specs = [pl.BlockSpec((Tb, Bt, I), lambda bi, ti: (ti, bi, 0))]

    for l in range(num_layers):
        wih, whh, b = layer_params[l]
        in_dim = wih.shape[0]
        wih_p = _pad_gate_cols(wih, H, Hp)
        if l > 0 and Hp != H:
            wih_p = jnp.pad(wih_p, ((0, Hp - in_dim), (0, 0)))
        whh_p = _pad_gate_cols(whh, H, Hp)
        if Hp != H:
            whh_p = jnp.pad(whh_p, ((0, Hp - H), (0, 0)))
        b_p = _pad_gate_cols(b, H, Hp)
        inputs += [wih_p.astype(jnp.bfloat16), whh_p.astype(jnp.bfloat16),
                   b_p.astype(jnp.float32)]
        in_specs += [_const_spec(wih_p.shape, use_buffered),
                     _const_spec(whh_p.shape, use_buffered),
                     _const_spec(b_p.shape, use_buffered)]

    wfc, bfc = fc_params
    wfc_p = jnp.pad(wfc, ((0, Hp - H), (0, Cp - num_classes)))
    bfc_p = jnp.pad(bfc, ((0, 0), (0, Cp - num_classes)))
    inputs += [wfc_p.astype(jnp.bfloat16), bfc_p.astype(jnp.float32)]
    in_specs += [_const_spec(wfc_p.shape, use_buffered),
                 _const_spec(bfc_p.shape, use_buffered)]

    out_spec = pl.BlockSpec((Bt, Cp), lambda bi, ti: (bi, 0))

    # Explicit VMEM budget: weights single-buffered + pipelined x block +
    # proj/inp/state scratch, with headroom; capped below the physical VMEM.
    ws = wbytes + _block_bytes(Tb, Bt, I, Hp, Cp, num_layers)
    vmem_limit = max(32 << 20, int(ws * 1.4) + (4 << 20))
    vmem_limit = min(vmem_limit, int(vmem_cap * 0.9))

    # Advisory cost estimate so XLA schedules around the sequential kernel.
    flops = 0
    for l in range(num_layers):
        k = I if l == 0 else Hp
        flops += 2 * T * Bp * 4 * Hp * (k + Hp)
    flops += 2 * Bp * Hp * Cp
    cost = pl.CostEstimate(
        flops=int(flops),
        transcendentals=int(5 * T * Bp * Hp * num_layers),
        bytes_accessed=int(
            sum(int(a.size) * a.dtype.itemsize for a in inputs)
            + Bp * Cp * 4),
    )

    kernel = make_lstm_kernel(num_layers, Hp, Tb, T, gate_dtype)
    out = pl.pallas_call(
        kernel,
        out_shape=jax.ShapeDtypeStruct((Bp, Cp), jnp.float32),
        grid_spec=pltpu.PrefetchScalarGridSpec(
            num_scalar_prefetch=0,
            grid=(n_btiles, n_tblocks),
            in_specs=in_specs,
            out_specs=out_spec,
            scratch_shapes=[
                pltpu.VMEM((num_layers, Bt, Hp), jnp.float32),   # h per layer
                pltpu.VMEM((num_layers, Bt, Hp), jnp.float32),   # c per layer
                pltpu.VMEM((Tb * Bt, 4 * Hp), jnp.float32),      # block proj
                pltpu.VMEM((2, Tb * Bt, Hp), jnp.bfloat16),      # layer output
            ],
        ),
        compiler_params=pltpu.CompilerParams(
            dimension_semantics=("parallel", "arbitrary"),
            vmem_limit_bytes=int(vmem_limit)),
        cost_estimate=cost,
    )(*inputs)
    return out[:B, :num_classes]


def lstm_forward(x, layer_params, fc_params, *, hidden_size, num_layers,
                 num_classes):
    """x: (B, T, input_size) batch_first, like the PyTorch module."""
    gen = _tpu_generation()
    bf16_gates = gen >= 6
    vmem_cap = (64 << 20) if (gen >= 7 or gen == 0) else (128 << 20)
    kwargs = dict(hidden_size=hidden_size, num_layers=num_layers,
                  num_classes=num_classes, bf16_gates=bf16_gates,
                  vmem_cap=vmem_cap, tpu_gen=gen)
    try:
        return _lstm_forward_impl(x, layer_params, fc_params,
                                  use_buffered=True, **kwargs)
    except Exception:
        # pl.Buffered(1) on constant weight specs unsupported by this
        # jax/Mosaic version -> fall back to default double buffering.
        return _lstm_forward_impl(x, layer_params, fc_params,
                                  use_buffered=False, **kwargs)


# ---------------------------------------------------------------------------
# Params / reference
# ---------------------------------------------------------------------------
def init_params(key, input_size, hidden_size, num_layers, num_classes):
    """PyTorch-style uniform(-1/sqrt(H), 1/sqrt(H)) init, deterministic."""
    H = hidden_size
    k = 1.0 / jnp.sqrt(jnp.float32(H))
    layer_params = []
    for l in range(num_layers):
        in_dim = input_size if l == 0 else H
        key, k1, k2, k3, k4 = jax.random.split(key, 5)
        # stored transposed: (in_dim, 4H) and (H, 4H); gate order [i, f, g, o]
        wih = jax.random.uniform(k1, (in_dim, 4 * H), jnp.float32, -k, k)
        whh = jax.random.uniform(k2, (H, 4 * H), jnp.float32, -k, k)
        b_ih = jax.random.uniform(k3, (4 * H,), jnp.float32, -k, k)
        b_hh = jax.random.uniform(k4, (4 * H,), jnp.float32, -k, k)
        b = (b_ih + b_hh).reshape(1, 4 * H)
        layer_params.append((wih, whh, b))
    key, k5, k6 = jax.random.split(key, 3)
    kf = 1.0 / jnp.sqrt(jnp.float32(H))
    wfc = jax.random.uniform(k5, (H, num_classes), jnp.float32, -kf, kf)
    bfc = jax.random.uniform(k6, (1, num_classes), jnp.float32, -kf, kf)
    return tuple(layer_params), (wfc, bfc)


def lstm_ref(x, layer_params, fc_params, hidden_size, num_layers, gate_dtype):
    """Pure-JAX reference mirroring torch.nn.LSTM + Linear semantics, with the
    same bf16-operand / f32-accumulate matmul and gate-dtype policy."""
    B, T, _ = x.shape
    H = hidden_size
    bf = jnp.bfloat16
    h = [jnp.zeros((B, H), jnp.float32) for _ in range(num_layers)]
    c = [jnp.zeros((B, H), jnp.float32) for _ in range(num_layers)]
    for t in range(T):
        inp = x[:, t, :].astype(bf)
        for l in range(num_layers):
            wih, whh, b = layer_params[l]
            gates = (jnp.dot(inp, wih.astype(bf),
                             preferred_element_type=jnp.float32)
                     + jnp.dot(h[l].astype(bf), whh.astype(bf),
                               preferred_element_type=jnp.float32)
                     + b)
            ga = gates.astype(gate_dtype)
            i_g = _sigmoid(ga[:, 0 * H:1 * H])
            f_g = _sigmoid(ga[:, 1 * H:2 * H])
            g_g = jnp.tanh(ga[:, 2 * H:3 * H])
            o_g = _sigmoid(ga[:, 3 * H:4 * H])
            c[l] = f_g * c[l] + i_g * g_g
            h[l] = (o_g * jnp.tanh(c[l].astype(gate_dtype))
                    ).astype(jnp.float32)
            inp = h[l].astype(bf)
    wfc, bfc = fc_params
    return (jnp.dot(inp, wfc.astype(bf),
                    preferred_element_type=jnp.float32) + bfc)


if __name__ == "__main__":
    # Small shapes consistent with the module's forward: x is (B, T, input).
    batch, seq = 2, 8
    input_size, hidden_size, num_layers, num_classes = 16, 32, 2, 10

    key = jax.random.PRNGKey(0)
    kx, kp = jax.random.split(key)
    x = jax.random.normal(kx, (batch, seq, input_size), jnp.float32)
    layer_params, fc_params = init_params(
        kp, input_size, hidden_size, num_layers, num_classes)

    out = lstm_forward(x, layer_params, fc_params,
                       hidden_size=hidden_size, num_layers=num_layers,
                       num_classes=num_classes)
    out = jax.block_until_ready(out)

    gd = _gate_dtype_for(_tpu_generation())
    ref = lstm_ref(x, layer_params, fc_params, hidden_size, num_layers, gd)
    assert out.shape == (batch, num_classes)
    assert jnp.allclose(out, ref, rtol=1e-2, atol=1e-2), (
        float(jnp.max(jnp.abs(out - ref))), out, ref)

    print("KERNEL_OK")
</pallas_src>

<mosaic_0001>
module attributes {stable_mosaic.version = 11 : i64} {
  func.func @kernel(%arg0: i32, %arg1: i32, %arg2: memref<8x8x16xbf16, #tpu.memory_space<vmem>>, %arg3: memref<16x512xbf16, #tpu.memory_space<vmem>>, %arg4: memref<128x512xbf16, #tpu.memory_space<vmem>>, %arg5: memref<1x512xf32, #tpu.memory_space<vmem>>, %arg6: memref<128x512xbf16, #tpu.memory_space<vmem>>, %arg7: memref<128x512xbf16, #tpu.memory_space<vmem>>, %arg8: memref<1x512xf32, #tpu.memory_space<vmem>>, %arg9: memref<128x128xbf16, #tpu.memory_space<vmem>>, %arg10: memref<1x128xf32, #tpu.memory_space<vmem>>, %arg11: memref<8x128xf32, #tpu.memory_space<vmem>>, %arg12: memref<2x8x128xf32, #tpu.memory_space<vmem>>, %arg13: memref<2x8x128xf32, #tpu.memory_space<vmem>>, %arg14: memref<64x512xf32, #tpu.memory_space<vmem>>, %arg15: memref<2x64x128xbf16, #tpu.memory_space<vmem>>) attributes {dimension_semantics = [#tpu.dimension_semantics<parallel>, #tpu.dimension_semantics<arbitrary>], iteration_bounds = array<i64: 1, 1>, scalar_prefetch = 0 : i64, scratch_operands = 4 : i64, tpu.core_type = #tpu.core_type<tc>, window_params = [{transform_indices = @transform_0, window_bounds = array<i64: 8, 8, 16>}, {pipeline_mode = #tpu.pipeline_mode<synchronous>, transform_indices = @transform_1, window_bounds = array<i64: 16, 512>}, {pipeline_mode = #tpu.pipeline_mode<synchronous>, transform_indices = @transform_2, window_bounds = array<i64: 128, 512>}, {pipeline_mode = #tpu.pipeline_mode<synchronous>, transform_indices = @transform_3, window_bounds = array<i64: 1, 512>}, {pipeline_mode = #tpu.pipeline_mode<synchronous>, transform_indices = @transform_4, window_bounds = array<i64: 128, 512>}, {pipeline_mode = #tpu.pipeline_mode<synchronous>, transform_indices = @transform_5, window_bounds = array<i64: 128, 512>}, {pipeline_mode = #tpu.pipeline_mode<synchronous>, transform_indices = @transform_6, window_bounds = array<i64: 1, 512>}, {pipeline_mode = #tpu.pipeline_mode<synchronous>, transform_indices = @transform_7, window_bounds = array<i64: 128, 128>}, {pipeline_mode = #tpu.pipeline_mode<synchronous>, transform_indices = @transform_8, window_bounds = array<i64: 1, 128>}, {transform_indices = @transform_9, window_bounds = array<i64: 8, 128>}]} {
    %c0_i32 = arith.constant 0 : i32
    %0 = arith.cmpi eq, %arg1, %c0_i32 : i32
    %1 = arith.extui %0 : i1 to i32
    %c0_i32_0 = arith.constant 0 : i32
    %2 = arith.cmpi ne, %1, %c0_i32_0 : i32
    scf.if %2 {
      %cst_285 = arith.constant 0.000000e+00 : f32
      %650 = vector.broadcast %cst_285 : f32 to vector<2x8x128xf32>
      %c0_286 = arith.constant 0 : index
      %c0_287 = arith.constant 0 : index
      %c0_288 = arith.constant 0 : index
      %651 = vector.load %arg12[%c0_286, %c0_287, %c0_288] : memref<2x8x128xf32, #tpu.memory_space<vmem>>, vector<2x8x128xf32>
      tpu.vector_store %arg12[%c0_286, %c0_287, %c0_288], %650 {strides = array<i32>} : memref<2x8x128xf32, #tpu.memory_space<vmem>>, vector<2x8x128xf32>,
      %cst_289 = arith.constant 0.000000e+00 : f32
      %652 = vector.broadcast %cst_289 : f32 to vector<2x8x128xf32>
      %c0_290 = arith.constant 0 : index
      %c0_291 = arith.constant 0 : index
      %c0_292 = arith.constant 0 : index
      %653 = vector.load %arg13[%c0_290, %c0_291, %c0_292] : memref<2x8x128xf32, #tpu.memory_space<vmem>>, vector<2x8x128xf32>
      tpu.vector_store %arg13[%c0_290, %c0_291, %c0_292], %652 {strides = array<i32>} : memref<2x8x128xf32, #tpu.memory_space<vmem>>, vector<2x8x128xf32>,
    } else {
    }
    %c0 = arith.constant 0 : index
    %c0_1 = arith.constant 0 : index
    %c0_2 = arith.constant 0 : index
    %3 = vector.load %arg2[%c0, %c0_1, %c0_2] : memref<8x8x16xbf16, #tpu.memory_space<vmem>>, vector<8x8x16xbf16>
    %4 = vector.shape_cast %3 : vector<8x8x16xbf16> to vector<64x16xbf16>
    %c0_3 = arith.constant 0 : index
    %c0_4 = arith.constant 0 : index
    %5 = vector.load %arg3[%c0_3, %c0_4] : memref<16x512xbf16, #tpu.memory_space<vmem>>, vector<16x512xbf16>
    %cst = arith.constant dense<0.000000e+00> : vector<64x512xf32>
    %6 = tpu.matmul %4, %5, %cst {dimension_numbers = #tpu.dot_dimension_numbers<[1], [0], [0], [1], [0, 0, 1, 1], [], []>} : vector<64x16xbf16>, vector<16x512xbf16>, vector<64x512xf32> -> vector<64x512xf32>
    %c0_5 = arith.constant 0 : index
    %c0_6 = arith.constant 0 : index
    %7 = vector.load %arg5[%c0_5, %c0_6] : memref<1x512xf32, #tpu.memory_space<vmem>>, vector<1x512xf32>
    %8 = vector.broadcast %7 : vector<1x512xf32> to vector<64x512xf32>
    %9 = arith.addf %6, %8 : vector<64x512xf32>
    %c0_7 = arith.constant 0 : index
    %c0_8 = arith.constant 0 : index
    %10 = vector.load %arg14[%c0_7, %c0_8] : memref<64x512xf32, #tpu.memory_space<vmem>>, vector<64x512xf32>
    tpu.vector_store %arg14[%c0_7, %c0_8], %9 {strides = array<i32>} : memref<64x512xf32, #tpu.memory_space<vmem>>, vector<64x512xf32>,
    %c0_9 = arith.constant 0 : index
    %c0_10 = arith.constant 0 : index
    %c0_11 = arith.constant 0 : index
    %11 = vector.load %arg12[%c0_9, %c0_10, %c0_11] : memref<2x8x128xf32, #tpu.memory_space<vmem>>, vector<1x8x128xf32>
    %12 = vector.shape_cast %11 : vector<1x8x128xf32> to vector<8x128xf32>
    %c0_12 = arith.constant 0 : index
    %c0_13 = arith.constant 0 : index
    %c0_14 = arith.constant 0 : index
    %13 = vector.load %arg13[%c0_12, %c0_13, %c0_14] : memref<2x8x128xf32, #tpu.memory_space<vmem>>, vector<1x8x128xf32>
    %14 = vector.shape_cast %13 : vector<1x8x128xf32> to vector<8x128xf32>
    %c0_15 = arith.constant 0 : index
    %c0_16 = arith.constant 0 : index
    %15 = vector.load %arg14[%c0_15, %c0_16] : memref<64x512xf32, #tpu.memory_space<vmem>>, vector<8x512xf32>
    %16 = arith.truncf %12 : vector<8x128xf32> to vector<8x128xbf16>
    %c0_17 = arith.constant 0 : index
    %c0_18 = arith.constant 0 : index
    %17 = vector.load %arg4[%c0_17, %c0_18] : memref<128x512xbf16, #tpu.memory_space<vmem>>, vector<128x512xbf16>
    %cst_19 = arith.constant dense<0.000000e+00> : vector<8x512xf32>
    %18 = tpu.matmul %16, %17, %cst_19 {dimension_numbers = #tpu.dot_dimension_numbers<[1], [0], [0], [1], [0, 0, 1, 1], [], []>} : vector<8x128xbf16>, vector<128x512xbf16>, vector<8x512xf32> -> vector<8x512xf32>
    %19 = arith.addf %15, %18 : vector<8x512xf32>
    %20 = vector.extract_strided_slice %19 {offsets = [0, 0], sizes = [8, 128], strides = [1, 1]} : vector<8x512xf32> to vector<8x128xf32>
    %cst_20 = arith.constant 5.000000e-01 : f32
    %21 = vector.broadcast %cst_20 : f32 to vector<8x128xf32>
    %22 = arith.mulf %21, %20 : vector<8x128xf32>
    %23 = math.tanh %22 : vector<8x128xf32>
    %cst_21 = arith.constant 1.000000e+00 : f32
    %24 = vector.broadcast %cst_21 : f32 to vector<8x128xf32>
    %25 = arith.addf %23, %24 : vector<8x128xf32>
    %cst_22 = arith.constant 5.000000e-01 : f32
    %26 = vector.broadcast %cst_22 : f32 to vector<8x128xf32>
    %27 = arith.mulf %26, %25 : vector<8x128xf32>
    %28 = vector.extract_strided_slice %19 {offsets = [0, 128], sizes = [8, 128], strides = [1, 1]} : vector<8x512xf32> to vector<8x128xf32>
    %cst_23 = arith.constant 5.000000e-01 : f32
    %29 = vector.broadcast %cst_23 : f32 to vector<8x128xf32>
    %30 = arith.mulf %29, %28 : vector<8x128xf32>
    %31 = math.tanh %30 : vector<8x128xf32>
    %cst_24 = arith.constant 1.000000e+00 : f32
    %32 = vector.broadcast %cst_24 : f32 to vector<8x128xf32>
    %33 = arith.addf %31, %32 : vector<8x128xf32>
    %cst_25 = arith.constant 5.000000e-01 : f32
    %34 = vector.broadcast %cst_25 : f32 to vector<8x128xf32>
    %35 = arith.mulf %34, %33 : vector<8x128xf32>
    %36 = vector.extract_strided_slice %19 {offsets = [0, 256], sizes = [8, 128], strides = [1, 1]} : vector<8x512xf32> to vector<8x128xf32>
    %37 = math.tanh %36 : vector<8x128xf32>
    %38 = vector.extract_strided_slice %19 {offsets = [0, 384], sizes = [8, 128], strides = [1, 1]} : vector<8x512xf32> to vector<8x128xf32>
    %cst_26 = arith.constant 5.000000e-01 : f32
    %39 = vector.broadcast %cst_26 : f32 to vector<8x128xf32>
    %40 = arith.mulf %39, %38 : vector<8x128xf32>
    %41 = math.tanh %40 : vector<8x128xf32>
    %cst_27 = arith.constant 1.000000e+00 : f32
    %42 = vector.broadcast %cst_27 : f32 to vector<8x128xf32>
    %43 = arith.addf %41, %42 : vector<8x128xf32>
    %cst_28 = arith.constant 5.000000e-01 : f32
    %44 = vector.broadcast %cst_28 : f32 to vector<8x128xf32>
    %45 = arith.mulf %44, %43 : vector<8x128xf32>
    %46 = arith.mulf %35, %14 : vector<8x128xf32>
    %47 = arith.mulf %27, %37 : vector<8x128xf32>
    %48 = arith.addf %46, %47 : vector<8x128xf32>
    %49 = math.tanh %48 : vector<8x128xf32>
    %50 = arith.mulf %45, %49 : vector<8x128xf32>
    %51 = arith.truncf %50 : vector<8x128xf32> to vector<8x128xbf16>
    %c0_29 = arith.constant 0 : index
    %c0_30 = arith.constant 0 : index
    %c0_31 = arith.constant 0 : index
    %52 = vector.load %arg15[%c0_29, %c0_30, %c0_31] : memref<2x64x128xbf16, #tpu.memory_space<vmem>>, vector<1x8x128xbf16>
    %53 = vector.shape_cast %52 : vector<1x8x128xbf16> to vector<8x128xbf16>
    %54 = vector.shape_cast %51 : vector<8x128xbf16> to vector<1x8x128xbf16>
    tpu.vector_store %arg15[%c0_29, %c0_30, %c0_31], %54 {strides = array<i32>} : memref<2x64x128xbf16, #tpu.memory_space<vmem>>, vector<1x8x128xbf16>,
    %c8 = arith.constant 8 : index
    %c0_32 = arith.constant 0 : index
    %55 = vector.load %arg14[%c8, %c0_32] : memref<64x512xf32, #tpu.memory_space<vmem>>, vector<8x512xf32>
    %56 = arith.truncf %50 : vector<8x128xf32> to vector<8x128xbf16>
    %c0_33 = arith.constant 0 : index
    %c0_34 = arith.constant 0 : index
    %57 = vector.load %arg4[%c0_33, %c0_34] : memref<128x512xbf16, #tpu.memory_space<vmem>>, vector<128x512xbf16>
    %cst_35 = arith.constant dense<0.000000e+00> : vector<8x512xf32>
    %58 = tpu.matmul %56, %57, %cst_35 {dimension_numbers = #tpu.dot_dimension_numbers<[1], [0], [0], [1], [0, 0, 1, 1], [], []>} : vector<8x128xbf16>, vector<128x512xbf16>, vector<8x512xf32> -> vector<8x512xf32>
    %59 = arith.addf %55, %58 : vector<8x512xf32>
    %60 = vector.extract_strided_slice %59 {offsets = [0, 0], sizes = [8, 128], strides = [1, 1]} : vector<8x512xf32> to vector<8x128xf32>
    %cst_36 = arith.constant 5.000000e-01 : f32
    %61 = vector.broadcast %cst_36 : f32 to vector<8x128xf32>
    %62 = arith.mulf %61, %60 : vector<8x128xf32>
    %63 = math.tanh %62 : vector<8x128xf32>
    %cst_37 = arith.constant 1.000000e+00 : f32
    %64 = vector.broadcast %cst_37 : f32 to vector<8x128xf32>
    %65 = arith.addf %63, %64 : vector<8x128xf32>
    %cst_38 = arith.constant 5.000000e-01 : f32
    %66 = vector.broadcast %cst_38 : f32 to vector<8x128xf32>
    %67 = arith.mulf %66, %65 : vector<8x128xf32>
    %68 = vector.extract_strided_slice %59 {offsets = [0, 128], sizes = [8, 128], strides = [1, 1]} : vector<8x512xf32> to vector<8x128xf32>
    %cst_39 = arith.constant 5.000000e-01 : f32
    %69 = vector.broadcast %cst_39 : f32 to vector<8x128xf32>
    %70 = arith.mulf %69, %68 : vector<8x128xf32>
    %71 = math.tanh %70 : vector<8x128xf32>
    %cst_40 = arith.constant 1.000000e+00 : f32
    %72 = vector.broadcast %cst_40 : f32 to vector<8x128xf32>
    %73 = arith.addf %71, %72 : vector<8x128xf32>
    %cst_41 = arith.constant 5.000000e-01 : f32
    %74 = vector.broadcast %cst_41 : f32 to vector<8x128xf32>
    %75 = arith.mulf %74, %73 : vector<8x128xf32>
    %76 = vector.extract_strided_slice %59 {offsets = [0, 256], sizes = [8, 128], strides = [1, 1]} : vector<8x512xf32> to vector<8x128xf32>
    %77 = math.tanh %76 : vector<8x128xf32>
    %78 = vector.extract_strided_slice %59 {offsets = [0, 384], sizes = [8, 128], strides = [1, 1]} : vector<8x512xf32> to vector<8x128xf32>
    %cst_42 = arith.constant 5.000000e-01 : f32
    %79 = vector.broadcast %cst_42 : f32 to vector<8x128xf32>
    %80 = arith.mulf %79, %78 : vector<8x128xf32>
    %81 = math.tanh %80 : vector<8x128xf32>
    %cst_43 = arith.constant 1.000000e+00 : f32
    %82 = vector.broadcast %cst_43 : f32 to vector<8x128xf32>
    %83 = arith.addf %81, %82 : vector<8x128xf32>
    %cst_44 = arith.constant 5.000000e-01 : f32
    %84 = vector.broadcast %cst_44 : f32 to vector<8x128xf32>
    %85 = arith.mulf %84, %83 : vector<8x128xf32>
    %86 = arith.mulf %75, %48 : vector<8x128xf32>
    %87 = arith.mulf %67, %77 : vector<8x128xf32>
    %88 = arith.addf %86, %87 : vector<8x128xf32>
    %89 = math.tanh %88 : vector<8x128xf32>
    %90 = arith.mulf %85, %89 : vector<8x128xf32>
    %91 = arith.truncf %90 : vector<8x128xf32> to vector<8x128xbf16>
    %c0_45 = arith.constant 0 : index
    %c8_46 = arith.constant 8 : index
    %c0_47 = arith.constant 0 : index
    %92 = vector.load %arg15[%c0_45, %c8_46, %c0_47] : memref<2x64x128xbf16, #tpu.memory_space<vmem>>, vector<1x8x128xbf16>
    %93 = vector.shape_cast %92 : vector<1x8x128xbf16> to vector<8x128xbf16>
    %94 = vector.shape_cast %91 : vector<8x128xbf16> to vector<1x8x128xbf16>
    tpu.vector_store %arg15[%c0_45, %c8_46, %c0_47], %94 {strides = array<i32>} : memref<2x64x128xbf16, #tpu.memory_space<vmem>>, vector<1x8x128xbf16>,
    %c16 = arith.constant 16 : index
    %c0_48 = arith.constant 0 : index
    %95 = vector.load %arg14[%c16, %c0_48] : memref<64x512xf32, #tpu.memory_space<vmem>>, vector<8x512xf32>
    %96 = arith.truncf %90 : vector<8x128xf32> to vector<8x128xbf16>
    %c0_49 = arith.constant 0 : index
    %c0_50 = arith.constant 0 : index
    %97 = vector.load %arg4[%c0_49, %c0_50] : memref<128x512xbf16, #tpu.memory_space<vmem>>, vector<128x512xbf16>
    %cst_51 = arith.constant dense<0.000000e+00> : vector<8x512xf32>
    %98 = tpu.matmul %96, %97, %cst_51 {dimension_numbers = #tpu.dot_dimension_numbers<[1], [0], [0], [1], [0, 0, 1, 1], [], []>} : vector<8x128xbf16>, vector<128x512xbf16>, vector<8x512xf32> -> vector<8x512xf32>
    %99 = arith.addf %95, %98 : vector<8x512xf32>
    %100 = vector.extract_strided_slice %99 {offsets = [0, 0], sizes = [8, 128], strides = [1, 1]} : vector<8x512xf32> to vector<8x128xf32>
    %cst_52 = arith.constant 5.000000e-01 : f32
    %101 = vector.broadcast %cst_52 : f32 to vector<8x128xf32>
    %102 = arith.mulf %101, %100 : vector<8x128xf32>
    %103 = math.tanh %102 : vector<8x128xf32>
    %cst_53 = arith.constant 1.000000e+00 : f32
    %104 = vector.broadcast %cst_53 : f32 to vector<8x128xf32>
    %105 = arith.addf %103, %104 : vector<8x128xf32>
    %cst_54 = arith.constant 5.000000e-01 : f32
    %106 = vector.broadcast %cst_54 : f32 to vector<8x128xf32>
    %107 = arith.mulf %106, %105 : vector<8x128xf32>
    %108 = vector.extract_strided_slice %99 {offsets = [0, 128], sizes = [8, 128], strides = [1, 1]} : vector<8x512xf32> to vector<8x128xf32>
    %cst_55 = arith.constant 5.000000e-01 : f32
    %109 = vector.broadcast %cst_55 : f32 to vector<8x128xf32>
    %110 = arith.mulf %109, %108 : vector<8x128xf32>
    %111 = math.tanh %110 : vector<8x128xf32>
    %cst_56 = arith.constant 1.000000e+00 : f32
    %112 = vector.broadcast %cst_56 : f32 to vector<8x128xf32>
    %113 = arith.addf %111, %112 : vector<8x128xf32>
    %cst_57 = arith.constant 5.000000e-01 : f32
    %114 = vector.broadcast %cst_57 : f32 to vector<8x128xf32>
    %115 = arith.mulf %114, %113 : vector<8x128xf32>
    %116 = vector.extract_strided_slice %99 {offsets = [0, 256], sizes = [8, 128], strides = [1, 1]} : vector<8x512xf32> to vector<8x128xf32>
    %117 = math.tanh %116 : vector<8x128xf32>
    %118 = vector.extract_strided_slice %99 {offsets = [0, 384], sizes = [8, 128], strides = [1, 1]} : vector<8x512xf32> to vector<8x128xf32>
    %cst_58 = arith.constant 5.000000e-01 : f32
    %119 = vector.broadcast %cst_58 : f32 to vector<8x128xf32>
    %120 = arith.mulf %119, %118 : vector<8x128xf32>
    %121 = math.tanh %120 : vector<8x128xf32>
    %cst_59 = arith.constant 1.000000e+00 : f32
    %122 = vector.broadcast %cst_59 : f32 to vector<8x128xf32>
    %123 = arith.addf %121, %122 : vector<8x128xf32>
    %cst_60 = arith.constant 5.000000e-01 : f32
    %124 = vector.broadcast %cst_60 : f32 to vector<8x128xf32>
    %125 = arith.mulf %124, %123 : vector<8x128xf32>
    %126 = arith.mulf %115, %88 : vector<8x128xf32>
    %127 = arith.mulf %107, %117 : vector<8x128xf32>
    %128 = arith.addf %126, %127 : vector<8x128xf32>
    %129 = math.tanh %128 : vector<8x128xf32>
    %130 = arith.mulf %125, %129 : vector<8x128xf32>
    %131 = arith.truncf %130 : vector<8x128xf32> to vector<8x128xbf16>
    %c0_61 = arith.constant 0 : index
    %c16_62 = arith.constant 16 : index
    %c0_63 = arith.constant 0 : index
    %132 = vector.load %arg15[%c0_61, %c16_62, %c0_63] : memref<2x64x128xbf16, #tpu.memory_space<vmem>>, vector<1x8x128xbf16>
    %133 = vector.shape_cast %132 : vector<1x8x128xbf16> to vector<8x128xbf16>
    %134 = vector.shape_cast %131 : vector<8x128xbf16> to vector<1x8x128xbf16>
    tpu.vector_store %arg15[%c0_61, %c16_62, %c0_63], %134 {strides = array<i32>} : memref<2x64x128xbf16, #tpu.memory_space<vmem>>, vector<1x8x128xbf16>,
    %c24 = arith.constant 24 : index
    %c0_64 = arith.constant 0 : index
    %135 = vector.load %arg14[%c24, %c0_64] : memref<64x512xf32, #tpu.memory_space<vmem>>, vector<8x512xf32>
    %136 = arith.truncf %130 : vector<8x128xf32> to vector<8x128xbf16>
    %c0_65 = arith.constant 0 : index
    %c0_66 = arith.constant 0 : index
    %137 = vector.load %arg4[%c0_65, %c0_66] : memref<128x512xbf16, #tpu.memory_space<vmem>>, vector<128x512xbf16>
    %cst_67 = arith.constant dense<0.000000e+00> : vector<8x512xf32>
    %138 = tpu.matmul %136, %137, %cst_67 {dimension_numbers = #tpu.dot_dimension_numbers<[1], [0], [0], [1], [0, 0, 1, 1], [], []>} : vector<8x128xbf16>, vector<128x512xbf16>, vector<8x512xf32> -> vector<8x512xf32>
    %139 = arith.addf %135, %138 : vector<8x512xf32>
    %140 = vector.extract_strided_slice %139 {offsets = [0, 0], sizes = [8, 128], strides = [1, 1]} : vector<8x512xf32> to vector<8x128xf32>
    %cst_68 = arith.constant 5.000000e-01 : f32
    %141 = vector.broadcast %cst_68 : f32 to vector<8x128xf32>
    %142 = arith.mulf %141, %140 : vector<8x128xf32>
    %143 = math.tanh %142 : vector<8x128xf32>
    %cst_69 = arith.constant 1.000000e+00 : f32
    %144 = vector.broadcast %cst_69 : f32 to vector<8x128xf32>
    %145 = arith.addf %143, %144 : vector<8x128xf32>
    %cst_70 = arith.constant 5.000000e-01 : f32
    %146 = vector.broadcast %cst_70 : f32 to vector<8x128xf32>
    %147 = arith.mulf %146, %145 : vector<8x128xf32>
    %148 = vector.extract_strided_slice %139 {offsets = [0, 128], sizes = [8, 128], strides = [1, 1]} : vector<8x512xf32> to vector<8x128xf32>
    %cst_71 = arith.constant 5.000000e-01 : f32
    %149 = vector.broadcast %cst_71 : f32 to vector<8x128xf32>
    %150 = arith.mulf %149, %148 : vector<8x128xf32>
    %151 = math.tanh %150 : vector<8x128xf32>
    %cst_72 = arith.constant 1.000000e+00 : f32
    %152 = vector.broadcast %cst_72 : f32 to vector<8x128xf32>
    %153 = arith.addf %151, %152 : vector<8x128xf32>
    %cst_73 = arith.constant 5.000000e-01 : f32
    %154 = vector.broadcast %cst_73 : f32 to vector<8x128xf32>
    %155 = arith.mulf %154, %153 : vector<8x128xf32>
    %156 = vector.extract_strided_slice %139 {offsets = [0, 256], sizes = [8, 128], strides = [1, 1]} : vector<8x512xf32> to vector<8x128xf32>
    %157 = math.tanh %156 : vector<8x128xf32>
    %158 = vector.extract_strided_slice %139 {offsets = [0, 384], sizes = [8, 128], strides = [1, 1]} : vector<8x512xf32> to vector<8x128xf32>
    %cst_74 = arith.constant 5.000000e-01 : f32
    %159 = vector.broadcast %cst_74 : f32 to vector<8x128xf32>
    %160 = arith.mulf %159, %158 : vector<8x128xf32>
    %161 = math.tanh %160 : vector<8x128xf32>
    %cst_75 = arith.constant 1.000000e+00 : f32
    %162 = vector.broadcast %cst_75 : f32 to vector<8x128xf32>
    %163 = arith.addf %161, %162 : vector<8x128xf32>
    %cst_76 = arith.constant 5.000000e-01 : f32
    %164 = vector.broadcast %cst_76 : f32 to vector<8x128xf32>
    %165 = arith.mulf %164, %163 : vector<8x128xf32>
    %166 = arith.mulf %155, %128 : vector<8x128xf32>
    %167 = arith.mulf %147, %157 : vector<8x128xf32>
    %168 = arith.addf %166, %167 : vector<8x128xf32>
    %169 = math.tanh %168 : vector<8x128xf32>
    %170 = arith.mulf %165, %169 : vector<8x128xf32>
    %171 = arith.truncf %170 : vector<8x128xf32> to vector<8x128xbf16>
    %c0_77 = arith.constant 0 : index
    %c24_78 = arith.constant 24 : index
    %c0_79 = arith.constant 0 : index
    %172 = vector.load %arg15[%c0_77, %c24_78, %c0_79] : memref<2x64x128xbf16, #tpu.memory_space<vmem>>, vector<1x8x128xbf16>
    %173 = vector.shape_cast %172 : vector<1x8x128xbf16> to vector<8x128xbf16>
    %174 = vector.shape_cast %171 : vector<8x128xbf16> to vector<1x8x128xbf16>
    tpu.vector_store %arg15[%c0_77, %c24_78, %c0_79], %174 {strides = array<i32>} : memref<2x64x128xbf16, #tpu.memory_space<vmem>>, vector<1x8x128xbf16>,
    %c32 = arith.constant 32 : index
    %c0_80 = arith.constant 0 : index
    %175 = vector.load %arg14[%c32, %c0_80] : memref<64x512xf32, #tpu.memory_space<vmem>>, vector<8x512xf32>
    %176 = arith.truncf %170 : vector<8x128xf32> to vector<8x128xbf16>
    %c0_81 = arith.constant 0 : index
    %c0_82 = arith.constant 0 : index
    %177 = vector.load %arg4[%c0_81, %c0_82] : memref<128x512xbf16, #tpu.memory_space<vmem>>, vector<128x512xbf16>
    %cst_83 = arith.constant dense<0.000000e+00> : vector<8x512xf32>
    %178 = tpu.matmul %176, %177, %cst_83 {dimension_numbers = #tpu.dot_dimension_numbers<[1], [0], [0], [1], [0, 0, 1, 1], [], []>} : vector<8x128xbf16>, vector<128x512xbf16>, vector<8x512xf32> -> vector<8x512xf32>
    %179 = arith.addf %175, %178 : vector<8x512xf32>
    %180 = vector.extract_strided_slice %179 {offsets = [0, 0], sizes = [8, 128], strides = [1, 1]} : vector<8x512xf32> to vector<8x128xf32>
    %cst_84 = arith.constant 5.000000e-01 : f32
    %181 = vector.broadcast %cst_84 : f32 to vector<8x128xf32>
    %182 = arith.mulf %181, %180 : vector<8x128xf32>
    %183 = math.tanh %182 : vector<8x128xf32>
    %cst_85 = arith.constant 1.000000e+00 : f32
    %184 = vector.broadcast %cst_85 : f32 to vector<8x128xf32>
    %185 = arith.addf %183, %184 : vector<8x128xf32>
    %cst_86 = arith.constant 5.000000e-01 : f32
    %186 = vector.broadcast %cst_86 : f32 to vector<8x128xf32>
    %187 = arith.mulf %186, %185 : vector<8x128xf32>
    %188 = vector.extract_strided_slice %179 {offsets = [0, 128], sizes = [8, 128], strides = [1, 1]} : vector<8x512xf32> to vector<8x128xf32>
    %cst_87 = arith.constant 5.000000e-01 : f32
    %189 = vector.broadcast %cst_87 : f32 to vector<8x128xf32>
    %190 = arith.mulf %189, %188 : vector<8x128xf32>
    %191 = math.tanh %190 : vector<8x128xf32>
    %cst_88 = arith.constant 1.000000e+00 : f32
    %192 = vector.broadcast %cst_88 : f32 to vector<8x128xf32>
    %193 = arith.addf %191, %192 : vector<8x128xf32>
    %cst_89 = arith.constant 5.000000e-01 : f32
    %194 = vector.broadcast %cst_89 : f32 to vector<8x128xf32>
    %195 = arith.mulf %194, %193 : vector<8x128xf32>
    %196 = vector.extract_strided_slice %179 {offsets = [0, 256], sizes = [8, 128], strides = [1, 1]} : vector<8x512xf32> to vector<8x128xf32>
    %197 = math.tanh %196 : vector<8x128xf32>
    %198 = vector.extract_strided_slice %179 {offsets = [0, 384], sizes = [8, 128], strides = [1, 1]} : vector<8x512xf32> to vector<8x128xf32>
    %cst_90 = arith.constant 5.000000e-01 : f32
    %199 = vector.broadcast %cst_90 : f32 to vector<8x128xf32>
    %200 = arith.mulf %199, %198 : vector<8x128xf32>
    %201 = math.tanh %200 : vector<8x128xf32>
    %cst_91 = arith.constant 1.000000e+00 : f32
    %202 = vector.broadcast %cst_91 : f32 to vector<8x128xf32>
    %203 = arith.addf %201, %202 : vector<8x128xf32>
    %cst_92 = arith.constant 5.000000e-01 : f32
    %204 = vector.broadcast %cst_92 : f32 to vector<8x128xf32>
    %205 = arith.mulf %204, %203 : vector<8x128xf32>
    %206 = arith.mulf %195, %168 : vector<8x128xf32>
    %207 = arith.mulf %187, %197 : vector<8x128xf32>
    %208 = arith.addf %206, %207 : vector<8x128xf32>
    %209 = math.tanh %208 : vector<8x128xf32>
    %210 = arith.mulf %205, %209 : vector<8x128xf32>
    %211 = arith.truncf %210 : vector<8x128xf32> to vector<8x128xbf16>
    %c0_93 = arith.constant 0 : index
    %c32_94 = arith.constant 32 : index
    %c0_95 = arith.constant 0 : index
    %212 = vector.load %arg15[%c0_93, %c32_94, %c0_95] : memref<2x64x128xbf16, #tpu.memory_space<vmem>>, vector<1x8x128xbf16>
    %213 = vector.shape_cast %212 : vector<1x8x128xbf16> to vector<8x128xbf16>
    %214 = vector.shape_cast %211 : vector<8x128xbf16> to vector<1x8x128xbf16>
    tpu.vector_store %arg15[%c0_93, %c32_94, %c0_95], %214 {strides = array<i32>} : memref<2x64x128xbf16, #tpu.memory_space<vmem>>, vector<1x8x128xbf16>,
    %c40 = arith.constant 40 : index
    %c0_96 = arith.constant 0 : index
    %215 = vector.load %arg14[%c40, %c0_96] : memref<64x512xf32, #tpu.memory_space<vmem>>, vector<8x512xf32>
    %216 = arith.truncf %210 : vector<8x128xf32> to vector<8x128xbf16>
    %c0_97 = arith.constant 0 : index
    %c0_98 = arith.constant 0 : index
    %217 = vector.load %arg4[%c0_97, %c0_98] : memref<128x512xbf16, #tpu.memory_space<vmem>>, vector<128x512xbf16>
    %cst_99 = arith.constant dense<0.000000e+00> : vector<8x512xf32>
    %218 = tpu.matmul %216, %217, %cst_99 {dimension_numbers = #tpu.dot_dimension_numbers<[1], [0], [0], [1], [0, 0, 1, 1], [], []>} : vector<8x128xbf16>, vector<128x512xbf16>, vector<8x512xf32> -> vector<8x512xf32>
    %219 = arith.addf %215, %218 : vector<8x512xf32>
    %220 = vector.extract_strided_slice %219 {offsets = [0, 0], sizes = [8, 128], strides = [1, 1]} : vector<8x512xf32> to vector<8x128xf32>
    %cst_100 = arith.constant 5.000000e-01 : f32
    %221 = vector.broadcast %cst_100 : f32 to vector<8x128xf32>
    %222 = arith.mulf %221, %220 : vector<8x128xf32>
    %223 = math.tanh %222 : vector<8x128xf32>
    %cst_101 = arith.constant 1.000000e+00 : f32
    %224 = vector.broadcast %cst_101 : f32 to vector<8x128xf32>
    %225 = arith.addf %223, %224 : vector<8x128xf32>
    %cst_102 = arith.constant 5.000000e-01 : f32
    %226 = vector.broadcast %cst_102 : f32 to vector<8x128xf32>
    %227 = arith.mulf %226, %225 : vector<8x128xf32>
    %228 = vector.extract_strided_slice %219 {offsets = [0, 128], sizes = [8, 128], strides = [1, 1]} : vector<8x512xf32> to vector<8x128xf32>
    %cst_103 = arith.constant 5.000000e-01 : f32
    %229 = vector.broadcast %cst_103 : f32 to vector<8x128xf32>
    %230 = arith.mulf %229, %228 : vector<8x128xf32>
    %231 = math.tanh %230 : vector<8x128xf32>
    %cst_104 = arith.constant 1.000000e+00 : f32
    %232 = vector.broadcast %cst_104 : f32 to vector<8x128xf32>
    %233 = arith.addf %231, %232 : vector<8x128xf32>
    %cst_105 = arith.constant 5.000000e-01 : f32
    %234 = vector.broadcast %cst_105 : f32 to vector<8x128xf32>
    %235 = arith.mulf %234, %233 : vector<8x128xf32>
    %236 = vector.extract_strided_slice %219 {offsets = [0, 256], sizes = [8, 128], strides = [1, 1]} : vector<8x512xf32> to vector<8x128xf32>
    %237 = math.tanh %236 : vector<8x128xf32>
    %238 = vector.extract_strided_slice %219 {offsets = [0, 384], sizes = [8, 128], strides = [1, 1]} : vector<8x512xf32> to vector<8x128xf32>
    %cst_106 = arith.constant 5.000000e-01 : f32
    %239 = vector.broadcast %cst_106 : f32 to vector<8x128xf32>
    %240 = arith.mulf %239, %238 : vector<8x128xf32>
    %241 = math.tanh %240 : vector<8x128xf32>
    %cst_107 = arith.constant 1.000000e+00 : f32
    %242 = vector.broadcast %cst_107 : f32 to vector<8x128xf32>
    %243 = arith.addf %241, %242 : vector<8x128xf32>
    %cst_108 = arith.constant 5.000000e-01 : f32
    %244 = vector.broadcast %cst_108 : f32 to vector<8x128xf32>
    %245 = arith.mulf %244, %243 : vector<8x128xf32>
    %246 = arith.mulf %235, %208 : vector<8x128xf32>
    %247 = arith.mulf %227, %237 : vector<8x128xf32>
    %248 = arith.addf %246, %247 : vector<8x128xf32>
    %249 = math.tanh %248 : vector<8x128xf32>
    %250 = arith.mulf %245, %249 : vector<8x128xf32>
    %251 = arith.truncf %250 : vector<8x128xf32> to vector<8x128xbf16>
    %c0_109 = arith.constant 0 : index
    %c40_110 = arith.constant 40 : index
    %c0_111 = arith.constant 0 : index
    %252 = vector.load %arg15[%c0_109, %c40_110, %c0_111] : memref<2x64x128xbf16, #tpu.memory_space<vmem>>, vector<1x8x128xbf16>
    %253 = vector.shape_cast %252 : vector<1x8x128xbf16> to vector<8x128xbf16>
    %254 = vector.shape_cast %251 : vector<8x128xbf16> to vector<1x8x128xbf16>
    tpu.vector_store %arg15[%c0_109, %c40_110, %c0_111], %254 {strides = array<i32>} : memref<2x64x128xbf16, #tpu.memory_space<vmem>>, vector<1x8x128xbf16>,
    %c48 = arith.constant 48 : index
    %c0_112 = arith.constant 0 : index
    %255 = vector.load %arg14[%c48, %c0_112] : memref<64x512xf32, #tpu.memory_space<vmem>>, vector<8x512xf32>
    %256 = arith.truncf %250 : vector<8x128xf32> to vector<8x128xbf16>
    %c0_113 = arith.constant 0 : index
    %c0_114 = arith.constant 0 : index
    %257 = vector.load %arg4[%c0_113, %c0_114] : memref<128x512xbf16, #tpu.memory_space<vmem>>, vector<128x512xbf16>
    %cst_115 = arith.constant dense<0.000000e+00> : vector<8x512xf32>
    %258 = tpu.matmul %256, %257, %cst_115 {dimension_numbers = #tpu.dot_dimension_numbers<[1], [0], [0], [1], [0, 0, 1, 1], [], []>} : vector<8x128xbf16>, vector<128x512xbf16>, vector<8x512xf32> -> vector<8x512xf32>
    %259 = arith.addf %255, %258 : vector<8x512xf32>
    %260 = vector.extract_strided_slice %259 {offsets = [0, 0], sizes = [8, 128], strides = [1, 1]} : vector<8x512xf32> to vector<8x128xf32>
    %cst_116 = arith.constant 5.000000e-01 : f32
    %261 = vector.broadcast %cst_116 : f32 to vector<8x128xf32>
    %262 = arith.mulf %261, %260 : vector<8x128xf32>
    %263 = math.tanh %262 : vector<8x128xf32>
    %cst_117 = arith.constant 1.000000e+00 : f32
    %264 = vector.broadcast %cst_117 : f32 to vector<8x128xf32>
    %265 = arith.addf %263, %264 : vector<8x128xf32>
    %cst_118 = arith.constant 5.000000e-01 : f32
    %266 = vector.broadcast %cst_118 : f32 to vector<8x128xf32>
    %267 = arith.mulf %266, %265 : vector<8x128xf32>
    %268 = vector.extract_strided_slice %259 {offsets = [0, 128], sizes = [8, 128], strides = [1, 1]} : vector<8x512xf32> to vector<8x128xf32>
    %cst_119 = arith.constant 5.000000e-01 : f32
    %269 = vector.broadcast %cst_119 : f32 to vector<8x128xf32>
    %270 = arith.mulf %269, %268 : vector<8x128xf32>
    %271 = math.tanh %270 : vector<8x128xf32>
    %cst_120 = arith.constant 1.000000e+00 : f32
    %272 = vector.broadcast %cst_120 : f32 to vector<8x128xf32>
    %273 = arith.addf %271, %272 : vector<8x128xf32>
    %cst_121 = arith.constant 5.000000e-01 : f32
    %274 = vector.broadcast %cst_121 : f32 to vector<8x128xf32>
    %275 = arith.mulf %274, %273 : vector<8x128xf32>
    %276 = vector.extract_strided_slice %259 {offsets = [0, 256], sizes = [8, 128], strides = [1, 1]} : vector<8x512xf32> to vector<8x128xf32>
    %277 = math.tanh %276 : vector<8x128xf32>
    %278 = vector.extract_strided_slice %259 {offsets = [0, 384], sizes = [8, 128], strides = [1, 1]} : vector<8x512xf32> to vector<8x128xf32>
    %cst_122 = arith.constant 5.000000e-01 : f32
    %279 = vector.broadcast %cst_122 : f32 to vector<8x128xf32>
    %280 = arith.mulf %279, %278 : vector<8x128xf32>
    %281 = math.tanh %280 : vector<8x128xf32>
    %cst_123 = arith.constant 1.000000e+00 : f32
    %282 = vector.broadcast %cst_123 : f32 to vector<8x128xf32>
    %283 = arith.addf %281, %282 : vector<8x128xf32>
    %cst_124 = arith.constant 5.000000e-01 : f32
    %284 = vector.broadcast %cst_124 : f32 to vector<8x128xf32>
    %285 = arith.mulf %284, %283 : vector<8x128xf32>
    %286 = arith.mulf %275, %248 : vector<8x128xf32>
    %287 = arith.mulf %267, %277 : vector<8x128xf32>
    %288 = arith.addf %286, %287 : vector<8x128xf32>
    %289 = math.tanh %288 : vector<8x128xf32>
    %290 = arith.mulf %285, %289 : vector<8x128xf32>
    %291 = arith.truncf %290 : vector<8x128xf32> to vector<8x128xbf16>
    %c0_125 = arith.constant 0 : index
    %c48_126 = arith.constant 48 : index
    %c0_127 = arith.constant 0 : index
    %292 = vector.load %arg15[%c0_125, %c48_126, %c0_127] : memref<2x64x128xbf16, #tpu.memory_space<vmem>>, vector<1x8x128xbf16>
    %293 = vector.shape_cast %292 : vector<1x8x128xbf16> to vector<8x128xbf16>
    %294 = vector.shape_cast %291 : vector<8x128xbf16> to vector<1x8x128xbf16>
    tpu.vector_store %arg15[%c0_125, %c48_126, %c0_127], %294 {strides = array<i32>} : memref<2x64x128xbf16, #tpu.memory_space<vmem>>, vector<1x8x128xbf16>,
    %c56 = arith.constant 56 : index
    %c0_128 = arith.constant 0 : index
    %295 = vector.load %arg14[%c56, %c0_128] : memref<64x512xf32, #tpu.memory_space<vmem>>, vector<8x512xf32>
    %296 = arith.truncf %290 : vector<8x128xf32> to vector<8x128xbf16>
    %c0_129 = arith.constant 0 : index
    %c0_130 = arith.constant 0 : index
    %297 = vector.load %arg4[%c0_129, %c0_130] : memref<128x512xbf16, #tpu.memory_space<vmem>>, vector<128x512xbf16>
    %cst_131 = arith.constant dense<0.000000e+00> : vector<8x512xf32>
    %298 = tpu.matmul %296, %297, %cst_131 {dimension_numbers = #tpu.dot_dimension_numbers<[1], [0], [0], [1], [0, 0, 1, 1], [], []>} : vector<8x128xbf16>, vector<128x512xbf16>, vector<8x512xf32> -> vector<8x512xf32>
    %299 = arith.addf %295, %298 : vector<8x512xf32>
    %300 = vector.extract_strided_slice %299 {offsets = [0, 0], sizes = [8, 128], strides = [1, 1]} : vector<8x512xf32> to vector<8x128xf32>
    %cst_132 = arith.constant 5.000000e-01 : f32
    %301 = vector.broadcast %cst_132 : f32 to vector<8x128xf32>
    %302 = arith.mulf %301, %300 : vector<8x128xf32>
    %303 = math.tanh %302 : vector<8x128xf32>
    %cst_133 = arith.constant 1.000000e+00 : f32
    %304 = vector.broadcast %cst_133 : f32 to vector<8x128xf32>
    %305 = arith.addf %303, %304 : vector<8x128xf32>
    %cst_134 = arith.constant 5.000000e-01 : f32
    %306 = vector.broadcast %cst_134 : f32 to vector<8x128xf32>
    %307 = arith.mulf %306, %305 : vector<8x128xf32>
    %308 = vector.extract_strided_slice %299 {offsets = [0, 128], sizes = [8, 128], strides = [1, 1]} : vector<8x512xf32> to vector<8x128xf32>
    %cst_135 = arith.constant 5.000000e-01 : f32
    %309 = vector.broadcast %cst_135 : f32 to vector<8x128xf32>
    %310 = arith.mulf %309, %308 : vector<8x128xf32>
    %311 = math.tanh %310 : vector<8x128xf32>
    %cst_136 = arith.constant 1.000000e+00 : f32
    %312 = vector.broadcast %cst_136 : f32 to vector<8x128xf32>
    %313 = arith.addf %311, %312 : vector<8x128xf32>
    %cst_137 = arith.constant 5.000000e-01 : f32
    %314 = vector.broadcast %cst_137 : f32 to vector<8x128xf32>
    %315 = arith.mulf %314, %313 : vector<8x128xf32>
    %316 = vector.extract_strided_slice %299 {offsets = [0, 256], sizes = [8, 128], strides = [1, 1]} : vector<8x512xf32> to vector<8x128xf32>
    %317 = math.tanh %316 : vector<8x128xf32>
    %318 = vector.extract_strided_slice %299 {offsets = [0, 384], sizes = [8, 128], strides = [1, 1]} : vector<8x512xf32> to vector<8x128xf32>
    %cst_138 = arith.constant 5.000000e-01 : f32
    %319 = vector.broadcast %cst_138 : f32 to vector<8x128xf32>
    %320 = arith.mulf %319, %318 : vector<8x128xf32>
    %321 = math.tanh %320 : vector<8x128xf32>
    %cst_139 = arith.constant 1.000000e+00 : f32
    %322 = vector.broadcast %cst_139 : f32 to vector<8x128xf32>
    %323 = arith.addf %321, %322 : vector<8x128xf32>
    %cst_140 = arith.constant 5.000000e-01 : f32
    %324 = vector.broadcast %cst_140 : f32 to vector<8x128xf32>
    %325 = arith.mulf %324, %323 : vector<8x128xf32>
    %326 = arith.mulf %315, %288 : vector<8x128xf32>
    %327 = arith.mulf %307, %317 : vector<8x128xf32>
    %328 = arith.addf %326, %327 : vector<8x128xf32>
    %329 = math.tanh %328 : vector<8x128xf32>
    %330 = arith.mulf %325, %329 : vector<8x128xf32>
    %331 = arith.truncf %330 : vector<8x128xf32> to vector<8x128xbf16>
    %c0_141 = arith.constant 0 : index
    %c56_142 = arith.constant 56 : index
    %c0_143 = arith.constant 0 : index
    %332 = vector.load %arg15[%c0_141, %c56_142, %c0_143] : memref<2x64x128xbf16, #tpu.memory_space<vmem>>, vector<1x8x128xbf16>
    %333 = vector.shape_cast %332 : vector<1x8x128xbf16> to vector<8x128xbf16>
    %334 = vector.shape_cast %331 : vector<8x128xbf16> to vector<1x8x128xbf16>
    tpu.vector_store %arg15[%c0_141, %c56_142, %c0_143], %334 {strides = array<i32>} : memref<2x64x128xbf16, #tpu.memory_space<vmem>>, vector<1x8x128xbf16>,
    %c0_144 = arith.constant 0 : index
    %c0_145 = arith.constant 0 : index
    %c0_146 = arith.constant 0 : index
    %335 = vector.load %arg12[%c0_144, %c0_145, %c0_146] : memref<2x8x128xf32, #tpu.memory_space<vmem>>, vector<1x8x128xf32>
    %336 = vector.shape_cast %335 : vector<1x8x128xf32> to vector<8x128xf32>
    %337 = vector.shape_cast %330 : vector<8x128xf32> to vector<1x8x128xf32>
    tpu.vector_store %arg12[%c0_144, %c0_145, %c0_146], %337 {strides = array<i32>} : memref<2x8x128xf32, #tpu.memory_space<vmem>>, vector<1x8x128xf32>,
    %c0_147 = arith.constant 0 : index
    %c0_148 = arith.constant 0 : index
    %c0_149 = arith.constant 0 : index
    %338 = vector.load %arg13[%c0_147, %c0_148, %c0_149] : memref<2x8x128xf32, #tpu.memory_space<vmem>>, vector<1x8x128xf32>
    %339 = vector.shape_cast %338 : vector<1x8x128xf32> to vector<8x128xf32>
    %340 = vector.shape_cast %328 : vector<8x128xf32> to vector<1x8x128xf32>
    tpu.vector_store %arg13[%c0_147, %c0_148, %c0_149], %340 {strides = array<i32>} : memref<2x8x128xf32, #tpu.memory_space<vmem>>, vector<1x8x128xf32>,
    %c0_150 = arith.constant 0 : index
    %c0_151 = arith.constant 0 : index
    %c0_152 = arith.constant 0 : index
    %341 = vector.load %arg15[%c0_150, %c0_151, %c0_152] : memref<2x64x128xbf16, #tpu.memory_space<vmem>>, vector<1x64x128xbf16>
    %342 = vector.shape_cast %341 : vector<1x64x128xbf16> to vector<64x128xbf16>
    %c0_153 = arith.constant 0 : index
    %c0_154 = arith.constant 0 : index
    %343 = vector.load %arg6[%c0_153, %c0_154] : memref<128x512xbf16, #tpu.memory_space<vmem>>, vector<128x512xbf16>
    %cst_155 = arith.constant dense<0.000000e+00> : vector<64x512xf32>
    %344 = tpu.matmul %342, %343, %cst_155 {dimension_numbers = #tpu.dot_dimension_numbers<[1], [0], [0], [1], [0, 0, 1, 1], [], []>} : vector<64x128xbf16>, vector<128x512xbf16>, vector<64x512xf32> -> vector<64x512xf32>
    %c0_156 = arith.constant 0 : index
    %c0_157 = arith.constant 0 : index
    %345 = vector.load %arg8[%c0_156, %c0_157] : memref<1x512xf32, #tpu.memory_space<vmem>>, vector<1x512xf32>
    %346 = vector.broadcast %345 : vector<1x512xf32> to vector<64x512xf32>
    %347 = arith.addf %344, %346 : vector<64x512xf32>
    %c0_158 = arith.constant 0 : index
    %c0_159 = arith.constant 0 : index
    %348 = vector.load %arg14[%c0_158, %c0_159] : memref<64x512xf32, #tpu.memory_space<vmem>>, vector<64x512xf32>
    tpu.vector_store %arg14[%c0_158, %c0_159], %347 {strides = array<i32>} : memref<64x512xf32, #tpu.memory_space<vmem>>, vector<64x512xf32>,
    %c1 = arith.constant 1 : index
    %c0_160 = arith.constant 0 : index
    %c0_161 = arith.constant 0 : index
    %349 = vector.load %arg12[%c1, %c0_160, %c0_161] : memref<2x8x128xf32, #tpu.memory_space<vmem>>, vector<1x8x128xf32>
    %350 = vector.shape_cast %349 : vector<1x8x128xf32> to vector<8x128xf32>
    %c1_162 = arith.constant 1 : index
    %c0_163 = arith.constant 0 : index
    %c0_164 = arith.constant 0 : index
    %351 = vector.load %arg13[%c1_162, %c0_163, %c0_164] : memref<2x8x128xf32, #tpu.memory_space<vmem>>, vector<1x8x128xf32>
    %352 = vector.shape_cast %351 : vector<1x8x128xf32> to vector<8x128xf32>
    %c0_165 = arith.constant 0 : index
    %c0_166 = arith.constant 0 : index
    %353 = vector.load %arg14[%c0_165, %c0_166] : memref<64x512xf32, #tpu.memory_space<vmem>>, vector<8x512xf32>
    %354 = arith.truncf %350 : vector<8x128xf32> to vector<8x128xbf16>
    %c0_167 = arith.constant 0 : index
    %c0_168 = arith.constant 0 : index
    %355 = vector.load %arg7[%c0_167, %c0_168] : memref<128x512xbf16, #tpu.memory_space<vmem>>, vector<128x512xbf16>
    %cst_169 = arith.constant dense<0.000000e+00> : vector<8x512xf32>
    %356 = tpu.matmul %354, %355, %cst_169 {dimension_numbers = #tpu.dot_dimension_numbers<[1], [0], [0], [1], [0, 0, 1, 1], [], []>} : vector<8x128xbf16>, vector<128x512xbf16>, vector<8x512xf32> -> vector<8x512xf32>
    %357 = arith.addf %353, %356 : vector<8x512xf32>
    %358 = vector.extract_strided_slice %357 {offsets = [0, 0], sizes = [8, 128], strides = [1, 1]} : vector<8x512xf32> to vector<8x128xf32>
    %cst_170 = arith.constant 5.000000e-01 : f32
    %359 = vector.broadcast %cst_170 : f32 to vector<8x128xf32>
    %360 = arith.mulf %359, %358 : vector<8x128xf32>
    %361 = math.tanh %360 : vector<8x128xf32>
    %cst_171 = arith.constant 1.000000e+00 : f32
    %362 = vector.broadcast %cst_171 : f32 to vector<8x128xf32>
    %363 = arith.addf %361, %362 : vector<8x128xf32>
    %cst_172 = arith.constant 5.000000e-01 : f32
    %364 = vector.broadcast %cst_172 : f32 to vector<8x128xf32>
    %365 = arith.mulf %364, %363 : vector<8x128xf32>
    %366 = vector.extract_strided_slice %357 {offsets = [0, 128], sizes = [8, 128], strides = [1, 1]} : vector<8x512xf32> to vector<8x128xf32>
    %cst_173 = arith.constant 5.000000e-01 : f32
    %367 = vector.broadcast %cst_173 : f32 to vector<8x128xf32>
    %368 = arith.mulf %367, %366 : vector<8x128xf32>
    %369 = math.tanh %368 : vector<8x128xf32>
    %cst_174 = arith.constant 1.000000e+00 : f32
    %370 = vector.broadcast %cst_174 : f32 to vector<8x128xf32>
    %371 = arith.addf %369, %370 : vector<8x128xf32>
    %cst_175 = arith.constant 5.000000e-01 : f32
    %372 = vector.broadcast %cst_175 : f32 to vector<8x128xf32>
    %373 = arith.mulf %372, %371 : vector<8x128xf32>
    %374 = vector.extract_strided_slice %357 {offsets = [0, 256], sizes = [8, 128], strides = [1, 1]} : vector<8x512xf32> to vector<8x128xf32>
    %375 = math.tanh %374 : vector<8x128xf32>
    %376 = vector.extract_strided_slice %357 {offsets = [0, 384], sizes = [8, 128], strides = [1, 1]} : vector<8x512xf32> to vector<8x128xf32>
    %cst_176 = arith.constant 5.000000e-01 : f32
    %377 = vector.broadcast %cst_176 : f32 to vector<8x128xf32>
    %378 = arith.mulf %377, %376 : vector<8x128xf32>
    %379 = math.tanh %378 : vector<8x128xf32>
    %cst_177 = arith.constant 1.000000e+00 : f32
    %380 = vector.broadcast %cst_177 : f32 to vector<8x128xf32>
    %381 = arith.addf %379, %380 : vector<8x128xf32>
    %cst_178 = arith.constant 5.000000e-01 : f32
    %382 = vector.broadcast %cst_178 : f32 to vector<8x128xf32>
    %383 = arith.mulf %382, %381 : vector<8x128xf32>
    %384 = arith.mulf %373, %352 : vector<8x128xf32>
    %385 = arith.mulf %365, %375 : vector<8x128xf32>
    %386 = arith.addf %384, %385 : vector<8x128xf32>
    %387 = math.tanh %386 : vector<8x128xf32>
    %388 = arith.mulf %383, %387 : vector<8x128xf32>
    %c8_179 = arith.constant 8 : index
    %c0_180 = arith.constant 0 : index
    %389 = vector.load %arg14[%c8_179, %c0_180] : memref<64x512xf32, #tpu.memory_space<vmem>>, vector<8x512xf32>
    %390 = arith.truncf %388 : vector<8x128xf32> to vector<8x128xbf16>
    %c0_181 = arith.constant 0 : index
    %c0_182 = arith.constant 0 : index
    %391 = vector.load %arg7[%c0_181, %c0_182] : memref<128x512xbf16, #tpu.memory_space<vmem>>, vector<128x512xbf16>
    %cst_183 = arith.constant dense<0.000000e+00> : vector<8x512xf32>
    %392 = tpu.matmul %390, %391, %cst_183 {dimension_numbers = #tpu.dot_dimension_numbers<[1], [0], [0], [1], [0, 0, 1, 1], [], []>} : vector<8x128xbf16>, vector<128x512xbf16>, vector<8x512xf32> -> vector<8x512xf32>
    %393 = arith.addf %389, %392 : vector<8x512xf32>
    %394 = vector.extract_strided_slice %393 {offsets = [0, 0], sizes = [8, 128], strides = [1, 1]} : vector<8x512xf32> to vector<8x128xf32>
    %cst_184 = arith.constant 5.000000e-01 : f32
    %395 = vector.broadcast %cst_184 : f32 to vector<8x128xf32>
    %396 = arith.mulf %395, %394 : vector<8x128xf32>
    %397 = math.tanh %396 : vector<8x128xf32>
    %cst_185 = arith.constant 1.000000e+00 : f32
    %398 = vector.broadcast %cst_185 : f32 to vector<8x128xf32>
    %399 = arith.addf %397, %398 : vector<8x128xf32>
    %cst_186 = arith.constant 5.000000e-01 : f32
    %400 = vector.broadcast %cst_186 : f32 to vector<8x128xf32>
    %401 = arith.mulf %400, %399 : vector<8x128xf32>
    %402 = vector.extract_strided_slice %393 {offsets = [0, 128], sizes = [8, 128], strides = [1, 1]} : vector<8x512xf32> to vector<8x128xf32>
    %cst_187 = arith.constant 5.000000e-01 : f32
    %403 = vector.broadcast %cst_187 : f32 to vector<8x128xf32>
    %404 = arith.mulf %403, %402 : vector<8x128xf32>
    %405 = math.tanh %404 : vector<8x128xf32>
    %cst_188 = arith.constant 1.000000e+00 : f32
    %406 = vector.broadcast %cst_188 : f32 to vector<8x128xf32>
    %407 = arith.addf %405, %406 : vector<8x128xf32>
    %cst_189 = arith.constant 5.000000e-01 : f32
    %408 = vector.broadcast %cst_189 : f32 to vector<8x128xf32>
    %409 = arith.mulf %408, %407 : vector<8x128xf32>
    %410 = vector.extract_strided_slice %393 {offsets = [0, 256], sizes = [8, 128], strides = [1, 1]} : vector<8x512xf32> to vector<8x128xf32>
    %411 = math.tanh %410 : vector<8x128xf32>
    %412 = vector.extract_strided_slice %393 {offsets = [0, 384], sizes = [8, 128], strides = [1, 1]} : vector<8x512xf32> to vector<8x128xf32>
    %cst_190 = arith.constant 5.000000e-01 : f32
    %413 = vector.broadcast %cst_190 : f32 to vector<8x128xf32>
    %414 = arith.mulf %413, %412 : vector<8x128xf32>
    %415 = math.tanh %414 : vector<8x128xf32>
    %cst_191 = arith.constant 1.000000e+00 : f32
    %416 = vector.broadcast %cst_191 : f32 to vector<8x128xf32>
    %417 = arith.addf %415, %416 : vector<8x128xf32>
    %cst_192 = arith.constant 5.000000e-01 : f32
    %418 = vector.broadcast %cst_192 : f32 to vector<8x128xf32>
    %419 = arith.mulf %418, %417 : vector<8x128xf32>
    %420 = arith.mulf %409, %386 : vector<8x128xf32>
    %421 = arith.mulf %401, %411 : vector<8x128xf32>
    %422 = arith.addf %420, %421 : vector<8x128xf32>
    %423 = math.tanh %422 : vector<8x128xf32>
    %424 = arith.mulf %419, %423 : vector<8x128xf32>
    %c16_193 = arith.constant 16 : index
    %c0_194 = arith.constant 0 : index
    %425 = vector.load %arg14[%c16_193, %c0_194] : memref<64x512xf32, #tpu.memory_space<vmem>>, vector<8x512xf32>
    %426 = arith.truncf %424 : vector<8x128xf32> to vector<8x128xbf16>
    %c0_195 = arith.constant 0 : index
    %c0_196 = arith.constant 0 : index
    %427 = vector.load %arg7[%c0_195, %c0_196] : memref<128x512xbf16, #tpu.memory_space<vmem>>, vector<128x512xbf16>
    %cst_197 = arith.constant dense<0.000000e+00> : vector<8x512xf32>
    %428 = tpu.matmul %426, %427, %cst_197 {dimension_numbers = #tpu.dot_dimension_numbers<[1], [0], [0], [1], [0, 0, 1, 1], [], []>} : vector<8x128xbf16>, vector<128x512xbf16>, vector<8x512xf32> -> vector<8x512xf32>
    %429 = arith.addf %425, %428 : vector<8x512xf32>
    %430 = vector.extract_strided_slice %429 {offsets = [0, 0], sizes = [8, 128], strides = [1, 1]} : vector<8x512xf32> to vector<8x128xf32>
    %cst_198 = arith.constant 5.000000e-01 : f32
    %431 = vector.broadcast %cst_198 : f32 to vector<8x128xf32>
    %432 = arith.mulf %431, %430 : vector<8x128xf32>
    %433 = math.tanh %432 : vector<8x128xf32>
    %cst_199 = arith.constant 1.000000e+00 : f32
    %434 = vector.broadcast %cst_199 : f32 to vector<8x128xf32>
    %435 = arith.addf %433, %434 : vector<8x128xf32>
    %cst_200 = arith.constant 5.000000e-01 : f32
    %436 = vector.broadcast %cst_200 : f32 to vector<8x128xf32>
    %437 = arith.mulf %436, %435 : vector<8x128xf32>
    %438 = vector.extract_strided_slice %429 {offsets = [0, 128], sizes = [8, 128], strides = [1, 1]} : vector<8x512xf32> to vector<8x128xf32>
    %cst_201 = arith.constant 5.000000e-01 : f32
    %439 = vector.broadcast %cst_201 : f32 to vector<8x128xf32>
    %440 = arith.mulf %439, %438 : vector<8x128xf32>
    %441 = math.tanh %440 : vector<8x128xf32>
    %cst_202 = arith.constant 1.000000e+00 : f32
    %442 = vector.broadcast %cst_202 : f32 to vector<8x128xf32>
    %443 = arith.addf %441, %442 : vector<8x128xf32>
    %cst_203 = arith.constant 5.000000e-01 : f32
    %444 = vector.broadcast %cst_203 : f32 to vector<8x128xf32>
    %445 = arith.mulf %444, %443 : vector<8x128xf32>
    %446 = vector.extract_strided_slice %429 {offsets = [0, 256], sizes = [8, 128], strides = [1, 1]} : vector<8x512xf32> to vector<8x128xf32>
    %447 = math.tanh %446 : vector<8x128xf32>
    %448 = vector.extract_strided_slice %429 {offsets = [0, 384], sizes = [8, 128], strides = [1, 1]} : vector<8x512xf32> to vector<8x128xf32>
    %cst_204 = arith.constant 5.000000e-01 : f32
    %449 = vector.broadcast %cst_204 : f32 to vector<8x128xf32>
    %450 = arith.mulf %449, %448 : vector<8x128xf32>
    %451 = math.tanh %450 : vector<8x128xf32>
    %cst_205 = arith.constant 1.000000e+00 : f32
    %452 = vector.broadcast %cst_205 : f32 to vector<8x128xf32>
    %453 = arith.addf %451, %452 : vector<8x128xf32>
    %cst_206 = arith.constant 5.000000e-01 : f32
    %454 = vector.broadcast %cst_206 : f32 to vector<8x128xf32>
    %455 = arith.mulf %454, %453 : vector<8x128xf32>
    %456 = arith.mulf %445, %422 : vector<8x128xf32>
    %457 = arith.mulf %437, %447 : vector<8x128xf32>
    %458 = arith.addf %456, %457 : vector<8x128xf32>
    %459 = math.tanh %458 : vector<8x128xf32>
    %460 = arith.mulf %455, %459 : vector<8x128xf32>
    %c24_207 = arith.constant 24 : index
    %c0_208 = arith.constant 0 : index
    %461 = vector.load %arg14[%c24_207, %c0_208] : memref<64x512xf32, #tpu.memory_space<vmem>>, vector<8x512xf32>
    %462 = arith.truncf %460 : vector<8x128xf32> to vector<8x128xbf16>
    %c0_209 = arith.constant 0 : index
    %c0_210 = arith.constant 0 : index
    %463 = vector.load %arg7[%c0_209, %c0_210] : memref<128x512xbf16, #tpu.memory_space<vmem>>, vector<128x512xbf16>
    %cst_211 = arith.constant dense<0.000000e+00> : vector<8x512xf32>
    %464 = tpu.matmul %462, %463, %cst_211 {dimension_numbers = #tpu.dot_dimension_numbers<[1], [0], [0], [1], [0, 0, 1, 1], [], []>} : vector<8x128xbf16>, vector<128x512xbf16>, vector<8x512xf32> -> vector<8x512xf32>
    %465 = arith.addf %461, %464 : vector<8x512xf32>
    %466 = vector.extract_strided_slice %465 {offsets = [0, 0], sizes = [8, 128], strides = [1, 1]} : vector<8x512xf32> to vector<8x128xf32>
    %cst_212 = arith.constant 5.000000e-01 : f32
    %467 = vector.broadcast %cst_212 : f32 to vector<8x128xf32>
    %468 = arith.mulf %467, %466 : vector<8x128xf32>
    %469 = math.tanh %468 : vector<8x128xf32>
    %cst_213 = arith.constant 1.000000e+00 : f32
    %470 = vector.broadcast %cst_213 : f32 to vector<8x128xf32>
    %471 = arith.addf %469, %470 : vector<8x128xf32>
    %cst_214 = arith.constant 5.000000e-01 : f32
    %472 = vector.broadcast %cst_214 : f32 to vector<8x128xf32>
    %473 = arith.mulf %472, %471 : vector<8x128xf32>
    %474 = vector.extract_strided_slice %465 {offsets = [0, 128], sizes = [8, 128], strides = [1, 1]} : vector<8x512xf32> to vector<8x128xf32>
    %cst_215 = arith.constant 5.000000e-01 : f32
    %475 = vector.broadcast %cst_215 : f32 to vector<8x128xf32>
    %476 = arith.mulf %475, %474 : vector<8x128xf32>
    %477 = math.tanh %476 : vector<8x128xf32>
    %cst_216 = arith.constant 1.000000e+00 : f32
    %478 = vector.broadcast %cst_216 : f32 to vector<8x128xf32>
    %479 = arith.addf %477, %478 : vector<8x128xf32>
    %cst_217 = arith.constant 5.000000e-01 : f32
    %480 = vector.broadcast %cst_217 : f32 to vector<8x128xf32>
    %481 = arith.mulf %480, %479 : vector<8x128xf32>
    %482 = vector.extract_strided_slice %465 {offsets = [0, 256], sizes = [8, 128], strides = [1, 1]} : vector<8x512xf32> to vector<8x128xf32>
    %483 = math.tanh %482 : vector<8x128xf32>
    %484 = vector.extract_strided_slice %465 {offsets = [0, 384], sizes = [8, 128], strides = [1, 1]} : vector<8x512xf32> to vector<8x128xf32>
    %cst_218 = arith.constant 5.000000e-01 : f32
    %485 = vector.broadcast %cst_218 : f32 to vector<8x128xf32>
    %486 = arith.mulf %485, %484 : vector<8x128xf32>
    %487 = math.tanh %486 : vector<8x128xf32>
    %cst_219 = arith.constant 1.000000e+00 : f32
    %488 = vector.broadcast %cst_219 : f32 to vector<8x128xf32>
    %489 = arith.addf %487, %488 : vector<8x128xf32>
    %cst_220 = arith.constant 5.000000e-01 : f32
    %490 = vector.broadcast %cst_220 : f32 to vector<8x128xf32>
    %491 = arith.mulf %490, %489 : vector<8x128xf32>
    %492 = arith.mulf %481, %458 : vector<8x128xf32>
    %493 = arith.mulf %473, %483 : vector<8x128xf32>
    %494 = arith.addf %492, %493 : vector<8x128xf32>
    %495 = math.tanh %494 : vector<8x128xf32>
    %496 = arith.mulf %491, %495 : vector<8x128xf32>
    %c32_221 = arith.constant 32 : index
    %c0_222 = arith.constant 0 : index
    %497 = vector.load %arg14[%c32_221, %c0_222] : memref<64x512xf32, #tpu.memory_space<vmem>>, vector<8x512xf32>
    %498 = arith.truncf %496 : vector<8x128xf32> to vector<8x128xbf16>
    %c0_223 = arith.constant 0 : index
    %c0_224 = arith.constant 0 : index
    %499 = vector.load %arg7[%c0_223, %c0_224] : memref<128x512xbf16, #tpu.memory_space<vmem>>, vector<128x512xbf16>
    %cst_225 = arith.constant dense<0.000000e+00> : vector<8x512xf32>
    %500 = tpu.matmul %498, %499, %cst_225 {dimension_numbers = #tpu.dot_dimension_numbers<[1], [0], [0], [1], [0, 0, 1, 1], [], []>} : vector<8x128xbf16>, vector<128x512xbf16>, vector<8x512xf32> -> vector<8x512xf32>
    %501 = arith.addf %497, %500 : vector<8x512xf32>
    %502 = vector.extract_strided_slice %501 {offsets = [0, 0], sizes = [8, 128], strides = [1, 1]} : vector<8x512xf32> to vector<8x128xf32>
    %cst_226 = arith.constant 5.000000e-01 : f32
    %503 = vector.broadcast %cst_226 : f32 to vector<8x128xf32>
    %504 = arith.mulf %503, %502 : vector<8x128xf32>
    %505 = math.tanh %504 : vector<8x128xf32>
    %cst_227 = arith.constant 1.000000e+00 : f32
    %506 = vector.broadcast %cst_227 : f32 to vector<8x128xf32>
    %507 = arith.addf %505, %506 : vector<8x128xf32>
    %cst_228 = arith.constant 5.000000e-01 : f32
    %508 = vector.broadcast %cst_228 : f32 to vector<8x128xf32>
    %509 = arith.mulf %508, %507 : vector<8x128xf32>
    %510 = vector.extract_strided_slice %501 {offsets = [0, 128], sizes = [8, 128], strides = [1, 1]} : vector<8x512xf32> to vector<8x128xf32>
    %cst_229 = arith.constant 5.000000e-01 : f32
    %511 = vector.broadcast %cst_229 : f32 to vector<8x128xf32>
    %512 = arith.mulf %511, %510 : vector<8x128xf32>
    %513 = math.tanh %512 : vector<8x128xf32>
    %cst_230 = arith.constant 1.000000e+00 : f32
    %514 = vector.broadcast %cst_230 : f32 to vector<8x128xf32>
    %515 = arith.addf %513, %514 : vector<8x128xf32>
    %cst_231 = arith.constant 5.000000e-01 : f32
    %516 = vector.broadcast %cst_231 : f32 to vector<8x128xf32>
    %517 = arith.mulf %516, %515 : vector<8x128xf32>
    %518 = vector.extract_strided_slice %501 {offsets = [0, 256], sizes = [8, 128], strides = [1, 1]} : vector<8x512xf32> to vector<8x128xf32>
    %519 = math.tanh %518 : vector<8x128xf32>
    %520 = vector.extract_strided_slice %501 {offsets = [0, 384], sizes = [8, 128], strides = [1, 1]} : vector<8x512xf32> to vector<8x128xf32>
    %cst_232 = arith.constant 5.000000e-01 : f32
    %521 = vector.broadcast %cst_232 : f32 to vector<8x128xf32>
    %522 = arith.mulf %521, %520 : vector<8x128xf32>
    %523 = math.tanh %522 : vector<8x128xf32>
    %cst_233 = arith.constant 1.000000e+00 : f32
    %524 = vector.broadcast %cst_233 : f32 to vector<8x128xf32>
    %525 = arith.addf %523, %524 : vector<8x128xf32>
    %cst_234 = arith.constant 5.000000e-01 : f32
    %526 = vector.broadcast %cst_234 : f32 to vector<8x128xf32>
    %527 = arith.mulf %526, %525 : vector<8x128xf32>
    %528 = arith.mulf %517, %494 : vector<8x128xf32>
    %529 = arith.mulf %509, %519 : vector<8x128xf32>
    %530 = arith.addf %528, %529 : vector<8x128xf32>
    %531 = math.tanh %530 : vector<8x128xf32>
    %532 = arith.mulf %527, %531 : vector<8x128xf32>
    %c40_235 = arith.constant 40 : index
    %c0_236 = arith.constant 0 : index
    %533 = vector.load %arg14[%c40_235, %c0_236] : memref<64x512xf32, #tpu.memory_space<vmem>>, vector<8x512xf32>
    %534 = arith.truncf %532 : vector<8x128xf32> to vector<8x128xbf16>
    %c0_237 = arith.constant 0 : index
    %c0_238 = arith.constant 0 : index
    %535 = vector.load %arg7[%c0_237, %c0_238] : memref<128x512xbf16, #tpu.memory_space<vmem>>, vector<128x512xbf16>
    %cst_239 = arith.constant dense<0.000000e+00> : vector<8x512xf32>
    %536 = tpu.matmul %534, %535, %cst_239 {dimension_numbers = #tpu.dot_dimension_numbers<[1], [0], [0], [1], [0, 0, 1, 1], [], []>} : vector<8x128xbf16>, vector<128x512xbf16>, vector<8x512xf32> -> vector<8x512xf32>
    %537 = arith.addf %533, %536 : vector<8x512xf32>
    %538 = vector.extract_strided_slice %537 {offsets = [0, 0], sizes = [8, 128], strides = [1, 1]} : vector<8x512xf32> to vector<8x128xf32>
    %cst_240 = arith.constant 5.000000e-01 : f32
    %539 = vector.broadcast %cst_240 : f32 to vector<8x128xf32>
    %540 = arith.mulf %539, %538 : vector<8x128xf32>
    %541 = math.tanh %540 : vector<8x128xf32>
    %cst_241 = arith.constant 1.000000e+00 : f32
    %542 = vector.broadcast %cst_241 : f32 to vector<8x128xf32>
    %543 = arith.addf %541, %542 : vector<8x128xf32>
    %cst_242 = arith.constant 5.000000e-01 : f32
    %544 = vector.broadcast %cst_242 : f32 to vector<8x128xf32>
    %545 = arith.mulf %544, %543 : vector<8x128xf32>
    %546 = vector.extract_strided_slice %537 {offsets = [0, 128], sizes = [8, 128], strides = [1, 1]} : vector<8x512xf32> to vector<8x128xf32>
    %cst_243 = arith.constant 5.000000e-01 : f32
    %547 = vector.broadcast %cst_243 : f32 to vector<8x128xf32>
    %548 = arith.mulf %547, %546 : vector<8x128xf32>
    %549 = math.tanh %548 : vector<8x128xf32>
    %cst_244 = arith.constant 1.000000e+00 : f32
    %550 = vector.broadcast %cst_244 : f32 to vector<8x128xf32>
    %551 = arith.addf %549, %550 : vector<8x128xf32>
    %cst_245 = arith.constant 5.000000e-01 : f32
    %552 = vector.broadcast %cst_245 : f32 to vector<8x128xf32>
    %553 = arith.mulf %552, %551 : vector<8x128xf32>
    %554 = vector.extract_strided_slice %537 {offsets = [0, 256], sizes = [8, 128], strides = [1, 1]} : vector<8x512xf32> to vector<8x128xf32>
    %555 = math.tanh %554 : vector<8x128xf32>
    %556 = vector.extract_strided_slice %537 {offsets = [0, 384], sizes = [8, 128], strides = [1, 1]} : vector<8x512xf32> to vector<8x128xf32>
    %cst_246 = arith.constant 5.000000e-01 : f32
    %557 = vector.broadcast %cst_246 : f32 to vector<8x128xf32>
    %558 = arith.mulf %557, %556 : vector<8x128xf32>
    %559 = math.tanh %558 : vector<8x128xf32>
    %cst_247 = arith.constant 1.000000e+00 : f32
    %560 = vector.broadcast %cst_247 : f32 to vector<8x128xf32>
    %561 = arith.addf %559, %560 : vector<8x128xf32>
    %cst_248 = arith.constant 5.000000e-01 : f32
    %562 = vector.broadcast %cst_248 : f32 to vector<8x128xf32>
    %563 = arith.mulf %562, %561 : vector<8x128xf32>
    %564 = arith.mulf %553, %530 : vector<8x128xf32>
    %565 = arith.mulf %545, %555 : vector<8x128xf32>
    %566 = arith.addf %564, %565 : vector<8x128xf32>
    %567 = math.tanh %566 : vector<8x128xf32>
    %568 = arith.mulf %563, %567 : vector<8x128xf32>
    %c48_249 = arith.constant 48 : index
    %c0_250 = arith.constant 0 : index
    %569 = vector.load %arg14[%c48_249, %c0_250] : memref<64x512xf32, #tpu.memory_space<vmem>>, vector<8x512xf32>
    %570 = arith.truncf %568 : vector<8x128xf32> to vector<8x128xbf16>
    %c0_251 = arith.constant 0 : index
    %c0_252 = arith.constant 0 : index
    %571 = vector.load %arg7[%c0_251, %c0_252] : memref<128x512xbf16, #tpu.memory_space<vmem>>, vector<128x512xbf16>
    %cst_253 = arith.constant dense<0.000000e+00> : vector<8x512xf32>
    %572 = tpu.matmul %570, %571, %cst_253 {dimension_numbers = #tpu.dot_dimension_numbers<[1], [0], [0], [1], [0, 0, 1, 1], [], []>} : vector<8x128xbf16>, vector<128x512xbf16>, vector<8x512xf32> -> vector<8x512xf32>
    %573 = arith.addf %569, %572 : vector<8x512xf32>
    %574 = vector.extract_strided_slice %573 {offsets = [0, 0], sizes = [8, 128], strides = [1, 1]} : vector<8x512xf32> to vector<8x128xf32>
    %cst_254 = arith.constant 5.000000e-01 : f32
    %575 = vector.broadcast %cst_254 : f32 to vector<8x128xf32>
    %576 = arith.mulf %575, %574 : vector<8x128xf32>
    %577 = math.tanh %576 : vector<8x128xf32>
    %cst_255 = arith.constant 1.000000e+00 : f32
    %578 = vector.broadcast %cst_255 : f32 to vector<8x128xf32>
    %579 = arith.addf %577, %578 : vector<8x128xf32>
    %cst_256 = arith.constant 5.000000e-01 : f32
    %580 = vector.broadcast %cst_256 : f32 to vector<8x128xf32>
    %581 = arith.mulf %580, %579 : vector<8x128xf32>
    %582 = vector.extract_strided_slice %573 {offsets = [0, 128], sizes = [8, 128], strides = [1, 1]} : vector<8x512xf32> to vector<8x128xf32>
    %cst_257 = arith.constant 5.000000e-01 : f32
    %583 = vector.broadcast %cst_257 : f32 to vector<8x128xf32>
    %584 = arith.mulf %583, %582 : vector<8x128xf32>
    %585 = math.tanh %584 : vector<8x128xf32>
    %cst_258 = arith.constant 1.000000e+00 : f32
    %586 = vector.broadcast %cst_258 : f32 to vector<8x128xf32>
    %587 = arith.addf %585, %586 : vector<8x128xf32>
    %cst_259 = arith.constant 5.000000e-01 : f32
    %588 = vector.broadcast %cst_259 : f32 to vector<8x128xf32>
    %589 = arith.mulf %588, %587 : vector<8x128xf32>
    %590 = vector.extract_strided_slice %573 {offsets = [0, 256], sizes = [8, 128], strides = [1, 1]} : vector<8x512xf32> to vector<8x128xf32>
    %591 = math.tanh %590 : vector<8x128xf32>
    %592 = vector.extract_strided_slice %573 {offsets = [0, 384], sizes = [8, 128], strides = [1, 1]} : vector<8x512xf32> to vector<8x128xf32>
    %cst_260 = arith.constant 5.000000e-01 : f32
    %593 = vector.broadcast %cst_260 : f32 to vector<8x128xf32>
    %594 = arith.mulf %593, %592 : vector<8x128xf32>
    %595 = math.tanh %594 : vector<8x128xf32>
    %cst_261 = arith.constant 1.000000e+00 : f32
    %596 = vector.broadcast %cst_261 : f32 to vector<8x128xf32>
    %597 = arith.addf %595, %596 : vector<8x128xf32>
    %cst_262 = arith.constant 5.000000e-01 : f32
    %598 = vector.broadcast %cst_262 : f32 to vector<8x128xf32>
    %599 = arith.mulf %598, %597 : vector<8x128xf32>
    %600 = arith.mulf %589, %566 : vector<8x128xf32>
    %601 = arith.mulf %581, %591 : vector<8x128xf32>
    %602 = arith.addf %600, %601 : vector<8x128xf32>
    %603 = math.tanh %602 : vector<8x128xf32>
    %604 = arith.mulf %599, %603 : vector<8x128xf32>
    %c56_263 = arith.constant 56 : index
    %c0_264 = arith.constant 0 : index
    %605 = vector.load %arg14[%c56_263, %c0_264] : memref<64x512xf32, #tpu.memory_space<vmem>>, vector<8x512xf32>
    %606 = arith.truncf %604 : vector<8x128xf32> to vector<8x128xbf16>
    %c0_265 = arith.constant 0 : index
    %c0_266 = arith.constant 0 : index
    %607 = vector.load %arg7[%c0_265, %c0_266] : memref<128x512xbf16, #tpu.memory_space<vmem>>, vector<128x512xbf16>
    %cst_267 = arith.constant dense<0.000000e+00> : vector<8x512xf32>
    %608 = tpu.matmul %606, %607, %cst_267 {dimension_numbers = #tpu.dot_dimension_numbers<[1], [0], [0], [1], [0, 0, 1, 1], [], []>} : vector<8x128xbf16>, vector<128x512xbf16>, vector<8x512xf32> -> vector<8x512xf32>
    %609 = arith.addf %605, %608 : vector<8x512xf32>
    %610 = vector.extract_strided_slice %609 {offsets = [0, 0], sizes = [8, 128], strides = [1, 1]} : vector<8x512xf32> to vector<8x128xf32>
    %cst_268 = arith.constant 5.000000e-01 : f32
    %611 = vector.broadcast %cst_268 : f32 to vector<8x128xf32>
    %612 = arith.mulf %611, %610 : vector<8x128xf32>
    %613 = math.tanh %612 : vector<8x128xf32>
    %cst_269 = arith.constant 1.000000e+00 : f32
    %614 = vector.broadcast %cst_269 : f32 to vector<8x128xf32>
    %615 = arith.addf %613, %614 : vector<8x128xf32>
    %cst_270 = arith.constant 5.000000e-01 : f32
    %616 = vector.broadcast %cst_270 : f32 to vector<8x128xf32>
    %617 = arith.mulf %616, %615 : vector<8x128xf32>
    %618 = vector.extract_strided_slice %609 {offsets = [0, 128], sizes = [8, 128], strides = [1, 1]} : vector<8x512xf32> to vector<8x128xf32>
    %cst_271 = arith.constant 5.000000e-01 : f32
    %619 = vector.broadcast %cst_271 : f32 to vector<8x128xf32>
    %620 = arith.mulf %619, %618 : vector<8x128xf32>
    %621 = math.tanh %620 : vector<8x128xf32>
    %cst_272 = arith.constant 1.000000e+00 : f32
    %622 = vector.broadcast %cst_272 : f32 to vector<8x128xf32>
    %623 = arith.addf %621, %622 : vector<8x128xf32>
    %cst_273 = arith.constant 5.000000e-01 : f32
    %624 = vector.broadcast %cst_273 : f32 to vector<8x128xf32>
    %625 = arith.mulf %624, %623 : vector<8x128xf32>
    %626 = vector.extract_strided_slice %609 {offsets = [0, 256], sizes = [8, 128], strides = [1, 1]} : vector<8x512xf32> to vector<8x128xf32>
    %627 = math.tanh %626 : vector<8x128xf32>
    %628 = vector.extract_strided_slice %609 {offsets = [0, 384], sizes = [8, 128], strides = [1, 1]} : vector<8x512xf32> to vector<8x128xf32>
    %cst_274 = arith.constant 5.000000e-01 : f32
    %629 = vector.broadcast %cst_274 : f32 to vector<8x128xf32>
    %630 = arith.mulf %629, %628 : vector<8x128xf32>
    %631 = math.tanh %630 : vector<8x128xf32>
    %cst_275 = arith.constant 1.000000e+00 : f32
    %632 = vector.broadcast %cst_275 : f32 to vector<8x128xf32>
    %633 = arith.addf %631, %632 : vector<8x128xf32>
    %cst_276 = arith.constant 5.000000e-01 : f32
    %634 = vector.broadcast %cst_276 : f32 to vector<8x128xf32>
    %635 = arith.mulf %634, %633 : vector<8x128xf32>
    %636 = arith.mulf %625, %602 : vector<8x128xf32>
    %637 = arith.mulf %617, %627 : vector<8x128xf32>
    %638 = arith.addf %636, %637 : vector<8x128xf32>
    %639 = math.tanh %638 : vector<8x128xf32>
    %640 = arith.mulf %635, %639 : vector<8x128xf32>
    %c1_277 = arith.constant 1 : index
    %c0_278 = arith.constant 0 : index
    %c0_279 = arith.constant 0 : index
    %641 = vector.load %arg12[%c1_277, %c0_278, %c0_279] : memref<2x8x128xf32, #tpu.memory_space<vmem>>, vector<1x8x128xf32>
    %642 = vector.shape_cast %641 : vector<1x8x128xf32> to vector<8x128xf32>
    %643 = vector.shape_cast %640 : vector<8x128xf32> to vector<1x8x128xf32>
    tpu.vector_store %arg12[%c1_277, %c0_278, %c0_279], %643 {strides = array<i32>} : memref<2x8x128xf32, #tpu.memory_space<vmem>>, vector<1x8x128xf32>,
    %c1_280 = arith.constant 1 : index
    %c0_281 = arith.constant 0 : index
    %c0_282 = arith.constant 0 : index
    %644 = vector.load %arg13[%c1_280, %c0_281, %c0_282] : memref<2x8x128xf32, #tpu.memory_space<vmem>>, vector<1x8x128xf32>
    %645 = vector.shape_cast %644 : vector<1x8x128xf32> to vector<8x128xf32>
    %646 = vector.shape_cast %638 : vector<8x128xf32> to vector<1x8x128xf32>
    tpu.vector_store %arg13[%c1_280, %c0_281, %c0_282], %646 {strides = array<i32>} : memref<2x8x128xf32, #tpu.memory_space<vmem>>, vector<1x8x128xf32>,
    %c0_i32_283 = arith.constant 0 : i32
    %647 = arith.cmpi eq, %arg1, %c0_i32_283 : i32
    %648 = arith.extui %647 : i1 to i32
    %c0_i32_284 = arith.constant 0 : i32
    %649 = arith.cmpi ne, %648, %c0_i32_284 : i32
    scf.if %649 {
      %c1_285 = arith.constant 1 : index
      %c0_286 = arith.constant 0 : index
      %c0_287 = arith.constant 0 : index
      %650 = vector.load %arg12[%c1_285, %c0_286, %c0_287] : memref<2x8x128xf32, #tpu.memory_space<vmem>>, vector<1x8x128xf32>
      %651 = vector.shape_cast %650 : vector<1x8x128xf32> to vector<8x128xf32>
      %652 = arith.truncf %651 : vector<8x128xf32> to vector<8x128xbf16>
      %c0_288 = arith.constant 0 : index
      %c0_289 = arith.constant 0 : index
      %653 = vector.load %arg9[%c0_288, %c0_289] : memref<128x128xbf16, #tpu.memory_space<vmem>>, vector<128x128xbf16>
      %cst_290 = arith.constant dense<0.000000e+00> : vector<8x128xf32>
      %654 = tpu.matmul %652, %653, %cst_290 {dimension_numbers = #tpu.dot_dimension_numbers<[1], [0], [0], [1], [0, 0, 1, 1], [], []>} : vector<8x128xbf16>, vector<128x128xbf16>, vector<8x128xf32> -> vector<8x128xf32>
      %c0_291 = arith.constant 0 : index
      %c0_292 = arith.constant 0 : index
      %655 = vector.load %arg10[%c0_291, %c0_292] : memref<1x128xf32, #tpu.memory_space<vmem>>, vector<1x128xf32>
      %656 = vector.broadcast %655 : vector<1x128xf32> to vector<8x128xf32>
      %657 = arith.addf %654, %656 : vector<8x128xf32>
      %c0_293 = arith.constant 0 : index
      %c0_294 = arith.constant 0 : index
      %658 = vector.load %arg11[%c0_293, %c0_294] : memref<8x128xf32, #tpu.memory_space<vmem>>, vector<8x128xf32>
      tpu.vector_store %arg11[%c0_293, %c0_294], %657 {strides = array<i32>} : memref<8x128xf32, #tpu.memory_space<vmem>>, vector<8x128xf32>,
    } else {
    }
    return
  }
  func.func @transform_0(%arg0: i32, %arg1: i32) -> (i32, i32, i32) {
    %c0_i32 = arith.constant 0 : i32
    %c0_i32_0 = arith.constant 0 : i32
    return %arg1, %arg0, %c0_i32 : i32, i32, i32
  }
  func.func @transform_1(%arg0: i32, %arg1: i32) -> (i32, i32) {
    %c0_i32 = arith.constant 0 : i32
    %c0_i32_0 = arith.constant 0 : i32
    %c0_i32_1 = arith.constant 0 : i32
    return %c0_i32, %c0_i32_0 : i32, i32
  }
  func.func @transform_2(%arg0: i32, %arg1: i32) -> (i32, i32) {
    %c0_i32 = arith.constant 0 : i32
    %c0_i32_0 = arith.constant 0 : i32
    %c0_i32_1 = arith.constant 0 : i32
    return %c0_i32, %c0_i32_0 : i32, i32
  }
  func.func @transform_3(%arg0: i32, %arg1: i32) -> (i32, i32) {
    %c0_i32 = arith.constant 0 : i32
    %c0_i32_0 = arith.constant 0 : i32
    %c0_i32_1 = arith.constant 0 : i32
    return %c0_i32, %c0_i32_0 : i32, i32
  }
  func.func @transform_4(%arg0: i32, %arg1: i32) -> (i32, i32) {
    %c0_i32 = arith.constant 0 : i32
    %c0_i32_0 = arith.constant 0 : i32
    %c0_i32_1 = arith.constant 0 : i32
    return %c0_i32, %c0_i32_0 : i32, i32
  }
  func.func @transform_5(%arg0: i32, %arg1: i32) -> (i32, i32) {
    %c0_i32 = arith.constant 0 : i32
    %c0_i32_0 = arith.constant 0 : i32
    %c0_i32_1 = arith.constant 0 : i32
    return %c0_i32, %c0_i32_0 : i32, i32
  }
  func.func @transform_6(%arg0: i32, %arg1: i32) -> (i32, i32) {
    %c0_i32 = arith.constant 0 : i32
    %c0_i32_0 = arith.constant 0 : i32
    %c0_i32_1 = arith.constant 0 : i32
    return %c0_i32, %c0_i32_0 : i32, i32
  }
  func.func @transform_7(%arg0: i32, %arg1: i32) -> (i32, i32) {
    %c0_i32 = arith.constant 0 : i32
    %c0_i32_0 = arith.constant 0 : i32
    %c0_i32_1 = arith.constant 0 : i32
    return %c0_i32, %c0_i32_0 : i32, i32
  }
  func.func @transform_8(%arg0: i32, %arg1: i32) -> (i32, i32) {
    %c0_i32 = arith.constant 0 : i32
    %c0_i32_0 = arith.constant 0 : i32
    %c0_i32_1 = arith.constant 0 : i32
    return %c0_i32, %c0_i32_0 : i32, i32
  }
  func.func @transform_9(%arg0: i32, %arg1: i32) -> (i32, i32) {
    %c0_i32 = arith.constant 0 : i32
    %c0_i32_0 = arith.constant 0 : i32
    return %arg0, %c0_i32 : i32, i32
  }
}

module attributes {stable_mosaic.version = 11 : i64} {
  func.func @kernel(%arg0: i32, %arg1: i32, %arg2: memref<8x8x16xbf16, #tpu.memory_space<vmem>>, %arg3: memref<16x512xbf16, #tpu.memory_space<vmem>>, %arg4: memref<128x512xbf16, #tpu.memory_space<vmem>>, %arg5: memref<1x512xf32, #tpu.memory_space<vmem>>, %arg6: memref<128x512xbf16, #tpu.memory_space<vmem>>, %arg7: memref<128x512xbf16, #tpu.memory_space<vmem>>, %arg8: memref<1x512xf32, #tpu.memory_space<vmem>>, %arg9: memref<128x128xbf16, #tpu.memory_space<vmem>>, %arg10: memref<1x128xf32, #tpu.memory_space<vmem>>, %arg11: memref<8x128xf32, #tpu.memory_space<vmem>>, %arg12: memref<2x8x128xf32, #tpu.memory_space<vmem>>, %arg13: memref<2x8x128xf32, #tpu.memory_space<vmem>>, %arg14: memref<64x512xf32, #tpu.memory_space<vmem>>, %arg15: memref<2x64x128xbf16, #tpu.memory_space<vmem>>) attributes {dimension_semantics = [#tpu.dimension_semantics<parallel>, #tpu.dimension_semantics<arbitrary>], iteration_bounds = array<i64: 1, 1>, scalar_prefetch = 0 : i64, scratch_operands = 4 : i64, tpu.core_type = #tpu.core_type<tc>, window_params = [{transform_indices = @transform_0, window_bounds = array<i64: 8, 8, 16>}, {pipeline_mode = #tpu.pipeline_mode<synchronous>, transform_indices = @transform_1, window_bounds = array<i64: 16, 512>}, {pipeline_mode = #tpu.pipeline_mode<synchronous>, transform_indices = @transform_2, window_bounds = array<i64: 128, 512>}, {pipeline_mode = #tpu.pipeline_mode<synchronous>, transform_indices = @transform_3, window_bounds = array<i64: 1, 512>}, {pipeline_mode = #tpu.pipeline_mode<synchronous>, transform_indices = @transform_4, window_bounds = array<i64: 128, 512>}, {pipeline_mode = #tpu.pipeline_mode<synchronous>, transform_indices = @transform_5, window_bounds = array<i64: 128, 512>}, {pipeline_mode = #tpu.pipeline_mode<synchronous>, transform_indices = @transform_6, window_bounds = array<i64: 1, 512>}, {pipeline_mode = #tpu.pipeline_mode<synchronous>, transform_indices = @transform_7, window_bounds = array<i64: 128, 128>}, {pipeline_mode = #tpu.pipeline_mode<synchronous>, transform_indices = @transform_8, window_bounds = array<i64: 1, 128>}, {transform_indices = @transform_9, window_bounds = array<i64: 8, 128>}]} {
    %c0_i32 = arith.constant 0 : i32
    %0 = arith.cmpi eq, %arg1, %c0_i32 : i32
    %1 = arith.extui %0 : i1 to i32
    %c0_i32_0 = arith.constant 0 : i32
    %2 = arith.cmpi ne, %1, %c0_i32_0 : i32
    scf.if %2 {
      %cst_285 = arith.constant 0.000000e+00 : f32
      %650 = vector.broadcast %cst_285 : f32 to vector<2x8x128xf32>
      %c0_286 = arith.constant 0 : index
      %c0_287 = arith.constant 0 : index
      %c0_288 = arith.constant 0 : index
      %651 = vector.load %arg12[%c0_286, %c0_287, %c0_288] : memref<2x8x128xf32, #tpu.memory_space<vmem>>, vector<2x8x128xf32>
      tpu.vector_store %arg12[%c0_286, %c0_287, %c0_288], %650 {strides = array<i32>} : memref<2x8x128xf32, #tpu.memory_space<vmem>>, vector<2x8x128xf32>,
      %cst_289 = arith.constant 0.000000e+00 : f32
      %652 = vector.broadcast %cst_289 : f32 to vector<2x8x128xf32>
      %c0_290 = arith.constant 0 : index
      %c0_291 = arith.constant 0 : index
      %c0_292 = arith.constant 0 : index
      %653 = vector.load %arg13[%c0_290, %c0_291, %c0_292] : memref<2x8x128xf32, #tpu.memory_space<vmem>>, vector<2x8x128xf32>
      tpu.vector_store %arg13[%c0_290, %c0_291, %c0_292], %652 {strides = array<i32>} : memref<2x8x128xf32, #tpu.memory_space<vmem>>, vector<2x8x128xf32>,
    } else {
    }
    %c0 = arith.constant 0 : index
    %c0_1 = arith.constant 0 : index
    %c0_2 = arith.constant 0 : index
    %3 = vector.load %arg2[%c0, %c0_1, %c0_2] : memref<8x8x16xbf16, #tpu.memory_space<vmem>>, vector<8x8x16xbf16>
    %4 = vector.shape_cast %3 : vector<8x8x16xbf16> to vector<64x16xbf16>
    %c0_3 = arith.constant 0 : index
    %c0_4 = arith.constant 0 : index
    %5 = vector.load %arg3[%c0_3, %c0_4] : memref<16x512xbf16, #tpu.memory_space<vmem>>, vector<16x512xbf16>
    %cst = arith.constant dense<0.000000e+00> : vector<64x512xf32>
    %6 = tpu.matmul %4, %5, %cst {dimension_numbers = #tpu.dot_dimension_numbers<[1], [0], [0], [1], [0, 0, 1, 1], [], []>} : vector<64x16xbf16>, vector<16x512xbf16>, vector<64x512xf32> -> vector<64x512xf32>
    %c0_5 = arith.constant 0 : index
    %c0_6 = arith.constant 0 : index
    %7 = vector.load %arg5[%c0_5, %c0_6] : memref<1x512xf32, #tpu.memory_space<vmem>>, vector<1x512xf32>
    %8 = vector.broadcast %7 : vector<1x512xf32> to vector<64x512xf32>
    %9 = arith.addf %6, %8 : vector<64x512xf32>
    %c0_7 = arith.constant 0 : index
    %c0_8 = arith.constant 0 : index
    %10 = vector.load %arg14[%c0_7, %c0_8] : memref<64x512xf32, #tpu.memory_space<vmem>>, vector<64x512xf32>
    tpu.vector_store %arg14[%c0_7, %c0_8], %9 {strides = array<i32>} : memref<64x512xf32, #tpu.memory_space<vmem>>, vector<64x512xf32>,
    %c0_9 = arith.constant 0 : index
    %c0_10 = arith.constant 0 : index
    %c0_11 = arith.constant 0 : index
    %11 = vector.load %arg12[%c0_9, %c0_10, %c0_11] : memref<2x8x128xf32, #tpu.memory_space<vmem>>, vector<1x8x128xf32>
    %12 = vector.shape_cast %11 : vector<1x8x128xf32> to vector<8x128xf32>
    %c0_12 = arith.constant 0 : index
    %c0_13 = arith.constant 0 : index
    %c0_14 = arith.constant 0 : index
    %13 = vector.load %arg13[%c0_12, %c0_13, %c0_14] : memref<2x8x128xf32, #tpu.memory_space<vmem>>, vector<1x8x128xf32>
    %14 = vector.shape_cast %13 : vector<1x8x128xf32> to vector<8x128xf32>
    %c0_15 = arith.constant 0 : index
    %c0_16 = arith.constant 0 : index
    %15 = vector.load %arg14[%c0_15, %c0_16] : memref<64x512xf32, #tpu.memory_space<vmem>>, vector<8x512xf32>
    %16 = arith.truncf %12 : vector<8x128xf32> to vector<8x128xbf16>
    %c0_17 = arith.constant 0 : index
    %c0_18 = arith.constant 0 : index
    %17 = vector.load %arg4[%c0_17, %c0_18] : memref<128x512xbf16, #tpu.memory_space<vmem>>, vector<128x512xbf16>
    %cst_19 = arith.constant dense<0.000000e+00> : vector<8x512xf32>
    %18 = tpu.matmul %16, %17, %cst_19 {dimension_numbers = #tpu.dot_dimension_numbers<[1], [0], [0], [1], [0, 0, 1, 1], [], []>} : vector<8x128xbf16>, vector<128x512xbf16>, vector<8x512xf32> -> vector<8x512xf32>
    %19 = arith.addf %15, %18 : vector<8x512xf32>
    %20 = vector.extract_strided_slice %19 {offsets = [0, 0], sizes = [8, 128], strides = [1, 1]} : vector<8x512xf32> to vector<8x128xf32>
    %cst_20 = arith.constant 5.000000e-01 : f32
    %21 = vector.broadcast %cst_20 : f32 to vector<8x128xf32>
    %22 = arith.mulf %21, %20 : vector<8x128xf32>
    %23 = math.tanh %22 : vector<8x128xf32>
    %cst_21 = arith.constant 1.000000e+00 : f32
    %24 = vector.broadcast %cst_21 : f32 to vector<8x128xf32>
    %25 = arith.addf %23, %24 : vector<8x128xf32>
    %cst_22 = arith.constant 5.000000e-01 : f32
    %26 = vector.broadcast %cst_22 : f32 to vector<8x128xf32>
    %27 = arith.mulf %26, %25 : vector<8x128xf32>
    %28 = vector.extract_strided_slice %19 {offsets = [0, 128], sizes = [8, 128], strides = [1, 1]} : vector<8x512xf32> to vector<8x128xf32>
    %cst_23 = arith.constant 5.000000e-01 : f32
    %29 = vector.broadcast %cst_23 : f32 to vector<8x128xf32>
    %30 = arith.mulf %29, %28 : vector<8x128xf32>
    %31 = math.tanh %30 : vector<8x128xf32>
    %cst_24 = arith.constant 1.000000e+00 : f32
    %32 = vector.broadcast %cst_24 : f32 to vector<8x128xf32>
    %33 = arith.addf %31, %32 : vector<8x128xf32>
    %cst_25 = arith.constant 5.000000e-01 : f32
    %34 = vector.broadcast %cst_25 : f32 to vector<8x128xf32>
    %35 = arith.mulf %34, %33 : vector<8x128xf32>
    %36 = vector.extract_strided_slice %19 {offsets = [0, 256], sizes = [8, 128], strides = [1, 1]} : vector<8x512xf32> to vector<8x128xf32>
    %37 = math.tanh %36 : vector<8x128xf32>
    %38 = vector.extract_strided_slice %19 {offsets = [0, 384], sizes = [8, 128], strides = [1, 1]} : vector<8x512xf32> to vector<8x128xf32>
    %cst_26 = arith.constant 5.000000e-01 : f32
    %39 = vector.broadcast %cst_26 : f32 to vector<8x128xf32>
    %40 = arith.mulf %39, %38 : vector<8x128xf32>
    %41 = math.tanh %40 : vector<8x128xf32>
    %cst_27 = arith.constant 1.000000e+00 : f32
    %42 = vector.broadcast %cst_27 : f32 to vector<8x128xf32>
    %43 = arith.addf %41, %42 : vector<8x128xf32>
    %cst_28 = arith.constant 5.000000e-01 : f32
    %44 = vector.broadcast %cst_28 : f32 to vector<8x128xf32>
    %45 = arith.mulf %44, %43 : vector<8x128xf32>
    %46 = arith.mulf %35, %14 : vector<8x128xf32>
    %47 = arith.mulf %27, %37 : vector<8x128xf32>
    %48 = arith.addf %46, %47 : vector<8x128xf32>
    %49 = math.tanh %48 : vector<8x128xf32>
    %50 = arith.mulf %45, %49 : vector<8x128xf32>
    %51 = arith.truncf %50 : vector<8x128xf32> to vector<8x128xbf16>
    %c0_29 = arith.constant 0 : index
    %c0_30 = arith.constant 0 : index
    %c0_31 = arith.constant 0 : index
    %52 = vector.load %arg15[%c0_29, %c0_30, %c0_31] : memref<2x64x128xbf16, #tpu.memory_space<vmem>>, vector<1x8x128xbf16>
    %53 = vector.shape_cast %52 : vector<1x8x128xbf16> to vector<8x128xbf16>
    %54 = vector.shape_cast %51 : vector<8x128xbf16> to vector<1x8x128xbf16>
    tpu.vector_store %arg15[%c0_29, %c0_30, %c0_31], %54 {strides = array<i32>} : memref<2x64x128xbf16, #tpu.memory_space<vmem>>, vector<1x8x128xbf16>,
    %c8 = arith.constant 8 : index
    %c0_32 = arith.constant 0 : index
    %55 = vector.load %arg14[%c8, %c0_32] : memref<64x512xf32, #tpu.memory_space<vmem>>, vector<8x512xf32>
    %56 = arith.truncf %50 : vector<8x128xf32> to vector<8x128xbf16>
    %c0_33 = arith.constant 0 : index
    %c0_34 = arith.constant 0 : index
    %57 = vector.load %arg4[%c0_33, %c0_34] : memref<128x512xbf16, #tpu.memory_space<vmem>>, vector<128x512xbf16>
    %cst_35 = arith.constant dense<0.000000e+00> : vector<8x512xf32>
    %58 = tpu.matmul %56, %57, %cst_35 {dimension_numbers = #tpu.dot_dimension_numbers<[1], [0], [0], [1], [0, 0, 1, 1], [], []>} : vector<8x128xbf16>, vector<128x512xbf16>, vector<8x512xf32> -> vector<8x512xf32>
    %59 = arith.addf %55, %58 : vector<8x512xf32>
    %60 = vector.extract_strided_slice %59 {offsets = [0, 0], sizes = [8, 128], strides = [1, 1]} : vector<8x512xf32> to vector<8x128xf32>
    %cst_36 = arith.constant 5.000000e-01 : f32
    %61 = vector.broadcast %cst_36 : f32 to vector<8x128xf32>
    %62 = arith.mulf %61, %60 : vector<8x128xf32>
    %63 = math.tanh %62 : vector<8x128xf32>
    %cst_37 = arith.constant 1.000000e+00 : f32
    %64 = vector.broadcast %cst_37 : f32 to vector<8x128xf32>
    %65 = arith.addf %63, %64 : vector<8x128xf32>
    %cst_38 = arith.constant 5.000000e-01 : f32
    %66 = vector.broadcast %cst_38 : f32 to vector<8x128xf32>
    %67 = arith.mulf %66, %65 : vector<8x128xf32>
    %68 = vector.extract_strided_slice %59 {offsets = [0, 128], sizes = [8, 128], strides = [1, 1]} : vector<8x512xf32> to vector<8x128xf32>
    %cst_39 = arith.constant 5.000000e-01 : f32
    %69 = vector.broadcast %cst_39 : f32 to vector<8x128xf32>
    %70 = arith.mulf %69, %68 : vector<8x128xf32>
    %71 = math.tanh %70 : vector<8x128xf32>
    %cst_40 = arith.constant 1.000000e+00 : f32
    %72 = vector.broadcast %cst_40 : f32 to vector<8x128xf32>
    %73 = arith.addf %71, %72 : vector<8x128xf32>
    %cst_41 = arith.constant 5.000000e-01 : f32
    %74 = vector.broadcast %cst_41 : f32 to vector<8x128xf32>
    %75 = arith.mulf %74, %73 : vector<8x128xf32>
    %76 = vector.extract_strided_slice %59 {offsets = [0, 256], sizes = [8, 128], strides = [1, 1]} : vector<8x512xf32> to vector<8x128xf32>
    %77 = math.tanh %76 : vector<8x128xf32>
    %78 = vector.extract_strided_slice %59 {offsets = [0, 384], sizes = [8, 128], strides = [1, 1]} : vector<8x512xf32> to vector<8x128xf32>
    %cst_42 = arith.constant 5.000000e-01 : f32
    %79 = vector.broadcast %cst_42 : f32 to vector<8x128xf32>
    %80 = arith.mulf %79, %78 : vector<8x128xf32>
    %81 = math.tanh %80 : vector<8x128xf32>
    %cst_43 = arith.constant 1.000000e+00 : f32
    %82 = vector.broadcast %cst_43 : f32 to vector<8x128xf32>
    %83 = arith.addf %81, %82 : vector<8x128xf32>
    %cst_44 = arith.constant 5.000000e-01 : f32
    %84 = vector.broadcast %cst_44 : f32 to vector<8x128xf32>
    %85 = arith.mulf %84, %83 : vector<8x128xf32>
    %86 = arith.mulf %75, %48 : vector<8x128xf32>
    %87 = arith.mulf %67, %77 : vector<8x128xf32>
    %88 = arith.addf %86, %87 : vector<8x128xf32>
    %89 = math.tanh %88 : vector<8x128xf32>
    %90 = arith.mulf %85, %89 : vector<8x128xf32>
    %91 = arith.truncf %90 : vector<8x128xf32> to vector<8x128xbf16>
    %c0_45 = arith.constant 0 : index
    %c8_46 = arith.constant 8 : index
    %c0_47 = arith.constant 0 : index
    %92 = vector.load %arg15[%c0_45, %c8_46, %c0_47] : memref<2x64x128xbf16, #tpu.memory_space<vmem>>, vector<1x8x128xbf16>
    %93 = vector.shape_cast %92 : vector<1x8x128xbf16> to vector<8x128xbf16>
    %94 = vector.shape_cast %91 : vector<8x128xbf16> to vector<1x8x128xbf16>
    tpu.vector_store %arg15[%c0_45, %c8_46, %c0_47], %94 {strides = array<i32>} : memref<2x64x128xbf16, #tpu.memory_space<vmem>>, vector<1x8x128xbf16>,
    %c16 = arith.constant 16 : index
    %c0_48 = arith.constant 0 : index
    %95 = vector.load %arg14[%c16, %c0_48] : memref<64x512xf32, #tpu.memory_space<vmem>>, vector<8x512xf32>
    %96 = arith.truncf %90 : vector<8x128xf32> to vector<8x128xbf16>
    %c0_49 = arith.constant 0 : index
    %c0_50 = arith.constant 0 : index
    %97 = vector.load %arg4[%c0_49, %c0_50] : memref<128x512xbf16, #tpu.memory_space<vmem>>, vector<128x512xbf16>
    %cst_51 = arith.constant dense<0.000000e+00> : vector<8x512xf32>
    %98 = tpu.matmul %96, %97, %cst_51 {dimension_numbers = #tpu.dot_dimension_numbers<[1], [0], [0], [1], [0, 0, 1, 1], [], []>} : vector<8x128xbf16>, vector<128x512xbf16>, vector<8x512xf32> -> vector<8x512xf32>
    %99 = arith.addf %95, %98 : vector<8x512xf32>
    %100 = vector.extract_strided_slice %99 {offsets = [0, 0], sizes = [8, 128], strides = [1, 1]} : vector<8x512xf32> to vector<8x128xf32>
    %cst_52 = arith.constant 5.000000e-01 : f32
    %101 = vector.broadcast %cst_52 : f32 to vector<8x128xf32>
    %102 = arith.mulf %101, %100 : vector<8x128xf32>
    %103 = math.tanh %102 : vector<8x128xf32>
    %cst_53 = arith.constant 1.000000e+00 : f32
    %104 = vector.broadcast %cst_53 : f32 to vector<8x128xf32>
    %105 = arith.addf %103, %104 : vector<8x128xf32>
    %cst_54 = arith.constant 5.000000e-01 : f32
    %106 = vector.broadcast %cst_54 : f32 to vector<8x128xf32>
    %107 = arith.mulf %106, %105 : vector<8x128xf32>
    %108 = vector.extract_strided_slice %99 {offsets = [0, 128], sizes = [8, 128], strides = [1, 1]} : vector<8x512xf32> to vector<8x128xf32>
    %cst_55 = arith.constant 5.000000e-01 : f32
    %109 = vector.broadcast %cst_55 : f32 to vector<8x128xf32>
    %110 = arith.mulf %109, %108 : vector<8x128xf32>
    %111 = math.tanh %110 : vector<8x128xf32>
    %cst_56 = arith.constant 1.000000e+00 : f32
    %112 = vector.broadcast %cst_56 : f32 to vector<8x128xf32>
    %113 = arith.addf %111, %112 : vector<8x128xf32>
    %cst_57 = arith.constant 5.000000e-01 : f32
    %114 = vector.broadcast %cst_57 : f32 to vector<8x128xf32>
    %115 = arith.mulf %114, %113 : vector<8x128xf32>
    %116 = vector.extract_strided_slice %99 {offsets = [0, 256], sizes = [8, 128], strides = [1, 1]} : vector<8x512xf32> to vector<8x128xf32>
    %117 = math.tanh %116 : vector<8x128xf32>
    %118 = vector.extract_strided_slice %99 {offsets = [0, 384], sizes = [8, 128], strides = [1, 1]} : vector<8x512xf32> to vector<8x128xf32>
    %cst_58 = arith.constant 5.000000e-01 : f32
    %119 = vector.broadcast %cst_58 : f32 to vector<8x128xf32>
    %120 = arith.mulf %119, %118 : vector<8x128xf32>
    %121 = math.tanh %120 : vector<8x128xf32>
    %cst_59 = arith.constant 1.000000e+00 : f32
    %122 = vector.broadcast %cst_59 : f32 to vector<8x128xf32>
    %123 = arith.addf %121, %122 : vector<8x128xf32>
    %cst_60 = arith.constant 5.000000e-01 : f32
    %124 = vector.broadcast %cst_60 : f32 to vector<8x128xf32>
    %125 = arith.mulf %124, %123 : vector<8x128xf32>
    %126 = arith.mulf %115, %88 : vector<8x128xf32>
    %127 = arith.mulf %107, %117 : vector<8x128xf32>
    %128 = arith.addf %126, %127 : vector<8x128xf32>
    %129 = math.tanh %128 : vector<8x128xf32>
    %130 = arith.mulf %125, %129 : vector<8x128xf32>
    %131 = arith.truncf %130 : vector<8x128xf32> to vector<8x128xbf16>
    %c0_61 = arith.constant 0 : index
    %c16_62 = arith.constant 16 : index
    %c0_63 = arith.constant 0 : index
    %132 = vector.load %arg15[%c0_61, %c16_62, %c0_63] : memref<2x64x128xbf16, #tpu.memory_space<vmem>>, vector<1x8x128xbf16>
    %133 = vector.shape_cast %132 : vector<1x8x128xbf16> to vector<8x128xbf16>
    %134 = vector.shape_cast %131 : vector<8x128xbf16> to vector<1x8x128xbf16>
    tpu.vector_store %arg15[%c0_61, %c16_62, %c0_63], %134 {strides = array<i32>} : memref<2x64x128xbf16, #tpu.memory_space<vmem>>, vector<1x8x128xbf16>,
    %c24 = arith.constant 24 : index
    %c0_64 = arith.constant 0 : index
    %135 = vector.load %arg14[%c24, %c0_64] : memref<64x512xf32, #tpu.memory_space<vmem>>, vector<8x512xf32>
    %136 = arith.truncf %130 : vector<8x128xf32> to vector<8x128xbf16>
    %c0_65 = arith.constant 0 : index
    %c0_66 = arith.constant 0 : index
    %137 = vector.load %arg4[%c0_65, %c0_66] : memref<128x512xbf16, #tpu.memory_space<vmem>>, vector<128x512xbf16>
    %cst_67 = arith.constant dense<0.000000e+00> : vector<8x512xf32>
    %138 = tpu.matmul %136, %137, %cst_67 {dimension_numbers = #tpu.dot_dimension_numbers<[1], [0], [0], [1], [0, 0, 1, 1], [], []>} : vector<8x128xbf16>, vector<128x512xbf16>, vector<8x512xf32> -> vector<8x512xf32>
    %139 = arith.addf %135, %138 : vector<8x512xf32>
    %140 = vector.extract_strided_slice %139 {offsets = [0, 0], sizes = [8, 128], strides = [1, 1]} : vector<8x512xf32> to vector<8x128xf32>
    %cst_68 = arith.constant 5.000000e-01 : f32
    %141 = vector.broadcast %cst_68 : f32 to vector<8x128xf32>
    %142 = arith.mulf %141, %140 : vector<8x128xf32>
    %143 = math.tanh %142 : vector<8x128xf32>
    %cst_69 = arith.constant 1.000000e+00 : f32
    %144 = vector.broadcast %cst_69 : f32 to vector<8x128xf32>
    %145 = arith.addf %143, %144 : vector<8x128xf32>
    %cst_70 = arith.constant 5.000000e-01 : f32
    %146 = vector.broadcast %cst_70 : f32 to vector<8x128xf32>
    %147 = arith.mulf %146, %145 : vector<8x128xf32>
    %148 = vector.extract_strided_slice %139 {offsets = [0, 128], sizes = [8, 128], strides = [1, 1]} : vector<8x512xf32> to vector<8x128xf32>
    %cst_71 = arith.constant 5.000000e-01 : f32
    %149 = vector.broadcast %cst_71 : f32 to vector<8x128xf32>
    %150 = arith.mulf %149, %148 : vector<8x128xf32>
    %151 = math.tanh %150 : vector<8x128xf32>
    %cst_72 = arith.constant 1.000000e+00 : f32
    %152 = vector.broadcast %cst_72 : f32 to vector<8x128xf32>
    %153 = arith.addf %151, %152 : vector<8x128xf32>
    %cst_73 = arith.constant 5.000000e-01 : f32
    %154 = vector.broadcast %cst_73 : f32 to vector<8x128xf32>
    %155 = arith.mulf %154, %153 : vector<8x128xf32>
    %156 = vector.extract_strided_slice %139 {offsets = [0, 256], sizes = [8, 128], strides = [1, 1]} : vector<8x512xf32> to vector<8x128xf32>
    %157 = math.tanh %156 : vector<8x128xf32>
    %158 = vector.extract_strided_slice %139 {offsets = [0, 384], sizes = [8, 128], strides = [1, 1]} : vector<8x512xf32> to vector<8x128xf32>
    %cst_74 = arith.constant 5.000000e-01 : f32
    %159 = vector.broadcast %cst_74 : f32 to vector<8x128xf32>
    %160 = arith.mulf %159, %158 : vector<8x128xf32>
    %161 = math.tanh %160 : vector<8x128xf32>
    %cst_75 = arith.constant 1.000000e+00 : f32
    %162 = vector.broadcast %cst_75 : f32 to vector<8x128xf32>
    %163 = arith.addf %161, %162 : vector<8x128xf32>
    %cst_76 = arith.constant 5.000000e-01 : f32
    %164 = vector.broadcast %cst_76 : f32 to vector<8x128xf32>
    %165 = arith.mulf %164, %163 : vector<8x128xf32>
    %166 = arith.mulf %155, %128 : vector<8x128xf32>
    %167 = arith.mulf %147, %157 : vector<8x128xf32>
    %168 = arith.addf %166, %167 : vector<8x128xf32>
    %169 = math.tanh %168 : vector<8x128xf32>
    %170 = arith.mulf %165, %169 : vector<8x128xf32>
    %171 = arith.truncf %170 : vector<8x128xf32> to vector<8x128xbf16>
    %c0_77 = arith.constant 0 : index
    %c24_78 = arith.constant 24 : index
    %c0_79 = arith.constant 0 : index
    %172 = vector.load %arg15[%c0_77, %c24_78, %c0_79] : memref<2x64x128xbf16, #tpu.memory_space<vmem>>, vector<1x8x128xbf16>
    %173 = vector.shape_cast %172 : vector<1x8x128xbf16> to vector<8x128xbf16>
    %174 = vector.shape_cast %171 : vector<8x128xbf16> to vector<1x8x128xbf16>
    tpu.vector_store %arg15[%c0_77, %c24_78, %c0_79], %174 {strides = array<i32>} : memref<2x64x128xbf16, #tpu.memory_space<vmem>>, vector<1x8x128xbf16>,
    %c32 = arith.constant 32 : index
    %c0_80 = arith.constant 0 : index
    %175 = vector.load %arg14[%c32, %c0_80] : memref<64x512xf32, #tpu.memory_space<vmem>>, vector<8x512xf32>
    %176 = arith.truncf %170 : vector<8x128xf32> to vector<8x128xbf16>
    %c0_81 = arith.constant 0 : index
    %c0_82 = arith.constant 0 : index
    %177 = vector.load %arg4[%c0_81, %c0_82] : memref<128x512xbf16, #tpu.memory_space<vmem>>, vector<128x512xbf16>
    %cst_83 = arith.constant dense<0.000000e+00> : vector<8x512xf32>
    %178 = tpu.matmul %176, %177, %cst_83 {dimension_numbers = #tpu.dot_dimension_numbers<[1], [0], [0], [1], [0, 0, 1, 1], [], []>} : vector<8x128xbf16>, vector<128x512xbf16>, vector<8x512xf32> -> vector<8x512xf32>
    %179 = arith.addf %175, %178 : vector<8x512xf32>
    %180 = vector.extract_strided_slice %179 {offsets = [0, 0], sizes = [8, 128], strides = [1, 1]} : vector<8x512xf32> to vector<8x128xf32>
    %cst_84 = arith.constant 5.000000e-01 : f32
    %181 = vector.broadcast %cst_84 : f32 to vector<8x128xf32>
    %182 = arith.mulf %181, %180 : vector<8x128xf32>
    %183 = math.tanh %182 : vector<8x128xf32>
    %cst_85 = arith.constant 1.000000e+00 : f32
    %184 = vector.broadcast %cst_85 : f32 to vector<8x128xf32>
    %185 = arith.addf %183, %184 : vector<8x128xf32>
    %cst_86 = arith.constant 5.000000e-01 : f32
    %186 = vector.broadcast %cst_86 : f32 to vector<8x128xf32>
    %187 = arith.mulf %186, %185 : vector<8x128xf32>
    %188 = vector.extract_strided_slice %179 {offsets = [0, 128], sizes = [8, 128], strides = [1, 1]} : vector<8x512xf32> to vector<8x128xf32>
    %cst_87 = arith.constant 5.000000e-01 : f32
    %189 = vector.broadcast %cst_87 : f32 to vector<8x128xf32>
    %190 = arith.mulf %189, %188 : vector<8x128xf32>
    %191 = math.tanh %190 : vector<8x128xf32>
    %cst_88 = arith.constant 1.000000e+00 : f32
    %192 = vector.broadcast %cst_88 : f32 to vector<8x128xf32>
    %193 = arith.addf %191, %192 : vector<8x128xf32>
    %cst_89 = arith.constant 5.000000e-01 : f32
    %194 = vector.broadcast %cst_89 : f32 to vector<8x128xf32>
    %195 = arith.mulf %194, %193 : vector<8x128xf32>
    %196 = vector.extract_strided_slice %179 {offsets = [0, 256], sizes = [8, 128], strides = [1, 1]} : vector<8x512xf32> to vector<8x128xf32>
    %197 = math.tanh %196 : vector<8x128xf32>
    %198 = vector.extract_strided_slice %179 {offsets = [0, 384], sizes = [8, 128], strides = [1, 1]} : vector<8x512xf32> to vector<8x128xf32>
    %cst_90 = arith.constant 5.000000e-01 : f32
    %199 = vector.broadcast %cst_90 : f32 to vector<8x128xf32>
    %200 = arith.mulf %199, %198 : vector<8x128xf32>
    %201 = math.tanh %200 : vector<8x128xf32>
    %cst_91 = arith.constant 1.000000e+00 : f32
    %202 = vector.broadcast %cst_91 : f32 to vector<8x128xf32>
    %203 = arith.addf %201, %202 : vector<8x128xf32>
    %cst_92 = arith.constant 5.000000e-01 : f32
    %204 = vector.broadcast %cst_92 : f32 to vector<8x128xf32>
    %205 = arith.mulf %204, %203 : vector<8x128xf32>
    %206 = arith.mulf %195, %168 : vector<8x128xf32>
    %207 = arith.mulf %187, %197 : vector<8x128xf32>
    %208 = arith.addf %206, %207 : vector<8x128xf32>
    %209 = math.tanh %208 : vector<8x128xf32>
    %210 = arith.mulf %205, %209 : vector<8x128xf32>
    %211 = arith.truncf %210 : vector<8x128xf32> to vector<8x128xbf16>
    %c0_93 = arith.constant 0 : index
    %c32_94 = arith.constant 32 : index
    %c0_95 = arith.constant 0 : index
    %212 = vector.load %arg15[%c0_93, %c32_94, %c0_95] : memref<2x64x128xbf16, #tpu.memory_space<vmem>>, vector<1x8x128xbf16>
    %213 = vector.shape_cast %212 : vector<1x8x128xbf16> to vector<8x128xbf16>
    %214 = vector.shape_cast %211 : vector<8x128xbf16> to vector<1x8x128xbf16>
    tpu.vector_store %arg15[%c0_93, %c32_94, %c0_95], %214 {strides = array<i32>} : memref<2x64x128xbf16, #tpu.memory_space<vmem>>, vector<1x8x128xbf16>,
    %c40 = arith.constant 40 : index
    %c0_96 = arith.constant 0 : index
    %215 = vector.load %arg14[%c40, %c0_96] : memref<64x512xf32, #tpu.memory_space<vmem>>, vector<8x512xf32>
    %216 = arith.truncf %210 : vector<8x128xf32> to vector<8x128xbf16>
    %c0_97 = arith.constant 0 : index
    %c0_98 = arith.constant 0 : index
    %217 = vector.load %arg4[%c0_97, %c0_98] : memref<128x512xbf16, #tpu.memory_space<vmem>>, vector<128x512xbf16>
    %cst_99 = arith.constant dense<0.000000e+00> : vector<8x512xf32>
    %218 = tpu.matmul %216, %217, %cst_99 {dimension_numbers = #tpu.dot_dimension_numbers<[1], [0], [0], [1], [0, 0, 1, 1], [], []>} : vector<8x128xbf16>, vector<128x512xbf16>, vector<8x512xf32> -> vector<8x512xf32>
    %219 = arith.addf %215, %218 : vector<8x512xf32>
    %220 = vector.extract_strided_slice %219 {offsets = [0, 0], sizes = [8, 128], strides = [1, 1]} : vector<8x512xf32> to vector<8x128xf32>
    %cst_100 = arith.constant 5.000000e-01 : f32
    %221 = vector.broadcast %cst_100 : f32 to vector<8x128xf32>
    %222 = arith.mulf %221, %220 : vector<8x128xf32>
    %223 = math.tanh %222 : vector<8x128xf32>
    %cst_101 = arith.constant 1.000000e+00 : f32
    %224 = vector.broadcast %cst_101 : f32 to vector<8x128xf32>
    %225 = arith.addf %223, %224 : vector<8x128xf32>
    %cst_102 = arith.constant 5.000000e-01 : f32
    %226 = vector.broadcast %cst_102 : f32 to vector<8x128xf32>
    %227 = arith.mulf %226, %225 : vector<8x128xf32>
    %228 = vector.extract_strided_slice %219 {offsets = [0, 128], sizes = [8, 128], strides = [1, 1]} : vector<8x512xf32> to vector<8x128xf32>
    %cst_103 = arith.constant 5.000000e-01 : f32
    %229 = vector.broadcast %cst_103 : f32 to vector<8x128xf32>
    %230 = arith.mulf %229, %228 : vector<8x128xf32>
    %231 = math.tanh %230 : vector<8x128xf32>
    %cst_104 = arith.constant 1.000000e+00 : f32
    %232 = vector.broadcast %cst_104 : f32 to vector<8x128xf32>
    %233 = arith.addf %231, %232 : vector<8x128xf32>
    %cst_105 = arith.constant 5.000000e-01 : f32
    %234 = vector.broadcast %cst_105 : f32 to vector<8x128xf32>
    %235 = arith.mulf %234, %233 : vector<8x128xf32>
    %236 = vector.extract_strided_slice %219 {offsets = [0, 256], sizes = [8, 128], strides = [1, 1]} : vector<8x512xf32> to vector<8x128xf32>
    %237 = math.tanh %236 : vector<8x128xf32>
    %238 = vector.extract_strided_slice %219 {offsets = [0, 384], sizes = [8, 128], strides = [1, 1]} : vector<8x512xf32> to vector<8x128xf32>
    %cst_106 = arith.constant 5.000000e-01 : f32
    %239 = vector.broadcast %cst_106 : f32 to vector<8x128xf32>
    %240 = arith.mulf %239, %238 : vector<8x128xf32>
    %241 = math.tanh %240 : vector<8x128xf32>
    %cst_107 = arith.constant 1.000000e+00 : f32
    %242 = vector.broadcast %cst_107 : f32 to vector<8x128xf32>
    %243 = arith.addf %241, %242 : vector<8x128xf32>
    %cst_108 = arith.constant 5.000000e-01 : f32
    %244 = vector.broadcast %cst_108 : f32 to vector<8x128xf32>
    %245 = arith.mulf %244, %243 : vector<8x128xf32>
    %246 = arith.mulf %235, %208 : vector<8x128xf32>
    %247 = arith.mulf %227, %237 : vector<8x128xf32>
    %248 = arith.addf %246, %247 : vector<8x128xf32>
    %249 = math.tanh %248 : vector<8x128xf32>
    %250 = arith.mulf %245, %249 : vector<8x128xf32>
    %251 = arith.truncf %250 : vector<8x128xf32> to vector<8x128xbf16>
    %c0_109 = arith.constant 0 : index
    %c40_110 = arith.constant 40 : index
    %c0_111 = arith.constant 0 : index
    %252 = vector.load %arg15[%c0_109, %c40_110, %c0_111] : memref<2x64x128xbf16, #tpu.memory_space<vmem>>, vector<1x8x128xbf16>
    %253 = vector.shape_cast %252 : vector<1x8x128xbf16> to vector<8x128xbf16>
    %254 = vector.shape_cast %251 : vector<8x128xbf16> to vector<1x8x128xbf16>
    tpu.vector_store %arg15[%c0_109, %c40_110, %c0_111], %254 {strides = array<i32>} : memref<2x64x128xbf16, #tpu.memory_space<vmem>>, vector<1x8x128xbf16>,
    %c48 = arith.constant 48 : index
    %c0_112 = arith.constant 0 : index
    %255 = vector.load %arg14[%c48, %c0_112] : memref<64x512xf32, #tpu.memory_space<vmem>>, vector<8x512xf32>
    %256 = arith.truncf %250 : vector<8x128xf32> to vector<8x128xbf16>
    %c0_113 = arith.constant 0 : index
    %c0_114 = arith.constant 0 : index
    %257 = vector.load %arg4[%c0_113, %c0_114] : memref<128x512xbf16, #tpu.memory_space<vmem>>, vector<128x512xbf16>
    %cst_115 = arith.constant dense<0.000000e+00> : vector<8x512xf32>
    %258 = tpu.matmul %256, %257, %cst_115 {dimension_numbers = #tpu.dot_dimension_numbers<[1], [0], [0], [1], [0, 0, 1, 1], [], []>} : vector<8x128xbf16>, vector<128x512xbf16>, vector<8x512xf32> -> vector<8x512xf32>
    %259 = arith.addf %255, %258 : vector<8x512xf32>
    %260 = vector.extract_strided_slice %259 {offsets = [0, 0], sizes = [8, 128], strides = [1, 1]} : vector<8x512xf32> to vector<8x128xf32>
    %cst_116 = arith.constant 5.000000e-01 : f32
    %261 = vector.broadcast %cst_116 : f32 to vector<8x128xf32>
    %262 = arith.mulf %261, %260 : vector<8x128xf32>
    %263 = math.tanh %262 : vector<8x128xf32>
    %cst_117 = arith.constant 1.000000e+00 : f32
    %264 = vector.broadcast %cst_117 : f32 to vector<8x128xf32>
    %265 = arith.addf %263, %264 : vector<8x128xf32>
    %cst_118 = arith.constant 5.000000e-01 : f32
    %266 = vector.broadcast %cst_118 : f32 to vector<8x128xf32>
    %267 = arith.mulf %266, %265 : vector<8x128xf32>
    %268 = vector.extract_strided_slice %259 {offsets = [0, 128], sizes = [8, 128], strides = [1, 1]} : vector<8x512xf32> to vector<8x128xf32>
    %cst_119 = arith.constant 5.000000e-01 : f32
    %269 = vector.broadcast %cst_119 : f32 to vector<8x128xf32>
    %270 = arith.mulf %269, %268 : vector<8x128xf32>
    %271 = math.tanh %270 : vector<8x128xf32>
    %cst_120 = arith.constant 1.000000e+00 : f32
    %272 = vector.broadcast %cst_120 : f32 to vector<8x128xf32>
    %273 = arith.addf %271, %272 : vector<8x128xf32>
    %cst_121 = arith.constant 5.000000e-01 : f32
    %274 = vector.broadcast %cst_121 : f32 to vector<8x128xf32>
    %275 = arith.mulf %274, %273 : vector<8x128xf32>
    %276 = vector.extract_strided_slice %259 {offsets = [0, 256], sizes = [8, 128], strides = [1, 1]} : vector<8x512xf32> to vector<8x128xf32>
    %277 = math.tanh %276 : vector<8x128xf32>
    %278 = vector.extract_strided_slice %259 {offsets = [0, 384], sizes = [8, 128], strides = [1, 1]} : vector<8x512xf32> to vector<8x128xf32>
    %cst_122 = arith.constant 5.000000e-01 : f32
    %279 = vector.broadcast %cst_122 : f32 to vector<8x128xf32>
    %280 = arith.mulf %279, %278 : vector<8x128xf32>
    %281 = math.tanh %280 : vector<8x128xf32>
    %cst_123 = arith.constant 1.000000e+00 : f32
    %282 = vector.broadcast %cst_123 : f32 to vector<8x128xf32>
    %283 = arith.addf %281, %282 : vector<8x128xf32>
    %cst_124 = arith.constant 5.000000e-01 : f32
    %284 = vector.broadcast %cst_124 : f32 to vector<8x128xf32>
    %285 = arith.mulf %284, %283 : vector<8x128xf32>
    %286 = arith.mulf %275, %248 : vector<8x128xf32>
    %287 = arith.mulf %267, %277 : vector<8x128xf32>
    %288 = arith.addf %286, %287 : vector<8x128xf32>
    %289 = math.tanh %288 : vector<8x128xf32>
    %290 = arith.mulf %285, %289 : vector<8x128xf32>
    %291 = arith.truncf %290 : vector<8x128xf32> to vector<8x128xbf16>
    %c0_125 = arith.constant 0 : index
    %c48_126 = arith.constant 48 : index
    %c0_127 = arith.constant 0 : index
    %292 = vector.load %arg15[%c0_125, %c48_126, %c0_127] : memref<2x64x128xbf16, #tpu.memory_space<vmem>>, vector<1x8x128xbf16>
    %293 = vector.shape_cast %292 : vector<1x8x128xbf16> to vector<8x128xbf16>
    %294 = vector.shape_cast %291 : vector<8x128xbf16> to vector<1x8x128xbf16>
    tpu.vector_store %arg15[%c0_125, %c48_126, %c0_127], %294 {strides = array<i32>} : memref<2x64x128xbf16, #tpu.memory_space<vmem>>, vector<1x8x128xbf16>,
    %c56 = arith.constant 56 : index
    %c0_128 = arith.constant 0 : index
    %295 = vector.load %arg14[%c56, %c0_128] : memref<64x512xf32, #tpu.memory_space<vmem>>, vector<8x512xf32>
    %296 = arith.truncf %290 : vector<8x128xf32> to vector<8x128xbf16>
    %c0_129 = arith.constant 0 : index
    %c0_130 = arith.constant 0 : index
    %297 = vector.load %arg4[%c0_129, %c0_130] : memref<128x512xbf16, #tpu.memory_space<vmem>>, vector<128x512xbf16>
    %cst_131 = arith.constant dense<0.000000e+00> : vector<8x512xf32>
    %298 = tpu.matmul %296, %297, %cst_131 {dimension_numbers = #tpu.dot_dimension_numbers<[1], [0], [0], [1], [0, 0, 1, 1], [], []>} : vector<8x128xbf16>, vector<128x512xbf16>, vector<8x512xf32> -> vector<8x512xf32>
    %299 = arith.addf %295, %298 : vector<8x512xf32>
    %300 = vector.extract_strided_slice %299 {offsets = [0, 0], sizes = [8, 128], strides = [1, 1]} : vector<8x512xf32> to vector<8x128xf32>
    %cst_132 = arith.constant 5.000000e-01 : f32
    %301 = vector.broadcast %cst_132 : f32 to vector<8x128xf32>
    %302 = arith.mulf %301, %300 : vector<8x128xf32>
    %303 = math.tanh %302 : vector<8x128xf32>
    %cst_133 = arith.constant 1.000000e+00 : f32
    %304 = vector.broadcast %cst_133 : f32 to vector<8x128xf32>
    %305 = arith.addf %303, %304 : vector<8x128xf32>
    %cst_134 = arith.constant 5.000000e-01 : f32
    %306 = vector.broadcast %cst_134 : f32 to vector<8x128xf32>
    %307 = arith.mulf %306, %305 : vector<8x128xf32>
    %308 = vector.extract_strided_slice %299 {offsets = [0, 128], sizes = [8, 128], strides = [1, 1]} : vector<8x512xf32> to vector<8x128xf32>
    %cst_135 = arith.constant 5.000000e-01 : f32
    %309 = vector.broadcast %cst_135 : f32 to vector<8x128xf32>
    %310 = arith.mulf %309, %308 : vector<8x128xf32>
    %311 = math.tanh %310 : vector<8x128xf32>
    %cst_136 = arith.constant 1.000000e+00 : f32
    %312 = vector.broadcast %cst_136 : f32 to vector<8x128xf32>
    %313 = arith.addf %311, %312 : vector<8x128xf32>
    %cst_137 = arith.constant 5.000000e-01 : f32
    %314 = vector.broadcast %cst_137 : f32 to vector<8x128xf32>
    %315 = arith.mulf %314, %313 : vector<8x128xf32>
    %316 = vector.extract_strided_slice %299 {offsets = [0, 256], sizes = [8, 128], strides = [1, 1]} : vector<8x512xf32> to vector<8x128xf32>
    %317 = math.tanh %316 : vector<8x128xf32>
    %318 = vector.extract_strided_slice %299 {offsets = [0, 384], sizes = [8, 128], strides = [1, 1]} : vector<8x512xf32> to vector<8x128xf32>
    %cst_138 = arith.constant 5.000000e-01 : f32
    %319 = vector.broadcast %cst_138 : f32 to vector<8x128xf32>
    %320 = arith.mulf %319, %318 : vector<8x128xf32>
    %321 = math.tanh %320 : vector<8x128xf32>
    %cst_139 = arith.constant 1.000000e+00 : f32
    %322 = vector.broadcast %cst_139 : f32 to vector<8x128xf32>
    %323 = arith.addf %321, %322 : vector<8x128xf32>
    %cst_140 = arith.constant 5.000000e-01 : f32
    %324 = vector.broadcast %cst_140 : f32 to vector<8x128xf32>
    %325 = arith.mulf %324, %323 : vector<8x128xf32>
    %326 = arith.mulf %315, %288 : vector<8x128xf32>
    %327 = arith.mulf %307, %317 : vector<8x128xf32>
    %328 = arith.addf %326, %327 : vector<8x128xf32>
    %329 = math.tanh %328 : vector<8x128xf32>
    %330 = arith.mulf %325, %329 : vector<8x128xf32>
    %331 = arith.truncf %330 : vector<8x128xf32> to vector<8x128xbf16>
    %c0_141 = arith.constant 0 : index
    %c56_142 = arith.constant 56 : index
    %c0_143 = arith.constant 0 : index
    %332 = vector.load %arg15[%c0_141, %c56_142, %c0_143] : memref<2x64x128xbf16, #tpu.memory_space<vmem>>, vector<1x8x128xbf16>
    %333 = vector.shape_cast %332 : vector<1x8x128xbf16> to vector<8x128xbf16>
    %334 = vector.shape_cast %331 : vector<8x128xbf16> to vector<1x8x128xbf16>
    tpu.vector_store %arg15[%c0_141, %c56_142, %c0_143], %334 {strides = array<i32>} : memref<2x64x128xbf16, #tpu.memory_space<vmem>>, vector<1x8x128xbf16>,
    %c0_144 = arith.constant 0 : index
    %c0_145 = arith.constant 0 : index
    %c0_146 = arith.constant 0 : index
    %335 = vector.load %arg12[%c0_144, %c0_145, %c0_146] : memref<2x8x128xf32, #tpu.memory_space<vmem>>, vector<1x8x128xf32>
    %336 = vector.shape_cast %335 : vector<1x8x128xf32> to vector<8x128xf32>
    %337 = vector.shape_cast %330 : vector<8x128xf32> to vector<1x8x128xf32>
    tpu.vector_store %arg12[%c0_144, %c0_145, %c0_146], %337 {strides = array<i32>} : memref<2x8x128xf32, #tpu.memory_space<vmem>>, vector<1x8x128xf32>,
    %c0_147 = arith.constant 0 : index
    %c0_148 = arith.constant 0 : index
    %c0_149 = arith.constant 0 : index
    %338 = vector.load %arg13[%c0_147, %c0_148, %c0_149] : memref<2x8x128xf32, #tpu.memory_space<vmem>>, vector<1x8x128xf32>
    %339 = vector.shape_cast %338 : vector<1x8x128xf32> to vector<8x128xf32>
    %340 = vector.shape_cast %328 : vector<8x128xf32> to vector<1x8x128xf32>
    tpu.vector_store %arg13[%c0_147, %c0_148, %c0_149], %340 {strides = array<i32>} : memref<2x8x128xf32, #tpu.memory_space<vmem>>, vector<1x8x128xf32>,
    %c0_150 = arith.constant 0 : index
    %c0_151 = arith.constant 0 : index
    %c0_152 = arith.constant 0 : index
    %341 = vector.load %arg15[%c0_150, %c0_151, %c0_152] : memref<2x64x128xbf16, #tpu.memory_space<vmem>>, vector<1x64x128xbf16>
    %342 = vector.shape_cast %341 : vector<1x64x128xbf16> to vector<64x128xbf16>
    %c0_153 = arith.constant 0 : index
    %c0_154 = arith.constant 0 : index
    %343 = vector.load %arg6[%c0_153, %c0_154] : memref<128x512xbf16, #tpu.memory_space<vmem>>, vector<128x512xbf16>
    %cst_155 = arith.constant dense<0.000000e+00> : vector<64x512xf32>
    %344 = tpu.matmul %342, %343, %cst_155 {dimension_numbers = #tpu.dot_dimension_numbers<[1], [0], [0], [1], [0, 0, 1, 1], [], []>} : vector<64x128xbf16>, vector<128x512xbf16>, vector<64x512xf32> -> vector<64x512xf32>
    %c0_156 = arith.constant 0 : index
    %c0_157 = arith.constant 0 : index
    %345 = vector.load %arg8[%c0_156, %c0_157] : memref<1x512xf32, #tpu.memory_space<vmem>>, vector<1x512xf32>
    %346 = vector.broadcast %345 : vector<1x512xf32> to vector<64x512xf32>
    %347 = arith.addf %344, %346 : vector<64x512xf32>
    %c0_158 = arith.constant 0 : index
    %c0_159 = arith.constant 0 : index
    %348 = vector.load %arg14[%c0_158, %c0_159] : memref<64x512xf32, #tpu.memory_space<vmem>>, vector<64x512xf32>
    tpu.vector_store %arg14[%c0_158, %c0_159], %347 {strides = array<i32>} : memref<64x512xf32, #tpu.memory_space<vmem>>, vector<64x512xf32>,
    %c1 = arith.constant 1 : index
    %c0_160 = arith.constant 0 : index
    %c0_161 = arith.constant 0 : index
    %349 = vector.load %arg12[%c1, %c0_160, %c0_161] : memref<2x8x128xf32, #tpu.memory_space<vmem>>, vector<1x8x128xf32>
    %350 = vector.shape_cast %349 : vector<1x8x128xf32> to vector<8x128xf32>
    %c1_162 = arith.constant 1 : index
    %c0_163 = arith.constant 0 : index
    %c0_164 = arith.constant 0 : index
    %351 = vector.load %arg13[%c1_162, %c0_163, %c0_164] : memref<2x8x128xf32, #tpu.memory_space<vmem>>, vector<1x8x128xf32>
    %352 = vector.shape_cast %351 : vector<1x8x128xf32> to vector<8x128xf32>
    %c0_165 = arith.constant 0 : index
    %c0_166 = arith.constant 0 : index
    %353 = vector.load %arg14[%c0_165, %c0_166] : memref<64x512xf32, #tpu.memory_space<vmem>>, vector<8x512xf32>
    %354 = arith.truncf %350 : vector<8x128xf32> to vector<8x128xbf16>
    %c0_167 = arith.constant 0 : index
    %c0_168 = arith.constant 0 : index
    %355 = vector.load %arg7[%c0_167, %c0_168] : memref<128x512xbf16, #tpu.memory_space<vmem>>, vector<128x512xbf16>
    %cst_169 = arith.constant dense<0.000000e+00> : vector<8x512xf32>
    %356 = tpu.matmul %354, %355, %cst_169 {dimension_numbers = #tpu.dot_dimension_numbers<[1], [0], [0], [1], [0, 0, 1, 1], [], []>} : vector<8x128xbf16>, vector<128x512xbf16>, vector<8x512xf32> -> vector<8x512xf32>
    %357 = arith.addf %353, %356 : vector<8x512xf32>
    %358 = vector.extract_strided_slice %357 {offsets = [0, 0], sizes = [8, 128], strides = [1, 1]} : vector<8x512xf32> to vector<8x128xf32>
    %cst_170 = arith.constant 5.000000e-01 : f32
    %359 = vector.broadcast %cst_170 : f32 to vector<8x128xf32>
    %360 = arith.mulf %359, %358 : vector<8x128xf32>
    %361 = math.tanh %360 : vector<8x128xf32>
    %cst_171 = arith.constant 1.000000e+00 : f32
    %362 = vector.broadcast %cst_171 : f32 to vector<8x128xf32>
    %363 = arith.addf %361, %362 : vector<8x128xf32>
    %cst_172 = arith.constant 5.000000e-01 : f32
    %364 = vector.broadcast %cst_172 : f32 to vector<8x128xf32>
    %365 = arith.mulf %364, %363 : vector<8x128xf32>
    %366 = vector.extract_strided_slice %357 {offsets = [0, 128], sizes = [8, 128], strides = [1, 1]} : vector<8x512xf32> to vector<8x128xf32>
    %cst_173 = arith.constant 5.000000e-01 : f32
    %367 = vector.broadcast %cst_173 : f32 to vector<8x128xf32>
    %368 = arith.mulf %367, %366 : vector<8x128xf32>
    %369 = math.tanh %368 : vector<8x128xf32>
    %cst_174 = arith.constant 1.000000e+00 : f32
    %370 = vector.broadcast %cst_174 : f32 to vector<8x128xf32>
    %371 = arith.addf %369, %370 : vector<8x128xf32>
    %cst_175 = arith.constant 5.000000e-01 : f32
    %372 = vector.broadcast %cst_175 : f32 to vector<8x128xf32>
    %373 = arith.mulf %372, %371 : vector<8x128xf32>
    %374 = vector.extract_strided_slice %357 {offsets = [0, 256], sizes = [8, 128], strides = [1, 1]} : vector<8x512xf32> to vector<8x128xf32>
    %375 = math.tanh %374 : vector<8x128xf32>
    %376 = vector.extract_strided_slice %357 {offsets = [0, 384], sizes = [8, 128], strides = [1, 1]} : vector<8x512xf32> to vector<8x128xf32>
    %cst_176 = arith.constant 5.000000e-01 : f32
    %377 = vector.broadcast %cst_176 : f32 to vector<8x128xf32>
    %378 = arith.mulf %377, %376 : vector<8x128xf32>
    %379 = math.tanh %378 : vector<8x128xf32>
    %cst_177 = arith.constant 1.000000e+00 : f32
    %380 = vector.broadcast %cst_177 : f32 to vector<8x128xf32>
    %381 = arith.addf %379, %380 : vector<8x128xf32>
    %cst_178 = arith.constant 5.000000e-01 : f32
    %382 = vector.broadcast %cst_178 : f32 to vector<8x128xf32>
    %383 = arith.mulf %382, %381 : vector<8x128xf32>
    %384 = arith.mulf %373, %352 : vector<8x128xf32>
    %385 = arith.mulf %365, %375 : vector<8x128xf32>
    %386 = arith.addf %384, %385 : vector<8x128xf32>
    %387 = math.tanh %386 : vector<8x128xf32>
    %388 = arith.mulf %383, %387 : vector<8x128xf32>
    %c8_179 = arith.constant 8 : index
    %c0_180 = arith.constant 0 : index
    %389 = vector.load %arg14[%c8_179, %c0_180] : memref<64x512xf32, #tpu.memory_space<vmem>>, vector<8x512xf32>
    %390 = arith.truncf %388 : vector<8x128xf32> to vector<8x128xbf16>
    %c0_181 = arith.constant 0 : index
    %c0_182 = arith.constant 0 : index
    %391 = vector.load %arg7[%c0_181, %c0_182] : memref<128x512xbf16, #tpu.memory_space<vmem>>, vector<128x512xbf16>
    %cst_183 = arith.constant dense<0.000000e+00> : vector<8x512xf32>
    %392 = tpu.matmul %390, %391, %cst_183 {dimension_numbers = #tpu.dot_dimension_numbers<[1], [0], [0], [1], [0, 0, 1, 1], [], []>} : vector<8x128xbf16>, vector<128x512xbf16>, vector<8x512xf32> -> vector<8x512xf32>
    %393 = arith.addf %389, %392 : vector<8x512xf32>
    %394 = vector.extract_strided_slice %393 {offsets = [0, 0], sizes = [8, 128], strides = [1, 1]} : vector<8x512xf32> to vector<8x128xf32>
    %cst_184 = arith.constant 5.000000e-01 : f32
    %395 = vector.broadcast %cst_184 : f32 to vector<8x128xf32>
    %396 = arith.mulf %395, %394 : vector<8x128xf32>
    %397 = math.tanh %396 : vector<8x128xf32>
    %cst_185 = arith.constant 1.000000e+00 : f32
    %398 = vector.broadcast %cst_185 : f32 to vector<8x128xf32>
    %399 = arith.addf %397, %398 : vector<8x128xf32>
    %cst_186 = arith.constant 5.000000e-01 : f32
    %400 = vector.broadcast %cst_186 : f32 to vector<8x128xf32>
    %401 = arith.mulf %400, %399 : vector<8x128xf32>
    %402 = vector.extract_strided_slice %393 {offsets = [0, 128], sizes = [8, 128], strides = [1, 1]} : vector<8x512xf32> to vector<8x128xf32>
    %cst_187 = arith.constant 5.000000e-01 : f32
    %403 = vector.broadcast %cst_187 : f32 to vector<8x128xf32>
    %404 = arith.mulf %403, %402 : vector<8x128xf32>
    %405 = math.tanh %404 : vector<8x128xf32>
    %cst_188 = arith.constant 1.000000e+00 : f32
    %406 = vector.broadcast %cst_188 : f32 to vector<8x128xf32>
    %407 = arith.addf %405, %406 : vector<8x128xf32>
    %cst_189 = arith.constant 5.000000e-01 : f32
    %408 = vector.broadcast %cst_189 : f32 to vector<8x128xf32>
    %409 = arith.mulf %408, %407 : vector<8x128xf32>
    %410 = vector.extract_strided_slice %393 {offsets = [0, 256], sizes = [8, 128], strides = [1, 1]} : vector<8x512xf32> to vector<8x128xf32>
    %411 = math.tanh %410 : vector<8x128xf32>
    %412 = vector.extract_strided_slice %393 {offsets = [0, 384], sizes = [8, 128], strides = [1, 1]} : vector<8x512xf32> to vector<8x128xf32>
    %cst_190 = arith.constant 5.000000e-01 : f32
    %413 = vector.broadcast %cst_190 : f32 to vector<8x128xf32>
    %414 = arith.mulf %413, %412 : vector<8x128xf32>
    %415 = math.tanh %414 : vector<8x128xf32>
    %cst_191 = arith.constant 1.000000e+00 : f32
    %416 = vector.broadcast %cst_191 : f32 to vector<8x128xf32>
    %417 = arith.addf %415, %416 : vector<8x128xf32>
    %cst_192 = arith.constant 5.000000e-01 : f32
    %418 = vector.broadcast %cst_192 : f32 to vector<8x128xf32>
    %419 = arith.mulf %418, %417 : vector<8x128xf32>
    %420 = arith.mulf %409, %386 : vector<8x128xf32>
    %421 = arith.mulf %401, %411 : vector<8x128xf32>
    %422 = arith.addf %420, %421 : vector<8x128xf32>
    %423 = math.tanh %422 : vector<8x128xf32>
    %424 = arith.mulf %419, %423 : vector<8x128xf32>
    %c16_193 = arith.constant 16 : index
    %c0_194 = arith.constant 0 : index
    %425 = vector.load %arg14[%c16_193, %c0_194] : memref<64x512xf32, #tpu.memory_space<vmem>>, vector<8x512xf32>
    %426 = arith.truncf %424 : vector<8x128xf32> to vector<8x128xbf16>
    %c0_195 = arith.constant 0 : index
    %c0_196 = arith.constant 0 : index
    %427 = vector.load %arg7[%c0_195, %c0_196] : memref<128x512xbf16, #tpu.memory_space<vmem>>, vector<128x512xbf16>
    %cst_197 = arith.constant dense<0.000000e+00> : vector<8x512xf32>
    %428 = tpu.matmul %426, %427, %cst_197 {dimension_numbers = #tpu.dot_dimension_numbers<[1], [0], [0], [1], [0, 0, 1, 1], [], []>} : vector<8x128xbf16>, vector<128x512xbf16>, vector<8x512xf32> -> vector<8x512xf32>
    %429 = arith.addf %425, %428 : vector<8x512xf32>
    %430 = vector.extract_strided_slice %429 {offsets = [0, 0], sizes = [8, 128], strides = [1, 1]} : vector<8x512xf32> to vector<8x128xf32>
    %cst_198 = arith.constant 5.000000e-01 : f32
    %431 = vector.broadcast %cst_198 : f32 to vector<8x128xf32>
    %432 = arith.mulf %431, %430 : vector<8x128xf32>
    %433 = math.tanh %432 : vector<8x128xf32>
    %cst_199 = arith.constant 1.000000e+00 : f32
    %434 = vector.broadcast %cst_199 : f32 to vector<8x128xf32>
    %435 = arith.addf %433, %434 : vector<8x128xf32>
    %cst_200 = arith.constant 5.000000e-01 : f32
    %436 = vector.broadcast %cst_200 : f32 to vector<8x128xf32>
    %437 = arith.mulf %436, %435 : vector<8x128xf32>
    %438 = vector.extract_strided_slice %429 {offsets = [0, 128], sizes = [8, 128], strides = [1, 1]} : vector<8x512xf32> to vector<8x128xf32>
    %cst_201 = arith.constant 5.000000e-01 : f32
    %439 = vector.broadcast %cst_201 : f32 to vector<8x128xf32>
    %440 = arith.mulf %439, %438 : vector<8x128xf32>
    %441 = math.tanh %440 : vector<8x128xf32>
    %cst_202 = arith.constant 1.000000e+00 : f32
    %442 = vector.broadcast %cst_202 : f32 to vector<8x128xf32>
    %443 = arith.addf %441, %442 : vector<8x128xf32>
    %cst_203 = arith.constant 5.000000e-01 : f32
    %444 = vector.broadcast %cst_203 : f32 to vector<8x128xf32>
    %445 = arith.mulf %444, %443 : vector<8x128xf32>
    %446 = vector.extract_strided_slice %429 {offsets = [0, 256], sizes = [8, 128], strides = [1, 1]} : vector<8x512xf32> to vector<8x128xf32>
    %447 = math.tanh %446 : vector<8x128xf32>
    %448 = vector.extract_strided_slice %429 {offsets = [0, 384], sizes = [8, 128], strides = [1, 1]} : vector<8x512xf32> to vector<8x128xf32>
    %cst_204 = arith.constant 5.000000e-01 : f32
    %449 = vector.broadcast %cst_204 : f32 to vector<8x128xf32>
    %450 = arith.mulf %449, %448 : vector<8x128xf32>
    %451 = math.tanh %450 : vector<8x128xf32>
    %cst_205 = arith.constant 1.000000e+00 : f32
    %452 = vector.broadcast %cst_205 : f32 to vector<8x128xf32>
    %453 = arith.addf %451, %452 : vector<8x128xf32>
    %cst_206 = arith.constant 5.000000e-01 : f32
    %454 = vector.broadcast %cst_206 : f32 to vector<8x128xf32>
    %455 = arith.mulf %454, %453 : vector<8x128xf32>
    %456 = arith.mulf %445, %422 : vector<8x128xf32>
    %457 = arith.mulf %437, %447 : vector<8x128xf32>
    %458 = arith.addf %456, %457 : vector<8x128xf32>
    %459 = math.tanh %458 : vector<8x128xf32>
    %460 = arith.mulf %455, %459 : vector<8x128xf32>
    %c24_207 = arith.constant 24 : index
    %c0_208 = arith.constant 0 : index
    %461 = vector.load %arg14[%c24_207, %c0_208] : memref<64x512xf32, #tpu.memory_space<vmem>>, vector<8x512xf32>
    %462 = arith.truncf %460 : vector<8x128xf32> to vector<8x128xbf16>
    %c0_209 = arith.constant 0 : index
    %c0_210 = arith.constant 0 : index
    %463 = vector.load %arg7[%c0_209, %c0_210] : memref<128x512xbf16, #tpu.memory_space<vmem>>, vector<128x512xbf16>
    %cst_211 = arith.constant dense<0.000000e+00> : vector<8x512xf32>
    %464 = tpu.matmul %462, %463, %cst_211 {dimension_numbers = #tpu.dot_dimension_numbers<[1], [0], [0], [1], [0, 0, 1, 1], [], []>} : vector<8x128xbf16>, vector<128x512xbf16>, vector<8x512xf32> -> vector<8x512xf32>
    %465 = arith.addf %461, %464 : vector<8x512xf32>
    %466 = vector.extract_strided_slice %465 {offsets = [0, 0], sizes = [8, 128], strides = [1, 1]} : vector<8x512xf32> to vector<8x128xf32>
    %cst_212 = arith.constant 5.000000e-01 : f32
    %467 = vector.broadcast %cst_212 : f32 to vector<8x128xf32>
    %468 = arith.mulf %467, %466 : vector<8x128xf32>
    %469 = math.tanh %468 : vector<8x128xf32>
    %cst_213 = arith.constant 1.000000e+00 : f32
    %470 = vector.broadcast %cst_213 : f32 to vector<8x128xf32>
    %471 = arith.addf %469, %470 : vector<8x128xf32>
    %cst_214 = arith.constant 5.000000e-01 : f32
    %472 = vector.broadcast %cst_214 : f32 to vector<8x128xf32>
    %473 = arith.mulf %472, %471 : vector<8x128xf32>
    %474 = vector.extract_strided_slice %465 {offsets = [0, 128], sizes = [8, 128], strides = [1, 1]} : vector<8x512xf32> to vector<8x128xf32>
    %cst_215 = arith.constant 5.000000e-01 : f32
    %475 = vector.broadcast %cst_215 : f32 to vector<8x128xf32>
    %476 = arith.mulf %475, %474 : vector<8x128xf32>
    %477 = math.tanh %476 : vector<8x128xf32>
    %cst_216 = arith.constant 1.000000e+00 : f32
    %478 = vector.broadcast %cst_216 : f32 to vector<8x128xf32>
    %479 = arith.addf %477, %478 : vector<8x128xf32>
    %cst_217 = arith.constant 5.000000e-01 : f32
    %480 = vector.broadcast %cst_217 : f32 to vector<8x128xf32>
    %481 = arith.mulf %480, %479 : vector<8x128xf32>
    %482 = vector.extract_strided_slice %465 {offsets = [0, 256], sizes = [8, 128], strides = [1, 1]} : vector<8x512xf32> to vector<8x128xf32>
    %483 = math.tanh %482 : vector<8x128xf32>
    %484 = vector.extract_strided_slice %465 {offsets = [0, 384], sizes = [8, 128], strides = [1, 1]} : vector<8x512xf32> to vector<8x128xf32>
    %cst_218 = arith.constant 5.000000e-01 : f32
    %485 = vector.broadcast %cst_218 : f32 to vector<8x128xf32>
    %486 = arith.mulf %485, %484 : vector<8x128xf32>
    %487 = math.tanh %486 : vector<8x128xf32>
    %cst_219 = arith.constant 1.000000e+00 : f32
    %488 = vector.broadcast %cst_219 : f32 to vector<8x128xf32>
    %489 = arith.addf %487, %488 : vector<8x128xf32>
    %cst_220 = arith.constant 5.000000e-01 : f32
    %490 = vector.broadcast %cst_220 : f32 to vector<8x128xf32>
    %491 = arith.mulf %490, %489 : vector<8x128xf32>
    %492 = arith.mulf %481, %458 : vector<8x128xf32>
    %493 = arith.mulf %473, %483 : vector<8x128xf32>
    %494 = arith.addf %492, %493 : vector<8x128xf32>
    %495 = math.tanh %494 : vector<8x128xf32>
    %496 = arith.mulf %491, %495 : vector<8x128xf32>
    %c32_221 = arith.constant 32 : index
    %c0_222 = arith.constant 0 : index
    %497 = vector.load %arg14[%c32_221, %c0_222] : memref<64x512xf32, #tpu.memory_space<vmem>>, vector<8x512xf32>
    %498 = arith.truncf %496 : vector<8x128xf32> to vector<8x128xbf16>
    %c0_223 = arith.constant 0 : index
    %c0_224 = arith.constant 0 : index
    %499 = vector.load %arg7[%c0_223, %c0_224] : memref<128x512xbf16, #tpu.memory_space<vmem>>, vector<128x512xbf16>
    %cst_225 = arith.constant dense<0.000000e+00> : vector<8x512xf32>
    %500 = tpu.matmul %498, %499, %cst_225 {dimension_numbers = #tpu.dot_dimension_numbers<[1], [0], [0], [1], [0, 0, 1, 1], [], []>} : vector<8x128xbf16>, vector<128x512xbf16>, vector<8x512xf32> -> vector<8x512xf32>
    %501 = arith.addf %497, %500 : vector<8x512xf32>
    %502 = vector.extract_strided_slice %501 {offsets = [0, 0], sizes = [8, 128], strides = [1, 1]} : vector<8x512xf32> to vector<8x128xf32>
    %cst_226 = arith.constant 5.000000e-01 : f32
    %503 = vector.broadcast %cst_226 : f32 to vector<8x128xf32>
    %504 = arith.mulf %503, %502 : vector<8x128xf32>
    %505 = math.tanh %504 : vector<8x128xf32>
    %cst_227 = arith.constant 1.000000e+00 : f32
    %506 = vector.broadcast %cst_227 : f32 to vector<8x128xf32>
    %507 = arith.addf %505, %506 : vector<8x128xf32>
    %cst_228 = arith.constant 5.000000e-01 : f32
    %508 = vector.broadcast %cst_228 : f32 to vector<8x128xf32>
    %509 = arith.mulf %508, %507 : vector<8x128xf32>
    %510 = vector.extract_strided_slice %501 {offsets = [0, 128], sizes = [8, 128], strides = [1, 1]} : vector<8x512xf32> to vector<8x128xf32>
    %cst_229 = arith.constant 5.000000e-01 : f32
    %511 = vector.broadcast %cst_229 : f32 to vector<8x128xf32>
    %512 = arith.mulf %511, %510 : vector<8x128xf32>
    %513 = math.tanh %512 : vector<8x128xf32>
    %cst_230 = arith.constant 1.000000e+00 : f32
    %514 = vector.broadcast %cst_230 : f32 to vector<8x128xf32>
    %515 = arith.addf %513, %514 : vector<8x128xf32>
    %cst_231 = arith.constant 5.000000e-01 : f32
    %516 = vector.broadcast %cst_231 : f32 to vector<8x128xf32>
    %517 = arith.mulf %516, %515 : vector<8x128xf32>
    %518 = vector.extract_strided_slice %501 {offsets = [0, 256], sizes = [8, 128], strides = [1, 1]} : vector<8x512xf32> to vector<8x128xf32>
    %519 = math.tanh %518 : vector<8x128xf32>
    %520 = vector.extract_strided_slice %501 {offsets = [0, 384], sizes = [8, 128], strides = [1, 1]} : vector<8x512xf32> to vector<8x128xf32>
    %cst_232 = arith.constant 5.000000e-01 : f32
    %521 = vector.broadcast %cst_232 : f32 to vector<8x128xf32>
    %522 = arith.mulf %521, %520 : vector<8x128xf32>
    %523 = math.tanh %522 : vector<8x128xf32>
    %cst_233 = arith.constant 1.000000e+00 : f32
    %524 = vector.broadcast %cst_233 : f32 to vector<8x128xf32>
    %525 = arith.addf %523, %524 : vector<8x128xf32>
    %cst_234 = arith.constant 5.000000e-01 : f32
    %526 = vector.broadcast %cst_234 : f32 to vector<8x128xf32>
    %527 = arith.mulf %526, %525 : vector<8x128xf32>
    %528 = arith.mulf %517, %494 : vector<8x128xf32>
    %529 = arith.mulf %509, %519 : vector<8x128xf32>
    %530 = arith.addf %528, %529 : vector<8x128xf32>
    %531 = math.tanh %530 : vector<8x128xf32>
    %532 = arith.mulf %527, %531 : vector<8x128xf32>
    %c40_235 = arith.constant 40 : index
    %c0_236 = arith.constant 0 : index
    %533 = vector.load %arg14[%c40_235, %c0_236] : memref<64x512xf32, #tpu.memory_space<vmem>>, vector<8x512xf32>
    %534 = arith.truncf %532 : vector<8x128xf32> to vector<8x128xbf16>
    %c0_237 = arith.constant 0 : index
    %c0_238 = arith.constant 0 : index
    %535 = vector.load %arg7[%c0_237, %c0_238] : memref<128x512xbf16, #tpu.memory_space<vmem>>, vector<128x512xbf16>
    %cst_239 = arith.constant dense<0.000000e+00> : vector<8x512xf32>
    %536 = tpu.matmul %534, %535, %cst_239 {dimension_numbers = #tpu.dot_dimension_numbers<[1], [0], [0], [1], [0, 0, 1, 1], [], []>} : vector<8x128xbf16>, vector<128x512xbf16>, vector<8x512xf32> -> vector<8x512xf32>
    %537 = arith.addf %533, %536 : vector<8x512xf32>
    %538 = vector.extract_strided_slice %537 {offsets = [0, 0], sizes = [8, 128], strides = [1, 1]} : vector<8x512xf32> to vector<8x128xf32>
    %cst_240 = arith.constant 5.000000e-01 : f32
    %539 = vector.broadcast %cst_240 : f32 to vector<8x128xf32>
    %540 = arith.mulf %539, %538 : vector<8x128xf32>
    %541 = math.tanh %540 : vector<8x128xf32>
    %cst_241 = arith.constant 1.000000e+00 : f32
    %542 = vector.broadcast %cst_241 : f32 to vector<8x128xf32>
    %543 = arith.addf %541, %542 : vector<8x128xf32>
    %cst_242 = arith.constant 5.000000e-01 : f32
    %544 = vector.broadcast %cst_242 : f32 to vector<8x128xf32>
    %545 = arith.mulf %544, %543 : vector<8x128xf32>
    %546 = vector.extract_strided_slice %537 {offsets = [0, 128], sizes = [8, 128], strides = [1, 1]} : vector<8x512xf32> to vector<8x128xf32>
    %cst_243 = arith.constant 5.000000e-01 : f32
    %547 = vector.broadcast %cst_243 : f32 to vector<8x128xf32>
    %548 = arith.mulf %547, %546 : vector<8x128xf32>
    %549 = math.tanh %548 : vector<8x128xf32>
    %cst_244 = arith.constant 1.000000e+00 : f32
    %550 = vector.broadcast %cst_244 : f32 to vector<8x128xf32>
    %551 = arith.addf %549, %550 : vector<8x128xf32>
    %cst_245 = arith.constant 5.000000e-01 : f32
    %552 = vector.broadcast %cst_245 : f32 to vector<8x128xf32>
    %553 = arith.mulf %552, %551 : vector<8x128xf32>
    %554 = vector.extract_strided_slice %537 {offsets = [0, 256], sizes = [8, 128], strides = [1, 1]} : vector<8x512xf32> to vector<8x128xf32>
    %555 = math.tanh %554 : vector<8x128xf32>
    %556 = vector.extract_strided_slice %537 {offsets = [0, 384], sizes = [8, 128], strides = [1, 1]} : vector<8x512xf32> to vector<8x128xf32>
    %cst_246 = arith.constant 5.000000e-01 : f32
    %557 = vector.broadcast %cst_246 : f32 to vector<8x128xf32>
    %558 = arith.mulf %557, %556 : vector<8x128xf32>
    %559 = math.tanh %558 : vector<8x128xf32>
    %cst_247 = arith.constant 1.000000e+00 : f32
    %560 = vector.broadcast %cst_247 : f32 to vector<8x128xf32>
    %561 = arith.addf %559, %560 : vector<8x128xf32>
    %cst_248 = arith.constant 5.000000e-01 : f32
    %562 = vector.broadcast %cst_248 : f32 to vector<8x128xf32>
    %563 = arith.mulf %562, %561 : vector<8x128xf32>
    %564 = arith.mulf %553, %530 : vector<8x128xf32>
    %565 = arith.mulf %545, %555 : vector<8x128xf32>
    %566 = arith.addf %564, %565 : vector<8x128xf32>
    %567 = math.tanh %566 : vector<8x128xf32>
    %568 = arith.mulf %563, %567 : vector<8x128xf32>
    %c48_249 = arith.constant 48 : index
    %c0_250 = arith.constant 0 : index
    %569 = vector.load %arg14[%c48_249, %c0_250] : memref<64x512xf32, #tpu.memory_space<vmem>>, vector<8x512xf32>
    %570 = arith.truncf %568 : vector<8x128xf32> to vector<8x128xbf16>
    %c0_251 = arith.constant 0 : index
    %c0_252 = arith.constant 0 : index
    %571 = vector.load %arg7[%c0_251, %c0_252] : memref<128x512xbf16, #tpu.memory_space<vmem>>, vector<128x512xbf16>
    %cst_253 = arith.constant dense<0.000000e+00> : vector<8x512xf32>
    %572 = tpu.matmul %570, %571, %cst_253 {dimension_numbers = #tpu.dot_dimension_numbers<[1], [0], [0], [1], [0, 0, 1, 1], [], []>} : vector<8x128xbf16>, vector<128x512xbf16>, vector<8x512xf32> -> vector<8x512xf32>
    %573 = arith.addf %569, %572 : vector<8x512xf32>
    %574 = vector.extract_strided_slice %573 {offsets = [0, 0], sizes = [8, 128], strides = [1, 1]} : vector<8x512xf32> to vector<8x128xf32>
    %cst_254 = arith.constant 5.000000e-01 : f32
    %575 = vector.broadcast %cst_254 : f32 to vector<8x128xf32>
    %576 = arith.mulf %575, %574 : vector<8x128xf32>
    %577 = math.tanh %576 : vector<8x128xf32>
    %cst_255 = arith.constant 1.000000e+00 : f32
    %578 = vector.broadcast %cst_255 : f32 to vector<8x128xf32>
    %579 = arith.addf %577, %578 : vector<8x128xf32>
    %cst_256 = arith.constant 5.000000e-01 : f32
    %580 = vector.broadcast %cst_256 : f32 to vector<8x128xf32>
    %581 = arith.mulf %580, %579 : vector<8x128xf32>
    %582 = vector.extract_strided_slice %573 {offsets = [0, 128], sizes = [8, 128], strides = [1, 1]} : vector<8x512xf32> to vector<8x128xf32>
    %cst_257 = arith.constant 5.000000e-01 : f32
    %583 = vector.broadcast %cst_257 : f32 to vector<8x128xf32>
    %584 = arith.mulf %583, %582 : vector<8x128xf32>
    %585 = math.tanh %584 : vector<8x128xf32>
    %cst_258 = arith.constant 1.000000e+00 : f32
    %586 = vector.broadcast %cst_258 : f32 to vector<8x128xf32>
    %587 = arith.addf %585, %586 : vector<8x128xf32>
    %cst_259 = arith.constant 5.000000e-01 : f32
    %588 = vector.broadcast %cst_259 : f32 to vector<8x128xf32>
    %589 = arith.mulf %588, %587 : vector<8x128xf32>
    %590 = vector.extract_strided_slice %573 {offsets = [0, 256], sizes = [8, 128], strides = [1, 1]} : vector<8x512xf32> to vector<8x128xf32>
    %591 = math.tanh %590 : vector<8x128xf32>
    %592 = vector.extract_strided_slice %573 {offsets = [0, 384], sizes = [8, 128], strides = [1, 1]} : vector<8x512xf32> to vector<8x128xf32>
    %cst_260 = arith.constant 5.000000e-01 : f32
    %593 = vector.broadcast %cst_260 : f32 to vector<8x128xf32>
    %594 = arith.mulf %593, %592 : vector<8x128xf32>
    %595 = math.tanh %594 : vector<8x128xf32>
    %cst_261 = arith.constant 1.000000e+00 : f32
    %596 = vector.broadcast %cst_261 : f32 to vector<8x128xf32>
    %597 = arith.addf %595, %596 : vector<8x128xf32>
    %cst_262 = arith.constant 5.000000e-01 : f32
    %598 = vector.broadcast %cst_262 : f32 to vector<8x128xf32>
    %599 = arith.mulf %598, %597 : vector<8x128xf32>
    %600 = arith.mulf %589, %566 : vector<8x128xf32>
    %601 = arith.mulf %581, %591 : vector<8x128xf32>
    %602 = arith.addf %600, %601 : vector<8x128xf32>
    %603 = math.tanh %602 : vector<8x128xf32>
    %604 = arith.mulf %599, %603 : vector<8x128xf32>
    %c56_263 = arith.constant 56 : index
    %c0_264 = arith.constant 0 : index
    %605 = vector.load %arg14[%c56_263, %c0_264] : memref<64x512xf32, #tpu.memory_space<vmem>>, vector<8x512xf32>
    %606 = arith.truncf %604 : vector<8x128xf32> to vector<8x128xbf16>
    %c0_265 = arith.constant 0 : index
    %c0_266 = arith.constant 0 : index
    %607 = vector.load %arg7[%c0_265, %c0_266] : memref<128x512xbf16, #tpu.memory_space<vmem>>, vector<128x512xbf16>
    %cst_267 = arith.constant dense<0.000000e+00> : vector<8x512xf32>
    %608 = tpu.matmul %606, %607, %cst_267 {dimension_numbers = #tpu.dot_dimension_numbers<[1], [0], [0], [1], [0, 0, 1, 1], [], []>} : vector<8x128xbf16>, vector<128x512xbf16>, vector<8x512xf32> -> vector<8x512xf32>
    %609 = arith.addf %605, %608 : vector<8x512xf32>
    %610 = vector.extract_strided_slice %609 {offsets = [0, 0], sizes = [8, 128], strides = [1, 1]} : vector<8x512xf32> to vector<8x128xf32>
    %cst_268 = arith.constant 5.000000e-01 : f32
    %611 = vector.broadcast %cst_268 : f32 to vector<8x128xf32>
    %612 = arith.mulf %611, %610 : vector<8x128xf32>
    %613 = math.tanh %612 : vector<8x128xf32>
    %cst_269 = arith.constant 1.000000e+00 : f32
    %614 = vector.broadcast %cst_269 : f32 to vector<8x128xf32>
    %615 = arith.addf %613, %614 : vector<8x128xf32>
    %cst_270 = arith.constant 5.000000e-01 : f32
    %616 = vector.broadcast %cst_270 : f32 to vector<8x128xf32>
    %617 = arith.mulf %616, %615 : vector<8x128xf32>
    %618 = vector.extract_strided_slice %609 {offsets = [0, 128], sizes = [8, 128], strides = [1, 1]} : vector<8x512xf32> to vector<8x128xf32>
    %cst_271 = arith.constant 5.000000e-01 : f32
    %619 = vector.broadcast %cst_271 : f32 to vector<8x128xf32>
    %620 = arith.mulf %619, %618 : vector<8x128xf32>
    %621 = math.tanh %620 : vector<8x128xf32>
    %cst_272 = arith.constant 1.000000e+00 : f32
    %622 = vector.broadcast %cst_272 : f32 to vector<8x128xf32>
    %623 = arith.addf %621, %622 : vector<8x128xf32>
    %cst_273 = arith.constant 5.000000e-01 : f32
    %624 = vector.broadcast %cst_273 : f32 to vector<8x128xf32>
    %625 = arith.mulf %624, %623 : vector<8x128xf32>
    %626 = vector.extract_strided_slice %609 {offsets = [0, 256], sizes = [8, 128], strides = [1, 1]} : vector<8x512xf32> to vector<8x128xf32>
    %627 = math.tanh %626 : vector<8x128xf32>
    %628 = vector.extract_strided_slice %609 {offsets = [0, 384], sizes = [8, 128], strides = [1, 1]} : vector<8x512xf32> to vector<8x128xf32>
    %cst_274 = arith.constant 5.000000e-01 : f32
    %629 = vector.broadcast %cst_274 : f32 to vector<8x128xf32>
    %630 = arith.mulf %629, %628 : vector<8x128xf32>
    %631 = math.tanh %630 : vector<8x128xf32>
    %cst_275 = arith.constant 1.000000e+00 : f32
    %632 = vector.broadcast %cst_275 : f32 to vector<8x128xf32>
    %633 = arith.addf %631, %632 : vector<8x128xf32>
    %cst_276 = arith.constant 5.000000e-01 : f32
    %634 = vector.broadcast %cst_276 : f32 to vector<8x128xf32>
    %635 = arith.mulf %634, %633 : vector<8x128xf32>
    %636 = arith.mulf %625, %602 : vector<8x128xf32>
    %637 = arith.mulf %617, %627 : vector<8x128xf32>
    %638 = arith.addf %636, %637 : vector<8x128xf32>
    %639 = math.tanh %638 : vector<8x128xf32>
    %640 = arith.mulf %635, %639 : vector<8x128xf32>
    %c1_277 = arith.constant 1 : index
    %c0_278 = arith.constant 0 : index
    %c0_279 = arith.constant 0 : index
    %641 = vector.load %arg12[%c1_277, %c0_278, %c0_279] : memref<2x8x128xf32, #tpu.memory_space<vmem>>, vector<1x8x128xf32>
    %642 = vector.shape_cast %641 : vector<1x8x128xf32> to vector<8x128xf32>
    %643 = vector.shape_cast %640 : vector<8x128xf32> to vector<1x8x128xf32>
    tpu.vector_store %arg12[%c1_277, %c0_278, %c0_279], %643 {strides = array<i32>} : memref<2x8x128xf32, #tpu.memory_space<vmem>>, vector<1x8x128xf32>,
    %c1_280 = arith.constant 1 : index
    %c0_281 = arith.constant 0 : index
    %c0_282 = arith.constant 0 : index
    %644 = vector.load %arg13[%c1_280, %c0_281, %c0_282] : memref<2x8x128xf32, #tpu.memory_space<vmem>>, vector<1x8x128xf32>
    %645 = vector.shape_cast %644 : vector<1x8x128xf32> to vector<8x128xf32>
    %646 = vector.shape_cast %638 : vector<8x128xf32> to vector<1x8x128xf32>
    tpu.vector_store %arg13[%c1_280, %c0_281, %c0_282], %646 {strides = array<i32>} : memref<2x8x128xf32, #tpu.memory_space<vmem>>, vector<1x8x128xf32>,
    %c0_i32_283 = arith.constant 0 : i32
    %647 = arith.cmpi eq, %arg1, %c0_i32_283 : i32
    %648 = arith.extui %647 : i1 to i32
    %c0_i32_284 = arith.constant 0 : i32
    %649 = arith.cmpi ne, %648, %c0_i32_284 : i32
    scf.if %649 {
      %c1_285 = arith.constant 1 : index
      %c0_286 = arith.constant 0 : index
      %c0_287 = arith.constant 0 : index
      %650 = vector.load %arg12[%c1_285, %c0_286, %c0_287] : memref<2x8x128xf32, #tpu.memory_space<vmem>>, vector<1x8x128xf32>
      %651 = vector.shape_cast %650 : vector<1x8x128xf32> to vector<8x128xf32>
      %652 = arith.truncf %651 : vector<8x128xf32> to vector<8x128xbf16>
      %c0_288 = arith.constant 0 : index
      %c0_289 = arith.constant 0 : index
      %653 = vector.load %arg9[%c0_288, %c0_289] : memref<128x128xbf16, #tpu.memory_space<vmem>>, vector<128x128xbf16>
      %cst_290 = arith.constant dense<0.000000e+00> : vector<8x128xf32>
      %654 = tpu.matmul %652, %653, %cst_290 {dimension_numbers = #tpu.dot_dimension_numbers<[1], [0], [0], [1], [0, 0, 1, 1], [], []>} : vector<8x128xbf16>, vector<128x128xbf16>, vector<8x128xf32> -> vector<8x128xf32>
      %c0_291 = arith.constant 0 : index
      %c0_292 = arith.constant 0 : index
      %655 = vector.load %arg10[%c0_291, %c0_292] : memref<1x128xf32, #tpu.memory_space<vmem>>, vector<1x128xf32>
      %656 = vector.broadcast %655 : vector<1x128xf32> to vector<8x128xf32>
      %657 = arith.addf %654, %656 : vector<8x128xf32>
      %c0_293 = arith.constant 0 : index
      %c0_294 = arith.constant 0 : index
      %658 = vector.load %arg11[%c0_293, %c0_294] : memref<8x128xf32, #tpu.memory_space<vmem>>, vector<8x128xf32>
      tpu.vector_store %arg11[%c0_293, %c0_294], %657 {strides = array<i32>} : memref<8x128xf32, #tpu.memory_space<vmem>>, vector<8x128xf32>,
    } else {
    }
    return
  }
  func.func @transform_0(%arg0: i32, %arg1: i32) -> (i32, i32, i32) {
    %c0_i32 = arith.constant 0 : i32
    %c0_i32_0 = arith.constant 0 : i32
    return %arg1, %arg0, %c0_i32 : i32, i32, i32
  }
  func.func @transform_1(%arg0: i32, %arg1: i32) -> (i32, i32) {
    %c0_i32 = arith.constant 0 : i32
    %c0_i32_0 = arith.constant 0 : i32
    %c0_i32_1 = arith.constant 0 : i32
    return %c0_i32, %c0_i32_0 : i32, i32
  }
  func.func @transform_2(%arg0: i32, %arg1: i32) -> (i32, i32) {
    %c0_i32 = arith.constant 0 : i32
    %c0_i32_0 = arith.constant 0 : i32
    %c0_i32_1 = arith.constant 0 : i32
    return %c0_i32, %c0_i32_0 : i32, i32
  }
  func.func @transform_3(%arg0: i32, %arg1: i32) -> (i32, i32) {
    %c0_i32 = arith.constant 0 : i32
    %c0_i32_0 = arith.constant 0 : i32
    %c0_i32_1 = arith.constant 0 : i32
    return %c0_i32, %c0_i32_0 : i32, i32
  }
  func.func @transform_4(%arg0: i32, %arg1: i32) -> (i32, i32) {
    %c0_i32 = arith.constant 0 : i32
    %c0_i32_0 = arith.constant 0 : i32
    %c0_i32_1 = arith.constant 0 : i32
    return %c0_i32, %c0_i32_0 : i32, i32
  }
  func.func @transform_5(%arg0: i32, %arg1: i32) -> (i32, i32) {
    %c0_i32 = arith.constant 0 : i32
    %c0_i32_0 = arith.constant 0 : i32
    %c0_i32_1 = arith.constant 0 : i32
    return %c0_i32, %c0_i32_0 : i32, i32
  }
  func.func @transform_6(%arg0: i32, %arg1: i32) -> (i32, i32) {
    %c0_i32 = arith.constant 0 : i32
    %c0_i32_0 = arith.constant 0 : i32
    %c0_i32_1 = arith.constant 0 : i32
    return %c0_i32, %c0_i32_0 : i32, i32
  }
  func.func @transform_7(%arg0: i32, %arg1: i32) -> (i32, i32) {
    %c0_i32 = arith.constant 0 : i32
    %c0_i32_0 = arith.constant 0 : i32
    %c0_i32_1 = arith.constant 0 : i32
    return %c0_i32, %c0_i32_0 : i32, i32
  }
  func.func @transform_8(%arg0: i32, %arg1: i32) -> (i32, i32) {
    %c0_i32 = arith.constant 0 : i32
    %c0_i32_0 = arith.constant 0 : i32
    %c0_i32_1 = arith.constant 0 : i32
    return %c0_i32, %c0_i32_0 : i32, i32
  }
  func.func @transform_9(%arg0: i32, %arg1: i32) -> (i32, i32) {
    %c0_i32 = arith.constant 0 : i32
    %c0_i32_0 = arith.constant 0 : i32
    return %arg0, %c0_i32 : i32, i32
  }
}

</mosaic_0001>

<bundles_post_ra>
// kernel: _lstm_forward_impl.1
= control target key start
LH: loop header
LB: loop body
LE: loop exit
PB: predicated region body
PF: predicated region fallthrough
CT: control target
= control target key end

     0   :  { %vm103_vm0 = vcmask 130048   ;;  %s8340_s1 = inlined_call_operand.vmem [shape: bf16[16,512], index: 1, kind: input, shape index: {}]   ;;  %s8341_s0 = inlined_call_operand.vmem [shape: bf16[8,8,16], index: 0, kind: input, shape index: {}]   ;;  %s8342_s2 = inlined_call_operand.vmem [shape: bf16[128,512], index: 2, kind: input, shape index: {}]   ;;  %s8343_s3 = inlined_call_operand.vmem [shape: f32[1,512], index: 3, kind: input, shape index: {}]   ;;  %s8344_s4 = inlined_call_operand.vmem [shape: bf16[128,512], index: 4, kind: input, shape index: {}]   ;;  %s8345_s5 = inlined_call_operand.vmem [shape: bf16[128,512], index: 5, kind: input, shape index: {}]   ;;  %s8346_s6 = inlined_call_operand.vmem [shape: f32[1,512], index: 6, kind: input, shape index: {}]   ;;  %s8347_s8 = inlined_call_operand.vmem [shape: f32[1,128], index: 8, kind: input, shape index: {}]   ;;  %s8348_s7 = inlined_call_operand.vmem [shape: bf16[128,128], index: 7, kind: input, shape index: {}]   ;;  %s8349_s9 = inlined_call_operand.vmem [shape: f32[8,128], index: 9, kind: output, shape index: {}]  }
   0x1   :  { %v3766_v0 = vld [vmem:[%s8340_s1] sm:$0xf]  ;;  %v5130_v1 = vld [vmem:[%s8340_s1 + $0xc] sm:$0xf0]  ;;  %v3774_v2 = vld [vmem:[%s8340_s1 + $0x8] sm:$0xf] }
   0x2   :  { %v3767_v3 = vor.u32 %v5130_v1, %v3766_v0  ;;  %v5131_v4 = vld [vmem:[%s8340_s1 + $0x14] sm:$0xf0]  ;;  %v5129_v5 = vld [vmem:[%s8340_s1 + $0xc] sm:$0xf]  ;;  %v3776_v6 = vld [vmem:[%s8340_s1 + $0x18] sm:$0xf0] }
   0x3   :  { %v3775_v7 = vor.u32 %v5131_v4, %v3774_v2  ;;  %v3779_v8 = vor.u32 %v5129_v5, %v3776_v6  ;;  %v5699_v9 = vld [vmem:[%s8341_s0] sm:$0xff]  ;;  %v5704_v10 = vld [vmem:[%s8341_s0 + $0x18] sm:$0xff]  ;;  %v3768_v12 = vld [vmem:[%s8340_s1 + $0x10] sm:$0xf0] }
   0x4   :  { %v5128_v11 = vld [vmem:[%s8340_s1 + $0x4] sm:$0xf]  ;;  %123 = vmatpush.bf16.msra.mxu0 %v3767_v3  ;;  %5464 = vmatpush.bf16.msra.mxu1 %v3767_v3  ;;  %v3912_v15 = vld [vmem:[%s8342_s2 + $0xf0] sm:$0xf0]  ;;  %v3918_v16 = vld [vmem:[%s8342_s2 + $0xe8] sm:$0xf] }
   0x5   :  { %v5160_v13 = vld [vmem:[%s8342_s2 + $0xe4] sm:$0xf]  ;;  %181 = vmatpush.bf16.msra.mxu2 %v3775_v7  ;;  %210 = vmatpush.bf16.msra.mxu3 %v3779_v8  ;;  %v3771_v14 = vor.u32 %v5128_v11, %v3768_v12  ;;  %v5163_v17 = vld [vmem:[%s8342_s2 + $0xf4] sm:$0xf0]  ;;  %v3910_v20 = vld [vmem:[%s8342_s2 + $0xe0] sm:$0xf] }
   0x6   :  { %v3915_v18 = vor.u32 %v5160_v13, %v3912_v15  ;;  %v3919_v19 = vor.u32 %v5163_v17, %v3918_v16  ;;  %v5162_v21 = vld [vmem:[%s8342_s2 + $0xec] sm:$0xf0]  ;;  %v3894_v22 = vld [vmem:[%s8342_s2 + $0xc0] sm:$0xf]  ;;  %v5161_v25 = vld [vmem:[%s8342_s2 + $0xec] sm:$0xf] }
   0x7   :  { %3780 = vmatmul.msk.bf16.vlgmr.msra.gmra.mxu0 %vm103_vm0, %v5699_v9  ;;  %3783 = vmatmul.msk.bf16.vlgmr.msra.gmra.mxu1 %vm103_vm0, %v5704_v10  ;;  %v3911_v23 = vor.u32 %v5162_v21, %v3910_v20  ;;  %v5158_v24 = vld [vmem:[%s8342_s2 + $0xcc] sm:$0xf0]  ;;  %v3920_v26 = vld [vmem:[%s8342_s2 + $0xf8] sm:$0xf0]  ;;  %v5156_v28 = vld [vmem:[%s8342_s2 + $0xc4] sm:$0xf] }
   0x8   :  { %152 = vmatpush.bf16.msrb.mxu1 %v3771_v14  ;;  %3788 = vmatmul.msk.bf16.vlgmr.msra.gmra.mxu2 %vm103_vm0, %v5699_v9  ;;  %v3923_v27 = vor.u32 %v5161_v25, %v3920_v26  ;;  %v3896_v29 = vld [vmem:[%s8342_s2 + $0xd0] sm:$0xf0]  ;;  %v3902_v30 = vld [vmem:[%s8342_s2 + $0xc8] sm:$0xf]  ;;  %v5159_v32 = vld [vmem:[%s8342_s2 + $0xd4] sm:$0xf0]  ;;  %v3895_v33 = vor.u32 %v5158_v24, %v3894_v22 }
   0x9   :  { %3792 = vmatmul.msk.bf16.vlgmr.msra.gmra.mxu3 %vm103_vm0, %v5699_v9  ;;  %v3899_v31 = vor.u32 %v5156_v28, %v3896_v29  ;;  %489 = vmatpush.bf16.msrb.mxu2 %v3919_v19  ;;  %v3903_v34 = vor.u32 %v5159_v32, %v3902_v30  ;;  %v3878_v35 = vld [vmem:[%s8342_s2 + $0xa0] sm:$0xf]  ;;  %v5157_v36 = vld [vmem:[%s8342_s2 + $0xcc] sm:$0xf]  ;;  %v5154_v37 = vld [vmem:[%s8342_s2 + $0xac] sm:$0xf0] }
   0xa   :  { %463 = vmatpush.bf16.msrb.mxu0 %v3911_v23  ;;  %502 = vmatpush.bf16.msrb.mxu3 %v3923_v27  ;;  %v3904_v38 = vld [vmem:[%s8342_s2 + $0xd8] sm:$0xf0]  ;;  %v5152_v39 = vld [vmem:[%s8342_s2 + $0xa4] sm:$0xf]  ;;  %v3880_v41 = vld [vmem:[%s8342_s2 + $0xb0] sm:$0xf0]  ;;  %v3879_v46 = vor.u32 %v5154_v37, %v3878_v35 }
   0xb   :  { %v3907_v40 = vor.u32 %v5157_v36, %v3904_v38  ;;  %v3886_v42 = vld [vmem:[%s8342_s2 + $0xa8] sm:$0xf]  ;;  %v5155_v43 = vld [vmem:[%s8342_s2 + $0xb4] sm:$0xf0]  ;;  %v3862_v44 = vld [vmem:[%s8342_s2 + $0x80] sm:$0xf]  ;;  %v3883_v45 = vor.u32 %v5152_v39, %v3880_v41 }
   0xc   :  { %476 = vmatpush.bf16.msra.mxu1 %v3915_v18  ;;  %v5150_v47 = vld [vmem:[%s8342_s2 + $0x8c] sm:$0xf0]  ;;  %v3887_v48 = vor.u32 %v5155_v43, %v3886_v42  ;;  %v5153_v49 = vld [vmem:[%s8342_s2 + $0xac] sm:$0xf]  ;;  %v3888_v50 = vld [vmem:[%s8342_s2 + $0xb8] sm:$0xf0] }
   0xd   :  { %490 = vmatpush.bf16.msrb.mxu2 %v3903_v34  ;;  %v3891_v51 = vor.u32 %v5153_v49, %v3888_v50  ;;  %v5148_v52 = vld [vmem:[%s8342_s2 + $0x84] sm:$0xf]  ;;  %v3864_v53 = vld [vmem:[%s8342_s2 + $0x90] sm:$0xf0]  ;;  %v3870_v54 = vld [vmem:[%s8342_s2 + $0x88] sm:$0xf]  ;;  %v3863_v58 = vor.u32 %v5150_v47, %v3862_v44 }
   0xe   :  { %464 = vmatpush.bf16.msrb.mxu0 %v3895_v33  ;;  %503 = vmatpush.bf16.msrb.mxu3 %v3907_v40  ;;  %v5151_v55 = vld [vmem:[%s8342_s2 + $0x94] sm:$0xf0]  ;;  %v3867_v56 = vor.u32 %v5148_v52, %v3864_v53  ;;  %v5149_v57 = vld [vmem:[%s8342_s2 + $0x8c] sm:$0xf]  ;;  %v3872_v60 = vld [vmem:[%s8342_s2 + $0x98] sm:$0xf0] }
   0xf   :  { %v3871_v59 = vor.u32 %v5151_v55, %v3870_v54  ;;  %v5819_v61 = vld [vmem:[%s8341_s0 + $0x8] sm:$0xff]  ;;  %v3846_v62 = vld [vmem:[%s8342_s2 + $0x60] sm:$0xf]  ;;  %v5146_v63 = vld [vmem:[%s8342_s2 + $0x6c] sm:$0xf0]  ;;  %v3875_v0 = vor.u32 %v5149_v57, %v3872_v60  ;;  %v5627_v49 = vmov 0.0|0.0  }
  0x10   :  { %477 = vmatpush.bf16.msra.mxu1 %v3899_v31  ;;  %v3847_v1 = vor.u32 %v5146_v63, %v3846_v62  ;;  %v3830_v2 = vld [vmem:[%s8342_s2 + $0x40] sm:$0xf]  ;;  %v5142_v3 = vld [vmem:[%s8342_s2 + $0x4c] sm:$0xf0]  ;;  %v3854_v4 = vld [vmem:[%s8342_s2 + $0x68] sm:$0xf] }
  0x11   :  { %491 = vmatpush.bf16.msrb.mxu2 %v3887_v48  ;;  %v5147_v5 = vld [vmem:[%s8342_s2 + $0x74] sm:$0xf0]  ;;  %v5145_v6 = vld [vmem:[%s8342_s2 + $0x6c] sm:$0xf]  ;;  %v3856_v8 = vld [vmem:[%s8342_s2 + $0x78] sm:$0xf0]  ;;  %v3831_v16 = vor.u32 %v5142_v3, %v3830_v2 }
  0x12   :  { %465 = vmatpush.bf16.msrb.mxu0 %v3879_v46  ;;  %504 = vmatpush.bf16.msrb.mxu3 %v3891_v51  ;;  %v3855_v7 = vor.u32 %v5147_v5, %v3854_v4  ;;  %v5138_v11 = vld [vmem:[%s8342_s2 + $0x2c] sm:$0xf0]  ;;  %v5144_v12 = vld [vmem:[%s8342_s2 + $0x64] sm:$0xf]  ;;  %v3848_v13 = vld [vmem:[%s8342_s2 + $0x70] sm:$0xf0]  ;;  %v3859_v14 = vor.u32 %v5145_v6, %v3856_v8 }
  0x13   :  { %v3838_v15 = vld [vmem:[%s8342_s2 + $0x48] sm:$0xf]  ;;  %v3851_v17 = vor.u32 %v5144_v12, %v3848_v13  ;;  %v5143_v18 = vld [vmem:[%s8342_s2 + $0x54] sm:$0xf0]  ;;  %v5141_v19 = vld [vmem:[%s8342_s2 + $0x4c] sm:$0xf] }
  0x14   :  { %478 = vmatpush.bf16.msra.mxu1 %v3883_v45  ;;  %v3840_v20 = vld [vmem:[%s8342_s2 + $0x58] sm:$0xf0]  ;;  %v3839_v21 = vor.u32 %v5143_v18, %v3838_v15  ;;  %v5140_v22 = vld [vmem:[%s8342_s2 + $0x44] sm:$0xf]  ;;  %v3832_v23 = vld [vmem:[%s8342_s2 + $0x50] sm:$0xf0] }
  0x15   :  { %492 = vmatpush.bf16.msrb.mxu2 %v3871_v59  ;;  %v3822_v24 = vld [vmem:[%s8342_s2 + $0x28] sm:$0xf]  ;;  %v3843_v25 = vor.u32 %v5141_v19, %v3840_v20  ;;  %v3835_v26 = vor.u32 %v5140_v22, %v3832_v23  ;;  %v5139_v27 = vld [vmem:[%s8342_s2 + $0x34] sm:$0xf0]  ;;  %v5137_v28 = vld [vmem:[%s8342_s2 + $0x2c] sm:$0xf] }
  0x16   :  { %466 = vmatpush.bf16.msrb.mxu0 %v3863_v58  ;;  %505 = vmatpush.bf16.msrb.mxu3 %v3875_v0  ;;  %v3824_v29 = vld [vmem:[%s8342_s2 + $0x38] sm:$0xf0]  ;;  %v3798_v31 = vld [vmem:[%s8342_s2] sm:$0xf]  ;;  %v3823_v32 = vor.u32 %v5139_v27, %v3822_v24  ;;  %v5134_v33 = vld [vmem:[%s8342_s2 + $0xc] sm:$0xf0] }
  0x17   :  { %3781 = vmatmul.msk.bf16.gmra.mxu0 %vm103_vm0, %v5819_v61  ;;  %3784 = vmatmul.msk.bf16.vlgmr.msrb.gmra.mxu1 %vm103_vm0, %v5699_v9  ;;  %v3814_v9 = vld [vmem:[%s8342_s2 + $0x20] sm:$0xf]  ;;  %v3806_v34 = vld [vmem:[%s8342_s2 + $0x8] sm:$0xf]  ;;  %v5135_v35 = vld [vmem:[%s8342_s2 + $0x14] sm:$0xf0]  ;;  %v3827_v36 = vor.u32 %v5137_v28, %v3824_v29  ;;  %v3799_v39 = vor.u32 %v5134_v33, %v3798_v31 }
  0x18   :  { %479 = vmatpush.bf16.msra.mxu1 %v3867_v56  ;;  %3789 = vmatmul.msk.bf16.gmra.mxu2 %vm103_vm0, %v5819_v61  ;;  %v3815_v30 = vor.u32 %v5138_v11, %v3814_v9  ;;  %v5133_v37 = vld [vmem:[%s8342_s2 + $0xc] sm:$0xf]  ;;  %v3808_v38 = vld [vmem:[%s8342_s2 + $0x18] sm:$0xf0]  ;;  %v3807_v40 = vor.u32 %v5135_v35, %v3806_v34  ;;  %v5126_v41 = vld [vmem:[%s8341_s0 + $0x10] sm:$0xff] }
  0x19   :  { %3793 = vmatmul.msk.bf16.gmra.mxu3 %vm103_vm0, %v5819_v61  ;;  %493 = vmatpush.bf16.msrb.mxu2 %v3855_v7  ;;  %v3811_v42 = vor.u32 %v5133_v37, %v3808_v38  ;;  %v5136_v43 = vld [vmem:[%s8342_s2 + $0x24] sm:$0xf]  ;;  %v3816_v44 = vld [vmem:[%s8342_s2 + $0x30] sm:$0xf0]  ;;  %v53_v50 = vld [vmem:[%s8343_s3] sm:$0xf] }
  0x1a   :  { %467 = vmatpush.bf16.msrb.mxu0 %v3847_v1  ;;  %506 = vmatpush.bf16.msrb.mxu3 %v3859_v14  ;;  %v3819_v45 = vor.u32 %v5136_v43, %v3816_v44  ;;  %v5132_v46 = vld [vmem:[%s8342_s2 + $0x4] sm:$0xf]  ;;  %v3800_v47 = vld [vmem:[%s8342_s2 + $0x10] sm:$0xf0]  ;;  %v5947_v51 = vperm.slane %v53_v50, 0  ;;  %v5971_v63 = vperm.slane %v53_v50, 2 }
  0x1b   :  { %v3803_v48 = vor.u32 %v5132_v46, %v3800_v47  ;;  %v5973_v0 = vperm.slane %v53_v50, 3  ;;  %v5987_v8 = vperm.slane %v53_v50, 1  ;;  %v4038_v22 = vld [vmem:[%s8342_s2 + $0xe0] sm:$0xf]  ;;  %v5194_v23 = vld [vmem:[%s8342_s2 + $0xec] sm:$0xf0] }
  0x1c   :  { %480 = vmatpush.bf16.msra.mxu1 %v3851_v17  ;;  %v5192_v24 = vld [vmem:[%s8342_s2 + $0xe4] sm:$0xf]  ;;  %v4039_v27 = vor.u32 %v5194_v23, %v4038_v22  ;;  %v4040_v28 = vld [vmem:[%s8342_s2 + $0xf0] sm:$0xf0]  ;;  %v4046_v29 = vld [vmem:[%s8342_s2 + $0xe8] sm:$0xf] }
  0x1d   :  { %494 = vmatpush.bf16.msrb.mxu2 %v3839_v21  ;;  %v5193_v34 = vld [vmem:[%s8342_s2 + $0xec] sm:$0xf]  ;;  %v4048_v35 = vld [vmem:[%s8342_s2 + $0xf8] sm:$0xf0]  ;;  %v4022_v38 = vld [vmem:[%s8342_s2 + $0xc0] sm:$0xf] }
  0x1e   :  { %468 = vmatpush.bf16.msrb.mxu0 %v3831_v16  ;;  %507 = vmatpush.bf16.msrb.mxu3 %v3843_v25  ;;  %v4051_v37 = vor.u32 %v5193_v34, %v4048_v35  ;;  %v4030_v43 = vld [vmem:[%s8342_s2 + $0xc8] sm:$0xf]  ;;  %v5189_v46 = vld [vmem:[%s8342_s2 + $0xcc] sm:$0xf]  ;;  %v4032_v47 = vld [vmem:[%s8342_s2 + $0xd8] sm:$0xf0] }
  0x1f   :  { %v4035_v50 = vor.u32 %v5189_v46, %v4032_v47  ;;  %v4008_v23 = vld [vmem:[%s8342_s2 + $0xb0] sm:$0xf0]  ;;  %v3990_v35 = vld [vmem:[%s8342_s2 + $0x80] sm:$0xf] }
  0x20   :  { %481 = vmatpush.bf16.msra.mxu1 %v3835_v26 }
  0x21   :  { %495 = vmatpush.bf16.msrb.mxu2 %v3823_v32  ;;  %v4043_v32 = vor.u32 %v5192_v24, %v4040_v28  ;;  %v4014_v24 = vld [vmem:[%s8342_s2 + $0xa8] sm:$0xf] }
  0x22   :  { %469 = vmatpush.bf16.msrb.mxu0 %v3815_v30  ;;  %508 = vmatpush.bf16.msrb.mxu3 %v3827_v36  ;;  %v5195_v30 = vld [vmem:[%s8342_s2 + $0xf4] sm:$0xf0] }
  0x23   :  { %v4047_v33 = vor.u32 %v5195_v30, %v4046_v29 }
  0x24   :  { %482 = vmatpush.bf16.msra.mxu1 %v3819_v45  ;;  %v5191_v45 = vld [vmem:[%s8342_s2 + $0xd4] sm:$0xf0] }
  0x25   :  { %496 = vmatpush.bf16.msrb.mxu2 %v3807_v40 }
  0x26   :  { %470 = vmatpush.bf16.msrb.mxu0 %v3799_v39  ;;  %509 = vmatpush.bf16.msrb.mxu3 %v3811_v42  ;;  %v5190_v39 = vld [vmem:[%s8342_s2 + $0xcc] sm:$0xf0]  ;;  %v4024_v42 = vld [vmem:[%s8342_s2 + $0xd0] sm:$0xf0] }
  0x27   :  { %3782 = vmatmul.msk.bf16.gmra.mxu0 %vm103_vm0, %v5126_v41  ;;  %3785 = vmatmul.msk.bf16.gmra.mxu1 %vm103_vm0, %v5819_v61  ;;  %v4023_v40 = vor.u32 %v5190_v39, %v4022_v38  ;;  %v5180_v38 = vld [vmem:[%s8342_s2 + $0x84] sm:$0xf] }
  0x28   :  { %3790 = vmatmul.msk.bf16.gmra.mxu2 %vm103_vm0, %v5126_v41  ;;  %483 = vmatpush.bf16.msra.mxu1 %v3803_v48  ;;  %v4031_v48 = vor.u32 %v5191_v45, %v4030_v43  ;;  %v5181_v43 = vld [vmem:[%s8342_s2 + $0x8c] sm:$0xf] }
  0x29   :  { %3794 = vmatmul.msk.bf16.gmra.mxu3 %vm103_vm0, %v5126_v41  ;;  %761 = vmatpush.bf16.msra.mxu2 %v4047_v33 }
  0x2a   :  { %735 = vmatpush.bf16.msra.mxu0 %v4039_v27  ;;  %774 = vmatpush.bf16.msra.mxu3 %v4051_v37  ;;  %v5182_v37 = vld [vmem:[%s8342_s2 + $0x8c] sm:$0xf0] }
  0x2b   :  { %v3991_v39 = vor.u32 %v5182_v37, %v3990_v35  ;;  %v3960_v37 = vld [vmem:[%s8342_s2 + $0x50] sm:$0xf0] }
  0x2c   :  { %748 = vmatpush.bf16.msrb.mxu1 %v4043_v32  ;;  %v4016_v32 = vld [vmem:[%s8342_s2 + $0xb8] sm:$0xf0] }
  0x2d   :  { %762 = vmatpush.bf16.msra.mxu2 %v4031_v48 }
  0x2e   :  { %736 = vmatpush.bf16.msra.mxu0 %v4023_v40  ;;  %775 = vmatpush.bf16.msra.mxu3 %v4035_v50  ;;  %v3998_v40 = vld [vmem:[%s8342_s2 + $0x88] sm:$0xf]  ;;  %v3974_v50 = vld [vmem:[%s8342_s2 + $0x60] sm:$0xf] }
  0x37   :  { %3786 = vmatmul.msk.bf16.gmra.mxu1 %vm103_vm0, %v5126_v41  ;;  %471 = vmatmul.bf16.vlgmr.msrb.gmra.mxu0 %v5627_v49  ;;  %v5188_v41 = vld [vmem:[%s8342_s2 + $0xc4] sm:$0xf] }
  0x38   :  { %3791 = vmatmul.msk.bf16.gmra.mxu2 %vm103_vm0, %v5704_v10  ;;  %v4027_v44 = vor.u32 %v5188_v41, %v4024_v42  ;;  %v5183_v42 = vld [vmem:[%s8342_s2 + $0x94] sm:$0xf0] }
  0x39   :  { %3795 = vmatmul.msk.bf16.gmra.mxu3 %vm103_vm0, %v5704_v10  ;;  %v3999_v46 = vor.u32 %v5183_v42, %v3998_v40  ;;  %v3968_v42 = vld [vmem:[%s8342_s2 + $0x58] sm:$0xf0] }
  0x3a   :  { %749 = vmatpush.bf16.msrb.mxu1 %v4027_v44  ;;  %v4000_v44 = vld [vmem:[%s8342_s2 + $0x98] sm:$0xf0] }
  0x3b   :  { %v4003_v47 = vor.u32 %v5181_v43, %v4000_v44  ;;  %v3942_v43 = vld [vmem:[%s8342_s2 + $0x20] sm:$0xf] }
  0x47   :  { %3787 = vmatmul.msk.bf16.gmra.mxu1 %vm103_vm0, %v5704_v10 }
  0x48   :  { %497 = vmatmul.bf16.vlgmr.msrb.gmra.mxu2 %v5627_v49 }
  0x49   :  { %510 = vmatmul.bf16.vlgmr.msrb.gmra.mxu3 %v5627_v49 }
  0x57   :  { %484 = vmatmul.bf16.vlgmr.msra.gmra.mxu1 %v5627_v49 }
  0x84   :  { %v5949_v52 = vpop.f32.mrf.mxu0  ;;  %v140_v53 = vpop.f32.mrf.mxu1 }
  0x85   :  { %v5952_v54 = vadd.f32 %v140_v53, %v5947_v51 }
  0x8b   :  { %v5954_v55 = vpop.f32.mrf.mxu2 }
  0x8c   :  { %v5956_v10 = vpop.f32.mrf.mxu3  ;;  %v5958_v56 = vpop.f32.mrf.mxu0  ;;  %v184_v44 = vadd.f32 %v5954_v55, %v5971_v63  ;;  %v3950_v55 = vld [vmem:[%s8342_s2 + $0x28] sm:$0xf] }
  0x8d   :  { %v5960_v57 = vpop.f32.mrf.mxu1 }
  0x93   :  { %v5962_v58 = vpop.f32.mrf.mxu2 }
  0x94   :  { %v5964_v59 = vpop.f32.mrf.mxu3  ;;  %v130_v60 = vpop.f32.mrf.mxu0 }
  0x95   :  { %v5967_v61 = vadd.f32 %v130_v60, %v5947_v51  ;;  %v5969_v62 = vpop.f32.mrf.mxu1  ;;  %v4006_v60 = vld [vmem:[%s8342_s2 + $0xa0] sm:$0xf] }
  0x9b   :  { %v188_v1 = vpop.f32.mrf.mxu2 }
  0x9c   :  { %v5976_v2 = vadd.f32 %v188_v1, %v5971_v63  ;;  %v217_v3 = vpop.f32.mrf.mxu3  ;;  %v5978_v4 = vpop.f32.mrf.mxu0  ;;  %v5186_v1 = vld [vmem:[%s8342_s2 + $0xac] sm:$0xf0] }
  0x9d   :  { %v5981_v5 = vadd.f32 %v217_v3, %v5973_v0  ;;  %v5983_v6 = vpop.f32.mrf.mxu1  ;;  %v5184_v3 = vld [vmem:[%s8342_s2 + $0xa4] sm:$0xf]  ;;  %v4007_v22 = vor.u32 %v5186_v1, %v4006_v60 }
  0x9e   :  { %v4011_v29 = vor.u32 %v5184_v3, %v4008_v23  ;;  %v5176_v60 = vld [vmem:[%s8342_s2 + $0x64] sm:$0xf] }
  0x9f   :  { %737 = vmatpush.bf16.msra.mxu0 %v4007_v22 }
  0xa0   :  { %750 = vmatpush.bf16.msrb.mxu1 %v4011_v29  ;;  %v3984_v29 = vld [vmem:[%s8342_s2 + $0x78] sm:$0xf0] }
  0xa3   :  { %v5985_v7 = vpop.f32.mrf.mxu2  ;;  %738 = vmatpush.bf16.msra.mxu0 %v3991_v39  ;;  %v5175_v39 = vld [vmem:[%s8342_s2 + $0x54] sm:$0xf0] }
  0xa4   :  { %v5989_v9 = vpop.f32.mrf.mxu3  ;;  %v135_v11 = vpop.f32.mrf.mxu0 }
  0xa5   :  { %v5992_v12 = vadd.f32 %v135_v11, %v5947_v51  ;;  %v159_v13 = vpop.f32.mrf.mxu1  ;;  %v126_v11 = vadd.f32 %v5949_v52, %v5947_v51  ;;  %v5187_v52 = vld [vmem:[%s8342_s2 + $0xb4] sm:$0xf0] }
  0xa6   :  { %v5995_v14 = vadd.f32 %v159_v13, %v5987_v8  ;;  %v4015_v30 = vor.u32 %v5187_v52, %v4014_v24  ;;  %v5177_v52 = vld [vmem:[%s8342_s2 + $0x6c] sm:$0xf] }
  0xa8   :  { %763 = vmatpush.bf16.msra.mxu2 %v4015_v30 }
  0xab   :  { %v193_v15 = vpop.f32.mrf.mxu2 }
  0xac   :  { %v5998_v16 = vadd.f32 %v193_v15, %v5971_v63  ;;  %v222_v17 = vpop.f32.mrf.mxu3  ;;  %v6000_v18 = vpop.f32.mrf.mxu0  ;;  %764 = vmatpush.bf16.msra.mxu2 %v3999_v46  ;;  %v5170_v46 = vld [vmem:[%s8342_s2 + $0x2c] sm:$0xf0] }
  0xad   :  { %v6003_v19 = vadd.f32 %v222_v17, %v5973_v0  ;;  %v6005_v20 = vpop.f32.mrf.mxu1 }
  0xb3   :  { %v6007_v21 = vpop.f32.mrf.mxu2 }
  0xb4   :  { %v6018_v25 = vpop.f32.mrf.mxu3  ;;  %v472_v26 = vpop.f32.mrf.mxu0 }
  0xb5   :  { %v164_v31 = vpop.f32.mrf.mxu1  ;;  %v515_v33 = vadd.f32 %v472_v26, %v126_v11  ;;  %v3992_v26 = vld [vmem:[%s8342_s2 + $0x90] sm:$0xf0] }
  0xb6   :  { %v6036_v36 = vadd.f32 %v164_v31, %v5987_v8  ;;  %v5185_v31 = vld [vmem:[%s8342_s2 + $0xac] sm:$0xf]  ;;  %v3995_v41 = vor.u32 %v5180_v38, %v3992_v26  ;;  %v3976_v11 = vld [vmem:[%s8342_s2 + $0x70] sm:$0xf0]  ;;  %v3966_v38 = vld [vmem:[%s8342_s2 + $0x48] sm:$0xf] }
  0xb7   :  { %v4019_v34 = vor.u32 %v5185_v31, %v4016_v32  ;;  %v519_v45 = vmul.f32 0.5, %v515_v33  ;;  %v3979_v23 = vor.u32 %v5176_v60, %v3976_v11  ;;  %v3987_v31 = vor.u32 %v5177_v52, %v3984_v29  ;;  %v3958_v32 = vld [vmem:[%s8342_s2 + $0x40] sm:$0xf]  ;;  %v5174_v33 = vld [vmem:[%s8342_s2 + $0x4c] sm:$0xf0] }
  0xb8   :  { %751 = vmatpush.bf16.msrb.mxu1 %v3995_v41  ;;  %v3959_v35 = vor.u32 %v5174_v33, %v3958_v32  ;;  %v3967_v40 = vor.u32 %v5175_v39, %v3966_v38  ;;  %v5173_v41 = vld [vmem:[%s8342_s2 + $0x4c] sm:$0xf]  ;;  %v3943_v60 = vor.u32 %v5170_v46, %v3942_v43  ;;  %v5171_v11 = vld [vmem:[%s8342_s2 + $0x34] sm:$0xf0]  ;;  %v3952_v52 = vld [vmem:[%s8342_s2 + $0x38] sm:$0xf0] }
  0xb9   :  { %776 = vmatpush.bf16.msra.mxu3 %v4019_v34  ;;  %5467 = vtanh.f32 %v519_v45  ;;  %v5172_v34 = vld [vmem:[%s8342_s2 + $0x44] sm:$0xf]  ;;  %v3971_v45 = vor.u32 %v5173_v41, %v3968_v42  ;;  %v3926_v29 = vld [vmem:[%s8342_s2] sm:$0xf]  ;;  %v5167_v39 = vld [vmem:[%s8342_s2 + $0x14] sm:$0xf0] }
  0xba   :  { %v3963_v26 = vor.u32 %v5172_v34, %v3960_v37  ;;  %v5164_v34 = vld [vmem:[%s8342_s2 + $0x4] sm:$0xf]  ;;  %v3934_v37 = vld [vmem:[%s8342_s2 + $0x8] sm:$0xf] }
  0xbb   :  { %v198_v53 = vpop.f32.mrf.mxu2  ;;  %v3935_v43 = vor.u32 %v5167_v39, %v3934_v37 }
  0xbc   :  { %v6074_v13 = vadd.f32 %v198_v53, %v5971_v63  ;;  %v227_v15 = vpop.f32.mrf.mxu3  ;;  %v474_v17 = vpop.f32.mrf.mxu0  ;;  %v5178_v53 = vld [vmem:[%s8342_s2 + $0x6c] sm:$0xf0]  ;;  %752 = vmatpush.bf16.msrb.mxu1 %v3979_v23 }
  0xbd   :  { %v6086_v27 = vadd.f32 %v227_v15, %v5973_v0  ;;  %v6088_v28 = vpop.f32.mrf.mxu1  ;;  %777 = vmatpush.bf16.msra.mxu3 %v4003_v47  ;;  %v3975_v3 = vor.u32 %v5178_v53, %v3974_v50  ;;  %v3982_v15 = vld [vmem:[%s8342_s2 + $0x68] sm:$0xf]  ;;  %v5179_v17 = vld [vmem:[%s8342_s2 + $0x74] sm:$0xf0]  ;;  %v5168_v47 = vld [vmem:[%s8342_s2 + $0x24] sm:$0xf] }
  0xbe   :  { %v3983_v24 = vor.u32 %v5179_v17, %v3982_v15  ;;  %v3944_v50 = vld [vmem:[%s8342_s2 + $0x30] sm:$0xf0]  ;;  %v5169_v15 = vld [vmem:[%s8342_s2 + $0x2c] sm:$0xf] }
  0xbf   :  { %739 = vmatpush.bf16.msra.mxu0 %v3975_v3  ;;  %v3947_v3 = vor.u32 %v5168_v47, %v3944_v50  ;;  %v5468_v17 = vpop.eup %5467  ;;  %v3955_v33 = vor.u32 %v5169_v15, %v3952_v52  ;;  %v155_v50 = vadd.f32 %v5969_v62, %v5987_v8 }
  0xc0   :  { %765 = vmatpush.bf16.msra.mxu2 %v3983_v24  ;;  %753 = vmatpush.bf16.msrb.mxu1 %v3963_v26  ;;  %v3951_v24 = vor.u32 %v5171_v11, %v3950_v55  ;;  %v5165_v26 = vld [vmem:[%s8342_s2 + $0xc] sm:$0xf]  ;;  %v521_v41 = vadd.f32 1.0, %v5468_v17 }
  0xc1   :  { %778 = vmatpush.bf16.msra.mxu3 %v3987_v31  ;;  %v5166_v31 = vld [vmem:[%s8342_s2 + $0xc] sm:$0xf0] }
  0xc2   :  { %v3927_v38 = vor.u32 %v5166_v31, %v3926_v29 }
  0xc3   :  { %v6120_v48 = vpop.f32.mrf.mxu2  ;;  %740 = vmatpush.bf16.msra.mxu0 %v3959_v35  ;;  %v3928_v35 = vld [vmem:[%s8342_s2 + $0x10] sm:$0xf0] }
  0xc4   :  { %v6131_v1 = vpop.f32.mrf.mxu3  ;;  %766 = vmatpush.bf16.msra.mxu2 %v3967_v40  ;;  %v3936_v40 = vld [vmem:[%s8342_s2 + $0x18] sm:$0xf0]  ;;  %754 = vmatpush.bf16.msrb.mxu1 %v3947_v3  ;;  %v3931_v42 = vor.u32 %v5164_v34, %v3928_v35  ;;  %v213_v3 = vadd.f32 %v5956_v10, %v5973_v0 }
  0xc5   :  { %v169_v22 = vpop.f32.mrf.mxu1  ;;  %779 = vmatpush.bf16.msra.mxu3 %v3971_v45  ;;  %v522_v45 = vmul.f32 0.5, %v521_v41 }
  0xc6   :  { %v6149_v30 = vadd.f32 %v169_v22, %v5987_v8 }
  0xc7   :  { %741 = vmatpush.bf16.msra.mxu0 %v3943_v60 }
  0xc8   :  { %767 = vmatpush.bf16.msra.mxu2 %v3951_v24  ;;  %755 = vmatpush.bf16.msrb.mxu1 %v3931_v42  ;;  %v4168_v42 = vld [vmem:[%s8342_s2 + $0xf0] sm:$0xf0] }
  0xc9   :  { %780 = vmatpush.bf16.msra.mxu3 %v3955_v33 }
  0xcb   :  { %v498_v53 = vpop.f32.mrf.mxu2  ;;  %742 = vmatpush.bf16.msra.mxu0 %v3927_v38 }
  0xcc   :  { %v517_v22 = vadd.f32 %v498_v53, %v184_v44  ;;  %v511_v23 = vpop.f32.mrf.mxu3  ;;  %v3939_v44 = vor.u32 %v5165_v26, %v3936_v40  ;;  %768 = vmatpush.bf16.msra.mxu2 %v3935_v43  ;;  %v5226_v26 = vld [vmem:[%s8342_s2 + $0xec] sm:$0xf0]  ;;  %v5224_v40 = vld [vmem:[%s8342_s2 + $0xe4] sm:$0xf]  ;;  %v4174_v43 = vld [vmem:[%s8342_s2 + $0xe8] sm:$0xf] }
  0xcd   :  { %v6207_v32 = vpop.f32.mrf.mxu1  ;;  %v518_v17 = vadd.f32 %v511_v23, %v213_v3  ;;  %v4166_v23 = vld [vmem:[%s8342_s2 + $0xe0] sm:$0xf] }
  0xce   :  { %5469 = vtanh.f32 %v517_v22  ;;  %781 = vmatpush.bf16.msra.mxu3 %v3939_v44  ;;  %v4167_v41 = vor.u32 %v5226_v26, %v4166_v23  ;;  %v5227_v44 = vld [vmem:[%s8342_s2 + $0xf4] sm:$0xf0] }
  0xcf   :  { %v528_v22 = vmul.f32 0.5, %v518_v17  ;;  %v4158_v17 = vld [vmem:[%s8342_s2 + $0xc8] sm:$0xf]  ;;  %v5219_v23 = vld [vmem:[%s8342_s2 + $0xb4] sm:$0xf0] }
  0xd0   :  { %1007 = vmatpush.bf16.msrb.mxu0 %v4167_v41  ;;  %v5217_v41 = vld [vmem:[%s8342_s2 + $0xac] sm:$0xf] }
  0xd3   :  { %v500_v46 = vpop.f32.mrf.mxu2 }
  0xd4   :  { %v5470_v47 = vpop.eup %5469  ;;  %v513_v53 = vpop.f32.mrf.mxu3  ;;  %v4175_v46 = vor.u32 %v5227_v44, %v4174_v43  ;;  %v4118_v44 = vld [vmem:[%s8342_s2 + $0x80] sm:$0xf] }
  0xd5   :  { %v533_v60 = vmul.f32 %v5470_v47, %v522_v45  ;;  %v485_v55 = vpop.f32.mrf.mxu1  ;;  %v4171_v45 = vor.u32 %v5224_v40, %v4168_v42  ;;  %v5225_v47 = vld [vmem:[%s8342_s2 + $0xec] sm:$0xf]  ;;  %v4144_v42 = vld [vmem:[%s8342_s2 + $0xb8] sm:$0xf0] }
  0xd6   :  { %v516_v11 = vadd.f32 %v485_v55, %v155_v50  ;;  %v4176_v50 = vld [vmem:[%s8342_s2 + $0xf8] sm:$0xf0]  ;;  %1033 = vmatpush.bf16.msrb.mxu2 %v4175_v46  ;;  %v5222_v55 = vld [vmem:[%s8342_s2 + $0xcc] sm:$0xf0]  ;;  %v4147_v43 = vor.u32 %v5217_v41, %v4144_v42  ;;  %v5212_v46 = vld [vmem:[%s8342_s2 + $0x84] sm:$0xf] }
  0xd7   :  { %v4179_v53 = vor.u32 %v5225_v47, %v4176_v50  ;;  %1020 = vmatpush.bf16.msra.mxu1 %v4171_v45  ;;  %v5214_v45 = vld [vmem:[%s8342_s2 + $0x8c] sm:$0xf0]  ;;  %v4120_v50 = vld [vmem:[%s8342_s2 + $0x90] sm:$0xf0] }
  0xd8   :  { %v523_v15 = vmul.f32 0.5, %v516_v11  ;;  %v5220_v11 = vld [vmem:[%s8342_s2 + $0xc4] sm:$0xf]  ;;  %v4119_v47 = vor.u32 %v5214_v45, %v4118_v44  ;;  %v4088_v42 = vld [vmem:[%s8342_s2 + $0x50] sm:$0xf0] }
  0xd9   :  { %1046 = vmatpush.bf16.msrb.mxu3 %v4179_v53  ;;  %v4126_v53 = vld [vmem:[%s8342_s2 + $0x88] sm:$0xf]  ;;  %v5207_v44 = vld [vmem:[%s8342_s2 + $0x54] sm:$0xf0] }
  0xda   :  { %5471 = vtanh.f32 %v523_v15  ;;  %v4152_v15 = vld [vmem:[%s8342_s2 + $0xd0] sm:$0xf0] }
  0xdb   :  { %5473 = vtanh.f32 %v528_v22  ;;  %v5223_v22 = vld [vmem:[%s8342_s2 + $0xd4] sm:$0xf0] }
  0xdd   :  { %v487_v24 = vpop.f32.mrf.mxu1 }
  0xde   :  { %v4155_v24 = vor.u32 %v5220_v11, %v4152_v15  ;;  %v4128_v15 = vld [vmem:[%s8342_s2 + $0x98] sm:$0xf0] }
  0xe0   :  { %v5472_v52 = vpop.eup %5471  ;;  %1021 = vmatpush.bf16.msra.mxu1 %v4155_v24  ;;  %v5210_v24 = vld [vmem:[%s8342_s2 + $0x6c] sm:$0xf0] }
  0xe1   :  { %v525_v29 = vadd.f32 1.0, %v5472_v52  ;;  %v5474_v62 = vpop.eup %5473  ;;  %v4159_v52 = vor.u32 %v5223_v22, %v4158_v17  ;;  %v4102_v22 = vld [vmem:[%s8342_s2 + $0x60] sm:$0xf] }
  0xe2   :  { %v530_v35 = vadd.f32 1.0, %v5474_v62  ;;  %v4134_v62 = vld [vmem:[%s8342_s2 + $0xa0] sm:$0xf] }
  0xe3   :  { %v526_v31 = vmul.f32 0.5, %v525_v29  ;;  %v5221_v29 = vld [vmem:[%s8342_s2 + $0xcc] sm:$0xf]  ;;  %1034 = vmatpush.bf16.msrb.mxu2 %v4159_v52  ;;  %v5208_v52 = vld [vmem:[%s8342_s2 + $0x64] sm:$0xf] }
  0xe4   :  { %v531_v37 = vmul.f32 0.5, %v530_v35  ;;  %v5218_v35 = vld [vmem:[%s8342_s2 + $0xac] sm:$0xf0] }
  0xe5   :  { %v532_v33 = vmul.f32 0.0, %v526_v31  ;;  %v4160_v31 = vld [vmem:[%s8342_s2 + $0xd8] sm:$0xf0] }
  0xe7   :  { %v6231_v34 = vadd.f32 %v533_v60, %v532_v33  ;;  %v4150_v60 = vld [vmem:[%s8342_s2 + $0xc0] sm:$0xf]  ;;  %v4163_v33 = vor.u32 %v5221_v29, %v4160_v31  ;;  %v4103_v29 = vor.u32 %v5210_v24, %v4102_v22  ;;  %v4104_v31 = vld [vmem:[%s8342_s2 + $0x70] sm:$0xf0]  ;;  %v5203_v22 = vld [vmem:[%s8342_s2 + $0x34] sm:$0xf0] }
  0xe8   :  { %v4151_v3 = vor.u32 %v5222_v55, %v4150_v60  ;;  %v5215_v60 = vld [vmem:[%s8342_s2 + $0x94] sm:$0xf0]  ;;  %v4123_v55 = vor.u32 %v5212_v46, %v4120_v50  ;;  %v4096_v50 = vld [vmem:[%s8342_s2 + $0x58] sm:$0xf0] }
  0xe9   :  { %5475 = vtanh.f32 %v6231_v34  ;;  %1047 = vmatpush.bf16.msrb.mxu3 %v4163_v33  ;;  %v4127_v11 = vor.u32 %v5215_v60, %v4126_v53  ;;  %v4110_v33 = vld [vmem:[%s8342_s2 + $0x68] sm:$0xf]  ;;  %v4070_v60 = vld [vmem:[%s8342_s2 + $0x20] sm:$0xf] }
  0xea   :  { %1008 = vmatpush.bf16.msrb.mxu0 %v4151_v3  ;;  %v5213_v3 = vld [vmem:[%s8342_s2 + $0x8c] sm:$0xf] }
  0xeb   :  { %v4131_v17 = vor.u32 %v5213_v3, %v4128_v15  ;;  %v4072_v15 = vld [vmem:[%s8342_s2 + $0x30] sm:$0xf0] }
  0xed   :  { %1048 = vmatpush.bf16.msrb.mxu3 %v4147_v43  ;;  %v4094_v43 = vld [vmem:[%s8342_s2 + $0x48] sm:$0xf] }
  0xee   :  { %v4095_v46 = vor.u32 %v5207_v44, %v4094_v43  ;;  %v128_v44 = vadd.f32 %v5958_v56, %v5947_v51 }
  0xef   :  { %v5476_v38 = vpop.eup %5475 }
  0xf0   :  { %v536_v39 = vmul.f32 %v5476_v38, %v531_v37  ;;  %v5216_v37 = vld [vmem:[%s8342_s2 + $0xa4] sm:$0xf]  ;;  %v4135_v38 = vor.u32 %v5218_v35, %v4134_v62  ;;  %v5211_v62 = vld [vmem:[%s8342_s2 + $0x74] sm:$0xf0]  ;;  %v4107_v35 = vor.u32 %v5208_v52, %v4104_v31  ;;  %v4080_v31 = vld [vmem:[%s8342_s2 + $0x38] sm:$0xf0] }
  0xf1   :  { %1049 = vmatpush.bf16.msrb.mxu3 %v4131_v17  ;;  %v4078_v17 = vld [vmem:[%s8342_s2 + $0x28] sm:$0xf] }
  0xf2   :  { %v537_v10 = vpack.c.bf16 %v536_v39, %v536_v39  ;;  %v4136_v39 = vld [vmem:[%s8342_s2 + $0xb0] sm:$0xf0]  ;;  %1009 = vmatpush.bf16.msrb.mxu0 %v4135_v38  ;;  %v5209_v38 = vld [vmem:[%s8342_s2 + $0x6c] sm:$0xf]  ;;  %v4079_v52 = vor.u32 %v5203_v22, %v4078_v17 }
  0xf3   :  { %v4139_v26 = vor.u32 %v5216_v37, %v4136_v39  ;;  %v4111_v37 = vor.u32 %v5211_v62, %v4110_v33  ;;  %v4112_v39 = vld [vmem:[%s8342_s2 + $0x78] sm:$0xf0]  ;;  %v4054_v62 = vld [vmem:[%s8342_s2] sm:$0xf] }
  0xf4   :  { %538 = vst [vmem:[#allocation5] sm:$0xf] %v537_v10  ;;  %743 = vmatmul.bf16.vlgmr.msra.gmra.mxu0 %v537_v10  ;;  %756 = vmatmul.bf16.vlgmr.msrb.gmra.mxu1 %v537_v10 }
  0xf5   :  { %769 = vmatmul.bf16.vlgmr.msra.gmra.mxu2 %v537_v10  ;;  %782 = vmatmul.bf16.vlgmr.msra.gmra.mxu3 %v537_v10  ;;  %v4142_v10 = vld [vmem:[%s8342_s2 + $0xa8] sm:$0xf] }
  0xf6   :  { %v4143_v40 = vor.u32 %v5219_v23, %v4142_v10  ;;  %1022 = vmatpush.bf16.msra.mxu1 %v4139_v26  ;;  %1010 = vmatpush.bf16.msrb.mxu0 %v4119_v47  ;;  %v4115_v10 = vor.u32 %v5209_v38, %v4112_v39  ;;  %v4086_v23 = vld [vmem:[%s8342_s2 + $0x40] sm:$0xf]  ;;  %v5206_v26 = vld [vmem:[%s8342_s2 + $0x4c] sm:$0xf0]  ;;  %v5205_v47 = vld [vmem:[%s8342_s2 + $0x4c] sm:$0xf] }
  0xf7   :  { %v4087_v41 = vor.u32 %v5206_v26, %v4086_v23  ;;  %v4099_v53 = vor.u32 %v5205_v47, %v4096_v50  ;;  %v4056_v39 = vld [vmem:[%s8342_s2 + $0x10] sm:$0xf0]  ;;  %v5199_v23 = vld [vmem:[%s8342_s2 + $0x14] sm:$0xf0] }
  0xf8   :  { %1035 = vmatpush.bf16.msrb.mxu2 %v4143_v40  ;;  %v5204_v40 = vld [vmem:[%s8342_s2 + $0x44] sm:$0xf]  ;;  %1050 = vmatpush.bf16.msrb.mxu3 %v4115_v10  ;;  %v4062_v10 = vld [vmem:[%s8342_s2 + $0x8] sm:$0xf] }
  0xf9   :  { %v4091_v45 = vor.u32 %v5204_v40, %v4088_v42  ;;  %v4063_v40 = vor.u32 %v5199_v23, %v4062_v10  ;;  %v4064_v42 = vld [vmem:[%s8342_s2 + $0x18] sm:$0xf0] }
  0xfa   :  { %1023 = vmatpush.bf16.msra.mxu1 %v4123_v55  ;;  %1011 = vmatpush.bf16.msrb.mxu0 %v4103_v29  ;;  %v5202_v55 = vld [vmem:[%s8342_s2 + $0x2c] sm:$0xf0]  ;;  %v5201_v29 = vld [vmem:[%s8342_s2 + $0x2c] sm:$0xf] }
  0xfb   :  { %v4071_v3 = vor.u32 %v5202_v55, %v4070_v60  ;;  %v4083_v33 = vor.u32 %v5201_v29, %v4080_v31 }
  0xfc   :  { %1036 = vmatpush.bf16.msrb.mxu2 %v4127_v11  ;;  %v5200_v11 = vld [vmem:[%s8342_s2 + $0x24] sm:$0xf]  ;;  %1051 = vmatpush.bf16.msrb.mxu3 %v4099_v53 }
  0xfd   :  { %v4075_v24 = vor.u32 %v5200_v11, %v4072_v15  ;;  %v186_v11 = vadd.f32 %v5962_v58, %v5971_v63 }
  0xfe   :  { %1024 = vmatpush.bf16.msra.mxu1 %v4107_v35  ;;  %1012 = vmatpush.bf16.msrb.mxu0 %v4087_v41  ;;  %v5198_v35 = vld [vmem:[%s8342_s2 + $0xc] sm:$0xf0]  ;;  %v5197_v41 = vld [vmem:[%s8342_s2 + $0xc] sm:$0xf] }
  0xff   :  { %v4055_v38 = vor.u32 %v5198_v35, %v4054_v62  ;;  %v4067_v43 = vor.u32 %v5197_v41, %v4064_v42 }
 0x100   :  { %1037 = vmatpush.bf16.msrb.mxu2 %v4111_v37  ;;  %v5196_v37 = vld [vmem:[%s8342_s2 + $0x4] sm:$0xf]  ;;  %1052 = vmatpush.bf16.msrb.mxu3 %v4083_v33 }
 0x101   :  { %v4059_v26 = vor.u32 %v5196_v37, %v4056_v39 }
 0x102   :  { %1025 = vmatpush.bf16.msra.mxu1 %v4091_v45  ;;  %1013 = vmatpush.bf16.msrb.mxu0 %v4071_v3  ;;  %v157_v45 = vadd.f32 %v5983_v6, %v5987_v8  ;;  %v215_v3 = vadd.f32 %v5964_v59, %v5973_v0 }
 0x104   :  { %1038 = vmatpush.bf16.msrb.mxu2 %v4095_v46  ;;  %1053 = vmatpush.bf16.msrb.mxu3 %v4067_v43 }
 0x106   :  { %1026 = vmatpush.bf16.msra.mxu1 %v4075_v24  ;;  %1014 = vmatpush.bf16.msrb.mxu0 %v4055_v38 }
 0x108   :  { %1039 = vmatpush.bf16.msrb.mxu2 %v4079_v52 }
 0x10a   :  { %1027 = vmatpush.bf16.msra.mxu1 %v4059_v26 }
 0x10c   :  { %1040 = vmatpush.bf16.msrb.mxu2 %v4063_v40 }
 0x171   :  { %v744_v46 = vpop.f32.mrf.mxu0  ;;  %v757_v47 = vpop.f32.mrf.mxu1 }
 0x172   :  { %v787_v50 = vadd.f32 %v744_v46, %v128_v44  ;;  %v788_v53 = vadd.f32 %v757_v47, %v157_v45  ;;  %v5258_v45 = vld [vmem:[%s8342_s2 + $0xec] sm:$0xf0]  ;;  %v5256_v46 = vld [vmem:[%s8342_s2 + $0xe4] sm:$0xf] }
 0x174   :  { %v791_v60 = vmul.f32 0.5, %v787_v50  ;;  %v795_v55 = vmul.f32 0.5, %v788_v53  ;;  %v4296_v50 = vld [vmem:[%s8342_s2 + $0xf0] sm:$0xf0]  ;;  %v4302_v53 = vld [vmem:[%s8342_s2 + $0xe8] sm:$0xf] }
 0x176   :  { %5477 = vtanh.f32 %v791_v60  ;;  %v5259_v60 = vld [vmem:[%s8342_s2 + $0xf4] sm:$0xf0] }
 0x177   :  { %5479 = vtanh.f32 %v795_v55  ;;  %v4299_v55 = vor.u32 %v5256_v46, %v4296_v50  ;;  %v4246_v46 = vld [vmem:[%s8342_s2 + $0x80] sm:$0xf]  ;;  %v5244_v50 = vld [vmem:[%s8342_s2 + $0x84] sm:$0xf] }
 0x178   :  { %v770_v15 = vpop.f32.mrf.mxu2  ;;  %v783_v56 = vpop.f32.mrf.mxu3 }
 0x179   :  { %v789_v17 = vadd.f32 %v770_v15, %v186_v11  ;;  %v790_v22 = vadd.f32 %v783_v56, %v215_v3  ;;  %v746_v6 = vpop.f32.mrf.mxu0  ;;  %v759_v24 = vpop.f32.mrf.mxu1  ;;  %v4303_v11 = vor.u32 %v5259_v60, %v4302_v53  ;;  %v5257_v3 = vld [vmem:[%s8342_s2 + $0xec] sm:$0xf]  ;;  %v4304_v15 = vld [vmem:[%s8342_s2 + $0xf8] sm:$0xf0]  ;;  %1292 = vmatpush.bf16.msrb.mxu1 %v4299_v55  ;;  %v4248_v60 = vld [vmem:[%s8342_s2 + $0x90] sm:$0xf0] }
 0x17a   :  { %v4307_v56 = vor.u32 %v5257_v3, %v4304_v15  ;;  %v5252_v6 = vld [vmem:[%s8342_s2 + $0xc4] sm:$0xf]  ;;  %v4254_v55 = vld [vmem:[%s8342_s2 + $0x88] sm:$0xf]  ;;  %v4251_v3 = vor.u32 %v5244_v50, %v4248_v60  ;;  %v4198_v50 = vld [vmem:[%s8342_s2 + $0x20] sm:$0xf] }
 0x17b   :  { %5481 = vtanh.f32 %v789_v17  ;;  %v800_v52 = vmul.f32 0.5, %v790_v22  ;;  %1305 = vmatpush.bf16.msra.mxu2 %v4303_v11  ;;  %v4278_v17 = vld [vmem:[%s8342_s2 + $0xc0] sm:$0xf]  ;;  %v5254_v22 = vld [vmem:[%s8342_s2 + $0xcc] sm:$0xf0] }
 0x17c   :  { %v5478_v29 = vpop.eup %5477  ;;  %1318 = vmatpush.bf16.msra.mxu3 %v4307_v56  ;;  %v4279_v24 = vor.u32 %v5254_v22, %v4278_v17  ;;  %v5247_v11 = vld [vmem:[%s8342_s2 + $0x94] sm:$0xf0]  ;;  %v5245_v56 = vld [vmem:[%s8342_s2 + $0x8c] sm:$0xf]  ;;  %v4256_v17 = vld [vmem:[%s8342_s2 + $0x98] sm:$0xf0] }
 0x17d   :  { %v5480_v31 = vpop.eup %5479  ;;  %v793_v33 = vadd.f32 1.0, %v5478_v29  ;;  %5483 = vtanh.f32 %v800_v52  ;;  %v4280_v52 = vld [vmem:[%s8342_s2 + $0xd0] sm:$0xf0]  ;;  %v4286_v29 = vld [vmem:[%s8342_s2 + $0xc8] sm:$0xf]  ;;  %v4255_v15 = vor.u32 %v5247_v11, %v4254_v55  ;;  %v4259_v22 = vor.u32 %v5245_v56, %v4256_v17 }
 0x17e   :  { %v797_v62 = vadd.f32 1.0, %v5480_v31  ;;  %v5255_v31 = vld [vmem:[%s8342_s2 + $0xd4] sm:$0xf0]  ;;  %v5232_v60 = vld [vmem:[%s8342_s2 + $0x24] sm:$0xf] }
 0x17f   :  { %v794_v35 = vmul.f32 0.5, %v793_v33  ;;  %v4283_v33 = vor.u32 %v5252_v6, %v4280_v52  ;;  %v4230_v6 = vld [vmem:[%s8342_s2 + $0x60] sm:$0xf]  ;;  %v5240_v52 = vld [vmem:[%s8342_s2 + $0x64] sm:$0xf] }
 0x180   :  { %v798_v37 = vmul.f32 0.5, %v797_v62  ;;  %v772_v58 = vpop.f32.mrf.mxu2  ;;  %v785_v38 = vpop.f32.mrf.mxu3  ;;  %v4287_v62 = vor.u32 %v5255_v31, %v4286_v29  ;;  %v4232_v31 = vld [vmem:[%s8342_s2 + $0x70] sm:$0xf0] }
 0x181   :  { %v5482_v39 = vpop.eup %5481  ;;  %1293 = vmatpush.bf16.msrb.mxu1 %v4283_v33  ;;  %v4262_v38 = vld [vmem:[%s8342_s2 + $0xa0] sm:$0xf]  ;;  %v4238_v33 = vld [vmem:[%s8342_s2 + $0x68] sm:$0xf]  ;;  %v4200_v11 = vld [vmem:[%s8342_s2 + $0x30] sm:$0xf0] }
 0x182   :  { %v804_v59 = vmul.f32 %v798_v37, %v6231_v34  ;;  %v805_v10 = vmul.f32 %v5482_v39, %v794_v35  ;;  %v4294_v34 = vld [vmem:[%s8342_s2 + $0xe0] sm:$0xf]  ;;  %v5253_v35 = vld [vmem:[%s8342_s2 + $0xcc] sm:$0xf]  ;;  %v4288_v37 = vld [vmem:[%s8342_s2 + $0xd8] sm:$0xf0]  ;;  %1306 = vmatpush.bf16.msra.mxu2 %v4287_v62  ;;  %v4203_v56 = vor.u32 %v5232_v60, %v4200_v11 }
 0x183   :  { %v5484_v23 = vpop.eup %5483  ;;  %v4295_v47 = vor.u32 %v5258_v45, %v4294_v34  ;;  %v4291_v58 = vor.u32 %v5253_v35, %v4288_v37  ;;  %v5250_v39 = vld [vmem:[%s8342_s2 + $0xac] sm:$0xf0]  ;;  %v4272_v34 = vld [vmem:[%s8342_s2 + $0xb8] sm:$0xf0]  ;;  %v5243_v62 = vld [vmem:[%s8342_s2 + $0x74] sm:$0xf0]  ;;  %v4235_v35 = vor.u32 %v5240_v52, %v4232_v31 }
 0x184   :  { %v6435_v26 = vadd.f32 %v805_v10, %v804_v59  ;;  %v802_v40 = vadd.f32 1.0, %v5484_v23  ;;  %v5248_v59 = vld [vmem:[%s8342_s2 + $0xa4] sm:$0xf]  ;;  %v4263_v10 = vor.u32 %v5250_v39, %v4262_v38  ;;  %v4264_v23 = vld [vmem:[%s8342_s2 + $0xb0] sm:$0xf0]  ;;  %v4239_v37 = vor.u32 %v5243_v62, %v4238_v33 }
 0x185   :  { %1279 = vmatpush.bf16.msra.mxu0 %v4295_v47  ;;  %1319 = vmatpush.bf16.msra.mxu3 %v4291_v58  ;;  %v5246_v47 = vld [vmem:[%s8342_s2 + $0x8c] sm:$0xf0]  ;;  %v5241_v58 = vld [vmem:[%s8342_s2 + $0x6c] sm:$0xf]  ;;  %v4240_v38 = vld [vmem:[%s8342_s2 + $0x78] sm:$0xf0] }
 0x186   :  { %5485 = vtanh.f32 %v6435_v26  ;;  %v803_v41 = vmul.f32 0.5, %v802_v40  ;;  %v4270_v40 = vld [vmem:[%s8342_s2 + $0xa8] sm:$0xf]  ;;  %v4247_v53 = vor.u32 %v5246_v47, %v4246_v46  ;;  %v4243_v39 = vor.u32 %v5241_v58, %v4240_v38  ;;  %v4224_v46 = vld [vmem:[%s8342_s2 + $0x58] sm:$0xf0] }
 0x187   :  { %v4182_v52 = vld [vmem:[%s8342_s2] sm:$0xf]  ;;  %v5228_v31 = vld [vmem:[%s8342_s2 + $0x4] sm:$0xf]  ;;  %v4184_v62 = vld [vmem:[%s8342_s2 + $0x10] sm:$0xf0] }
 0x188   :  { %v4187_v58 = vor.u32 %v5228_v31, %v4184_v62 }
 0x189   :  { %1280 = vmatpush.bf16.msra.mxu0 %v4279_v24  ;;  %v5242_v24 = vld [vmem:[%s8342_s2 + $0x6c] sm:$0xf0] }
 0x18a   :  { %v4231_v29 = vor.u32 %v5242_v24, %v4230_v6  ;;  %v4208_v6 = vld [vmem:[%s8342_s2 + $0x38] sm:$0xf0] }
 0x18c   :  { %v5486_v42 = vpop.eup %5485 }
 0x18d   :  { %v808_v43 = vmul.f32 %v5486_v42, %v803_v41  ;;  %v5251_v41 = vld [vmem:[%s8342_s2 + $0xb4] sm:$0xf0]  ;;  %v4267_v42 = vor.u32 %v5248_v59, %v4264_v23  ;;  %1281 = vmatpush.bf16.msra.mxu0 %v4263_v10  ;;  %v4214_v59 = vld [vmem:[%s8342_s2 + $0x40] sm:$0xf]  ;;  %v5238_v10 = vld [vmem:[%s8342_s2 + $0x4c] sm:$0xf0] }
 0x18e   :  { %v5236_v23 = vld [vmem:[%s8342_s2 + $0x44] sm:$0xf] }
 0x18f   :  { %v809_v44 = vpack.c.bf16 %v808_v43, %v808_v43  ;;  %v4271_v43 = vor.u32 %v5251_v41, %v4270_v40  ;;  %1294 = vmatpush.bf16.msrb.mxu1 %v4267_v42  ;;  %v4215_v40 = vor.u32 %v5238_v10, %v4214_v59  ;;  %v4216_v41 = vld [vmem:[%s8342_s2 + $0x50] sm:$0xf0]  ;;  %v4222_v42 = vld [vmem:[%s8342_s2 + $0x48] sm:$0xf]  ;;  %v4192_v59 = vld [vmem:[%s8342_s2 + $0x18] sm:$0xf0] }
 0x191   :  { %810 = vst [vmem:[#allocation5 + $0x4] sm:$0xf] %v809_v44  ;;  %1015 = vmatmul.bf16.vlgmr.msrb.gmra.mxu0 %v809_v44  ;;  %1028 = vmatmul.bf16.vlgmr.msra.gmra.mxu1 %v809_v44 }
 0x192   :  { %1041 = vmatmul.bf16.vlgmr.msrb.gmra.mxu2 %v809_v44  ;;  %1054 = vmatmul.bf16.vlgmr.msrb.gmra.mxu3 %v809_v44  ;;  %v5249_v44 = vld [vmem:[%s8342_s2 + $0xac] sm:$0xf] }
 0x193   :  { %v4275_v45 = vor.u32 %v5249_v44, %v4272_v34  ;;  %1307 = vmatpush.bf16.msra.mxu2 %v4271_v43  ;;  %1282 = vmatpush.bf16.msra.mxu0 %v4247_v53  ;;  %v5239_v43 = vld [vmem:[%s8342_s2 + $0x54] sm:$0xf0]  ;;  %v4219_v44 = vor.u32 %v5236_v23, %v4216_v41  ;;  %v5234_v53 = vld [vmem:[%s8342_s2 + $0x2c] sm:$0xf0] }
 0x194   :  { %1295 = vmatpush.bf16.msrb.mxu1 %v4251_v3  ;;  %v4223_v34 = vor.u32 %v5239_v43, %v4222_v42  ;;  %v4199_v55 = vor.u32 %v5234_v53, %v4198_v50  ;;  %v4206_v3 = vld [vmem:[%s8342_s2 + $0x28] sm:$0xf] }
 0x195   :  { %1320 = vmatpush.bf16.msra.mxu3 %v4275_v45  ;;  %v5237_v45 = vld [vmem:[%s8342_s2 + $0x4c] sm:$0xf] }
 0x196   :  { %v4227_v47 = vor.u32 %v5237_v45, %v4224_v46 }
 0x197   :  { %1308 = vmatpush.bf16.msra.mxu2 %v4255_v15  ;;  %1283 = vmatpush.bf16.msra.mxu0 %v4231_v29  ;;  %v5235_v15 = vld [vmem:[%s8342_s2 + $0x34] sm:$0xf0]  ;;  %v5230_v29 = vld [vmem:[%s8342_s2 + $0xc] sm:$0xf0] }
 0x198   :  { %1296 = vmatpush.bf16.msrb.mxu1 %v4235_v35  ;;  %v4207_v17 = vor.u32 %v5235_v15, %v4206_v3  ;;  %v4183_v33 = vor.u32 %v5230_v29, %v4182_v52  ;;  %v4190_v35 = vld [vmem:[%s8342_s2 + $0x8] sm:$0xf] }
 0x199   :  { %1321 = vmatpush.bf16.msra.mxu3 %v4259_v22  ;;  %v5233_v22 = vld [vmem:[%s8342_s2 + $0x2c] sm:$0xf] }
 0x19a   :  { %v4211_v24 = vor.u32 %v5233_v22, %v4208_v6 }
 0x19b   :  { %1309 = vmatpush.bf16.msra.mxu2 %v4239_v37  ;;  %1284 = vmatpush.bf16.msra.mxu0 %v4215_v40  ;;  %v5231_v37 = vld [vmem:[%s8342_s2 + $0x14] sm:$0xf0] }
 0x19c   :  { %1297 = vmatpush.bf16.msrb.mxu1 %v4219_v44  ;;  %v4191_v38 = vor.u32 %v5231_v37, %v4190_v35  ;;  %v5290_v35 = vld [vmem:[%s8342_s2 + $0xec] sm:$0xf0]  ;;  %v5288_v37 = vld [vmem:[%s8342_s2 + $0xe4] sm:$0xf] }
 0x19d   :  { %1322 = vmatpush.bf16.msra.mxu3 %v4243_v39  ;;  %v5229_v39 = vld [vmem:[%s8342_s2 + $0xc] sm:$0xf] }
 0x19e   :  { %v4195_v10 = vor.u32 %v5229_v39, %v4192_v59  ;;  %v4430_v39 = vld [vmem:[%s8342_s2 + $0xe8] sm:$0xf]  ;;  %v5291_v59 = vld [vmem:[%s8342_s2 + $0xf4] sm:$0xf0] }
 0x19f   :  { %1310 = vmatpush.bf16.msra.mxu2 %v4223_v34  ;;  %1285 = vmatpush.bf16.msra.mxu0 %v4199_v55 }
 0x1a0   :  { %1298 = vmatpush.bf16.msrb.mxu1 %v4203_v56 }
 0x1a1   :  { %1323 = vmatpush.bf16.msra.mxu3 %v4227_v47 }
 0x1a3   :  { %1311 = vmatpush.bf16.msra.mxu2 %v4207_v17  ;;  %1286 = vmatpush.bf16.msra.mxu0 %v4183_v33 }
 0x1a4   :  { %1299 = vmatpush.bf16.msrb.mxu1 %v4187_v58 }
 0x1a5   :  { %1324 = vmatpush.bf16.msra.mxu3 %v4211_v24 }
 0x1a7   :  { %1312 = vmatpush.bf16.msra.mxu2 %v4191_v38  ;;  %v4424_v38 = vld [vmem:[%s8342_s2 + $0xf0] sm:$0xf0] }
 0x1a9   :  { %1325 = vmatpush.bf16.msra.mxu3 %v4195_v10  ;;  %v4427_v10 = vor.u32 %v5288_v37, %v4424_v38  ;;  %v4376_v37 = vld [vmem:[%s8342_s2 + $0x90] sm:$0xf0]  ;;  %v5279_v38 = vld [vmem:[%s8342_s2 + $0x94] sm:$0xf0] }
 0x1ab   :  { %1564 = vmatpush.bf16.msra.mxu1 %v4427_v10  ;;  %v5277_v10 = vld [vmem:[%s8342_s2 + $0x8c] sm:$0xf] }
 0x20e   :  { %v1016_v23 = vpop.f32.mrf.mxu0  ;;  %v1029_v40 = vpop.f32.mrf.mxu1 }
 0x20f   :  { %v1059_v41 = vadd.f32 %v1016_v23, %v5967_v61  ;;  %v1060_v42 = vadd.f32 %v1029_v40, %v5995_v14  ;;  %v4431_v23 = vor.u32 %v5291_v59, %v4430_v39  ;;  %v5289_v40 = vld [vmem:[%s8342_s2 + $0xec] sm:$0xf] }
 0x211   :  { %v1063_v43 = vmul.f32 0.5, %v1059_v41  ;;  %v1067_v44 = vmul.f32 0.5, %v1060_v42  ;;  %v4432_v41 = vld [vmem:[%s8342_s2 + $0xf8] sm:$0xf0]  ;;  %1577 = vmatpush.bf16.msrb.mxu2 %v4431_v23 }
 0x212   :  { %v4435_v42 = vor.u32 %v5289_v40, %v4432_v41  ;;  %v4384_v23 = vld [vmem:[%s8342_s2 + $0x98] sm:$0xf0]  ;;  %v4358_v41 = vld [vmem:[%s8342_s2 + $0x60] sm:$0xf] }
 0x213   :  { %5487 = vtanh.f32 %v1063_v43  ;;  %v4406_v43 = vld [vmem:[%s8342_s2 + $0xc0] sm:$0xf]  ;;  %v4387_v40 = vor.u32 %v5277_v10, %v4384_v23 }
 0x214   :  { %5489 = vtanh.f32 %v1067_v44  ;;  %v5286_v44 = vld [vmem:[%s8342_s2 + $0xcc] sm:$0xf0]  ;;  %1590 = vmatpush.bf16.msrb.mxu3 %v4435_v42  ;;  %v4310_v23 = vld [vmem:[%s8342_s2] sm:$0xf] }
 0x215   :  { %v1042_v34 = vpop.f32.mrf.mxu2  ;;  %v1055_v45 = vpop.f32.mrf.mxu3  ;;  %v5274_v42 = vld [vmem:[%s8342_s2 + $0x6c] sm:$0xf0] }
 0x216   :  { %v1061_v46 = vadd.f32 %v1042_v34, %v5976_v2  ;;  %v1062_v47 = vadd.f32 %v1055_v45, %v5981_v5  ;;  %v1018_v50 = vpop.f32.mrf.mxu0  ;;  %v1031_v53 = vpop.f32.mrf.mxu1  ;;  %v5284_v34 = vld [vmem:[%s8342_s2 + $0xc4] sm:$0xf]  ;;  %v4407_v45 = vor.u32 %v5286_v44, %v4406_v43  ;;  %v4359_v44 = vor.u32 %v5274_v42, %v4358_v41 }
 0x217   :  { %v5287_v50 = vld [vmem:[%s8342_s2 + $0xd4] sm:$0xf0]  ;;  %v5272_v43 = vld [vmem:[%s8342_s2 + $0x64] sm:$0xf] }
 0x218   :  { %5491 = vtanh.f32 %v1061_v46  ;;  %v1072_v60 = vmul.f32 0.5, %v1062_v47  ;;  %v4408_v46 = vld [vmem:[%s8342_s2 + $0xd0] sm:$0xf0]  ;;  %v4414_v47 = vld [vmem:[%s8342_s2 + $0xc8] sm:$0xf] }
 0x219   :  { %v5488_v55 = vpop.eup %5487  ;;  %v4411_v53 = vor.u32 %v5284_v34, %v4408_v46  ;;  %v4360_v34 = vld [vmem:[%s8342_s2 + $0x70] sm:$0xf0]  ;;  %v5275_v46 = vld [vmem:[%s8342_s2 + $0x74] sm:$0xf0]  ;;  %v5260_v41 = vld [vmem:[%s8342_s2 + $0x4] sm:$0xf] }
 0x21a   :  { %v5490_v11 = vpop.eup %5489  ;;  %v1065_v3 = vadd.f32 1.0, %v5488_v55  ;;  %5493 = vtanh.f32 %v1072_v60  ;;  %v4415_v60 = vor.u32 %v5287_v50, %v4414_v47  ;;  %v5285_v55 = vld [vmem:[%s8342_s2 + $0xcc] sm:$0xf]  ;;  %v4363_v47 = vor.u32 %v5272_v43, %v4360_v34  ;;  %v4312_v43 = vld [vmem:[%s8342_s2 + $0x10] sm:$0xf0] }
 0x21b   :  { %v1069_v61 = vadd.f32 1.0, %v5490_v11  ;;  %v4416_v11 = vld [vmem:[%s8342_s2 + $0xd8] sm:$0xf0]  ;;  %1565 = vmatpush.bf16.msra.mxu1 %v4411_v53  ;;  %v5273_v53 = vld [vmem:[%s8342_s2 + $0x6c] sm:$0xf] }
 0x21c   :  { %v1066_v14 = vmul.f32 0.5, %v1065_v3  ;;  %v4419_v3 = vor.u32 %v5285_v55, %v4416_v11  ;;  %1578 = vmatpush.bf16.msrb.mxu2 %v4415_v60  ;;  %v4368_v60 = vld [vmem:[%s8342_s2 + $0x78] sm:$0xf0]  ;;  %v4342_v11 = vld [vmem:[%s8342_s2 + $0x40] sm:$0xf] }
 0x21d   :  { %v1070_v15 = vmul.f32 0.5, %v1069_v61  ;;  %v1044_v56 = vpop.f32.mrf.mxu2  ;;  %v1057_v17 = vpop.f32.mrf.mxu3  ;;  %v4390_v61 = vld [vmem:[%s8342_s2 + $0xa0] sm:$0xf]  ;;  %v4371_v55 = vor.u32 %v5273_v53, %v4368_v60  ;;  %v5263_v34 = vld [vmem:[%s8342_s2 + $0x14] sm:$0xf0]  ;;  %v133_v60 = vadd.f32 %v5978_v4, %v5947_v51 }
 0x21e   :  { %v5492_v22 = vpop.eup %5491  ;;  %1591 = vmatpush.bf16.msrb.mxu3 %v4419_v3  ;;  %v4392_v17 = vld [vmem:[%s8342_s2 + $0xb0] sm:$0xf0]  ;;  %v5270_v3 = vld [vmem:[%s8342_s2 + $0x4c] sm:$0xf0] }
 0x21f   :  { %v1076_v6 = vmul.f32 %v1070_v15, %v6435_v26  ;;  %v1077_v24 = vmul.f32 %v5492_v22, %v1066_v14  ;;  %v4422_v26 = vld [vmem:[%s8342_s2 + $0xe0] sm:$0xf]  ;;  %v5282_v14 = vld [vmem:[%s8342_s2 + $0xac] sm:$0xf0]  ;;  %v5280_v15 = vld [vmem:[%s8342_s2 + $0xa4] sm:$0xf] }
 0x220   :  { %v5494_v2 = vpop.eup %5493  ;;  %v4423_v58 = vor.u32 %v5290_v35, %v4422_v26  ;;  %v4391_v56 = vor.u32 %v5282_v14, %v4390_v61  ;;  %v4398_v22 = vld [vmem:[%s8342_s2 + $0xa8] sm:$0xf]  ;;  %v5276_v26 = vld [vmem:[%s8342_s2 + $0x84] sm:$0xf]  ;;  %v4343_v14 = vor.u32 %v5270_v3, %v4342_v11 }
 0x221   :  { %v6635_v52 = vadd.f32 %v1077_v24, %v1076_v6  ;;  %v1074_v5 = vadd.f32 1.0, %v5494_v2  ;;  %v5283_v6 = vld [vmem:[%s8342_s2 + $0xb4] sm:$0xf0]  ;;  %v4395_v24 = vor.u32 %v5280_v15, %v4392_v17  ;;  %v4379_v39 = vor.u32 %v5276_v26, %v4376_v37  ;;  %v5268_v61 = vld [vmem:[%s8342_s2 + $0x44] sm:$0xf] }
 0x222   :  { %1551 = vmatpush.bf16.msrb.mxu0 %v4423_v58  ;;  %v4399_v2 = vor.u32 %v5283_v6, %v4398_v22  ;;  %v4382_v58 = vld [vmem:[%s8342_s2 + $0x88] sm:$0xf]  ;;  %v4344_v15 = vld [vmem:[%s8342_s2 + $0x50] sm:$0xf0]  ;;  %v5271_v17 = vld [vmem:[%s8342_s2 + $0x54] sm:$0xf0] }
 0x223   :  { %5495 = vtanh.f32 %v6635_v52  ;;  %v1075_v29 = vmul.f32 0.5, %v1074_v5  ;;  %v5281_v5 = vld [vmem:[%s8342_s2 + $0xac] sm:$0xf]  ;;  %1566 = vmatpush.bf16.msra.mxu1 %v4395_v24  ;;  %v4383_v59 = vor.u32 %v5279_v38, %v4382_v58  ;;  %v4347_v22 = vor.u32 %v5268_v61, %v4344_v15  ;;  %v4328_v26 = vld [vmem:[%s8342_s2 + $0x30] sm:$0xf0] }
 0x224   :  { %1579 = vmatpush.bf16.msrb.mxu2 %v4399_v2  ;;  %v5269_v24 = vld [vmem:[%s8342_s2 + $0x4c] sm:$0xf]  ;;  %v4352_v2 = vld [vmem:[%s8342_s2 + $0x58] sm:$0xf0]  ;;  %v5267_v37 = vld [vmem:[%s8342_s2 + $0x34] sm:$0xf0] }
 0x226   :  { %1552 = vmatpush.bf16.msrb.mxu0 %v4407_v45  ;;  %v4366_v45 = vld [vmem:[%s8342_s2 + $0x68] sm:$0xf] }
 0x227   :  { %1567 = vmatpush.bf16.msra.mxu1 %v4379_v39  ;;  %v4367_v50 = vor.u32 %v5275_v46, %v4366_v45  ;;  %v5265_v39 = vld [vmem:[%s8342_s2 + $0x2c] sm:$0xf]  ;;  %v4315_v45 = vor.u32 %v5260_v41, %v4312_v43 }
 0x228   :  { %1580 = vmatpush.bf16.msrb.mxu2 %v4383_v59  ;;  %v4336_v59 = vld [vmem:[%s8342_s2 + $0x38] sm:$0xf0] }
 0x229   :  { %v5496_v31 = vpop.eup %5495  ;;  %v4339_v10 = vor.u32 %v5265_v39, %v4336_v59 }
 0x22a   :  { %v1080_v33 = vmul.f32 %v5496_v31, %v1075_v29  ;;  %v4400_v29 = vld [vmem:[%s8342_s2 + $0xb8] sm:$0xf0]  ;;  %1553 = vmatpush.bf16.msrb.mxu0 %v4391_v56  ;;  %v4350_v56 = vld [vmem:[%s8342_s2 + $0x48] sm:$0xf] }
 0x22b   :  { %v4403_v31 = vor.u32 %v5281_v5, %v4400_v29  ;;  %1568 = vmatpush.bf16.msra.mxu1 %v4363_v47  ;;  %v4351_v6 = vor.u32 %v5271_v17, %v4350_v56  ;;  %v4355_v5 = vor.u32 %v5269_v24, %v4352_v2  ;;  %v4326_v29 = vld [vmem:[%s8342_s2 + $0x20] sm:$0xf]  ;;  %v5261_v47 = vld [vmem:[%s8342_s2 + $0xc] sm:$0xf]  ;;  %v191_v17 = vadd.f32 %v5985_v7, %v5971_v63 }
 0x22c   :  { %v1081_v62 = vpack.c.bf16 %v1080_v33, %v1080_v33  ;;  %v4374_v33 = vld [vmem:[%s8342_s2 + $0x80] sm:$0xf]  ;;  %1581 = vmatpush.bf16.msrb.mxu2 %v4367_v50  ;;  %v4320_v50 = vld [vmem:[%s8342_s2 + $0x18] sm:$0xf0] }
 0x22d   :  { %1592 = vmatpush.bf16.msrb.mxu3 %v4403_v31  ;;  %v5266_v31 = vld [vmem:[%s8342_s2 + $0x2c] sm:$0xf0]  ;;  %v4323_v53 = vor.u32 %v5261_v47, %v4320_v50  ;;  %v4558_v47 = vld [vmem:[%s8342_s2 + $0xe8] sm:$0xf]  ;;  %v5323_v50 = vld [vmem:[%s8342_s2 + $0xf4] sm:$0xf0] }
 0x22e   :  { %1082 = vst [vmem:[#allocation5 + $0x8] sm:$0xf] %v1081_v62  ;;  %1287 = vmatmul.bf16.vlgmr.msra.gmra.mxu0 %v1081_v62  ;;  %1300 = vmatmul.bf16.vlgmr.msrb.gmra.mxu1 %v1081_v62 }
 0x22f   :  { %1313 = vmatmul.bf16.vlgmr.msra.gmra.mxu2 %v1081_v62  ;;  %1326 = vmatmul.bf16.vlgmr.msra.gmra.mxu3 %v1081_v62  ;;  %v5278_v62 = vld [vmem:[%s8342_s2 + $0x8c] sm:$0xf0] }
 0x230   :  { %v4375_v35 = vor.u32 %v5278_v62, %v4374_v33  ;;  %1569 = vmatpush.bf16.msra.mxu1 %v4347_v22  ;;  %1582 = vmatpush.bf16.msrb.mxu2 %v4351_v6  ;;  %v5264_v33 = vld [vmem:[%s8342_s2 + $0x24] sm:$0xf]  ;;  %v4327_v62 = vor.u32 %v5266_v31, %v4326_v29  ;;  %v220_v22 = vadd.f32 %v5989_v9, %v5973_v0 }
 0x231   :  { %1593 = vmatpush.bf16.msrb.mxu3 %v4387_v40  ;;  %v4331_v58 = vor.u32 %v5264_v33, %v4328_v26  ;;  %v5262_v40 = vld [vmem:[%s8342_s2 + $0xc] sm:$0xf0] }
 0x232   :  { %1554 = vmatpush.bf16.msrb.mxu0 %v4375_v35  ;;  %v4334_v35 = vld [vmem:[%s8342_s2 + $0x28] sm:$0xf]  ;;  %v4311_v42 = vor.u32 %v5262_v40, %v4310_v23 }
 0x233   :  { %v4335_v38 = vor.u32 %v5267_v37, %v4334_v35 }
 0x234   :  { %1570 = vmatpush.bf16.msra.mxu1 %v4331_v58 }
 0x235   :  { %1594 = vmatpush.bf16.msrb.mxu3 %v4371_v55  ;;  %1583 = vmatpush.bf16.msrb.mxu2 %v4335_v38  ;;  %v162_v55 = vadd.f32 %v6005_v20, %v5987_v8 }
 0x236   :  { %1555 = vmatpush.bf16.msrb.mxu0 %v4359_v44  ;;  %v4318_v44 = vld [vmem:[%s8342_s2 + $0x8] sm:$0xf] }
 0x237   :  { %v4319_v46 = vor.u32 %v5263_v34, %v4318_v44  ;;  %v5322_v44 = vld [vmem:[%s8342_s2 + $0xec] sm:$0xf0]  ;;  %v5320_v34 = vld [vmem:[%s8342_s2 + $0xe4] sm:$0xf] }
 0x238   :  { %1571 = vmatpush.bf16.msra.mxu1 %v4315_v45 }
 0x239   :  { %1595 = vmatpush.bf16.msrb.mxu3 %v4355_v5  ;;  %1584 = vmatpush.bf16.msrb.mxu2 %v4319_v46  ;;  %v4552_v46 = vld [vmem:[%s8342_s2 + $0xf0] sm:$0xf0] }
 0x23a   :  { %1556 = vmatpush.bf16.msrb.mxu0 %v4343_v14 }
 0x23d   :  { %1596 = vmatpush.bf16.msrb.mxu3 %v4339_v10 }
 0x23e   :  { %1557 = vmatpush.bf16.msrb.mxu0 %v4327_v62 }
 0x241   :  { %1597 = vmatpush.bf16.msrb.mxu3 %v4323_v53  ;;  %v4555_v53 = vor.u32 %v5320_v34, %v4552_v46  ;;  %v4512_v46 = vld [vmem:[%s8342_s2 + $0x98] sm:$0xf0] }
 0x242   :  { %1558 = vmatpush.bf16.msrb.mxu0 %v4311_v42 }
 0x243   :  { %1836 = vmatpush.bf16.msrb.mxu1 %v4555_v53  ;;  %v5306_v53 = vld [vmem:[%s8342_s2 + $0x6c] sm:$0xf0] }
 0x2ab   :  { %v1288_v11 = vpop.f32.mrf.mxu0  ;;  %v1301_v3 = vpop.f32.mrf.mxu1 }
 0x2ac   :  { %v1331_v61 = vadd.f32 %v1288_v11, %v133_v60  ;;  %v1332_v14 = vadd.f32 %v1301_v3, %v162_v55  ;;  %v4559_v60 = vor.u32 %v5323_v50, %v4558_v47  ;;  %v5321_v55 = vld [vmem:[%s8342_s2 + $0xec] sm:$0xf]  ;;  %v4560_v11 = vld [vmem:[%s8342_s2 + $0xf8] sm:$0xf0]  ;;  %v4486_v50 = vld [vmem:[%s8342_s2 + $0x60] sm:$0xf] }
 0x2ad   :  { %v4563_v3 = vor.u32 %v5321_v55, %v4560_v11  ;;  %v4487_v55 = vor.u32 %v5306_v53, %v4486_v50  ;;  %v4488_v11 = vld [vmem:[%s8342_s2 + $0x70] sm:$0xf0]  ;;  %v5295_v50 = vld [vmem:[%s8342_s2 + $0x14] sm:$0xf0] }
 0x2ae   :  { %v1335_v15 = vmul.f32 0.5, %v1331_v61  ;;  %v1339_v56 = vmul.f32 0.5, %v1332_v14  ;;  %1849 = vmatpush.bf16.msra.mxu2 %v4559_v60  ;;  %v4534_v61 = vld [vmem:[%s8342_s2 + $0xc0] sm:$0xf]  ;;  %v5318_v14 = vld [vmem:[%s8342_s2 + $0xcc] sm:$0xf0] }
 0x2af   :  { %1862 = vmatpush.bf16.msra.mxu3 %v4563_v3  ;;  %v5304_v60 = vld [vmem:[%s8342_s2 + $0x64] sm:$0xf]  ;;  %v4494_v3 = vld [vmem:[%s8342_s2 + $0x68] sm:$0xf] }
 0x2b0   :  { %5497 = vtanh.f32 %v1335_v15  ;;  %v5316_v15 = vld [vmem:[%s8342_s2 + $0xc4] sm:$0xf] }
 0x2b1   :  { %5499 = vtanh.f32 %v1339_v56  ;;  %v4535_v56 = vor.u32 %v5318_v14, %v4534_v61  ;;  %v5307_v61 = vld [vmem:[%s8342_s2 + $0x74] sm:$0xf0]  ;;  %v4491_v14 = vor.u32 %v5304_v60, %v4488_v11  ;;  %v4448_v11 = vld [vmem:[%s8342_s2 + $0x18] sm:$0xf0] }
 0x2b2   :  { %v1314_v6 = vpop.f32.mrf.mxu2  ;;  %v1327_v4 = vpop.f32.mrf.mxu3 }
 0x2b3   :  { %v1333_v24 = vadd.f32 %v1314_v6, %v191_v17  ;;  %v1334_v2 = vadd.f32 %v1327_v4, %v220_v22  ;;  %v1290_v20 = vpop.f32.mrf.mxu0  ;;  %v1303_v5 = vpop.f32.mrf.mxu1  ;;  %v4536_v17 = vld [vmem:[%s8342_s2 + $0xd0] sm:$0xf0]  ;;  %v4542_v22 = vld [vmem:[%s8342_s2 + $0xc8] sm:$0xf]  ;;  %v5319_v6 = vld [vmem:[%s8342_s2 + $0xd4] sm:$0xf0] }
 0x2b4   :  { %v4539_v4 = vor.u32 %v5316_v15, %v4536_v17  ;;  %v4544_v20 = vld [vmem:[%s8342_s2 + $0xd8] sm:$0xf0]  ;;  %v4495_v15 = vor.u32 %v5307_v61, %v4494_v3 }
 0x2b5   :  { %5501 = vtanh.f32 %v1333_v24  ;;  %v1344_v29 = vmul.f32 0.5, %v1334_v2  ;;  %v4543_v24 = vor.u32 %v5319_v6, %v4542_v22  ;;  %v5317_v2 = vld [vmem:[%s8342_s2 + $0xcc] sm:$0xf]  ;;  %v4496_v17 = vld [vmem:[%s8342_s2 + $0x78] sm:$0xf0] }
 0x2b6   :  { %v5498_v31 = vpop.eup %5497  ;;  %v4547_v5 = vor.u32 %v5317_v2, %v4544_v20  ;;  %1837 = vmatpush.bf16.msrb.mxu1 %v4539_v4  ;;  %v4470_v6 = vld [vmem:[%s8342_s2 + $0x40] sm:$0xf]  ;;  %v5302_v4 = vld [vmem:[%s8342_s2 + $0x4c] sm:$0xf0]  ;;  %v4472_v20 = vld [vmem:[%s8342_s2 + $0x50] sm:$0xf0] }
 0x2b7   :  { %v5500_v33 = vpop.eup %5499  ;;  %v1337_v62 = vadd.f32 1.0, %v5498_v31  ;;  %5503 = vtanh.f32 %v1344_v29  ;;  %1850 = vmatpush.bf16.msra.mxu2 %v4543_v24  ;;  %v4518_v29 = vld [vmem:[%s8342_s2 + $0xa0] sm:$0xf]  ;;  %v5314_v31 = vld [vmem:[%s8342_s2 + $0xac] sm:$0xf0]  ;;  %v4471_v2 = vor.u32 %v5302_v4, %v4470_v6 }
 0x2b8   :  { %v1341_v26 = vadd.f32 1.0, %v5500_v33  ;;  %v5312_v33 = vld [vmem:[%s8342_s2 + $0xa4] sm:$0xf]  ;;  %1863 = vmatpush.bf16.msra.mxu3 %v4547_v5  ;;  %v4478_v5 = vld [vmem:[%s8342_s2 + $0x48] sm:$0xf] }
 0x2b9   :  { %v1338_v35 = vmul.f32 0.5, %v1337_v62  ;;  %v4519_v62 = vor.u32 %v5314_v31, %v4518_v29  ;;  %v5300_v24 = vld [vmem:[%s8342_s2 + $0x44] sm:$0xf]  ;;  %v5303_v29 = vld [vmem:[%s8342_s2 + $0x54] sm:$0xf0] }
 0x2ba   :  { %v1342_v37 = vmul.f32 0.5, %v1341_v26  ;;  %v1316_v7 = vpop.f32.mrf.mxu2  ;;  %v1329_v58 = vpop.f32.mrf.mxu3  ;;  %v4520_v26 = vld [vmem:[%s8342_s2 + $0xb0] sm:$0xf0]  ;;  %v4475_v31 = vor.u32 %v5300_v24, %v4472_v20 }
 0x2bb   :  { %v5502_v38 = vpop.eup %5501  ;;  %v4523_v7 = vor.u32 %v5312_v33, %v4520_v26  ;;  %v4479_v33 = vor.u32 %v5303_v29, %v4478_v5  ;;  %v4480_v26 = vld [vmem:[%s8342_s2 + $0x58] sm:$0xf0] }
 0x2bc   :  { %v1348_v9 = vmul.f32 %v1342_v37, %v6635_v52  ;;  %v1349_v39 = vmul.f32 %v5502_v38, %v1338_v35  ;;  %v4550_v52 = vld [vmem:[%s8342_s2 + $0xe0] sm:$0xf]  ;;  %v4526_v35 = vld [vmem:[%s8342_s2 + $0xa8] sm:$0xf]  ;;  %v5315_v37 = vld [vmem:[%s8342_s2 + $0xb4] sm:$0xf0] }
 0x2bd   :  { %v5504_v59 = vpop.eup %5503  ;;  %v4551_v45 = vor.u32 %v5322_v44, %v4550_v52  ;;  %v4527_v58 = vor.u32 %v5315_v37, %v4526_v35  ;;  %v5313_v38 = vld [vmem:[%s8342_s2 + $0xac] sm:$0xf]  ;;  %1838 = vmatpush.bf16.msrb.mxu1 %v4523_v7  ;;  %v5311_v52 = vld [vmem:[%s8342_s2 + $0x94] sm:$0xf0]  ;;  %v4454_v37 = vld [vmem:[%s8342_s2 + $0x20] sm:$0xf] }
 0x2be   :  { %v6839_v10 = vadd.f32 %v1349_v39, %v1348_v9  ;;  %v1346_v23 = vadd.f32 1.0, %v5504_v59  ;;  %v4528_v9 = vld [vmem:[%s8342_s2 + $0xb8] sm:$0xf0]  ;;  %v4502_v59 = vld [vmem:[%s8342_s2 + $0x80] sm:$0xf] }
 0x2bf   :  { %1823 = vmatpush.bf16.msra.mxu0 %v4551_v45  ;;  %v4531_v39 = vor.u32 %v5313_v38, %v4528_v9  ;;  %1851 = vmatpush.bf16.msra.mxu2 %v4527_v58  ;;  %v5309_v45 = vld [vmem:[%s8342_s2 + $0x8c] sm:$0xf]  ;;  %v5298_v7 = vld [vmem:[%s8342_s2 + $0x2c] sm:$0xf0]  ;;  %v5296_v58 = vld [vmem:[%s8342_s2 + $0x24] sm:$0xf] }
 0x2c0   :  { %5505 = vtanh.f32 %v6839_v10  ;;  %v1347_v40 = vmul.f32 0.5, %v1346_v23  ;;  %v5310_v23 = vld [vmem:[%s8342_s2 + $0x8c] sm:$0xf0]  ;;  %v4515_v47 = vor.u32 %v5309_v45, %v4512_v46  ;;  %v4455_v38 = vor.u32 %v5298_v7, %v4454_v37  ;;  %v4456_v9 = vld [vmem:[%s8342_s2 + $0x30] sm:$0xf0] }
 0x2c1   :  { %1864 = vmatpush.bf16.msra.mxu3 %v4531_v39  ;;  %v4462_v39 = vld [vmem:[%s8342_s2 + $0x28] sm:$0xf]  ;;  %v4440_v46 = vld [vmem:[%s8342_s2 + $0x10] sm:$0xf0] }
 0x2c3   :  { %1824 = vmatpush.bf16.msra.mxu0 %v4535_v56  ;;  %v5305_v56 = vld [vmem:[%s8342_s2 + $0x6c] sm:$0xf] }
 0x2c4   :  { %v4499_v22 = vor.u32 %v5305_v56, %v4496_v17 }
 0x2c5   :  { %1865 = vmatpush.bf16.msra.mxu3 %v4515_v47  ;;  %v4446_v47 = vld [vmem:[%s8342_s2 + $0x8] sm:$0xf] }
 0x2c6   :  { %v5506_v41 = vpop.eup %5505  ;;  %v4447_v60 = vor.u32 %v5295_v50, %v4446_v47  ;;  %v5353_v47 = vld [vmem:[%s8342_s2 + $0xec] sm:$0xf]  ;;  %v4688_v50 = vld [vmem:[%s8342_s2 + $0xf8] sm:$0xf0] }
 0x2c7   :  { %v1352_v42 = vmul.f32 %v5506_v41, %v1347_v40  ;;  %1825 = vmatpush.bf16.msra.mxu0 %v4519_v62  ;;  %v5308_v40 = vld [vmem:[%s8342_s2 + $0x84] sm:$0xf]  ;;  %v4503_v41 = vor.u32 %v5310_v23, %v4502_v59  ;;  %v5301_v62 = vld [vmem:[%s8342_s2 + $0x4c] sm:$0xf]  ;;  %v5299_v59 = vld [vmem:[%s8342_s2 + $0x34] sm:$0xf0]  ;;  %v4459_v23 = vor.u32 %v5296_v58, %v4456_v9 }
 0x2c8   :  { %v4483_v35 = vor.u32 %v5301_v62, %v4480_v26 }
 0x2c9   :  { %v1353_v43 = vpack.c.bf16 %v1352_v42, %v1352_v42  ;;  %v4504_v42 = vld [vmem:[%s8342_s2 + $0x90] sm:$0xf0]  ;;  %1866 = vmatpush.bf16.msra.mxu3 %v4499_v22 }
 0x2ca   :  { %v4507_v44 = vor.u32 %v5308_v40, %v4504_v42  ;;  %v4463_v40 = vor.u32 %v5299_v59, %v4462_v39  ;;  %v4464_v42 = vld [vmem:[%s8342_s2 + $0x38] sm:$0xf0] }
 0x2cb   :  { %1354 = vst [vmem:[#allocation5 + $0xc] sm:$0xf] %v1353_v43  ;;  %1559 = vmatmul.bf16.vlgmr.msrb.gmra.mxu0 %v1353_v43  ;;  %1572 = vmatmul.bf16.vlgmr.msra.gmra.mxu1 %v1353_v43 }
 0x2cc   :  { %1585 = vmatmul.bf16.vlgmr.msrb.gmra.mxu2 %v1353_v43  ;;  %1598 = vmatmul.bf16.vlgmr.msrb.gmra.mxu3 %v1353_v43  ;;  %v4510_v43 = vld [vmem:[%s8342_s2 + $0x88] sm:$0xf] }
 0x2cd   :  { %v4511_v34 = vor.u32 %v5311_v52, %v4510_v43  ;;  %1826 = vmatpush.bf16.msra.mxu0 %v4503_v41  ;;  %1839 = vmatpush.bf16.msrb.mxu1 %v4507_v44  ;;  %v5297_v41 = vld [vmem:[%s8342_s2 + $0x2c] sm:$0xf]  ;;  %v4438_v52 = vld [vmem:[%s8342_s2] sm:$0xf]  ;;  %v5294_v44 = vld [vmem:[%s8342_s2 + $0xc] sm:$0xf0] }
 0x2ce   :  { %1867 = vmatpush.bf16.msra.mxu3 %v4483_v35  ;;  %v4467_v43 = vor.u32 %v5297_v41, %v4464_v42  ;;  %v4439_v45 = vor.u32 %v5294_v44, %v4438_v52  ;;  %v5354_v41 = vld [vmem:[%s8342_s2 + $0xec] sm:$0xf0]  ;;  %v5352_v42 = vld [vmem:[%s8342_s2 + $0xe4] sm:$0xf]  ;;  %v4680_v52 = vld [vmem:[%s8342_s2 + $0xf0] sm:$0xf0] }
 0x2cf   :  { %1852 = vmatpush.bf16.msra.mxu2 %v4511_v34  ;;  %v5292_v34 = vld [vmem:[%s8342_s2 + $0x4] sm:$0xf]  ;;  %v4686_v44 = vld [vmem:[%s8342_s2 + $0xe8] sm:$0xf] }
 0x2d0   :  { %v4443_v53 = vor.u32 %v5292_v34, %v4440_v46  ;;  %v5355_v34 = vld [vmem:[%s8342_s2 + $0xf4] sm:$0xf0] }
 0x2d1   :  { %1827 = vmatpush.bf16.msra.mxu0 %v4487_v55  ;;  %1840 = vmatpush.bf16.msrb.mxu1 %v4491_v14  ;;  %v5293_v55 = vld [vmem:[%s8342_s2 + $0xc] sm:$0xf]  ;;  %v4687_v46 = vor.u32 %v5355_v34, %v4686_v44  ;;  %v4616_v34 = vld [vmem:[%s8342_s2 + $0x70] sm:$0xf0] }
 0x2d2   :  { %1868 = vmatpush.bf16.msra.mxu3 %v4467_v43  ;;  %v4451_v3 = vor.u32 %v5293_v55, %v4448_v11  ;;  %v5350_v55 = vld [vmem:[%s8342_s2 + $0xcc] sm:$0xf0]  ;;  %v5348_v11 = vld [vmem:[%s8342_s2 + $0xc4] sm:$0xf] }
 0x2d3   :  { %1853 = vmatpush.bf16.msra.mxu2 %v4495_v15 }
 0x2d5   :  { %1828 = vmatpush.bf16.msra.mxu0 %v4471_v2  ;;  %1841 = vmatpush.bf16.msrb.mxu1 %v4475_v31 }
 0x2d6   :  { %1869 = vmatpush.bf16.msra.mxu3 %v4451_v3 }
 0x2d7   :  { %1854 = vmatpush.bf16.msra.mxu2 %v4479_v33 }
 0x2d9   :  { %1829 = vmatpush.bf16.msra.mxu0 %v4455_v38  ;;  %1842 = vmatpush.bf16.msrb.mxu1 %v4459_v23 }
 0x2db   :  { %1855 = vmatpush.bf16.msra.mxu2 %v4463_v40 }
 0x2dd   :  { %1830 = vmatpush.bf16.msra.mxu0 %v4439_v45  ;;  %1843 = vmatpush.bf16.msrb.mxu1 %v4443_v53  ;;  %v4683_v45 = vor.u32 %v5352_v42, %v4680_v52  ;;  %v4691_v53 = vor.u32 %v5353_v47, %v4688_v50  ;;  %v4614_v42 = vld [vmem:[%s8342_s2 + $0x60] sm:$0xf]  ;;  %v5336_v52 = vld [vmem:[%s8342_s2 + $0x64] sm:$0xf] }
 0x2de   :  { %v4619_v47 = vor.u32 %v5336_v52, %v4616_v34  ;;  %v138_v52 = vadd.f32 %v6000_v18, %v5947_v51  ;;  %v5384_v18 = vld [vmem:[%s8342_s2 + $0xe4] sm:$0xf] }
 0x2df   :  { %1856 = vmatpush.bf16.msra.mxu2 %v4447_v60  ;;  %v4662_v60 = vld [vmem:[%s8342_s2 + $0xc0] sm:$0xf]  ;;  %2134 = vmatpush.bf16.msrb.mxu3 %v4691_v53  ;;  %v5337_v53 = vld [vmem:[%s8342_s2 + $0x6c] sm:$0xf] }
 0x2e0   :  { %v4663_v3 = vor.u32 %v5350_v55, %v4662_v60  ;;  %v4624_v60 = vld [vmem:[%s8342_s2 + $0x78] sm:$0xf0] }
 0x2e1   :  { %2108 = vmatpush.bf16.msra.mxu1 %v4683_v45  ;;  %v4622_v45 = vld [vmem:[%s8342_s2 + $0x68] sm:$0xf]  ;;  %v4627_v55 = vor.u32 %v5337_v53, %v4624_v60  ;;  %v5386_v53 = vld [vmem:[%s8342_s2 + $0xec] sm:$0xf0] }
 0x2e3   :  { %2121 = vmatpush.bf16.msrb.mxu2 %v4687_v46  ;;  %v5339_v46 = vld [vmem:[%s8342_s2 + $0x74] sm:$0xf0] }
 0x2e4   :  { %v4623_v50 = vor.u32 %v5339_v46, %v4622_v45 }
 0x348   :  { %v1560_v61 = vpop.f32.mrf.mxu0  ;;  %v1573_v14 = vpop.f32.mrf.mxu1 }
 0x349   :  { %v1603_v15 = vadd.f32 %v1560_v61, %v5992_v12  ;;  %v1604_v56 = vadd.f32 %v1573_v14, %v6036_v36  ;;  %v4664_v61 = vld [vmem:[%s8342_s2 + $0xd0] sm:$0xf0]  ;;  %v4670_v14 = vld [vmem:[%s8342_s2 + $0xc8] sm:$0xf] }
 0x34b   :  { %v1607_v17 = vmul.f32 0.5, %v1603_v15  ;;  %v1611_v22 = vmul.f32 0.5, %v1604_v56  ;;  %v5351_v15 = vld [vmem:[%s8342_s2 + $0xd4] sm:$0xf0]  ;;  %v4667_v56 = vor.u32 %v5348_v11, %v4664_v61  ;;  %v4598_v11 = vld [vmem:[%s8342_s2 + $0x40] sm:$0xf] }
 0x34c   :  { %v5332_v61 = vld [vmem:[%s8342_s2 + $0x44] sm:$0xf] }
 0x34d   :  { %5507 = vtanh.f32 %v1607_v17  ;;  %v4671_v17 = vor.u32 %v5351_v15, %v4670_v14  ;;  %2109 = vmatpush.bf16.msra.mxu1 %v4667_v56  ;;  %v4600_v15 = vld [vmem:[%s8342_s2 + $0x50] sm:$0xf0]  ;;  %v4606_v56 = vld [vmem:[%s8342_s2 + $0x48] sm:$0xf] }
 0x34e   :  { %5509 = vtanh.f32 %v1611_v22  ;;  %v5349_v22 = vld [vmem:[%s8342_s2 + $0xcc] sm:$0xf] }
 0x34f   :  { %v1586_v6 = vpop.f32.mrf.mxu2  ;;  %v1599_v4 = vpop.f32.mrf.mxu3  ;;  %2122 = vmatpush.bf16.msrb.mxu2 %v4671_v17  ;;  %v5335_v17 = vld [vmem:[%s8342_s2 + $0x54] sm:$0xf0] }
 0x350   :  { %v1605_v24 = vadd.f32 %v1586_v6, %v5998_v16  ;;  %v1606_v2 = vadd.f32 %v1599_v4, %v6003_v19  ;;  %v1562_v20 = vpop.f32.mrf.mxu0  ;;  %v1575_v5 = vpop.f32.mrf.mxu1  ;;  %v4672_v6 = vld [vmem:[%s8342_s2 + $0xd8] sm:$0xf0] }
 0x351   :  { %v4675_v4 = vor.u32 %v5349_v22, %v4672_v6  ;;  %v5344_v20 = vld [vmem:[%s8342_s2 + $0xa4] sm:$0xf]  ;;  %v4603_v22 = vor.u32 %v5332_v61, %v4600_v15  ;;  %v4607_v6 = vor.u32 %v5335_v17, %v4606_v56  ;;  %v5385_v56 = vld [vmem:[%s8342_s2 + $0xec] sm:$0xf]  ;;  %v4816_v17 = vld [vmem:[%s8342_s2 + $0xf8] sm:$0xf0] }
 0x352   :  { %5511 = vtanh.f32 %v1605_v24  ;;  %v1616_v29 = vmul.f32 0.5, %v1606_v2  ;;  %v4646_v24 = vld [vmem:[%s8342_s2 + $0xa0] sm:$0xf]  ;;  %v5346_v2 = vld [vmem:[%s8342_s2 + $0xac] sm:$0xf0] }
 0x353   :  { %v5508_v31 = vpop.eup %5507  ;;  %2135 = vmatpush.bf16.msrb.mxu3 %v4675_v4  ;;  %v4647_v5 = vor.u32 %v5346_v2, %v4646_v24  ;;  %v5333_v4 = vld [vmem:[%s8342_s2 + $0x4c] sm:$0xf]  ;;  %v4608_v24 = vld [vmem:[%s8342_s2 + $0x58] sm:$0xf0] }
 0x354   :  { %v5510_v33 = vpop.eup %5509  ;;  %v1609_v62 = vadd.f32 1.0, %v5508_v31  ;;  %5513 = vtanh.f32 %v1616_v29  ;;  %v4648_v29 = vld [vmem:[%s8342_s2 + $0xb0] sm:$0xf0]  ;;  %v4654_v31 = vld [vmem:[%s8342_s2 + $0xa8] sm:$0xf]  ;;  %v4611_v2 = vor.u32 %v5333_v4, %v4608_v24 }
 0x355   :  { %v1613_v12 = vadd.f32 1.0, %v5510_v33  ;;  %v5347_v33 = vld [vmem:[%s8342_s2 + $0xb4] sm:$0xf0]  ;;  %v5382_v4 = vld [vmem:[%s8342_s2 + $0xcc] sm:$0xf0] }
 0x356   :  { %v1610_v36 = vmul.f32 0.5, %v1609_v62  ;;  %v4651_v62 = vor.u32 %v5344_v20, %v4648_v29  ;;  %v4582_v20 = vld [vmem:[%s8342_s2 + $0x20] sm:$0xf]  ;;  %v5328_v29 = vld [vmem:[%s8342_s2 + $0x24] sm:$0xf] }
 0x357   :  { %v1614_v26 = vmul.f32 0.5, %v1613_v12  ;;  %v1588_v35 = vpop.f32.mrf.mxu2  ;;  %v1601_v37 = vpop.f32.mrf.mxu3  ;;  %v4655_v12 = vor.u32 %v5347_v33, %v4654_v31  ;;  %v4584_v33 = vld [vmem:[%s8342_s2 + $0x30] sm:$0xf0]  ;;  %v5380_v24 = vld [vmem:[%s8342_s2 + $0xc4] sm:$0xf] }
 0x358   :  { %v5512_v7 = vpop.eup %5511  ;;  %2110 = vmatpush.bf16.msra.mxu1 %v4651_v62  ;;  %v4630_v37 = vld [vmem:[%s8342_s2 + $0x80] sm:$0xf]  ;;  %v4590_v62 = vld [vmem:[%s8342_s2 + $0x28] sm:$0xf] }
 0x359   :  { %v1620_v58 = vmul.f32 %v1614_v26, %v6839_v10  ;;  %v1621_v38 = vmul.f32 %v5512_v7, %v1610_v36  ;;  %v4678_v10 = vld [vmem:[%s8342_s2 + $0xe0] sm:$0xf]  ;;  %v5345_v36 = vld [vmem:[%s8342_s2 + $0xac] sm:$0xf]  ;;  %v4656_v26 = vld [vmem:[%s8342_s2 + $0xb8] sm:$0xf0]  ;;  %2123 = vmatpush.bf16.msrb.mxu2 %v4655_v12 }
 0x35a   :  { %v5514_v16 = vpop.eup %5513  ;;  %v4679_v43 = vor.u32 %v5354_v41, %v4678_v10  ;;  %v4659_v35 = vor.u32 %v5345_v36, %v4656_v26  ;;  %v5342_v7 = vld [vmem:[%s8342_s2 + $0x8c] sm:$0xf0]  ;;  %v4640_v10 = vld [vmem:[%s8342_s2 + $0x98] sm:$0xf0]  ;;  %v5331_v12 = vld [vmem:[%s8342_s2 + $0x34] sm:$0xf0]  ;;  %v4587_v36 = vor.u32 %v5328_v29, %v4584_v33  ;;  %v225_v33 = vadd.f32 %v6018_v25, %v5973_v0 }
 0x35b   :  { %v7039_v9 = vadd.f32 %v1621_v38, %v1620_v58  ;;  %v1618_v19 = vadd.f32 1.0, %v5514_v16  ;;  %v5340_v58 = vld [vmem:[%s8342_s2 + $0x84] sm:$0xf]  ;;  %v4631_v38 = vor.u32 %v5342_v7, %v4630_v37  ;;  %v4632_v16 = vld [vmem:[%s8342_s2 + $0x90] sm:$0xf0]  ;;  %v4591_v26 = vor.u32 %v5331_v12, %v4590_v62 }
 0x35c   :  { %2095 = vmatpush.bf16.msrb.mxu0 %v4679_v43  ;;  %2136 = vmatpush.bf16.msrb.mxu3 %v4659_v35  ;;  %v5338_v43 = vld [vmem:[%s8342_s2 + $0x6c] sm:$0xf0]  ;;  %v5329_v35 = vld [vmem:[%s8342_s2 + $0x2c] sm:$0xf]  ;;  %v4592_v37 = vld [vmem:[%s8342_s2 + $0x38] sm:$0xf0] }
 0x35d   :  { %5515 = vtanh.f32 %v7039_v9  ;;  %v1619_v39 = vmul.f32 0.5, %v1618_v19  ;;  %v4638_v19 = vld [vmem:[%s8342_s2 + $0x88] sm:$0xf]  ;;  %v4615_v44 = vor.u32 %v5338_v43, %v4614_v42  ;;  %v4595_v7 = vor.u32 %v5329_v35, %v4592_v37  ;;  %v4576_v42 = vld [vmem:[%s8342_s2 + $0x18] sm:$0xf0] }
 0x35e   :  { %v4798_v29 = vld [vmem:[%s8342_s2 + $0xc8] sm:$0xf]  ;;  %v5381_v12 = vld [vmem:[%s8342_s2 + $0xcc] sm:$0xf]  ;;  %v5378_v25 = vld [vmem:[%s8342_s2 + $0xac] sm:$0xf0] }
 0x360   :  { %2096 = vmatpush.bf16.msrb.mxu0 %v4663_v3  ;;  %v5334_v3 = vld [vmem:[%s8342_s2 + $0x4c] sm:$0xf0] }
 0x361   :  { %v4599_v14 = vor.u32 %v5334_v3, %v4598_v11  ;;  %v5387_v11 = vld [vmem:[%s8342_s2 + $0xf4] sm:$0xf0] }
 0x363   :  { %v5516_v59 = vpop.eup %5515 }
 0x364   :  { %v1624_v23 = vmul.f32 %v5516_v59, %v1619_v39  ;;  %2097 = vmatpush.bf16.msrb.mxu0 %v4647_v5  ;;  %v5343_v39 = vld [vmem:[%s8342_s2 + $0x94] sm:$0xf0]  ;;  %v4635_v59 = vor.u32 %v5340_v58, %v4632_v16  ;;  %v5330_v5 = vld [vmem:[%s8342_s2 + $0x2c] sm:$0xf0]  ;;  %v4566_v58 = vld [vmem:[%s8342_s2] sm:$0xf] }
 0x365   :  { %v4583_v31 = vor.u32 %v5330_v5, %v4582_v20  ;;  %v5324_v16 = vld [vmem:[%s8342_s2 + $0x4] sm:$0xf]  ;;  %v4792_v5 = vld [vmem:[%s8342_s2 + $0xd0] sm:$0xf0] }
 0x366   :  { %v1625_v40 = vpack.c.bf16 %v1624_v23, %v1624_v23  ;;  %v4639_v23 = vor.u32 %v5343_v39, %v4638_v19  ;;  %2111 = vmatpush.bf16.msra.mxu1 %v4635_v59  ;;  %v4568_v39 = vld [vmem:[%s8342_s2 + $0x10] sm:$0xf0]  ;;  %v4574_v59 = vld [vmem:[%s8342_s2 + $0x8] sm:$0xf] }
 0x368   :  { %1626 = vst [vmem:[#allocation5 + $0x10] sm:$0xf] %v1625_v40  ;;  %1831 = vmatmul.bf16.vlgmr.msra.gmra.mxu0 %v1625_v40  ;;  %1844 = vmatmul.bf16.vlgmr.msrb.gmra.mxu1 %v1625_v40 }
 0x369   :  { %1857 = vmatmul.bf16.vlgmr.msra.gmra.mxu2 %v1625_v40  ;;  %1870 = vmatmul.bf16.vlgmr.msra.gmra.mxu3 %v1625_v40  ;;  %v5341_v40 = vld [vmem:[%s8342_s2 + $0x8c] sm:$0xf] }
 0x36a   :  { %2098 = vmatpush.bf16.msrb.mxu0 %v4631_v38  ;;  %v4643_v41 = vor.u32 %v5341_v40, %v4640_v10  ;;  %2124 = vmatpush.bf16.msrb.mxu2 %v4639_v23  ;;  %v5326_v38 = vld [vmem:[%s8342_s2 + $0xc] sm:$0xf0]  ;;  %v5327_v23 = vld [vmem:[%s8342_s2 + $0x14] sm:$0xf0]  ;;  %v4571_v40 = vor.u32 %v5324_v16, %v4568_v39 }
 0x36b   :  { %2112 = vmatpush.bf16.msra.mxu1 %v4619_v47  ;;  %v4567_v19 = vor.u32 %v5326_v38, %v4566_v58  ;;  %v4575_v10 = vor.u32 %v5327_v23, %v4574_v59  ;;  %v5376_v58 = vld [vmem:[%s8342_s2 + $0xa4] sm:$0xf]  ;;  %v4776_v38 = vld [vmem:[%s8342_s2 + $0xb0] sm:$0xf0] }
 0x36c   :  { %2137 = vmatpush.bf16.msrb.mxu3 %v4643_v41  ;;  %v5325_v41 = vld [vmem:[%s8342_s2 + $0xc] sm:$0xf] }
 0x36d   :  { %v4579_v43 = vor.u32 %v5325_v41, %v4576_v42  ;;  %v5377_v41 = vld [vmem:[%s8342_s2 + $0xac] sm:$0xf]  ;;  %v4779_v42 = vor.u32 %v5376_v58, %v4776_v38  ;;  %v5371_v58 = vld [vmem:[%s8342_s2 + $0x74] sm:$0xf0] }
 0x36e   :  { %2099 = vmatpush.bf16.msrb.mxu0 %v4615_v44  ;;  %2125 = vmatpush.bf16.msrb.mxu2 %v4623_v50  ;;  %v167_v44 = vadd.f32 %v6088_v28, %v5987_v8  ;;  %v4806_v50 = vld [vmem:[%s8342_s2 + $0xe0] sm:$0xf]  ;;  %v4808_v28 = vld [vmem:[%s8342_s2 + $0xf0] sm:$0xf0] }
 0x36f   :  { %2113 = vmatpush.bf16.msra.mxu1 %v4603_v22  ;;  %v4807_v60 = vor.u32 %v5386_v53, %v4806_v50  ;;  %v4819_v22 = vor.u32 %v5385_v56, %v4816_v17  ;;  %v4760_v50 = vld [vmem:[%s8342_s2 + $0x90] sm:$0xf0] }
 0x370   :  { %2138 = vmatpush.bf16.msrb.mxu3 %v4627_v55  ;;  %v4814_v55 = vld [vmem:[%s8342_s2 + $0xe8] sm:$0xf] }
 0x371   :  { %v4815_v15 = vor.u32 %v5387_v11, %v4814_v55 }
 0x372   :  { %2100 = vmatpush.bf16.msrb.mxu0 %v4599_v14  ;;  %2126 = vmatpush.bf16.msrb.mxu2 %v4607_v6  ;;  %v4811_v14 = vor.u32 %v5384_v18, %v4808_v28  ;;  %v4790_v6 = vld [vmem:[%s8342_s2 + $0xc0] sm:$0xf]  ;;  %v4766_v18 = vld [vmem:[%s8342_s2 + $0x88] sm:$0xf]  ;;  %v5373_v28 = vld [vmem:[%s8342_s2 + $0x8c] sm:$0xf] }
 0x373   :  { %2114 = vmatpush.bf16.msra.mxu1 %v4587_v36  ;;  %v4791_v20 = vor.u32 %v5382_v4, %v4790_v6  ;;  %v4800_v36 = vld [vmem:[%s8342_s2 + $0xd8] sm:$0xf0] }
 0x374   :  { %2139 = vmatpush.bf16.msrb.mxu3 %v4611_v2  ;;  %v196_v2 = vadd.f32 %v6007_v21, %v5971_v63  ;;  %v4795_v21 = vor.u32 %v5380_v24, %v4792_v5 }
 0x376   :  { %2101 = vmatpush.bf16.msrb.mxu0 %v4583_v31  ;;  %2127 = vmatpush.bf16.msrb.mxu2 %v4591_v26  ;;  %v5383_v31 = vld [vmem:[%s8342_s2 + $0xd4] sm:$0xf0]  ;;  %v4774_v26 = vld [vmem:[%s8342_s2 + $0xa0] sm:$0xf] }
 0x377   :  { %2115 = vmatpush.bf16.msra.mxu1 %v4571_v40  ;;  %v4799_v62 = vor.u32 %v5383_v31, %v4798_v29  ;;  %v4775_v23 = vor.u32 %v5378_v25, %v4774_v26  ;;  %v4782_v40 = vld [vmem:[%s8342_s2 + $0xa8] sm:$0xf]  ;;  %v5370_v26 = vld [vmem:[%s8342_s2 + $0x6c] sm:$0xf0] }
 0x378   :  { %2140 = vmatpush.bf16.msrb.mxu3 %v4595_v7  ;;  %v4803_v7 = vor.u32 %v5381_v12, %v4800_v36  ;;  %v4750_v25 = vld [vmem:[%s8342_s2 + $0x68] sm:$0xf] }
 0x37a   :  { %2102 = vmatpush.bf16.msrb.mxu0 %v4567_v19  ;;  %2128 = vmatpush.bf16.msrb.mxu2 %v4575_v10  ;;  %v5379_v10 = vld [vmem:[%s8342_s2 + $0xb4] sm:$0xf0] }
 0x37b   :  { %2380 = vmatpush.bf16.msrb.mxu1 %v4811_v14 }
 0x37c   :  { %2141 = vmatpush.bf16.msrb.mxu3 %v4579_v43  ;;  %v4783_v43 = vor.u32 %v5379_v10, %v4782_v40  ;;  %v5366_v40 = vld [vmem:[%s8342_s2 + $0x4c] sm:$0xf0]  ;;  %v5364_v10 = vld [vmem:[%s8342_s2 + $0x44] sm:$0xf] }
 0x37e   :  { %2367 = vmatpush.bf16.msra.mxu0 %v4807_v60  ;;  %2393 = vmatpush.bf16.msra.mxu2 %v4815_v15  ;;  %v5375_v60 = vld [vmem:[%s8342_s2 + $0x94] sm:$0xf0] }
 0x37f   :  { %2381 = vmatpush.bf16.msrb.mxu1 %v4795_v21  ;;  %v4767_v56 = vor.u32 %v5375_v60, %v4766_v18  ;;  %v5360_v18 = vld [vmem:[%s8342_s2 + $0x24] sm:$0xf] }
 0x380   :  { %2406 = vmatpush.bf16.msra.mxu3 %v4819_v22 }
 0x382   :  { %2368 = vmatpush.bf16.msra.mxu0 %v4791_v20  ;;  %2394 = vmatpush.bf16.msra.mxu2 %v4799_v62 }
 0x383   :  { %2382 = vmatpush.bf16.msrb.mxu1 %v4779_v42  ;;  %v4728_v42 = vld [vmem:[%s8342_s2 + $0x50] sm:$0xf0] }
 0x384   :  { %2407 = vmatpush.bf16.msra.mxu3 %v4803_v7  ;;  %v4744_v7 = vld [vmem:[%s8342_s2 + $0x70] sm:$0xf0] }
 0x386   :  { %2369 = vmatpush.bf16.msra.mxu0 %v4775_v23  ;;  %2395 = vmatpush.bf16.msra.mxu2 %v4783_v43  ;;  %v4726_v23 = vld [vmem:[%s8342_s2 + $0x40] sm:$0xf]  ;;  %v4734_v43 = vld [vmem:[%s8342_s2 + $0x48] sm:$0xf] }
 0x38a   :  { %2396 = vmatpush.bf16.msra.mxu2 %v4767_v56 }
 0x3e5   :  { %v1832_v34 = vpop.f32.mrf.mxu0  ;;  %v1845_v45 = vpop.f32.mrf.mxu1 }
 0x3e6   :  { %v1875_v46 = vadd.f32 %v1832_v34, %v138_v52  ;;  %v1876_v47 = vadd.f32 %v1845_v45, %v167_v44  ;;  %v4784_v52 = vld [vmem:[%s8342_s2 + $0xb8] sm:$0xf0]  ;;  %v4758_v44 = vld [vmem:[%s8342_s2 + $0x80] sm:$0xf]  ;;  %v5374_v34 = vld [vmem:[%s8342_s2 + $0x8c] sm:$0xf0] }
 0x3e8   :  { %v1879_v3 = vmul.f32 0.5, %v1875_v46  ;;  %v1883_v61 = vmul.f32 0.5, %v1876_v47  ;;  %v4787_v46 = vor.u32 %v5377_v41, %v4784_v52  ;;  %v5372_v47 = vld [vmem:[%s8342_s2 + $0x84] sm:$0xf]  ;;  %v4727_v41 = vor.u32 %v5366_v40, %v4726_v23  ;;  %v5367_v52 = vld [vmem:[%s8342_s2 + $0x54] sm:$0xf0] }
 0x3e9   :  { %v4763_v15 = vor.u32 %v5372_v47, %v4760_v50  ;;  %v4710_v50 = vld [vmem:[%s8342_s2 + $0x20] sm:$0xf]  ;;  %v5416_v40 = vld [vmem:[%s8344_s4 + $0xc4] sm:$0xf] }
 0x3ea   :  { %5517 = vtanh.f32 %v1879_v3  ;;  %v4759_v3 = vor.u32 %v5374_v34, %v4758_v44  ;;  %2408 = vmatpush.bf16.msra.mxu3 %v4787_v46  ;;  %v4731_v44 = vor.u32 %v5364_v10, %v4728_v42  ;;  %v4735_v34 = vor.u32 %v5367_v52, %v4734_v43  ;;  %v4736_v46 = vld [vmem:[%s8342_s2 + $0x58] sm:$0xf0]  ;;  %v4936_v10 = vld [vmem:[%s8344_s4 + $0xd0] sm:$0xf0]  ;;  %v5419_v43 = vld [vmem:[%s8344_s4 + $0xd4] sm:$0xf0] }
 0x3eb   :  { %5519 = vtanh.f32 %v1883_v61  ;;  %v4768_v61 = vld [vmem:[%s8342_s2 + $0x98] sm:$0xf0]  ;;  %2383 = vmatpush.bf16.msrb.mxu1 %v4763_v15  ;;  %v4939_v42 = vor.u32 %v5416_v40, %v4936_v10  ;;  %v5417_v52 = vld [vmem:[%s8344_s4 + $0xcc] sm:$0xf]  ;;  %v4872_v40 = vld [vmem:[%s8344_s4 + $0x50] sm:$0xf0] }
 0x3ec   :  { %v1858_v35 = vpop.f32.mrf.mxu2  ;;  %v1871_v37 = vpop.f32.mrf.mxu3  ;;  %v4771_v22 = vor.u32 %v5373_v28, %v4768_v61  ;;  %2370 = vmatpush.bf16.msra.mxu0 %v4759_v3  ;;  %v4712_v28 = vld [vmem:[%s8342_s2 + $0x30] sm:$0xf0]  ;;  %v4720_v15 = vld [vmem:[%s8342_s2 + $0x38] sm:$0xf0] }
 0x3ed   :  { %v1877_v16 = vadd.f32 %v1858_v35, %v196_v2  ;;  %v1878_v19 = vadd.f32 %v1871_v37, %v225_v33  ;;  %v1834_v39 = vpop.f32.mrf.mxu0  ;;  %v1847_v59 = vpop.f32.mrf.mxu1  ;;  %v5368_v35 = vld [vmem:[%s8342_s2 + $0x64] sm:$0xf]  ;;  %v4715_v3 = vor.u32 %v5360_v18, %v4712_v28  ;;  %v4920_v18 = vld [vmem:[%s8344_s4 + $0xb0] sm:$0xf0]  ;;  %v5415_v28 = vld [vmem:[%s8344_s4 + $0xb4] sm:$0xf0] }
 0x3ee   :  { %2409 = vmatpush.bf16.msra.mxu3 %v4771_v22  ;;  %v4747_v38 = vor.u32 %v5368_v35, %v4744_v7  ;;  %v4752_v39 = vld [vmem:[%s8342_s2 + $0x78] sm:$0xf0]  ;;  %v5358_v22 = vld [vmem:[%s8342_s2 + $0xc] sm:$0xf0]  ;;  %v4958_v7 = vld [vmem:[%s8344_s4 + $0xe8] sm:$0xf] }
 0x3ef   :  { %5521 = vtanh.f32 %v1877_v16  ;;  %v1888_v45 = vmul.f32 0.5, %v1878_v19  ;;  %v4751_v16 = vor.u32 %v5371_v58, %v4750_v25  ;;  %v5369_v19 = vld [vmem:[%s8342_s2 + $0x6c] sm:$0xf]  ;;  %v5423_v25 = vld [vmem:[%s8344_s4 + $0xf4] sm:$0xf0] }
 0x3f0   :  { %v5518_v53 = vpop.eup %5517  ;;  %v4755_v59 = vor.u32 %v5369_v19, %v4752_v39  ;;  %2384 = vmatpush.bf16.msrb.mxu1 %v4747_v38  ;;  %v5421_v58 = vld [vmem:[%s8344_s4 + $0xec] sm:$0xf]  ;;  %v4959_v38 = vor.u32 %v5423_v25, %v4958_v7  ;;  %v4934_v19 = vld [vmem:[%s8344_s4 + $0xc0] sm:$0xf]  ;;  %v5418_v39 = vld [vmem:[%s8344_s4 + $0xcc] sm:$0xf0] }
 0x3f1   :  { %v5520_v55 = vpop.eup %5519  ;;  %v1881_v11 = vadd.f32 1.0, %v5518_v53  ;;  %5523 = vtanh.f32 %v1888_v45  ;;  %2397 = vmatpush.bf16.msra.mxu2 %v4751_v16  ;;  %v5365_v45 = vld [vmem:[%s8342_s2 + $0x4c] sm:$0xf]  ;;  %v5362_v53 = vld [vmem:[%s8342_s2 + $0x2c] sm:$0xf0]  ;;  %v4935_v23 = vor.u32 %v5418_v39, %v4934_v19 }
 0x3f2   :  { %v1885_v14 = vadd.f32 1.0, %v5520_v55  ;;  %2410 = vmatpush.bf16.msra.mxu3 %v4755_v59  ;;  %v4739_v47 = vor.u32 %v5365_v45, %v4736_v46  ;;  %v4711_v60 = vor.u32 %v5362_v53, %v4710_v50  ;;  %v4718_v55 = vld [vmem:[%s8342_s2 + $0x28] sm:$0xf]  ;;  %v4960_v16 = vld [vmem:[%s8344_s4 + $0xf8] sm:$0xf0] }
 0x3f3   :  { %v1882_v17 = vmul.f32 0.5, %v1881_v11  ;;  %v5363_v11 = vld [vmem:[%s8342_s2 + $0x34] sm:$0xf0]  ;;  %v4963_v59 = vor.u32 %v5421_v58, %v4960_v16  ;;  %v4918_v46 = vld [vmem:[%s8344_s4 + $0xa0] sm:$0xf] }
 0x3f4   :  { %v1886_v6 = vmul.f32 0.5, %v1885_v14  ;;  %v1860_v4 = vpop.f32.mrf.mxu2  ;;  %v1873_v24 = vpop.f32.mrf.mxu3  ;;  %2385 = vmatpush.bf16.msrb.mxu1 %v4731_v44  ;;  %v4719_v61 = vor.u32 %v5363_v11, %v4718_v55  ;;  %v5361_v14 = vld [vmem:[%s8342_s2 + $0x2c] sm:$0xf]  ;;  %v4944_v44 = vld [vmem:[%s8344_s4 + $0xd8] sm:$0xf0] }
 0x3f5   :  { %v5522_v2 = vpop.eup %5521  ;;  %2398 = vmatpush.bf16.msra.mxu2 %v4735_v34  ;;  %v4723_v56 = vor.u32 %v5361_v14, %v4720_v15  ;;  %v4696_v24 = vld [vmem:[%s8342_s2 + $0x10] sm:$0xf0]  ;;  %v4947_v45 = vor.u32 %v5417_v52, %v4944_v44  ;;  %v5412_v50 = vld [vmem:[%s8344_s4 + $0xa4] sm:$0xf]  ;;  %v4902_v15 = vld [vmem:[%s8344_s4 + $0x80] sm:$0xf] }
 0x3f6   :  { %v1892_v20 = vmul.f32 %v1886_v6, %v7039_v9  ;;  %v1893_v5 = vmul.f32 %v5522_v2, %v1882_v17  ;;  %v4742_v9 = vld [vmem:[%s8342_s2 + $0x60] sm:$0xf]  ;;  %2411 = vmatpush.bf16.msra.mxu3 %v4739_v47  ;;  %v5356_v6 = vld [vmem:[%s8342_s2 + $0x4] sm:$0xf]  ;;  %v4702_v2 = vld [vmem:[%s8342_s2 + $0x8] sm:$0xf]  ;;  %v4923_v55 = vor.u32 %v5412_v50, %v4920_v18 }
 0x3f7   :  { %v5524_v29 = vpop.eup %5523  ;;  %v4743_v37 = vor.u32 %v5370_v26, %v4742_v9  ;;  %v4694_v17 = vld [vmem:[%s8342_s2] sm:$0xf]  ;;  %v5420_v9 = vld [vmem:[%s8344_s4 + $0xe4] sm:$0xf]  ;;  %v4952_v26 = vld [vmem:[%s8344_s4 + $0xf0] sm:$0xf0] }
 0x3f8   :  { %v7339_v31 = vadd.f32 %v1893_v5, %v1892_v20  ;;  %v1890_v33 = vadd.f32 1.0, %v5524_v29  ;;  %2386 = vmatpush.bf16.msrb.mxu1 %v4715_v3  ;;  %v4695_v4 = vor.u32 %v5358_v22, %v4694_v17  ;;  %v5359_v20 = vld [vmem:[%s8342_s2 + $0x14] sm:$0xf0]  ;;  %v4699_v5 = vor.u32 %v5356_v6, %v4696_v24  ;;  %v5414_v47 = vld [vmem:[%s8344_s4 + $0xac] sm:$0xf0] }
 0x3f9   :  { %2371 = vmatpush.bf16.msra.mxu0 %v4743_v37  ;;  %2399 = vmatpush.bf16.msra.mxu2 %v4719_v61  ;;  %v4703_v29 = vor.u32 %v5359_v20, %v4702_v2  ;;  %v4955_v37 = vor.u32 %v5420_v9, %v4952_v26  ;;  %v4919_v53 = vor.u32 %v5414_v47, %v4918_v46  ;;  %v5413_v3 = vld [vmem:[%s8344_s4 + $0xac] sm:$0xf]  ;;  %v4928_v61 = vld [vmem:[%s8344_s4 + $0xb8] sm:$0xf0]  ;;  %v5408_v17 = vld [vmem:[%s8344_s4 + $0x84] sm:$0xf] }
 0x3fa   :  { %5525 = vtanh.f32 %v7339_v31  ;;  %v1891_v21 = vmul.f32 0.5, %v1890_v33  ;;  %2412 = vmatpush.bf16.msra.mxu3 %v4723_v56  ;;  %v5357_v33 = vld [vmem:[%s8342_s2 + $0xc] sm:$0xf]  ;;  %v4931_v14 = vor.u32 %v5413_v3, %v4928_v61  ;;  %v5410_v56 = vld [vmem:[%s8344_s4 + $0x8c] sm:$0xf0] }
 0x3fb   :  { %v4903_v22 = vor.u32 %v5410_v56, %v4902_v15  ;;  %v4904_v6 = vld [vmem:[%s8344_s4 + $0x90] sm:$0xf0]  ;;  %v5411_v24 = vld [vmem:[%s8344_s4 + $0x94] sm:$0xf0]  ;;  %v5405_v19 = vld [vmem:[%s8344_s4 + $0x6c] sm:$0xf] }
 0x3fc   :  { %2387 = vmatpush.bf16.msrb.mxu1 %v4699_v5  ;;  %v4907_v2 = vor.u32 %v5408_v17, %v4904_v6  ;;  %v5409_v5 = vld [vmem:[%s8344_s4 + $0x8c] sm:$0xf]  ;;  %v5407_v7 = vld [vmem:[%s8344_s4 + $0x74] sm:$0xf0]  ;;  %v4896_v39 = vld [vmem:[%s8344_s4 + $0x78] sm:$0xf0] }
 0x3fd   :  { %2372 = vmatpush.bf16.msra.mxu0 %v4727_v41  ;;  %2400 = vmatpush.bf16.msra.mxu2 %v4703_v29  ;;  %v4942_v41 = vld [vmem:[%s8344_s4 + $0xc8] sm:$0xf]  ;;  %v4912_v29 = vld [vmem:[%s8344_s4 + $0x98] sm:$0xf0]  ;;  %v5403_v44 = vld [vmem:[%s8344_s4 + $0x54] sm:$0xf0] }
 0x3fe   :  { %v4943_v34 = vor.u32 %v5419_v43, %v4942_v41  ;;  %v4878_v52 = vld [vmem:[%s8344_s4 + $0x48] sm:$0xf]  ;;  %v4880_v46 = vld [vmem:[%s8344_s4 + $0x58] sm:$0xf0]  ;;  %v4854_v47 = vld [vmem:[%s8344_s4 + $0x20] sm:$0xf] }
 0x3ff   :  { %v5396_v18 = vld [vmem:[%s8344_s4 + $0x24] sm:$0xf]  ;;  %v4864_v56 = vld [vmem:[%s8344_s4 + $0x38] sm:$0xf0]  ;;  %v4838_v17 = vld [vmem:[%s8344_s4] sm:$0xf] }
 0x400   :  { %v5526_v62 = vpop.eup %5525 }
 0x401   :  { %v1896_v12 = vmul.f32 %v5526_v62, %v1891_v21  ;;  %2373 = vmatpush.bf16.msra.mxu0 %v4711_v60  ;;  %v4704_v21 = vld [vmem:[%s8342_s2 + $0x18] sm:$0xf0]  ;;  %v4950_v62 = vld [vmem:[%s8344_s4 + $0xe0] sm:$0xf]  ;;  %v4926_v60 = vld [vmem:[%s8344_s4 + $0xa8] sm:$0xf] }
 0x402   :  { %v4927_v11 = vor.u32 %v5415_v28, %v4926_v60  ;;  %v4856_v60 = vld [vmem:[%s8344_s4 + $0x30] sm:$0xf0]  ;;  %v4862_v28 = vld [vmem:[%s8344_s4 + $0x28] sm:$0xf] }
 0x403   :  { %v1897_v36 = vpack.c.bf16 %v1896_v12, %v1896_v12  ;;  %v4707_v12 = vor.u32 %v5357_v33, %v4704_v21  ;;  %v4915_v33 = vor.u32 %v5409_v5, %v4912_v29  ;;  %v4886_v21 = vld [vmem:[%s8344_s4 + $0x60] sm:$0xf]  ;;  %v4859_v15 = vor.u32 %v5396_v18, %v4856_v60  ;;  %v5392_v5 = vld [vmem:[%s8344_s4 + $0x4] sm:$0xf]  ;;  %v4840_v29 = vld [vmem:[%s8344_s4 + $0x10] sm:$0xf0] }
 0x405   :  { %1898 = vst [vmem:[#allocation5 + $0x14] sm:$0xf] %v1897_v36  ;;  %2103 = vmatmul.bf16.vlgmr.msrb.gmra.mxu0 %v1897_v36  ;;  %2116 = vmatmul.bf16.vlgmr.msra.gmra.mxu1 %v1897_v36 }
 0x406   :  { %2129 = vmatmul.bf16.vlgmr.msrb.gmra.mxu2 %v1897_v36  ;;  %2142 = vmatmul.bf16.vlgmr.msrb.gmra.mxu3 %v1897_v36  ;;  %v5422_v36 = vld [vmem:[%s8344_s4 + $0xec] sm:$0xf0] }
 0x407   :  { %2374 = vmatpush.bf16.msra.mxu0 %v4695_v4  ;;  %v4951_v35 = vor.u32 %v5422_v36, %v4950_v62  ;;  %2413 = vmatpush.bf16.msra.mxu3 %v4707_v12  ;;  %v4910_v4 = vld [vmem:[%s8344_s4 + $0x88] sm:$0xf]  ;;  %v5406_v62 = vld [vmem:[%s8344_s4 + $0x6c] sm:$0xf0]  ;;  %v5404_v12 = vld [vmem:[%s8344_s4 + $0x64] sm:$0xf] }
 0x408   :  { %2708 = vmatpush.bf16.msra.mxu1 %v4955_v37  ;;  %2737 = vmatpush.bf16.msrb.mxu2 %v4959_v38  ;;  %v4911_v20 = vor.u32 %v5411_v24, %v4910_v4  ;;  %v4887_v26 = vor.u32 %v5406_v62, %v4886_v21  ;;  %v4894_v37 = vld [vmem:[%s8344_s4 + $0x68] sm:$0xf]  ;;  %v5393_v62 = vld [vmem:[%s8344_s4 + $0xc] sm:$0xf] }
 0x409   :  { %v4895_v16 = vor.u32 %v5407_v7, %v4894_v37 }
 0x40b   :  { %2679 = vmatpush.bf16.msrb.mxu0 %v4951_v35  ;;  %2766 = vmatpush.bf16.msrb.mxu3 %v4963_v59  ;;  %v4888_v35 = vld [vmem:[%s8344_s4 + $0x70] sm:$0xf0]  ;;  %v4870_v59 = vld [vmem:[%s8344_s4 + $0x40] sm:$0xf] }
 0x40c   :  { %2709 = vmatpush.bf16.msra.mxu1 %v4939_v42  ;;  %2738 = vmatpush.bf16.msrb.mxu2 %v4943_v34  ;;  %v4891_v38 = vor.u32 %v5404_v12, %v4888_v35  ;;  %v4879_v34 = vor.u32 %v5403_v44, %v4878_v52  ;;  %v4848_v12 = vld [vmem:[%s8344_s4 + $0x18] sm:$0xf0]  ;;  %v5388_v44 = vld [vmem:[#allocation5] sm:$0xff] }
 0x40f   :  { %2680 = vmatpush.bf16.msrb.mxu0 %v4935_v23  ;;  %2767 = vmatpush.bf16.msrb.mxu3 %v4947_v45  ;;  %v4899_v23 = vor.u32 %v5405_v19, %v4896_v39  ;;  %v5401_v45 = vld [vmem:[%s8344_s4 + $0x4c] sm:$0xf] }
 0x410   :  { %2710 = vmatpush.bf16.msra.mxu1 %v4923_v55  ;;  %2739 = vmatpush.bf16.msrb.mxu2 %v4927_v11  ;;  %v4883_v50 = vor.u32 %v5401_v45, %v4880_v46  ;;  %v5399_v55 = vld [vmem:[%s8344_s4 + $0x34] sm:$0xf0]  ;;  %v5397_v11 = vld [vmem:[%s8344_s4 + $0x2c] sm:$0xf]  ;;  %v5452_v45 = vld [vmem:[%s8345_s5 + $0xe4] sm:$0xf] }
 0x413   :  { %2681 = vmatpush.bf16.msrb.mxu0 %v4919_v53  ;;  %2768 = vmatpush.bf16.msrb.mxu3 %v4931_v14  ;;  %v5398_v53 = vld [vmem:[%s8344_s4 + $0x2c] sm:$0xf0] }
 0x414   :  { %2711 = vmatpush.bf16.msra.mxu1 %v4907_v2  ;;  %2740 = vmatpush.bf16.msrb.mxu2 %v4911_v20  ;;  %v4855_v14 = vor.u32 %v5398_v53, %v4854_v47  ;;  %v4863_v2 = vor.u32 %v5399_v55, %v4862_v28  ;;  %v5394_v20 = vld [vmem:[%s8344_s4 + $0xc] sm:$0xf0]  ;;  %v5080_v47 = vld [vmem:[%s8345_s5 + $0xf0] sm:$0xf0]  ;;  %v5455_v53 = vld [vmem:[%s8345_s5 + $0xf4] sm:$0xf0] }
 0x415   :  { %v7658_v18 = vor.u32 %v5452_v45, %v5080_v47  ;;  %v5453_v28 = vld [vmem:[%s8345_s5 + $0xec] sm:$0xf]  ;;  %v5088_v55 = vld [vmem:[%s8345_s5 + $0xf8] sm:$0xf0]  ;;  %v5436_v45 = vld [vmem:[%s8345_s5 + $0x64] sm:$0xf] }
 0x416   :  { %v5016_v47 = vld [vmem:[%s8345_s5 + $0x70] sm:$0xf0] }
 0x417   :  { %2682 = vmatpush.bf16.msrb.mxu0 %v4903_v22  ;;  %2769 = vmatpush.bf16.msrb.mxu3 %v4915_v33  ;;  %v5395_v33 = vld [vmem:[%s8344_s4 + $0x14] sm:$0xf0] }
 0x418   :  { %2712 = vmatpush.bf16.msra.mxu1 %v4891_v38  ;;  %2741 = vmatpush.bf16.msrb.mxu2 %v4895_v16 }
 0x41b   :  { %2683 = vmatpush.bf16.msrb.mxu0 %v4887_v26  ;;  %2770 = vmatpush.bf16.msrb.mxu3 %v4899_v23  ;;  %v4843_v26 = vor.u32 %v5392_v5, %v4840_v29  ;;  %v5072_v5 = vld [vmem:[%s8345_s5 + $0xd8] sm:$0xf0] }
 0x41c   :  { %2742 = vmatpush.bf16.msrb.mxu2 %v4879_v34  ;;  %v5454_v34 = vld [vmem:[%s8345_s5 + $0xec] sm:$0xf0] }
 0x41f   :  { %2771 = vmatpush.bf16.msrb.mxu3 %v4883_v50  ;;  %v5086_v50 = vld [vmem:[%s8345_s5 + $0xe8] sm:$0xf] }
 0x420   :  { %2743 = vmatpush.bf16.msrb.mxu2 %v4863_v2  ;;  %v7660_v60 = vor.u32 %v5455_v53, %v5086_v50  ;;  %v201_v50 = vadd.f32 %v6120_v48, %v5971_v63  ;;  %v230_v53 = vadd.f32 %v6131_v1, %v5973_v0  ;;  %v5437_v63 = vld [vmem:[%s8345_s5 + $0x6c] sm:$0xf]  ;;  %v7812_v0 = vor.u32 %v5436_v45, %v5016_v47 }
 0x482   :  { %v2104_v36 = vpop.f32.mrf.mxu0  ;;  %v2117_v9 = vpop.f32.mrf.mxu1 }
 0x483   :  { %v2147_v25 = vadd.f32 %v2104_v36, %v5952_v54  ;;  %v2148_v58 = vadd.f32 %v2117_v9, %v6149_v30  ;;  %v5402_v54 = vld [vmem:[%s8344_s4 + $0x4c] sm:$0xf0]  ;;  %v5400_v30 = vld [vmem:[%s8344_s4 + $0x44] sm:$0xf]  ;;  %v4839_v9 = vor.u32 %v5394_v20, %v4838_v17  ;;  %v5449_v20 = vld [vmem:[%s8345_s5 + $0xcc] sm:$0xf] }
 0x484   :  { %v4871_v42 = vor.u32 %v5402_v54, %v4870_v59  ;;  %v4875_v43 = vor.u32 %v5400_v30, %v4872_v40  ;;  %v7707_v29 = vor.u32 %v5449_v20, %v5072_v5 }
 0x485   :  { %v2151_v10 = vmul.f32 0.5, %v2147_v25  ;;  %v2155_v41 = vmul.f32 0.5, %v2148_v58  ;;  %v4851_v58 = vor.u32 %v5393_v62, %v4848_v12  ;;  %v5444_v62 = vld [vmem:[%s8345_s5 + $0xa4] sm:$0xf] }
 0x486   :  { %2684 = vmatpush.bf16.msrb.mxu0 %v4871_v42  ;;  %2713 = vmatpush.bf16.msra.mxu1 %v4875_v43 }
 0x487   :  { %5527 = vtanh.f32 %v2151_v10 }
 0x488   :  { %5529 = vtanh.f32 %v2155_v41 }
 0x489   :  { %v2130_v3 = vpop.f32.mrf.mxu2  ;;  %v2143_v61 = vpop.f32.mrf.mxu3 }
 0x48a   :  { %v2149_v22 = vadd.f32 %v2130_v3, %v6074_v13  ;;  %v2150_v6 = vadd.f32 %v2143_v61, %v6086_v27  ;;  %v2106_v4 = vpop.f32.mrf.mxu0  ;;  %v2119_v24 = vpop.f32.mrf.mxu1  ;;  %v4867_v13 = vor.u32 %v5397_v11, %v4864_v56  ;;  %v4846_v27 = vld [vmem:[%s8344_s4 + $0x8] sm:$0xf]  ;;  %2685 = vmatpush.bf16.msrb.mxu0 %v4855_v14  ;;  %2714 = vmatpush.bf16.msra.mxu1 %v4859_v15  ;;  %v5390_v61 = vld [vmem:[#allocation5 + $0x10] sm:$0xff]  ;;  %v5062_v14 = vld [vmem:[%s8345_s5 + $0xc0] sm:$0xf] }
 0x48b   :  { %v4847_v7 = vor.u32 %v5395_v33, %v4846_v27  ;;  %v7669_v11 = vor.u32 %v5453_v28, %v5088_v55  ;;  %v5389_v3 = vld [vmem:[#allocation5 + $0x8] sm:$0xff]  ;;  %v5450_v15 = vld [vmem:[%s8345_s5 + $0xcc] sm:$0xf0]  ;;  %v5448_v56 = vld [vmem:[%s8345_s5 + $0xc4] sm:$0xf]  ;;  %v172_v27 = vadd.f32 %v6207_v32, %v5987_v8 }
 0x48c   :  { %5531 = vtanh.f32 %v2149_v22  ;;  %v2160_v21 = vmul.f32 0.5, %v2150_v6  ;;  %2772 = vmatpush.bf16.msrb.mxu3 %v4867_v13  ;;  %v7683_v17 = vor.u32 %v5450_v15, %v5062_v14  ;;  %v5064_v22 = vld [vmem:[%s8345_s5 + $0xd0] sm:$0xf0]  ;;  %v5070_v6 = vld [vmem:[%s8345_s5 + $0xc8] sm:$0xf]  ;;  %v143_v13 = vadd.f32 %v5960_v57, %v5947_v51 }
 0x48d   :  { %v5528_v36 = vpop.eup %5527  ;;  %2744 = vmatpush.bf16.msrb.mxu2 %v4847_v7  ;;  %v5451_v4 = vld [vmem:[%s8345_s5 + $0xd4] sm:$0xf0]  ;;  %v7694_v24 = vor.u32 %v5448_v56, %v5064_v22  ;;  %v5046_v33 = vld [vmem:[%s8345_s5 + $0xa0] sm:$0xf]  ;;  %v5048_v51 = vld [vmem:[%s8345_s5 + $0xb0] sm:$0xf0] }
 0x48e   :  { %v5530_v35 = vpop.eup %5529  ;;  %v2153_v37 = vadd.f32 1.0, %v5528_v36  ;;  %5533 = vtanh.f32 %v2160_v21  ;;  %2686 = vmatpush.bf16.msrb.mxu0 %v4839_v9  ;;  %2715 = vmatpush.bf16.msra.mxu1 %v4843_v26  ;;  %v7696_v2 = vor.u32 %v5451_v4, %v5070_v6  ;;  %v5446_v21 = vld [vmem:[%s8345_s5 + $0xac] sm:$0xf0]  ;;  %v5054_v57 = vld [vmem:[%s8345_s5 + $0xa8] sm:$0xf] }
 0x48f   :  { %v2157_v25 = vadd.f32 1.0, %v5530_v35  ;;  %v7723_v9 = vor.u32 %v5446_v21, %v5046_v33  ;;  %v5447_v8 = vld [vmem:[%s8345_s5 + $0xb4] sm:$0xf0]  ;;  %v7734_v35 = vor.u32 %v5444_v62, %v5048_v51  ;;  %v5445_v7 = vld [vmem:[%s8345_s5 + $0xac] sm:$0xf] }
 0x490   :  { %v2154_v38 = vmul.f32 0.5, %v2153_v37  ;;  %2773 = vmatpush.bf16.msrb.mxu3 %v4851_v58  ;;  %v7736_v37 = vor.u32 %v5447_v8, %v5054_v57  ;;  %v5030_v58 = vld [vmem:[%s8345_s5 + $0x80] sm:$0xf]  ;;  %v5022_v55 = vld [vmem:[%s8345_s5 + $0x68] sm:$0xf] }
 0x491   :  { %v2158_v16 = vmul.f32 0.5, %v2157_v25  ;;  %v2132_v19 = vpop.f32.mrf.mxu2  ;;  %v2145_v39 = vpop.f32.mrf.mxu3  ;;  %v5056_v25 = vld [vmem:[%s8345_s5 + $0xb8] sm:$0xf0]  ;;  %v4998_v15 = vld [vmem:[%s8345_s5 + $0x40] sm:$0xf] }
 0x492   :  { %v5532_v59 = vpop.eup %5531  ;;  %v5440_v19 = vld [vmem:[%s8345_s5 + $0x84] sm:$0xf]  ;;  %v5032_v39 = vld [vmem:[%s8345_s5 + $0x90] sm:$0xf0]  ;;  %v5024_v14 = vld [vmem:[%s8345_s5 + $0x78] sm:$0xf0] }
 0x493   :  { %v2164_v23 = vmul.f32 %v2158_v16, %v7339_v31  ;;  %v2165_v54 = vmul.f32 %v5532_v59, %v2154_v38  ;;  %v5078_v31 = vld [vmem:[%s8345_s5 + $0xe0] sm:$0xf]  ;;  %v7748_v38 = vor.u32 %v5445_v7, %v5056_v25  ;;  %v5442_v16 = vld [vmem:[%s8345_s5 + $0x8c] sm:$0xf0]  ;;  %v7826_v5 = vor.u32 %v5437_v63, %v5024_v14  ;;  %v5006_v33 = vld [vmem:[%s8345_s5 + $0x48] sm:$0xf] }
 0x494   :  { %v5534_v30 = vpop.eup %5533  ;;  %v7647_v46 = vor.u32 %v5454_v34, %v5078_v31  ;;  %v5438_v34 = vld [vmem:[%s8345_s5 + $0x6c] sm:$0xf0]  ;;  %v5435_v21 = vld [vmem:[%s8345_s5 + $0x54] sm:$0xf0]  ;;  %v5433_v62 = vld [vmem:[%s8345_s5 + $0x4c] sm:$0xf] }
 0x495   :  { %v7635_v40 = vadd.f32 %v2165_v54, %v2164_v23  ;;  %v2162_v10 = vadd.f32 1.0, %v5534_v30  ;;  %v7761_v54 = vor.u32 %v5442_v16, %v5030_v58  ;;  %v7763_v30 = vor.u32 %v5440_v19, %v5032_v39  ;;  %v5434_v56 = vld [vmem:[%s8345_s5 + $0x4c] sm:$0xf0]  ;;  %v4982_v57 = vld [vmem:[%s8345_s5 + $0x20] sm:$0xf] }
 0x496   :  { %v7847_v51 = vor.u32 %v5434_v56, %v4998_v15  ;;  %v5430_v7 = vld [vmem:[%s8345_s5 + $0x2c] sm:$0xf0]  ;;  %v5428_v25 = vld [vmem:[%s8345_s5 + $0x24] sm:$0xf]  ;;  %v4984_v58 = vld [vmem:[%s8345_s5 + $0x30] sm:$0xf0] }
 0x497   :  { %5535 = vtanh.f32 %v7635_v40  ;;  %v2163_v41 = vmul.f32 0.5, %v2162_v10  ;;  %v5038_v10 = vld [vmem:[%s8345_s5 + $0x88] sm:$0xf]  ;;  %v7881_v45 = vor.u32 %v5428_v25, %v4984_v58  ;;  %v5424_v14 = vld [vmem:[%s8345_s5 + $0x4] sm:$0xf] }
 0x49d   :  { %v5536_v42 = vpop.eup %5535 }
 0x49e   :  { %v2168_v43 = vmul.f32 %v5536_v42, %v2163_v41  ;;  %v5443_v41 = vld [vmem:[%s8345_s5 + $0x94] sm:$0xf0] }
 0x49f   :  { %v7772_v42 = vor.u32 %v5443_v41, %v5038_v10 }
 0x4a0   :  { %v2169_v52 = vpack.c.bf16 %v2168_v43, %v2168_v43  ;;  %v5441_v43 = vld [vmem:[%s8345_s5 + $0x8c] sm:$0xf] }
 0x4a2   :  { %2170 = vst [vmem:[#allocation5 + $0x18] sm:$0xf] %v2169_v52  ;;  %2375 = vmatmul.bf16.vlgmr.msra.gmra.mxu0 %v2169_v52  ;;  %2388 = vmatmul.bf16.vlgmr.msrb.gmra.mxu1 %v2169_v52 }
 0x4a3   :  { %2401 = vmatmul.bf16.vlgmr.msra.gmra.mxu2 %v2169_v52  ;;  %2414 = vmatmul.bf16.vlgmr.msra.gmra.mxu3 %v2169_v52  ;;  %v5040_v52 = vld [vmem:[%s8345_s5 + $0x98] sm:$0xf0] }
 0x4a4   :  { %3028 = vmatpush.bf16.msra.mxu0 %v7647_v46  ;;  %3041 = vmatpush.bf16.msrb.mxu1 %v7658_v18  ;;  %v7783_v31 = vor.u32 %v5441_v43, %v5040_v52  ;;  %v7877_v43 = vor.u32 %v5430_v7, %v4982_v57 }
 0x4a5   :  { %3054 = vmatpush.bf16.msra.mxu2 %v7660_v60  ;;  %3067 = vmatpush.bf16.msra.mxu3 %v7669_v11 }
 0x4a8   :  { %3029 = vmatpush.bf16.msra.mxu0 %v7683_v17  ;;  %3042 = vmatpush.bf16.msrb.mxu1 %v7694_v24 }
 0x4a9   :  { %3055 = vmatpush.bf16.msra.mxu2 %v7696_v2  ;;  %3068 = vmatpush.bf16.msra.mxu3 %v7707_v29 }
 0x4ac   :  { %3030 = vmatpush.bf16.msra.mxu0 %v7723_v9  ;;  %3043 = vmatpush.bf16.msrb.mxu1 %v7734_v35 }
 0x4ad   :  { %3056 = vmatpush.bf16.msra.mxu2 %v7736_v37  ;;  %3069 = vmatpush.bf16.msra.mxu3 %v7748_v38 }
 0x4b0   :  { %3031 = vmatpush.bf16.msra.mxu0 %v7761_v54  ;;  %3044 = vmatpush.bf16.msrb.mxu1 %v7763_v30 }
 0x4b1   :  { %3057 = vmatpush.bf16.msra.mxu2 %v7772_v42  ;;  %3070 = vmatpush.bf16.msra.mxu3 %v7783_v31 }
 0x4b2   :  { %2687 = vmatmul.bf16.vlgmr.msrb.gmra.mxu0 %v5388_v44  ;;  %2716 = vmatmul.bf16.vlgmr.msra.gmra.mxu1 %v5388_v44 }
 0x4b3   :  { %2745 = vmatmul.bf16.vlgmr.msrb.gmra.mxu2 %v5388_v44  ;;  %2774 = vmatmul.bf16.vlgmr.msrb.gmra.mxu3 %v5388_v44  ;;  %v5014_v44 = vld [vmem:[%s8345_s5 + $0x60] sm:$0xf] }
 0x4b4   :  { %v7799_v28 = vor.u32 %v5438_v34, %v5014_v44  ;;  %3045 = vmatpush.bf16.msrb.mxu1 %v7812_v0 }
 0x4b5   :  { %3071 = vmatpush.bf16.msra.mxu3 %v7826_v5 }
 0x4b6   :  { %3032 = vmatpush.bf16.msra.mxu0 %v7799_v28 }
 0x4ba   :  { %3033 = vmatpush.bf16.msra.mxu0 %v7847_v51 }
 0x4be   :  { %3034 = vmatpush.bf16.msra.mxu0 %v7877_v43 }
 0x4c2   :  { %2692 = vmatmul.bf16.gmra.mxu0 %v5389_v3  ;;  %2721 = vmatmul.bf16.gmra.mxu1 %v5389_v3 }
 0x4c3   :  { %2750 = vmatmul.bf16.gmra.mxu2 %v5389_v3  ;;  %2779 = vmatmul.bf16.gmra.mxu3 %v5389_v3  ;;  %v5439_v3 = vld [vmem:[%s8345_s5 + $0x74] sm:$0xf0] }
 0x4c4   :  { %v7814_v1 = vor.u32 %v5439_v3, %v5022_v55  ;;  %v4992_v55 = vld [vmem:[%s8345_s5 + $0x38] sm:$0xf0] }
 0x4c6   :  { %3058 = vmatpush.bf16.msra.mxu2 %v7814_v1 }
 0x4d2   :  { %2697 = vmatmul.bf16.gmra.mxu0 %v5390_v61  ;;  %2726 = vmatmul.bf16.gmra.mxu1 %v5390_v61 }
 0x4d3   :  { %2755 = vmatmul.bf16.gmra.mxu2 %v5390_v61  ;;  %2784 = vmatmul.bf16.gmra.mxu3 %v5390_v61 }
 0x51f   :  { %v2376_v12 = vpop.f32.mrf.mxu0  ;;  %v2389_v36 = vpop.f32.mrf.mxu1 }
 0x520   :  { %v2419_v32 = vadd.f32 %v2376_v12, %v143_v13  ;;  %v2420_v26 = vadd.f32 %v2389_v36, %v172_v27  ;;  %v5432_v13 = vld [vmem:[%s8345_s5 + $0x44] sm:$0xf]  ;;  %v5000_v27 = vld [vmem:[%s8345_s5 + $0x50] sm:$0xf0]  ;;  %v5008_v12 = vld [vmem:[%s8345_s5 + $0x58] sm:$0xf0] }
 0x521   :  { %v7868_v39 = vor.u32 %v5433_v62, %v5008_v12 }
 0x522   :  { %v2423_v59 = vmul.f32 0.5, %v2419_v32  ;;  %v2427_v23 = vmul.f32 0.5, %v2420_v26  ;;  %v7854_v32 = vor.u32 %v5432_v13, %v5000_v27  ;;  %v7856_v26 = vor.u32 %v5435_v21, %v5006_v33  ;;  %v5425_v33 = vld [vmem:[%s8345_s5 + $0xc] sm:$0xf]  ;;  %v4976_v21 = vld [vmem:[%s8345_s5 + $0x18] sm:$0xf0] }
 0x523   :  { %3072 = vmatpush.bf16.msra.mxu3 %v7868_v39  ;;  %v7929_v62 = vor.u32 %v5425_v33, %v4976_v21 }
 0x524   :  { %5537 = vtanh.f32 %v2423_v59  ;;  %v4990_v59 = vld [vmem:[%s8345_s5 + $0x28] sm:$0xf]  ;;  %3046 = vmatpush.bf16.msrb.mxu1 %v7854_v32  ;;  %3059 = vmatpush.bf16.msra.mxu2 %v7856_v26 }
 0x525   :  { %5539 = vtanh.f32 %v2427_v23  ;;  %v5431_v23 = vld [vmem:[%s8345_s5 + $0x34] sm:$0xf0] }
 0x526   :  { %v2402_v48 = vpop.f32.mrf.mxu2  ;;  %v2415_v61 = vpop.f32.mrf.mxu3  ;;  %v7883_v47 = vor.u32 %v5431_v23, %v4990_v59 }
 0x527   :  { %v2421_v22 = vadd.f32 %v2402_v48, %v201_v50  ;;  %v2422_v6 = vadd.f32 %v2415_v61, %v230_v53  ;;  %v2378_v4 = vpop.f32.mrf.mxu0  ;;  %v2391_v20 = vpop.f32.mrf.mxu1  ;;  %v5429_v53 = vld [vmem:[%s8345_s5 + $0x2c] sm:$0xf]  ;;  %v4966_v48 = vld [vmem:[%s8345_s5] sm:$0xf]  ;;  %v5426_v61 = vld [vmem:[%s8345_s5 + $0xc] sm:$0xf0] }
 0x528   :  { %v7903_v15 = vor.u32 %v5429_v53, %v4992_v55  ;;  %v7905_v56 = vor.u32 %v5426_v61, %v4966_v48  ;;  %3047 = vmatpush.bf16.msrb.mxu1 %v7881_v45  ;;  %3060 = vmatpush.bf16.msra.mxu2 %v7883_v47 }
 0x529   :  { %5541 = vtanh.f32 %v2421_v22  ;;  %v2432_v36 = vmul.f32 0.5, %v2422_v6  ;;  %v4974_v22 = vld [vmem:[%s8345_s5 + $0x8] sm:$0xf]  ;;  %v5427_v6 = vld [vmem:[%s8345_s5 + $0x14] sm:$0xf0] }
 0x52a   :  { %v5538_v8 = vpop.eup %5537  ;;  %v7920_v27 = vor.u32 %v5427_v6, %v4974_v22  ;;  %3073 = vmatpush.bf16.msra.mxu3 %v7903_v15  ;;  %3035 = vmatpush.bf16.msra.mxu0 %v7905_v56 }
 0x52b   :  { %v5540_v16 = vpop.eup %5539  ;;  %v2425_v19 = vadd.f32 1.0, %v5538_v8  ;;  %5543 = vtanh.f32 %v2432_v36 }
 0x52c   :  { %v2429_v10 = vadd.f32 1.0, %v5540_v16  ;;  %3061 = vmatpush.bf16.msra.mxu2 %v7920_v27 }
 0x52d   :  { %v2426_v41 = vmul.f32 0.5, %v2425_v19 }
 0x52e   :  { %v2430_v52 = vmul.f32 0.5, %v2429_v10  ;;  %v2404_v44 = vpop.f32.mrf.mxu2  ;;  %v2417_v34 = vpop.f32.mrf.mxu3  ;;  %3074 = vmatpush.bf16.msra.mxu3 %v7929_v62  ;;  %3107 = vmatpush.bf16.msrb.mxu0 %v7647_v46 }
 0x52f   :  { %v5542_v50 = vpop.eup %5541  ;;  %v2717_v58 = vpop.f32.mrf.mxu1 }
 0x530   :  { %v2436_v3 = vmul.f32 %v2430_v52, %v7635_v40  ;;  %v2437_v63 = vmul.f32 %v5542_v50, %v2426_v41  ;;  %v4968_v40 = vld [vmem:[%s8345_s5 + $0x10] sm:$0xf0]  ;;  %3133 = vmatpush.bf16.msrb.mxu2 %v7660_v60 }
 0x531   :  { %v5544_v4 = vpop.eup %5543  ;;  %v7918_v13 = vor.u32 %v5424_v14, %v4968_v40 }
 0x532   :  { %v2438_v20 = vadd.f32 %v2437_v63, %v2436_v3  ;;  %v2434_v12 = vadd.f32 1.0, %v5544_v4  ;;  %3146 = vmatpush.bf16.msrb.mxu3 %v7669_v11  ;;  %3108 = vmatpush.bf16.msrb.mxu0 %v7683_v17 }
 0x533   :  { %3048 = vmatpush.bf16.msrb.mxu1 %v7918_v13 }
 0x534   :  { %5545 = vtanh.f32 %v2438_v20  ;;  %v2435_v36 = vmul.f32 0.5, %v2434_v12  ;;  %3134 = vmatpush.bf16.msrb.mxu2 %v7696_v2 }
 0x536   :  { %3147 = vmatpush.bf16.msrb.mxu3 %v7707_v29  ;;  %3109 = vmatpush.bf16.msrb.mxu0 %v7723_v9  ;;  %v2746_v16 = vpop.f32.mrf.mxu2  ;;  %v2775_v19 = vpop.f32.mrf.mxu3 }
 0x537   :  { %3120 = vmatpush.bf16.msra.mxu1 %v7658_v18  ;;  %v8005_v23 = vpop.f32.mrf.mxu1 }
 0x538   :  { %3135 = vmatpush.bf16.msrb.mxu2 %v7736_v37 }
 0x53a   :  { %v5546_v57 = vpop.eup %5545  ;;  %3148 = vmatpush.bf16.msrb.mxu3 %v7748_v38  ;;  %3110 = vmatpush.bf16.msrb.mxu0 %v7761_v54 }
 0x53b   :  { %v2440_v8 = vmul.f32 %v5546_v57, %v2435_v36  ;;  %3121 = vmatpush.bf16.msra.mxu1 %v7694_v24  ;;  %v2485_v57 = vld [vmem:[%s8346_s6] sm:$0xf] }
 0x53c   :  { %3136 = vmatpush.bf16.msrb.mxu2 %v7772_v42 }
 0x53d   :  { %v2441_v7 = vpack.c.bf16 %v2440_v8, %v2440_v8 }
 0x53e   :  { %3149 = vmatpush.bf16.msrb.mxu3 %v7783_v31  ;;  %3111 = vmatpush.bf16.msrb.mxu0 %v7799_v28  ;;  %v8007_v10 = vpop.f32.mrf.mxu2  ;;  %v8009_v41 = vpop.f32.mrf.mxu3 }
 0x53f   :  { %2442 = vst [vmem:[#allocation5 + $0x1c] sm:$0xf] %v2441_v7  ;;  %3122 = vmatpush.bf16.msra.mxu1 %v7734_v35  ;;  %v8013_v44 = vpop.f32.mrf.mxu1 }
 0x540   :  { %3137 = vmatpush.bf16.msrb.mxu2 %v7814_v1 }
 0x542   :  { %3150 = vmatpush.bf16.msrb.mxu3 %v7826_v5  ;;  %3112 = vmatpush.bf16.msrb.mxu0 %v7847_v51 }
 0x543   :  { %3123 = vmatpush.bf16.msra.mxu1 %v7763_v30 }
 0x544   :  { %3138 = vmatpush.bf16.msrb.mxu2 %v7856_v26 }
 0x546   :  { %v5391_v25 = vld [vmem:[#allocation5 + $0x18] sm:$0xff]  ;;  %3151 = vmatpush.bf16.msrb.mxu3 %v7868_v39  ;;  %3113 = vmatpush.bf16.msrb.mxu0 %v7877_v43  ;;  %v8015_v34 = vpop.f32.mrf.mxu2  ;;  %v8017_v50 = vpop.f32.mrf.mxu3 }
 0x547   :  { %2702 = vmatmul.bf16.gmra.mxu0 %v5391_v25  ;;  %2731 = vmatmul.bf16.gmra.mxu1 %v5391_v25  ;;  %8350 = vst [vmem:[#allocation6_spill] sm:$0xff] %v8015_v34  ;;  %v8021_v55 = vpop.f32.mrf.mxu1 }
 0x548   :  { %2760 = vmatmul.bf16.gmra.mxu2 %v5391_v25  ;;  %2789 = vmatmul.bf16.gmra.mxu3 %v5391_v25  ;;  %8351 = vst [vmem:[#allocation7_spill] sm:$0xff] %v8017_v50  ;;  %v8058_v25 = vperm.slane %v2485_v57, 0 }
 0x549   :  { %3124 = vmatpush.bf16.msra.mxu1 %v7812_v0  ;;  %3139 = vmatpush.bf16.msrb.mxu2 %v7883_v47  ;;  %8353 = vst [vmem:[#allocation9_spill] sm:$0xff] %v8021_v55 }
 0x54a   :  { %3152 = vmatpush.bf16.msrb.mxu3 %v7903_v15  ;;  %3114 = vmatpush.bf16.msrb.mxu0 %v7905_v56 }
 0x54d   :  { %3125 = vmatpush.bf16.msra.mxu1 %v7854_v32  ;;  %3140 = vmatpush.bf16.msrb.mxu2 %v7920_v27 }
 0x54e   :  { %3153 = vmatpush.bf16.msrb.mxu3 %v7929_v62  ;;  %v8023_v3 = vpop.f32.mrf.mxu2  ;;  %v8025_v63 = vpop.f32.mrf.mxu3 }
 0x54f   :  { %8354 = vst [vmem:[#allocation10_spill] sm:$0xff] %v8023_v3  ;;  %v8029_v61 = vpop.f32.mrf.mxu1 }
 0x550   :  { %8355 = vst [vmem:[#allocation11_spill] sm:$0xff] %v8025_v63 }
 0x551   :  { %3126 = vmatpush.bf16.msra.mxu1 %v7881_v45  ;;  %8357 = vst [vmem:[#allocation13_spill] sm:$0xff] %v8029_v61 }
 0x555   :  { %3127 = vmatpush.bf16.msra.mxu1 %v7918_v13 }
 0x556   :  { %v8031_v14 = vpop.f32.mrf.mxu2  ;;  %v8033_v40 = vpop.f32.mrf.mxu3 }
 0x557   :  { %3036 = vmatmul.bf16.vlgmr.msra.gmra.mxu0 %v5627_v49  ;;  %3049 = vmatmul.bf16.vlgmr.msrb.gmra.mxu1 %v5627_v49  ;;  %8358 = vst [vmem:[#allocation14_spill] sm:$0xff] %v8031_v14  ;;  %v8037_v6 = vpop.f32.mrf.mxu1  ;;  %v8068_v14 = vperm.slane %v2485_v57, 2 }
 0x558   :  { %3062 = vmatmul.bf16.vlgmr.msra.gmra.mxu2 %v5627_v49  ;;  %3075 = vmatmul.bf16.vlgmr.msra.gmra.mxu3 %v5627_v49  ;;  %v2688_v49 = vpop.f32.mrf.mxu0  ;;  %8359 = vst [vmem:[#allocation15_spill] sm:$0xff] %v8033_v40 }
 0x559   :  { %3186 = vmatpush.bf16.msra.mxu0 %v7647_v46  ;;  %3199 = vmatpush.bf16.msrb.mxu1 %v7658_v18  ;;  %8361 = vst [vmem:[#allocation17_spill] sm:$0xff] %v8037_v6 }
 0x55a   :  { %3212 = vmatpush.bf16.msra.mxu2 %v7660_v60  ;;  %3225 = vmatpush.bf16.msra.mxu3 %v7669_v11 }
 0x55d   :  { %3187 = vmatpush.bf16.msra.mxu0 %v7683_v17  ;;  %3200 = vmatpush.bf16.msrb.mxu1 %v7694_v24 }
 0x55e   :  { %3213 = vmatpush.bf16.msra.mxu2 %v7696_v2  ;;  %3226 = vmatpush.bf16.msra.mxu3 %v7707_v29  ;;  %v8039_v4 = vpop.f32.mrf.mxu2  ;;  %v8041_v20 = vpop.f32.mrf.mxu3 }
 0x55f   :  { %8362 = vst [vmem:[#allocation18_spill] sm:$0xff] %v8039_v4  ;;  %v8060_v4 = vperm.slane %v2485_v57, 1 }
 0x560   :  { %v8003_v59 = vpop.f32.mrf.mxu0  ;;  %8363 = vst [vmem:[#allocation19_spill] sm:$0xff] %v8041_v20 }
 0x561   :  { %3188 = vmatpush.bf16.msra.mxu0 %v7723_v9  ;;  %3201 = vmatpush.bf16.msrb.mxu1 %v7734_v35 }
 0x562   :  { %3214 = vmatpush.bf16.msra.mxu2 %v7736_v37  ;;  %3227 = vmatpush.bf16.msra.mxu3 %v7748_v38 }
 0x565   :  { %3189 = vmatpush.bf16.msra.mxu0 %v7761_v54  ;;  %3202 = vmatpush.bf16.msrb.mxu1 %v7763_v30 }
 0x566   :  { %3215 = vmatpush.bf16.msra.mxu2 %v7772_v42  ;;  %3228 = vmatpush.bf16.msra.mxu3 %v7783_v31 }
 0x568   :  { %v8011_v52 = vpop.f32.mrf.mxu0 }
 0x569   :  { %3190 = vmatpush.bf16.msra.mxu0 %v7799_v28  ;;  %3203 = vmatpush.bf16.msrb.mxu1 %v7812_v0 }
 0x56a   :  { %3216 = vmatpush.bf16.msra.mxu2 %v7814_v1  ;;  %3229 = vmatpush.bf16.msra.mxu3 %v7826_v5 }
 0x56d   :  { %3191 = vmatpush.bf16.msra.mxu0 %v7847_v51  ;;  %3204 = vmatpush.bf16.msrb.mxu1 %v7854_v32 }
 0x56e   :  { %3217 = vmatpush.bf16.msra.mxu2 %v7856_v26  ;;  %3230 = vmatpush.bf16.msra.mxu3 %v7868_v39 }
 0x570   :  { %v8019_v53 = vpop.f32.mrf.mxu0 }
 0x571   :  { %3192 = vmatpush.bf16.msra.mxu0 %v7877_v43  ;;  %3205 = vmatpush.bf16.msrb.mxu1 %v7881_v45  ;;  %8352 = vst [vmem:[#allocation8_spill] sm:$0xff] %v8019_v53 }
 0x572   :  { %3218 = vmatpush.bf16.msra.mxu2 %v7883_v47  ;;  %3231 = vmatpush.bf16.msra.mxu3 %v7903_v15 }
 0x575   :  { %3193 = vmatpush.bf16.msra.mxu0 %v7905_v56  ;;  %3206 = vmatpush.bf16.msrb.mxu1 %v7918_v13 }
 0x576   :  { %3219 = vmatpush.bf16.msra.mxu2 %v7920_v27  ;;  %3232 = vmatpush.bf16.msra.mxu3 %v7929_v62 }
 0x578   :  { %v8027_v48 = vpop.f32.mrf.mxu0 }
 0x579   :  { %8356 = vst [vmem:[#allocation12_spill] sm:$0xff] %v8027_v48  ;;  %v2747_v48 = vadd.f32 %v2746_v16, %v8068_v14 }
 0x580   :  { %v8035_v22 = vpop.f32.mrf.mxu0 }
 0x581   :  { %8360 = vst [vmem:[#allocation16_spill] sm:$0xff] %v8035_v22 }
 0x5c4   :  { %v8043_v33 = vpop.f32.mrf.mxu0  ;;  %v8045_v21 = vpop.f32.mrf.mxu1 }
 0x5c5   :  { %8364 = vst [vmem:[#allocation20_spill] sm:$0xff] %v8043_v33  ;;  %v2689_v33 = vadd.f32 %v2688_v49, %v8058_v25 }
 0x5c6   :  { %8365 = vst [vmem:[#allocation21_spill] sm:$0xff] %v8045_v21  ;;  %v2718_v21 = vadd.f32 %v2717_v58, %v8060_v4 }
 0x5cb   :  { %v8047_v12 = vpop.f32.mrf.mxu2  ;;  %v8049_v36 = vpop.f32.mrf.mxu3 }
 0x5cc   :  { %8366 = vst [vmem:[#allocation22_spill] sm:$0xff] %v8047_v12  ;;  %v8054_v8 = vpop.f32.mrf.mxu0  ;;  %v8056_v7 = vpop.f32.mrf.mxu1 }
 0x5cd   :  { %8367 = vst [vmem:[#allocation23_spill] sm:$0xff] %v8049_v36 }
 0x5ce   :  { %8368 = vst [vmem:[#allocation24_spill] sm:$0xff] %v8054_v8  ;;  %v8070_v8 = vperm.slane %v2485_v57, 3 }
 0x5cf   :  { %8369 = vst [vmem:[#allocation25_spill] sm:$0xff] %v8056_v7 }
 0x5d0   :  { %v2776_v49 = vadd.f32 %v2775_v19, %v8070_v8 }
 0x5d3   :  { %v8064_v20 = vpop.f32.mrf.mxu2  ;;  %v8066_v12 = vpop.f32.mrf.mxu3 }
 0x5d4   :  { %8370 = vst [vmem:[#allocation26_spill] sm:$0xff] %v8064_v20  ;;  %v3037_v36 = vpop.f32.mrf.mxu0  ;;  %v3050_v6 = vpop.f32.mrf.mxu1 }
 0x5d5   :  { %8371 = vst [vmem:[#allocation27_spill] sm:$0xff] %v8066_v12  ;;  %v3080_v22 = vadd.f32 %v3037_v36, %v2689_v33  ;;  %v3081_v40 = vadd.f32 %v3050_v6, %v2718_v21 }
 0x5d7   :  { %v3084_v7 = vmul.f32 0.5, %v3080_v22  ;;  %v3088_v61 = vmul.f32 0.5, %v3081_v40 }
 0x5d9   :  { %5547 = vtanh.f32 %v3084_v7 }
 0x5da   :  { %5549 = vtanh.f32 %v3088_v61 }
 0x5db   :  { %v3063_v58 = vpop.f32.mrf.mxu2  ;;  %v3076_v20 = vpop.f32.mrf.mxu3 }
 0x5dc   :  { %v3082_v63 = vadd.f32 %v3063_v58, %v2747_v48  ;;  %v3083_v12 = vadd.f32 %v3076_v20, %v2776_v49  ;;  %v3039_v3 = vpop.f32.mrf.mxu0  ;;  %v3052_v55 = vpop.f32.mrf.mxu1 }
 0x5de   :  { %5551 = vtanh.f32 %v3082_v63  ;;  %v3093_v6 = vmul.f32 0.5, %v3083_v12 }
 0x5df   :  { %v5548_v33 = vpop.eup %5547 }
 0x5e0   :  { %v5550_v21 = vpop.eup %5549  ;;  %v3086_v36 = vadd.f32 1.0, %v5548_v33  ;;  %5553 = vtanh.f32 %v3093_v6 }
 0x5e1   :  { %v3090_v57 = vadd.f32 1.0, %v5550_v21 }
 0x5e2   :  { %v3087_v40 = vmul.f32 0.5, %v3086_v36  ;;  %v2749_v36 = vadd.f32 %v8007_v10, %v8068_v14 }
 0x5e3   :  { %v3091_v22 = vmul.f32 0.5, %v3090_v57  ;;  %v3065_v7 = vpop.f32.mrf.mxu2  ;;  %v3078_v16 = vpop.f32.mrf.mxu3  ;;  %v2778_v57 = vadd.f32 %v8009_v41, %v8070_v8 }
 0x5e4   :  { %v5552_v53 = vpop.eup %5551 }
 0x5e5   :  { %v3097_v19 = vmul.f32 0.0, %v3091_v22  ;;  %v3098_v61 = vmul.f32 %v5552_v53, %v3087_v40  ;;  %v2720_v53 = vadd.f32 %v8005_v23, %v8060_v4 }
 0x5e6   :  { %v5554_v50 = vpop.eup %5553 }
 0x5e7   :  { %v8074_v34 = vadd.f32 %v3098_v61, %v3097_v19  ;;  %v3095_v55 = vadd.f32 1.0, %v5554_v50  ;;  %v2691_v50 = vadd.f32 %v8003_v59, %v8058_v25 }
 0x5e9   :  { %5555 = vtanh.f32 %v8074_v34  ;;  %v3096_v3 = vmul.f32 0.5, %v3095_v55 }
 0x5ef   :  { %v5556_v63 = vpop.eup %5555 }
 0x5f0   :  { %v3101_v48 = vmul.f32 %v5556_v63, %v3096_v3 }
 0x5f2   :  { %v3106_v20 = vpack.c.bf16 %v3101_v48, %v3101_v48 }
 0x5f4   :  { %3115 = vmatmul.bf16.vlgmr.msrb.gmra.mxu0 %v3106_v20  ;;  %3128 = vmatmul.bf16.vlgmr.msra.gmra.mxu1 %v3106_v20 }
 0x5f5   :  { %3141 = vmatmul.bf16.vlgmr.msrb.gmra.mxu2 %v3106_v20  ;;  %3154 = vmatmul.bf16.vlgmr.msrb.gmra.mxu3 %v3106_v20 }
 0x5f6   :  { %3265 = vmatpush.bf16.msrb.mxu0 %v7647_v46  ;;  %3278 = vmatpush.bf16.msra.mxu1 %v7658_v18 }
 0x5f7   :  { %3291 = vmatpush.bf16.msrb.mxu2 %v7660_v60  ;;  %3304 = vmatpush.bf16.msrb.mxu3 %v7669_v11 }
 0x5fa   :  { %3266 = vmatpush.bf16.msrb.mxu0 %v7683_v17  ;;  %3279 = vmatpush.bf16.msra.mxu1 %v7694_v24 }
 0x5fb   :  { %3292 = vmatpush.bf16.msrb.mxu2 %v7696_v2  ;;  %3305 = vmatpush.bf16.msrb.mxu3 %v7707_v29 }
 0x5fe   :  { %3267 = vmatpush.bf16.msrb.mxu0 %v7723_v9  ;;  %3280 = vmatpush.bf16.msra.mxu1 %v7734_v35 }
 0x5ff   :  { %3293 = vmatpush.bf16.msrb.mxu2 %v7736_v37  ;;  %3306 = vmatpush.bf16.msrb.mxu3 %v7748_v38 }
 0x602   :  { %3268 = vmatpush.bf16.msrb.mxu0 %v7761_v54  ;;  %3281 = vmatpush.bf16.msra.mxu1 %v7763_v30 }
 0x603   :  { %3294 = vmatpush.bf16.msrb.mxu2 %v7772_v42  ;;  %3307 = vmatpush.bf16.msrb.mxu3 %v7783_v31 }
 0x606   :  { %3269 = vmatpush.bf16.msrb.mxu0 %v7799_v28  ;;  %3282 = vmatpush.bf16.msra.mxu1 %v7812_v0 }
 0x607   :  { %3295 = vmatpush.bf16.msrb.mxu2 %v7814_v1  ;;  %3308 = vmatpush.bf16.msrb.mxu3 %v7826_v5 }
 0x60a   :  { %3270 = vmatpush.bf16.msrb.mxu0 %v7847_v51  ;;  %3283 = vmatpush.bf16.msra.mxu1 %v7854_v32 }
 0x60b   :  { %3296 = vmatpush.bf16.msrb.mxu2 %v7856_v26  ;;  %3309 = vmatpush.bf16.msrb.mxu3 %v7868_v39 }
 0x60e   :  { %3271 = vmatpush.bf16.msrb.mxu0 %v7877_v43  ;;  %3284 = vmatpush.bf16.msra.mxu1 %v7881_v45 }
 0x60f   :  { %3297 = vmatpush.bf16.msrb.mxu2 %v7883_v47  ;;  %3310 = vmatpush.bf16.msrb.mxu3 %v7903_v15 }
 0x612   :  { %3272 = vmatpush.bf16.msrb.mxu0 %v7905_v56  ;;  %3285 = vmatpush.bf16.msra.mxu1 %v7918_v13 }
 0x613   :  { %3298 = vmatpush.bf16.msrb.mxu2 %v7920_v27  ;;  %3311 = vmatpush.bf16.msrb.mxu3 %v7929_v62 }
 0x671   :  { %v3116_v12 = vpop.f32.mrf.mxu0  ;;  %v3129_v49 = vpop.f32.mrf.mxu1 }
 0x672   :  { %v3159_v58 = vadd.f32 %v3116_v12, %v2691_v50  ;;  %v3160_v6 = vadd.f32 %v3129_v49, %v2720_v53 }
 0x674   :  { %v3163_v33 = vmul.f32 0.5, %v3159_v58  ;;  %v3167_v21 = vmul.f32 0.5, %v3160_v6 }
 0x676   :  { %5557 = vtanh.f32 %v3163_v33 }
 0x677   :  { %5559 = vtanh.f32 %v3167_v21 }
 0x678   :  { %v3142_v40 = vpop.f32.mrf.mxu2  ;;  %v3155_v22 = vpop.f32.mrf.mxu3 }
 0x679   :  { %v3161_v59 = vadd.f32 %v3142_v40, %v2749_v36  ;;  %v3162_v7 = vadd.f32 %v3155_v22, %v2778_v57  ;;  %v3118_v16 = vpop.f32.mrf.mxu0  ;;  %v3131_v23 = vpop.f32.mrf.mxu1  ;;  %v2723_v40 = vadd.f32 %v8013_v44, %v8060_v4 }
 0x67b   :  { %5561 = vtanh.f32 %v3161_v59  ;;  %v3172_v19 = vmul.f32 0.5, %v3162_v7 }
 0x67c   :  { %v5558_v61 = vpop.eup %5557 }
 0x67d   :  { %v5560_v55 = vpop.eup %5559  ;;  %v3165_v3 = vadd.f32 1.0, %v5558_v61  ;;  %5563 = vtanh.f32 %v3172_v19  ;;  %v8372_v61 = vld [vmem:[#allocation6_spill] sm:$0xff] }
 0x67e   :  { %v3169_v63 = vadd.f32 1.0, %v5560_v55  ;;  %v2752_v55 = vadd.f32 %v8372_v61, %v8068_v14 }
 0x67f   :  { %v3166_v48 = vmul.f32 0.5, %v3165_v3  ;;  %v8373_v3 = vld [vmem:[#allocation7_spill] sm:$0xff] }
 0x680   :  { %v3170_v20 = vmul.f32 0.5, %v3169_v63  ;;  %v3144_v10 = vpop.f32.mrf.mxu2  ;;  %v3157_v50 = vpop.f32.mrf.mxu3  ;;  %v2781_v63 = vadd.f32 %v8373_v3, %v8070_v8 }
 0x681   :  { %v5562_v53 = vpop.eup %5561 }
 0x682   :  { %v3176_v41 = vmul.f32 %v3170_v20, %v8074_v34  ;;  %v3177_v12 = vmul.f32 %v5562_v53, %v3166_v48  ;;  %v2694_v34 = vadd.f32 %v8011_v52, %v8058_v25 }
 0x683   :  { %v5564_v49 = vpop.eup %5563 }
 0x684   :  { %v8118_v58 = vadd.f32 %v3177_v12, %v3176_v41  ;;  %v3174_v6 = vadd.f32 1.0, %v5564_v49 }
 0x686   :  { %5565 = vtanh.f32 %v8118_v58  ;;  %v3175_v33 = vmul.f32 0.5, %v3174_v6 }
 0x68c   :  { %v5566_v21 = vpop.eup %5565 }
 0x68d   :  { %v3180_v36 = vmul.f32 %v5566_v21, %v3175_v33 }
 0x68f   :  { %v3185_v57 = vpack.c.bf16 %v3180_v36, %v3180_v36 }
 0x691   :  { %3194 = vmatmul.bf16.vlgmr.msra.gmra.mxu0 %v3185_v57  ;;  %3207 = vmatmul.bf16.vlgmr.msrb.gmra.mxu1 %v3185_v57 }
 0x692   :  { %3220 = vmatmul.bf16.vlgmr.msra.gmra.mxu2 %v3185_v57  ;;  %3233 = vmatmul.bf16.vlgmr.msra.gmra.mxu3 %v3185_v57 }
 0x693   :  { %3344 = vmatpush.bf16.msra.mxu0 %v7647_v46  ;;  %3357 = vmatpush.bf16.msrb.mxu1 %v7658_v18 }
 0x694   :  { %3370 = vmatpush.bf16.msra.mxu2 %v7660_v60  ;;  %3383 = vmatpush.bf16.msra.mxu3 %v7669_v11 }
 0x697   :  { %3345 = vmatpush.bf16.msra.mxu0 %v7683_v17  ;;  %3358 = vmatpush.bf16.msrb.mxu1 %v7694_v24 }
 0x698   :  { %3371 = vmatpush.bf16.msra.mxu2 %v7696_v2  ;;  %3384 = vmatpush.bf16.msra.mxu3 %v7707_v29 }
 0x69b   :  { %3346 = vmatpush.bf16.msra.mxu0 %v7723_v9  ;;  %3359 = vmatpush.bf16.msrb.mxu1 %v7734_v35 }
 0x69c   :  { %3372 = vmatpush.bf16.msra.mxu2 %v7736_v37  ;;  %3385 = vmatpush.bf16.msra.mxu3 %v7748_v38 }
 0x69f   :  { %3347 = vmatpush.bf16.msra.mxu0 %v7761_v54  ;;  %3360 = vmatpush.bf16.msrb.mxu1 %v7763_v30 }
 0x6a0   :  { %3373 = vmatpush.bf16.msra.mxu2 %v7772_v42  ;;  %3386 = vmatpush.bf16.msra.mxu3 %v7783_v31 }
 0x6a3   :  { %3348 = vmatpush.bf16.msra.mxu0 %v7799_v28  ;;  %3361 = vmatpush.bf16.msrb.mxu1 %v7812_v0 }
 0x6a4   :  { %3374 = vmatpush.bf16.msra.mxu2 %v7814_v1  ;;  %3387 = vmatpush.bf16.msra.mxu3 %v7826_v5 }
 0x6a7   :  { %3349 = vmatpush.bf16.msra.mxu0 %v7847_v51  ;;  %3362 = vmatpush.bf16.msrb.mxu1 %v7854_v32 }
 0x6a8   :  { %3375 = vmatpush.bf16.msra.mxu2 %v7856_v26  ;;  %3388 = vmatpush.bf16.msra.mxu3 %v7868_v39 }
 0x6ab   :  { %3350 = vmatpush.bf16.msra.mxu0 %v7877_v43  ;;  %3363 = vmatpush.bf16.msrb.mxu1 %v7881_v45 }
 0x6ac   :  { %3376 = vmatpush.bf16.msra.mxu2 %v7883_v47  ;;  %3389 = vmatpush.bf16.msra.mxu3 %v7903_v15 }
 0x6af   :  { %3351 = vmatpush.bf16.msra.mxu0 %v7905_v56  ;;  %3364 = vmatpush.bf16.msrb.mxu1 %v7918_v13 }
 0x6b0   :  { %3377 = vmatpush.bf16.msra.mxu2 %v7920_v27  ;;  %3390 = vmatpush.bf16.msra.mxu3 %v7929_v62 }
 0x70e   :  { %v3195_v22 = vpop.f32.mrf.mxu0  ;;  %v3208_v59 = vpop.f32.mrf.mxu1 }
 0x70f   :  { %v3238_v7 = vadd.f32 %v3195_v22, %v2694_v34  ;;  %v3239_v16 = vadd.f32 %v3208_v59, %v2723_v40 }
 0x711   :  { %v3242_v23 = vmul.f32 0.5, %v3238_v7  ;;  %v3246_v19 = vmul.f32 0.5, %v3239_v16 }
 0x713   :  { %5567 = vtanh.f32 %v3242_v23 }
 0x714   :  { %5569 = vtanh.f32 %v3246_v19 }
 0x715   :  { %v3221_v48 = vpop.f32.mrf.mxu2  ;;  %v3234_v20 = vpop.f32.mrf.mxu3 }
 0x716   :  { %v3240_v52 = vadd.f32 %v3221_v48, %v2752_v55  ;;  %v3241_v10 = vadd.f32 %v3234_v20, %v2781_v63  ;;  %v3197_v50 = vpop.f32.mrf.mxu0  ;;  %v3210_v44 = vpop.f32.mrf.mxu1  ;;  %v8375_v63 = vld [vmem:[#allocation9_spill] sm:$0xff] }
 0x717   :  { %v2725_v48 = vadd.f32 %v8375_v63, %v8060_v4 }
 0x718   :  { %5571 = vtanh.f32 %v3240_v52  ;;  %v3251_v53 = vmul.f32 0.5, %v3241_v10 }
 0x719   :  { %v5568_v41 = vpop.eup %5567 }
 0x71a   :  { %v5570_v12 = vpop.eup %5569  ;;  %v3244_v49 = vadd.f32 1.0, %v5568_v41  ;;  %5573 = vtanh.f32 %v3251_v53  ;;  %v8376_v41 = vld [vmem:[#allocation10_spill] sm:$0xff] }
 0x71b   :  { %v3248_v6 = vadd.f32 1.0, %v5570_v12  ;;  %v2754_v12 = vadd.f32 %v8376_v41, %v8068_v14 }
 0x71c   :  { %v3245_v33 = vmul.f32 0.5, %v3244_v49  ;;  %v8377_v49 = vld [vmem:[#allocation11_spill] sm:$0xff] }
 0x71d   :  { %v3249_v21 = vmul.f32 0.5, %v3248_v6  ;;  %v3223_v36 = vpop.f32.mrf.mxu2  ;;  %v3236_v57 = vpop.f32.mrf.mxu3  ;;  %v2783_v6 = vadd.f32 %v8377_v49, %v8070_v8 }
 0x71e   :  { %v5572_v34 = vpop.eup %5571 }
 0x71f   :  { %v3255_v40 = vmul.f32 %v3249_v21, %v8118_v58  ;;  %v3256_v22 = vmul.f32 %v5572_v34, %v3245_v33  ;;  %v8374_v58 = vld [vmem:[#allocation8_spill] sm:$0xff] }
 0x720   :  { %v5574_v59 = vpop.eup %5573  ;;  %v2696_v3 = vadd.f32 %v8374_v58, %v8058_v25 }
 0x721   :  { %v8162_v7 = vadd.f32 %v3256_v22, %v3255_v40  ;;  %v3253_v16 = vadd.f32 1.0, %v5574_v59 }
 0x723   :  { %5575 = vtanh.f32 %v8162_v7  ;;  %v3254_v23 = vmul.f32 0.5, %v3253_v16 }
 0x729   :  { %v5576_v19 = vpop.eup %5575 }
 0x72a   :  { %v3259_v61 = vmul.f32 %v5576_v19, %v3254_v23 }
 0x72c   :  { %v3264_v55 = vpack.c.bf16 %v3259_v61, %v3259_v61 }
 0x72e   :  { %3273 = vmatmul.bf16.vlgmr.msrb.gmra.mxu0 %v3264_v55  ;;  %3286 = vmatmul.bf16.vlgmr.msra.gmra.mxu1 %v3264_v55 }
 0x72f   :  { %3299 = vmatmul.bf16.vlgmr.msrb.gmra.mxu2 %v3264_v55  ;;  %3312 = vmatmul.bf16.vlgmr.msrb.gmra.mxu3 %v3264_v55 }
 0x730   :  { %3423 = vmatpush.bf16.msrb.mxu0 %v7647_v46  ;;  %3436 = vmatpush.bf16.msra.mxu1 %v7658_v18 }
 0x731   :  { %3449 = vmatpush.bf16.msrb.mxu2 %v7660_v60  ;;  %3462 = vmatpush.bf16.msrb.mxu3 %v7669_v11 }
 0x734   :  { %3424 = vmatpush.bf16.msrb.mxu0 %v7683_v17  ;;  %3437 = vmatpush.bf16.msra.mxu1 %v7694_v24 }
 0x735   :  { %3450 = vmatpush.bf16.msrb.mxu2 %v7696_v2  ;;  %3463 = vmatpush.bf16.msrb.mxu3 %v7707_v29 }
 0x738   :  { %3425 = vmatpush.bf16.msrb.mxu0 %v7723_v9  ;;  %3438 = vmatpush.bf16.msra.mxu1 %v7734_v35 }
 0x739   :  { %3451 = vmatpush.bf16.msrb.mxu2 %v7736_v37  ;;  %3464 = vmatpush.bf16.msrb.mxu3 %v7748_v38 }
 0x73c   :  { %3426 = vmatpush.bf16.msrb.mxu0 %v7761_v54  ;;  %3439 = vmatpush.bf16.msra.mxu1 %v7763_v30 }
 0x73d   :  { %3452 = vmatpush.bf16.msrb.mxu2 %v7772_v42  ;;  %3465 = vmatpush.bf16.msrb.mxu3 %v7783_v31 }
 0x740   :  { %3427 = vmatpush.bf16.msrb.mxu0 %v7799_v28  ;;  %3440 = vmatpush.bf16.msra.mxu1 %v7812_v0 }
 0x741   :  { %3453 = vmatpush.bf16.msrb.mxu2 %v7814_v1  ;;  %3466 = vmatpush.bf16.msrb.mxu3 %v7826_v5 }
 0x744   :  { %3428 = vmatpush.bf16.msrb.mxu0 %v7847_v51  ;;  %3441 = vmatpush.bf16.msra.mxu1 %v7854_v32 }
 0x745   :  { %3454 = vmatpush.bf16.msrb.mxu2 %v7856_v26  ;;  %3467 = vmatpush.bf16.msrb.mxu3 %v7868_v39 }
 0x748   :  { %3429 = vmatpush.bf16.msrb.mxu0 %v7877_v43  ;;  %3442 = vmatpush.bf16.msra.mxu1 %v7881_v45 }
 0x749   :  { %3455 = vmatpush.bf16.msrb.mxu2 %v7883_v47  ;;  %3468 = vmatpush.bf16.msrb.mxu3 %v7903_v15 }
 0x74c   :  { %3430 = vmatpush.bf16.msrb.mxu0 %v7905_v56  ;;  %3443 = vmatpush.bf16.msra.mxu1 %v7918_v13 }
 0x74d   :  { %3456 = vmatpush.bf16.msrb.mxu2 %v7920_v27  ;;  %3469 = vmatpush.bf16.msrb.mxu3 %v7929_v62 }
 0x7ab   :  { %v3274_v20 = vpop.f32.mrf.mxu0  ;;  %v3287_v52 = vpop.f32.mrf.mxu1 }
 0x7ac   :  { %v3317_v10 = vadd.f32 %v3274_v20, %v2696_v3  ;;  %v3318_v50 = vadd.f32 %v3287_v52, %v2725_v48 }
 0x7ae   :  { %v3321_v44 = vmul.f32 0.5, %v3317_v10  ;;  %v3325_v53 = vmul.f32 0.5, %v3318_v50 }
 0x7b0   :  { %5577 = vtanh.f32 %v3321_v44 }
 0x7b1   :  { %5579 = vtanh.f32 %v3325_v53 }
 0x7b2   :  { %v3300_v33 = vpop.f32.mrf.mxu2  ;;  %v3313_v21 = vpop.f32.mrf.mxu3 }
 0x7b3   :  { %v3319_v36 = vadd.f32 %v3300_v33, %v2754_v12  ;;  %v3320_v57 = vadd.f32 %v3313_v21, %v2783_v6  ;;  %v3276_v34 = vpop.f32.mrf.mxu0  ;;  %v3289_v40 = vpop.f32.mrf.mxu1  ;;  %v8379_v6 = vld [vmem:[#allocation13_spill] sm:$0xff] }
 0x7b4   :  { %v2728_v33 = vadd.f32 %v8379_v6, %v8060_v4 }
 0x7b5   :  { %5581 = vtanh.f32 %v3319_v36  ;;  %v3330_v22 = vmul.f32 0.5, %v3320_v57 }
 0x7b6   :  { %v5578_v59 = vpop.eup %5577 }
 0x7b7   :  { %v5580_v16 = vpop.eup %5579  ;;  %v3323_v23 = vadd.f32 1.0, %v5578_v59  ;;  %5583 = vtanh.f32 %v3330_v22  ;;  %v8380_v59 = vld [vmem:[#allocation14_spill] sm:$0xff] }
 0x7b8   :  { %v3327_v19 = vadd.f32 1.0, %v5580_v16  ;;  %v2757_v16 = vadd.f32 %v8380_v59, %v8068_v14 }
 0x7b9   :  { %v3324_v61 = vmul.f32 0.5, %v3323_v23  ;;  %v8381_v23 = vld [vmem:[#allocation15_spill] sm:$0xff] }
 0x7ba   :  { %v3328_v55 = vmul.f32 0.5, %v3327_v19  ;;  %v3302_v58 = vpop.f32.mrf.mxu2  ;;  %v3315_v3 = vpop.f32.mrf.mxu3  ;;  %v2786_v19 = vadd.f32 %v8381_v23, %v8070_v8 }
 0x7bb   :  { %v5582_v63 = vpop.eup %5581 }
 0x7bc   :  { %v3334_v48 = vmul.f32 %v3328_v55, %v8162_v7  ;;  %v3335_v20 = vmul.f32 %v5582_v63, %v3324_v61  ;;  %v8378_v7 = vld [vmem:[#allocation12_spill] sm:$0xff] }
 0x7bd   :  { %v5584_v52 = vpop.eup %5583  ;;  %v2699_v49 = vadd.f32 %v8378_v7, %v8058_v25 }
 0x7be   :  { %v8206_v10 = vadd.f32 %v3335_v20, %v3334_v48  ;;  %v3332_v50 = vadd.f32 1.0, %v5584_v52 }
 0x7c0   :  { %5585 = vtanh.f32 %v8206_v10  ;;  %v3333_v44 = vmul.f32 0.5, %v3332_v50 }
 0x7c6   :  { %v5586_v53 = vpop.eup %5585 }
 0x7c7   :  { %v3338_v41 = vmul.f32 %v5586_v53, %v3333_v44 }
 0x7c9   :  { %v3343_v12 = vpack.c.bf16 %v3338_v41, %v3338_v41 }
 0x7cb   :  { %3352 = vmatmul.bf16.vlgmr.msra.gmra.mxu0 %v3343_v12  ;;  %3365 = vmatmul.bf16.vlgmr.msrb.gmra.mxu1 %v3343_v12 }
 0x7cc   :  { %3378 = vmatmul.bf16.vlgmr.msra.gmra.mxu2 %v3343_v12  ;;  %3391 = vmatmul.bf16.vlgmr.msra.gmra.mxu3 %v3343_v12 }
 0x7cd   :  { %3502 = vmatpush.bf16.msra.mxu0 %v7647_v46  ;;  %3515 = vmatpush.bf16.msrb.mxu1 %v7658_v18 }
 0x7ce   :  { %3528 = vmatpush.bf16.msra.mxu2 %v7660_v60  ;;  %3541 = vmatpush.bf16.msra.mxu3 %v7669_v11 }
 0x7d1   :  { %3503 = vmatpush.bf16.msra.mxu0 %v7683_v17  ;;  %3516 = vmatpush.bf16.msrb.mxu1 %v7694_v24 }
 0x7d2   :  { %3529 = vmatpush.bf16.msra.mxu2 %v7696_v2  ;;  %3542 = vmatpush.bf16.msra.mxu3 %v7707_v29 }
 0x7d5   :  { %3504 = vmatpush.bf16.msra.mxu0 %v7723_v9  ;;  %3517 = vmatpush.bf16.msrb.mxu1 %v7734_v35 }
 0x7d6   :  { %3530 = vmatpush.bf16.msra.mxu2 %v7736_v37  ;;  %3543 = vmatpush.bf16.msra.mxu3 %v7748_v38 }
 0x7d9   :  { %3505 = vmatpush.bf16.msra.mxu0 %v7761_v54  ;;  %3518 = vmatpush.bf16.msrb.mxu1 %v7763_v30 }
 0x7da   :  { %3531 = vmatpush.bf16.msra.mxu2 %v7772_v42  ;;  %3544 = vmatpush.bf16.msra.mxu3 %v7783_v31 }
 0x7dd   :  { %3506 = vmatpush.bf16.msra.mxu0 %v7799_v28  ;;  %3519 = vmatpush.bf16.msrb.mxu1 %v7812_v0 }
 0x7de   :  { %3532 = vmatpush.bf16.msra.mxu2 %v7814_v1  ;;  %3545 = vmatpush.bf16.msra.mxu3 %v7826_v5 }
 0x7e1   :  { %3507 = vmatpush.bf16.msra.mxu0 %v7847_v51  ;;  %3520 = vmatpush.bf16.msrb.mxu1 %v7854_v32 }
 0x7e2   :  { %3533 = vmatpush.bf16.msra.mxu2 %v7856_v26  ;;  %3546 = vmatpush.bf16.msra.mxu3 %v7868_v39 }
 0x7e5   :  { %3508 = vmatpush.bf16.msra.mxu0 %v7877_v43  ;;  %3521 = vmatpush.bf16.msrb.mxu1 %v7881_v45 }
 0x7e6   :  { %3534 = vmatpush.bf16.msra.mxu2 %v7883_v47  ;;  %3547 = vmatpush.bf16.msra.mxu3 %v7903_v15 }
 0x7e9   :  { %3509 = vmatpush.bf16.msra.mxu0 %v7905_v56  ;;  %3522 = vmatpush.bf16.msrb.mxu1 %v7918_v13 }
 0x7ea   :  { %3535 = vmatpush.bf16.msra.mxu2 %v7920_v27  ;;  %3548 = vmatpush.bf16.msra.mxu3 %v7929_v62 }
 0x848   :  { %v3353_v21 = vpop.f32.mrf.mxu0  ;;  %v3366_v36 = vpop.f32.mrf.mxu1 }
 0x849   :  { %v3396_v57 = vadd.f32 %v3353_v21, %v2699_v49  ;;  %v3397_v34 = vadd.f32 %v3366_v36, %v2728_v33 }
 0x84b   :  { %v3400_v40 = vmul.f32 0.5, %v3396_v57  ;;  %v3404_v22 = vmul.f32 0.5, %v3397_v34 }
 0x84d   :  { %5587 = vtanh.f32 %v3400_v40 }
 0x84e   :  { %5589 = vtanh.f32 %v3404_v22 }
 0x84f   :  { %v3379_v61 = vpop.f32.mrf.mxu2  ;;  %v3392_v55 = vpop.f32.mrf.mxu3 }
 0x850   :  { %v3398_v58 = vadd.f32 %v3379_v61, %v2757_v16  ;;  %v3399_v3 = vadd.f32 %v3392_v55, %v2786_v19  ;;  %v3355_v63 = vpop.f32.mrf.mxu0  ;;  %v3368_v48 = vpop.f32.mrf.mxu1 }
 0x851   :  { %v8386_v63 = vld [vmem:[#allocation20_spill] sm:$0xff] }
 0x852   :  { %5591 = vtanh.f32 %v3398_v58  ;;  %v3409_v20 = vmul.f32 0.5, %v3399_v3  ;;  %v2704_v48 = vadd.f32 %v8386_v63, %v8058_v25 }
 0x853   :  { %v5588_v52 = vpop.eup %5587 }
 0x854   :  { %v5590_v50 = vpop.eup %5589  ;;  %v3402_v44 = vadd.f32 1.0, %v5588_v52  ;;  %5593 = vtanh.f32 %v3409_v20  ;;  %v8387_v20 = vld [vmem:[#allocation21_spill] sm:$0xff] }
 0x855   :  { %v3406_v53 = vadd.f32 1.0, %v5590_v50  ;;  %v2733_v52 = vadd.f32 %v8387_v20, %v8060_v4 }
 0x856   :  { %v3403_v41 = vmul.f32 0.5, %v3402_v44 }
 0x857   :  { %v3407_v12 = vmul.f32 0.5, %v3406_v53  ;;  %v3381_v7 = vpop.f32.mrf.mxu2  ;;  %v3394_v49 = vpop.f32.mrf.mxu3 }
 0x858   :  { %v5592_v6 = vpop.eup %5591  ;;  %v8388_v49 = vld [vmem:[#allocation22_spill] sm:$0xff] }
 0x859   :  { %v3413_v33 = vmul.f32 %v3407_v12, %v8206_v10  ;;  %v3414_v21 = vmul.f32 %v5592_v6, %v3403_v41  ;;  %v2762_v6 = vadd.f32 %v8388_v49, %v8068_v14 }
 0x85a   :  { %v5594_v36 = vpop.eup %5593 }
 0x85b   :  { %v8250_v57 = vadd.f32 %v3414_v21, %v3413_v33  ;;  %v3411_v34 = vadd.f32 1.0, %v5594_v36  ;;  %v8389_v33 = vld [vmem:[#allocation23_spill] sm:$0xff] }
 0x85c   :  { %v2791_v21 = vadd.f32 %v8389_v33, %v8070_v8 }
 0x85d   :  { %5595 = vtanh.f32 %v8250_v57  ;;  %v3412_v40 = vmul.f32 0.5, %v3411_v34 }
 0x863   :  { %v5596_v22 = vpop.eup %5595 }
 0x864   :  { %v3417_v59 = vmul.f32 %v5596_v22, %v3412_v40 }
 0x866   :  { %v3422_v16 = vpack.c.bf16 %v3417_v59, %v3417_v59 }
 0x868   :  { %3431 = vmatmul.bf16.vlgmr.msrb.gmra.mxu0 %v3422_v16  ;;  %3444 = vmatmul.bf16.vlgmr.msra.gmra.mxu1 %v3422_v16 }
 0x869   :  { %3457 = vmatmul.bf16.vlgmr.msrb.gmra.mxu2 %v3422_v16  ;;  %3470 = vmatmul.bf16.vlgmr.msrb.gmra.mxu3 %v3422_v16 }
 0x86a   :  { %3581 = vmatpush.bf16.msrb.mxu0 %v7647_v46  ;;  %3594 = vmatpush.bf16.msra.mxu1 %v7658_v18  ;;  %v8382_v46 = vld [vmem:[#allocation16_spill] sm:$0xff] }
 0x86b   :  { %3607 = vmatpush.bf16.msrb.mxu2 %v7660_v60  ;;  %3620 = vmatpush.bf16.msrb.mxu3 %v7669_v11  ;;  %v2701_v18 = vadd.f32 %v8382_v46, %v8058_v25  ;;  %v8383_v60 = vld [vmem:[#allocation17_spill] sm:$0xff] }
 0x86c   :  { %v2730_v11 = vadd.f32 %v8383_v60, %v8060_v4 }
 0x86e   :  { %3582 = vmatpush.bf16.msrb.mxu0 %v7683_v17  ;;  %3595 = vmatpush.bf16.msra.mxu1 %v7694_v24 }
 0x86f   :  { %3608 = vmatpush.bf16.msrb.mxu2 %v7696_v2  ;;  %3621 = vmatpush.bf16.msrb.mxu3 %v7707_v29 }
 0x872   :  { %3583 = vmatpush.bf16.msrb.mxu0 %v7723_v9  ;;  %3596 = vmatpush.bf16.msra.mxu1 %v7734_v35 }
 0x873   :  { %3609 = vmatpush.bf16.msrb.mxu2 %v7736_v37  ;;  %3622 = vmatpush.bf16.msrb.mxu3 %v7748_v38  ;;  %v8384_v37 = vld [vmem:[#allocation18_spill] sm:$0xff] }
 0x874   :  { %v2759_v38 = vadd.f32 %v8384_v37, %v8068_v14 }
 0x876   :  { %3584 = vmatpush.bf16.msrb.mxu0 %v7761_v54  ;;  %3597 = vmatpush.bf16.msra.mxu1 %v7763_v30  ;;  %v8385_v54 = vld [vmem:[#allocation19_spill] sm:$0xff] }
 0x877   :  { %3610 = vmatpush.bf16.msrb.mxu2 %v7772_v42  ;;  %3623 = vmatpush.bf16.msrb.mxu3 %v7783_v31  ;;  %v2788_v30 = vadd.f32 %v8385_v54, %v8070_v8 }
 0x87a   :  { %3585 = vmatpush.bf16.msrb.mxu0 %v7799_v28  ;;  %3598 = vmatpush.bf16.msra.mxu1 %v7812_v0 }
 0x87b   :  { %3611 = vmatpush.bf16.msrb.mxu2 %v7814_v1  ;;  %3624 = vmatpush.bf16.msrb.mxu3 %v7826_v5 }
 0x87e   :  { %3586 = vmatpush.bf16.msrb.mxu0 %v7847_v51  ;;  %3599 = vmatpush.bf16.msra.mxu1 %v7854_v32 }
 0x87f   :  { %3612 = vmatpush.bf16.msrb.mxu2 %v7856_v26  ;;  %3625 = vmatpush.bf16.msrb.mxu3 %v7868_v39 }
 0x882   :  { %3587 = vmatpush.bf16.msrb.mxu0 %v7877_v43  ;;  %3600 = vmatpush.bf16.msra.mxu1 %v7881_v45 }
 0x883   :  { %3613 = vmatpush.bf16.msrb.mxu2 %v7883_v47  ;;  %3626 = vmatpush.bf16.msrb.mxu3 %v7903_v15 }
 0x886   :  { %3588 = vmatpush.bf16.msrb.mxu0 %v7905_v56  ;;  %3601 = vmatpush.bf16.msra.mxu1 %v7918_v13 }
 0x887   :  { %3614 = vmatpush.bf16.msrb.mxu2 %v7920_v27  ;;  %3627 = vmatpush.bf16.msrb.mxu3 %v7929_v62 }
 0x8e5   :  { %v3432_v17 = vpop.f32.mrf.mxu0  ;;  %v3445_v24 = vpop.f32.mrf.mxu1 }
 0x8e6   :  { %v3475_v2 = vadd.f32 %v3432_v17, %v2701_v18  ;;  %v3476_v29 = vadd.f32 %v3445_v24, %v2730_v11 }
 0x8e8   :  { %v3479_v9 = vmul.f32 0.5, %v3475_v2  ;;  %v3483_v35 = vmul.f32 0.5, %v3476_v29 }
 0x8ea   :  { %5597 = vtanh.f32 %v3479_v9 }
 0x8eb   :  { %5599 = vtanh.f32 %v3483_v35 }
 0x8ec   :  { %v3458_v42 = vpop.f32.mrf.mxu2  ;;  %v3471_v31 = vpop.f32.mrf.mxu3 }
 0x8ed   :  { %v3477_v28 = vadd.f32 %v3458_v42, %v2759_v38  ;;  %v3478_v0 = vadd.f32 %v3471_v31, %v2788_v30  ;;  %v3434_v1 = vpop.f32.mrf.mxu0  ;;  %v3447_v5 = vpop.f32.mrf.mxu1 }
 0x8ee   :  { %v5463_v1 = vld [vmem:[%s8348_s7 + $0x38] sm:$0xff]  ;;  %v5462_v5 = vld [vmem:[%s8348_s7 + $0x30] sm:$0xff] }
 0x8ef   :  { %5601 = vtanh.f32 %v3477_v28  ;;  %v3488_v51 = vmul.f32 0.5, %v3478_v0 }
 0x8f0   :  { %v5598_v32 = vpop.eup %5597 }
 0x8f1   :  { %v5600_v26 = vpop.eup %5599  ;;  %v3481_v39 = vadd.f32 1.0, %v5598_v32  ;;  %5603 = vtanh.f32 %v3488_v51  ;;  %v5461_v51 = vld [vmem:[%s8348_s7 + $0x28] sm:$0xff]  ;;  %v5460_v32 = vld [vmem:[%s8348_s7 + $0x20] sm:$0xff] }
 0x8f2   :  { %v3485_v43 = vadd.f32 1.0, %v5600_v26  ;;  %v5459_v26 = vld [vmem:[%s8348_s7 + $0x18] sm:$0xff] }
 0x8f3   :  { %v3482_v45 = vmul.f32 0.5, %v3481_v39  ;;  %v5458_v39 = vld [vmem:[%s8348_s7 + $0x10] sm:$0xff] }
 0x8f4   :  { %v3486_v47 = vmul.f32 0.5, %v3485_v43  ;;  %v3460_v15 = vpop.f32.mrf.mxu2  ;;  %v3473_v56 = vpop.f32.mrf.mxu3  ;;  %v5457_v43 = vld [vmem:[%s8348_s7 + $0x8] sm:$0xff] }
 0x8f5   :  { %v5602_v13 = vpop.eup %5601  ;;  %v8391_v56 = vld [vmem:[#allocation25_spill] sm:$0xff] }
 0x8f6   :  { %v3492_v27 = vmul.f32 %v3486_v47, %v8250_v57  ;;  %v3493_v62 = vmul.f32 %v5602_v13, %v3482_v45  ;;  %v5456_v45 = vld [vmem:[%s8348_s7] sm:$0xff]  ;;  %v8390_v47 = vld [vmem:[#allocation24_spill] sm:$0xff]  ;;  %v2735_v13 = vadd.f32 %v8391_v56, %v8060_v4 }
 0x8f7   :  { %v5604_v10 = vpop.eup %5603  ;;  %v2706_v15 = vadd.f32 %v8390_v47, %v8058_v25 }
 0x8f8   :  { %v3494_v23 = vadd.f32 %v3493_v62, %v3492_v27  ;;  %v3490_v19 = vadd.f32 1.0, %v5604_v10 }
 0x8fa   :  { %5605 = vtanh.f32 %v3494_v23  ;;  %v3491_v61 = vmul.f32 0.5, %v3490_v19 }
 0x900   :  { %v5606_v55 = vpop.eup %5605 }
 0x901   :  { %v3496_v58 = vmul.f32 %v5606_v55, %v3491_v61  ;;  %v8392_v55 = vld [vmem:[#allocation26_spill] sm:$0xff] }
 0x903   :  { %v3501_v3 = vpack.c.bf16 %v3496_v58, %v3496_v58  ;;  %v2764_v58 = vadd.f32 %v8392_v55, %v8068_v14 }
 0x905   :  { %3510 = vmatmul.bf16.vlgmr.msra.gmra.mxu0 %v3501_v3  ;;  %3523 = vmatmul.bf16.vlgmr.msrb.gmra.mxu1 %v3501_v3 }
 0x906   :  { %3536 = vmatmul.bf16.vlgmr.msra.gmra.mxu2 %v3501_v3  ;;  %3549 = vmatmul.bf16.vlgmr.msra.gmra.mxu3 %v3501_v3  ;;  %v8393_v3 = vld [vmem:[#allocation27_spill] sm:$0xff] }
 0x907   :  { %3730 = vmatpush.bf16.msra.mxu0 %v5463_v1  ;;  %v2793_v63 = vadd.f32 %v8393_v3, %v8070_v8 }
 0x90b   :  { %3731 = vmatpush.bf16.msra.mxu0 %v5462_v5 }
 0x90f   :  { %3732 = vmatpush.bf16.msra.mxu0 %v5461_v51 }
 0x913   :  { %3733 = vmatpush.bf16.msra.mxu0 %v5460_v32 }
 0x917   :  { %3734 = vmatpush.bf16.msra.mxu0 %v5459_v26 }
 0x91b   :  { %3735 = vmatpush.bf16.msra.mxu0 %v5458_v39 }
 0x91f   :  { %3736 = vmatpush.bf16.msra.mxu0 %v5457_v43 }
 0x923   :  { %3737 = vmatpush.bf16.msra.mxu0 %v5456_v45 }
 0x982   :  { %v3511_v50 = vpop.f32.mrf.mxu0  ;;  %v3524_v44 = vpop.f32.mrf.mxu1 }
 0x983   :  { %v3554_v53 = vadd.f32 %v3511_v50, %v2704_v48  ;;  %v3555_v41 = vadd.f32 %v3524_v44, %v2733_v52 }
 0x985   :  { %v3558_v12 = vmul.f32 0.5, %v3554_v53  ;;  %v3562_v7 = vmul.f32 0.5, %v3555_v41 }
 0x987   :  { %5607 = vtanh.f32 %v3558_v12 }
 0x988   :  { %5609 = vtanh.f32 %v3562_v7 }
 0x989   :  { %v3537_v36 = vpop.f32.mrf.mxu2  ;;  %v3550_v57 = vpop.f32.mrf.mxu3 }
 0x98a   :  { %v3556_v34 = vadd.f32 %v3537_v36, %v2762_v6  ;;  %v3557_v40 = vadd.f32 %v3550_v57, %v2791_v21  ;;  %v3513_v22 = vpop.f32.mrf.mxu0  ;;  %v3526_v59 = vpop.f32.mrf.mxu1 }
 0x98c   :  { %5611 = vtanh.f32 %v3556_v34  ;;  %v3567_v16 = vmul.f32 0.5, %v3557_v40 }
 0x98d   :  { %v5608_v46 = vpop.eup %5607 }
 0x98e   :  { %v5610_v18 = vpop.eup %5609  ;;  %v3560_v60 = vadd.f32 1.0, %v5608_v46  ;;  %5613 = vtanh.f32 %v3567_v16 }
 0x98f   :  { %v3564_v11 = vadd.f32 1.0, %v5610_v18  ;;  %v5466_v18 = vld [vmem:[%s8347_s8] ss:$0 sm:$0xff] }
 0x990   :  { %v3561_v17 = vmul.f32 0.5, %v3560_v60 }
 0x991   :  { %v3565_v24 = vmul.f32 0.5, %v3564_v11  ;;  %v3539_v2 = vpop.f32.mrf.mxu2  ;;  %v3552_v29 = vpop.f32.mrf.mxu3 }
 0x992   :  { %v5612_v9 = vpop.eup %5611 }
 0x993   :  { %v3571_v35 = vmul.f32 %v3565_v24, %v3494_v23  ;;  %v3572_v37 = vmul.f32 %v5612_v9, %v3561_v17 }
 0x994   :  { %v5614_v38 = vpop.eup %5613 }
 0x995   :  { %v3573_v54 = vadd.f32 %v3572_v37, %v3571_v35  ;;  %v3569_v30 = vadd.f32 1.0, %v5614_v38 }
 0x997   :  { %5615 = vtanh.f32 %v3573_v54  ;;  %v3570_v42 = vmul.f32 0.5, %v3569_v30 }
 0x99d   :  { %v5616_v31 = vpop.eup %5615 }
 0x99e   :  { %v3575_v28 = vmul.f32 %v5616_v31, %v3570_v42 }
 0x9a0   :  { %v3580_v0 = vpack.c.bf16 %v3575_v28, %v3575_v28 }
 0x9a2   :  { %3589 = vmatmul.bf16.vlgmr.msrb.gmra.mxu0 %v3580_v0  ;;  %3602 = vmatmul.bf16.vlgmr.msra.gmra.mxu1 %v3580_v0 }
 0x9a3   :  { %3615 = vmatmul.bf16.vlgmr.msrb.gmra.mxu2 %v3580_v0  ;;  %3628 = vmatmul.bf16.vlgmr.msrb.gmra.mxu3 %v3580_v0 }
 0xa1f   :  { %v3590_v27 = vpop.f32.mrf.mxu0  ;;  %v3603_v62 = vpop.f32.mrf.mxu1 }
 0xa20   :  { %v3633_v10 = vadd.f32 %v3590_v27, %v2706_v15  ;;  %v3634_v23 = vadd.f32 %v3603_v62, %v2735_v13 }
 0xa22   :  { %v3637_v19 = vmul.f32 0.5, %v3633_v10  ;;  %v3641_v61 = vmul.f32 0.5, %v3634_v23 }
 0xa24   :  { %5617 = vtanh.f32 %v3637_v19 }
 0xa25   :  { %5619 = vtanh.f32 %v3641_v61 }
 0xa26   :  { %v3616_v48 = vpop.f32.mrf.mxu2  ;;  %v3629_v20 = vpop.f32.mrf.mxu3 }
 0xa27   :  { %v3635_v25 = vadd.f32 %v3616_v48, %v2764_v58  ;;  %v3636_v52 = vadd.f32 %v3629_v20, %v2793_v63  ;;  %v3592_v50 = vpop.f32.mrf.mxu0  ;;  %v3605_v4 = vpop.f32.mrf.mxu1 }
 0xa29   :  { %5621 = vtanh.f32 %v3635_v25  ;;  %v3646_v44 = vmul.f32 0.5, %v3636_v52 }
 0xa2a   :  { %v5618_v53 = vpop.eup %5617 }
 0xa2b   :  { %v5620_v41 = vpop.eup %5619  ;;  %v3639_v12 = vadd.f32 1.0, %v5618_v53  ;;  %5623 = vtanh.f32 %v3646_v44 }
 0xa2c   :  { %v3643_v7 = vadd.f32 1.0, %v5620_v41 }
 0xa2d   :  { %v3640_v49 = vmul.f32 0.5, %v3639_v12 }
 0xa2e   :  { %v3644_v6 = vmul.f32 0.5, %v3643_v7  ;;  %v3618_v14 = vpop.f32.mrf.mxu2  ;;  %v3631_v33 = vpop.f32.mrf.mxu3 }
 0xa2f   :  { %v5622_v21 = vpop.eup %5621 }
 0xa30   :  { %v3650_v8 = vmul.f32 %v3644_v6, %v3573_v54  ;;  %v3651_v36 = vmul.f32 %v5622_v21, %v3640_v49 }
 0xa31   :  { %v5624_v57 = vpop.eup %5623 }
 0xa32   :  { %v3652_v34 = vadd.f32 %v3651_v36, %v3650_v8  ;;  %v3648_v40 = vadd.f32 1.0, %v5624_v57 }
 0xa34   :  { %5625 = vtanh.f32 %v3652_v34  ;;  %v3649_v22 = vmul.f32 0.5, %v3648_v40 }
 0xa3a   :  { %v5626_v59 = vpop.eup %5625 }
 0xa3b   :  { %v3654_v16 = vmul.f32 %v5626_v59, %v3649_v22 }
 0xa3d   :  { %v3661_v46 = vpack.c.bf16 %v3654_v16, %v3654_v16 }
 0xa3f   :  { %3738 = vmatmul.bf16.vlgmr.msra.gmra.mxu0 %v3661_v46 }
 0xabc   :  { %v3739_v60 = vpop.f32.mrf.mxu0 }
 0xabd   :  { %v3740_v11 = vadd.f32 %v5466_v18, %v3739_v60 }
 0xabf   :  { %3743 = vst [vmem:[%s8349_s9] sm:$0xff] %v3740_v11 }
 0xac4   :  { %v3741_v17 = vpop.f32.mrf.mxu0 }

// kernel: _lstm_forward_impl.1
= control target key start
LH: loop header
LB: loop body
LE: loop exit
PB: predicated region body
PF: predicated region fallthrough
CT: control target
= control target key end

     0   :  { %vm103_vm0 = vcmask 130048   ;;  %s8340_s1 = inlined_call_operand.vmem [shape: bf16[16,512], index: 1, kind: input, shape index: {}]   ;;  %s8341_s0 = inlined_call_operand.vmem [shape: bf16[8,8,16], index: 0, kind: input, shape index: {}]   ;;  %s8342_s2 = inlined_call_operand.vmem [shape: bf16[128,512], index: 2, kind: input, shape index: {}]   ;;  %s8343_s3 = inlined_call_operand.vmem [shape: f32[1,512], index: 3, kind: input, shape index: {}]   ;;  %s8344_s4 = inlined_call_operand.vmem [shape: bf16[128,512], index: 4, kind: input, shape index: {}]   ;;  %s8345_s5 = inlined_call_operand.vmem [shape: bf16[128,512], index: 5, kind: input, shape index: {}]   ;;  %s8346_s6 = inlined_call_operand.vmem [shape: f32[1,512], index: 6, kind: input, shape index: {}]   ;;  %s8347_s8 = inlined_call_operand.vmem [shape: f32[1,128], index: 8, kind: input, shape index: {}]   ;;  %s8348_s7 = inlined_call_operand.vmem [shape: bf16[128,128], index: 7, kind: input, shape index: {}]   ;;  %s8349_s9 = inlined_call_operand.vmem [shape: f32[8,128], index: 9, kind: output, shape index: {}]  }
   0x1   :  { %v3766_v0 = vld [vmem:[%s8340_s1] sm:$0xf]  ;;  %v5130_v1 = vld [vmem:[%s8340_s1 + $0xc] sm:$0xf0]  ;;  %v3774_v2 = vld [vmem:[%s8340_s1 + $0x8] sm:$0xf] }
   0x2   :  { %v3767_v3 = vor.u32 %v5130_v1, %v3766_v0  ;;  %v5131_v4 = vld [vmem:[%s8340_s1 + $0x14] sm:$0xf0]  ;;  %v5129_v5 = vld [vmem:[%s8340_s1 + $0xc] sm:$0xf]  ;;  %v3776_v6 = vld [vmem:[%s8340_s1 + $0x18] sm:$0xf0] }
   0x3   :  { %v3775_v7 = vor.u32 %v5131_v4, %v3774_v2  ;;  %v3779_v8 = vor.u32 %v5129_v5, %v3776_v6  ;;  %v5699_v9 = vld [vmem:[%s8341_s0] sm:$0xff]  ;;  %v5704_v10 = vld [vmem:[%s8341_s0 + $0x18] sm:$0xff]  ;;  %v3768_v12 = vld [vmem:[%s8340_s1 + $0x10] sm:$0xf0] }
   0x4   :  { %v5128_v11 = vld [vmem:[%s8340_s1 + $0x4] sm:$0xf]  ;;  %123 = vmatpush.bf16.msra.mxu0 %v3767_v3  ;;  %5464 = vmatpush.bf16.msra.mxu1 %v3767_v3  ;;  %v3912_v15 = vld [vmem:[%s8342_s2 + $0xf0] sm:$0xf0]  ;;  %v3918_v16 = vld [vmem:[%s8342_s2 + $0xe8] sm:$0xf] }
   0x5   :  { %v5160_v13 = vld [vmem:[%s8342_s2 + $0xe4] sm:$0xf]  ;;  %181 = vmatpush.bf16.msra.mxu2 %v3775_v7  ;;  %210 = vmatpush.bf16.msra.mxu3 %v3779_v8  ;;  %v3771_v14 = vor.u32 %v5128_v11, %v3768_v12  ;;  %v5163_v17 = vld [vmem:[%s8342_s2 + $0xf4] sm:$0xf0]  ;;  %v3910_v20 = vld [vmem:[%s8342_s2 + $0xe0] sm:$0xf] }
   0x6   :  { %v3915_v18 = vor.u32 %v5160_v13, %v3912_v15  ;;  %v3919_v19 = vor.u32 %v5163_v17, %v3918_v16  ;;  %v5162_v21 = vld [vmem:[%s8342_s2 + $0xec] sm:$0xf0]  ;;  %v3894_v22 = vld [vmem:[%s8342_s2 + $0xc0] sm:$0xf]  ;;  %v5161_v25 = vld [vmem:[%s8342_s2 + $0xec] sm:$0xf] }
   0x7   :  { %3780 = vmatmul.msk.bf16.vlgmr.msra.gmra.mxu0 %vm103_vm0, %v5699_v9  ;;  %3783 = vmatmul.msk.bf16.vlgmr.msra.gmra.mxu1 %vm103_vm0, %v5704_v10  ;;  %v3911_v23 = vor.u32 %v5162_v21, %v3910_v20  ;;  %v5158_v24 = vld [vmem:[%s8342_s2 + $0xcc] sm:$0xf0]  ;;  %v3920_v26 = vld [vmem:[%s8342_s2 + $0xf8] sm:$0xf0]  ;;  %v5156_v28 = vld [vmem:[%s8342_s2 + $0xc4] sm:$0xf] }
   0x8   :  { %152 = vmatpush.bf16.msrb.mxu1 %v3771_v14  ;;  %3788 = vmatmul.msk.bf16.vlgmr.msra.gmra.mxu2 %vm103_vm0, %v5699_v9  ;;  %v3923_v27 = vor.u32 %v5161_v25, %v3920_v26  ;;  %v3896_v29 = vld [vmem:[%s8342_s2 + $0xd0] sm:$0xf0]  ;;  %v3902_v30 = vld [vmem:[%s8342_s2 + $0xc8] sm:$0xf]  ;;  %v5159_v32 = vld [vmem:[%s8342_s2 + $0xd4] sm:$0xf0]  ;;  %v3895_v33 = vor.u32 %v5158_v24, %v3894_v22 }
   0x9   :  { %3792 = vmatmul.msk.bf16.vlgmr.msra.gmra.mxu3 %vm103_vm0, %v5699_v9  ;;  %v3899_v31 = vor.u32 %v5156_v28, %v3896_v29  ;;  %489 = vmatpush.bf16.msrb.mxu2 %v3919_v19  ;;  %v3903_v34 = vor.u32 %v5159_v32, %v3902_v30  ;;  %v3878_v35 = vld [vmem:[%s8342_s2 + $0xa0] sm:$0xf]  ;;  %v5157_v36 = vld [vmem:[%s8342_s2 + $0xcc] sm:$0xf]  ;;  %v5154_v37 = vld [vmem:[%s8342_s2 + $0xac] sm:$0xf0] }
   0xa   :  { %463 = vmatpush.bf16.msrb.mxu0 %v3911_v23  ;;  %502 = vmatpush.bf16.msrb.mxu3 %v3923_v27  ;;  %v3904_v38 = vld [vmem:[%s8342_s2 + $0xd8] sm:$0xf0]  ;;  %v5152_v39 = vld [vmem:[%s8342_s2 + $0xa4] sm:$0xf]  ;;  %v3880_v41 = vld [vmem:[%s8342_s2 + $0xb0] sm:$0xf0]  ;;  %v3879_v46 = vor.u32 %v5154_v37, %v3878_v35 }
   0xb   :  { %v3907_v40 = vor.u32 %v5157_v36, %v3904_v38  ;;  %v3886_v42 = vld [vmem:[%s8342_s2 + $0xa8] sm:$0xf]  ;;  %v5155_v43 = vld [vmem:[%s8342_s2 + $0xb4] sm:$0xf0]  ;;  %v3862_v44 = vld [vmem:[%s8342_s2 + $0x80] sm:$0xf]  ;;  %v3883_v45 = vor.u32 %v5152_v39, %v3880_v41 }
   0xc   :  { %476 = vmatpush.bf16.msra.mxu1 %v3915_v18  ;;  %v5150_v47 = vld [vmem:[%s8342_s2 + $0x8c] sm:$0xf0]  ;;  %v3887_v48 = vor.u32 %v5155_v43, %v3886_v42  ;;  %v5153_v49 = vld [vmem:[%s8342_s2 + $0xac] sm:$0xf]  ;;  %v3888_v50 = vld [vmem:[%s8342_s2 + $0xb8] sm:$0xf0] }
   0xd   :  { %490 = vmatpush.bf16.msrb.mxu2 %v3903_v34  ;;  %v3891_v51 = vor.u32 %v5153_v49, %v3888_v50  ;;  %v5148_v52 = vld [vmem:[%s8342_s2 + $0x84] sm:$0xf]  ;;  %v3864_v53 = vld [vmem:[%s8342_s2 + $0x90] sm:$0xf0]  ;;  %v3870_v54 = vld [vmem:[%s8342_s2 + $0x88] sm:$0xf]  ;;  %v3863_v58 = vor.u32 %v5150_v47, %v3862_v44 }
   0xe   :  { %464 = vmatpush.bf16.msrb.mxu0 %v3895_v33  ;;  %503 = vmatpush.bf16.msrb.mxu3 %v3907_v40  ;;  %v5151_v55 = vld [vmem:[%s8342_s2 + $0x94] sm:$0xf0]  ;;  %v3867_v56 = vor.u32 %v5148_v52, %v3864_v53  ;;  %v5149_v57 = vld [vmem:[%s8342_s2 + $0x8c] sm:$0xf]  ;;  %v3872_v60 = vld [vmem:[%s8342_s2 + $0x98] sm:$0xf0] }
   0xf   :  { %v3871_v59 = vor.u32 %v5151_v55, %v3870_v54  ;;  %v5819_v61 = vld [vmem:[%s8341_s0 + $0x8] sm:$0xff]  ;;  %v3846_v62 = vld [vmem:[%s8342_s2 + $0x60] sm:$0xf]  ;;  %v5146_v63 = vld [vmem:[%s8342_s2 + $0x6c] sm:$0xf0]  ;;  %v3875_v0 = vor.u32 %v5149_v57, %v3872_v60  ;;  %v5627_v49 = vmov 0.0|0.0  }
  0x10   :  { %477 = vmatpush.bf16.msra.mxu1 %v3899_v31  ;;  %v3847_v1 = vor.u32 %v5146_v63, %v3846_v62  ;;  %v3830_v2 = vld [vmem:[%s8342_s2 + $0x40] sm:$0xf]  ;;  %v5142_v3 = vld [vmem:[%s8342_s2 + $0x4c] sm:$0xf0]  ;;  %v3854_v4 = vld [vmem:[%s8342_s2 + $0x68] sm:$0xf] }
  0x11   :  { %491 = vmatpush.bf16.msrb.mxu2 %v3887_v48  ;;  %v5147_v5 = vld [vmem:[%s8342_s2 + $0x74] sm:$0xf0]  ;;  %v5145_v6 = vld [vmem:[%s8342_s2 + $0x6c] sm:$0xf]  ;;  %v3856_v8 = vld [vmem:[%s8342_s2 + $0x78] sm:$0xf0]  ;;  %v3831_v16 = vor.u32 %v5142_v3, %v3830_v2 }
  0x12   :  { %465 = vmatpush.bf16.msrb.mxu0 %v3879_v46  ;;  %504 = vmatpush.bf16.msrb.mxu3 %v3891_v51  ;;  %v3855_v7 = vor.u32 %v5147_v5, %v3854_v4  ;;  %v5138_v11 = vld [vmem:[%s8342_s2 + $0x2c] sm:$0xf0]  ;;  %v5144_v12 = vld [vmem:[%s8342_s2 + $0x64] sm:$0xf]  ;;  %v3848_v13 = vld [vmem:[%s8342_s2 + $0x70] sm:$0xf0]  ;;  %v3859_v14 = vor.u32 %v5145_v6, %v3856_v8 }
  0x13   :  { %v3838_v15 = vld [vmem:[%s8342_s2 + $0x48] sm:$0xf]  ;;  %v3851_v17 = vor.u32 %v5144_v12, %v3848_v13  ;;  %v5143_v18 = vld [vmem:[%s8342_s2 + $0x54] sm:$0xf0]  ;;  %v5141_v19 = vld [vmem:[%s8342_s2 + $0x4c] sm:$0xf] }
  0x14   :  { %478 = vmatpush.bf16.msra.mxu1 %v3883_v45  ;;  %v3840_v20 = vld [vmem:[%s8342_s2 + $0x58] sm:$0xf0]  ;;  %v3839_v21 = vor.u32 %v5143_v18, %v3838_v15  ;;  %v5140_v22 = vld [vmem:[%s8342_s2 + $0x44] sm:$0xf]  ;;  %v3832_v23 = vld [vmem:[%s8342_s2 + $0x50] sm:$0xf0] }
  0x15   :  { %492 = vmatpush.bf16.msrb.mxu2 %v3871_v59  ;;  %v3822_v24 = vld [vmem:[%s8342_s2 + $0x28] sm:$0xf]  ;;  %v3843_v25 = vor.u32 %v5141_v19, %v3840_v20  ;;  %v3835_v26 = vor.u32 %v5140_v22, %v3832_v23  ;;  %v5139_v27 = vld [vmem:[%s8342_s2 + $0x34] sm:$0xf0]  ;;  %v5137_v28 = vld [vmem:[%s8342_s2 + $0x2c] sm:$0xf] }
  0x16   :  { %466 = vmatpush.bf16.msrb.mxu0 %v3863_v58  ;;  %505 = vmatpush.bf16.msrb.mxu3 %v3875_v0  ;;  %v3824_v29 = vld [vmem:[%s8342_s2 + $0x38] sm:$0xf0]  ;;  %v3798_v31 = vld [vmem:[%s8342_s2] sm:$0xf]  ;;  %v3823_v32 = vor.u32 %v5139_v27, %v3822_v24  ;;  %v5134_v33 = vld [vmem:[%s8342_s2 + $0xc] sm:$0xf0] }
  0x17   :  { %3781 = vmatmul.msk.bf16.gmra.mxu0 %vm103_vm0, %v5819_v61  ;;  %3784 = vmatmul.msk.bf16.vlgmr.msrb.gmra.mxu1 %vm103_vm0, %v5699_v9  ;;  %v3814_v9 = vld [vmem:[%s8342_s2 + $0x20] sm:$0xf]  ;;  %v3806_v34 = vld [vmem:[%s8342_s2 + $0x8] sm:$0xf]  ;;  %v5135_v35 = vld [vmem:[%s8342_s2 + $0x14] sm:$0xf0]  ;;  %v3827_v36 = vor.u32 %v5137_v28, %v3824_v29  ;;  %v3799_v39 = vor.u32 %v5134_v33, %v3798_v31 }
  0x18   :  { %479 = vmatpush.bf16.msra.mxu1 %v3867_v56  ;;  %3789 = vmatmul.msk.bf16.gmra.mxu2 %vm103_vm0, %v5819_v61  ;;  %v3815_v30 = vor.u32 %v5138_v11, %v3814_v9  ;;  %v5133_v37 = vld [vmem:[%s8342_s2 + $0xc] sm:$0xf]  ;;  %v3808_v38 = vld [vmem:[%s8342_s2 + $0x18] sm:$0xf0]  ;;  %v3807_v40 = vor.u32 %v5135_v35, %v3806_v34  ;;  %v5126_v41 = vld [vmem:[%s8341_s0 + $0x10] sm:$0xff] }
  0x19   :  { %3793 = vmatmul.msk.bf16.gmra.mxu3 %vm103_vm0, %v5819_v61  ;;  %493 = vmatpush.bf16.msrb.mxu2 %v3855_v7  ;;  %v3811_v42 = vor.u32 %v5133_v37, %v3808_v38  ;;  %v5136_v43 = vld [vmem:[%s8342_s2 + $0x24] sm:$0xf]  ;;  %v3816_v44 = vld [vmem:[%s8342_s2 + $0x30] sm:$0xf0]  ;;  %v53_v50 = vld [vmem:[%s8343_s3] sm:$0xf] }
  0x1a   :  { %467 = vmatpush.bf16.msrb.mxu0 %v3847_v1  ;;  %506 = vmatpush.bf16.msrb.mxu3 %v3859_v14  ;;  %v3819_v45 = vor.u32 %v5136_v43, %v3816_v44  ;;  %v5132_v46 = vld [vmem:[%s8342_s2 + $0x4] sm:$0xf]  ;;  %v3800_v47 = vld [vmem:[%s8342_s2 + $0x10] sm:$0xf0]  ;;  %v5947_v51 = vperm.slane %v53_v50, 0  ;;  %v5971_v63 = vperm.slane %v53_v50, 2 }
  0x1b   :  { %v3803_v48 = vor.u32 %v5132_v46, %v3800_v47  ;;  %v5973_v0 = vperm.slane %v53_v50, 3  ;;  %v5987_v8 = vperm.slane %v53_v50, 1  ;;  %v4038_v22 = vld [vmem:[%s8342_s2 + $0xe0] sm:$0xf]  ;;  %v5194_v23 = vld [vmem:[%s8342_s2 + $0xec] sm:$0xf0] }
  0x1c   :  { %480 = vmatpush.bf16.msra.mxu1 %v3851_v17  ;;  %v5192_v24 = vld [vmem:[%s8342_s2 + $0xe4] sm:$0xf]  ;;  %v4039_v27 = vor.u32 %v5194_v23, %v4038_v22  ;;  %v4040_v28 = vld [vmem:[%s8342_s2 + $0xf0] sm:$0xf0]  ;;  %v4046_v29 = vld [vmem:[%s8342_s2 + $0xe8] sm:$0xf] }
  0x1d   :  { %494 = vmatpush.bf16.msrb.mxu2 %v3839_v21  ;;  %v5193_v34 = vld [vmem:[%s8342_s2 + $0xec] sm:$0xf]  ;;  %v4048_v35 = vld [vmem:[%s8342_s2 + $0xf8] sm:$0xf0]  ;;  %v4022_v38 = vld [vmem:[%s8342_s2 + $0xc0] sm:$0xf] }
  0x1e   :  { %468 = vmatpush.bf16.msrb.mxu0 %v3831_v16  ;;  %507 = vmatpush.bf16.msrb.mxu3 %v3843_v25  ;;  %v4051_v37 = vor.u32 %v5193_v34, %v4048_v35  ;;  %v4030_v43 = vld [vmem:[%s8342_s2 + $0xc8] sm:$0xf]  ;;  %v5189_v46 = vld [vmem:[%s8342_s2 + $0xcc] sm:$0xf]  ;;  %v4032_v47 = vld [vmem:[%s8342_s2 + $0xd8] sm:$0xf0] }
  0x1f   :  { %v4035_v50 = vor.u32 %v5189_v46, %v4032_v47  ;;  %v4008_v23 = vld [vmem:[%s8342_s2 + $0xb0] sm:$0xf0]  ;;  %v3990_v35 = vld [vmem:[%s8342_s2 + $0x80] sm:$0xf] }
  0x20   :  { %481 = vmatpush.bf16.msra.mxu1 %v3835_v26 }
  0x21   :  { %495 = vmatpush.bf16.msrb.mxu2 %v3823_v32  ;;  %v4043_v32 = vor.u32 %v5192_v24, %v4040_v28  ;;  %v4014_v24 = vld [vmem:[%s8342_s2 + $0xa8] sm:$0xf] }
  0x22   :  { %469 = vmatpush.bf16.msrb.mxu0 %v3815_v30  ;;  %508 = vmatpush.bf16.msrb.mxu3 %v3827_v36  ;;  %v5195_v30 = vld [vmem:[%s8342_s2 + $0xf4] sm:$0xf0] }
  0x23   :  { %v4047_v33 = vor.u32 %v5195_v30, %v4046_v29 }
  0x24   :  { %482 = vmatpush.bf16.msra.mxu1 %v3819_v45  ;;  %v5191_v45 = vld [vmem:[%s8342_s2 + $0xd4] sm:$0xf0] }
  0x25   :  { %496 = vmatpush.bf16.msrb.mxu2 %v3807_v40 }
  0x26   :  { %470 = vmatpush.bf16.msrb.mxu0 %v3799_v39  ;;  %509 = vmatpush.bf16.msrb.mxu3 %v3811_v42  ;;  %v5190_v39 = vld [vmem:[%s8342_s2 + $0xcc] sm:$0xf0]  ;;  %v4024_v42 = vld [vmem:[%s8342_s2 + $0xd0] sm:$0xf0] }
  0x27   :  { %3782 = vmatmul.msk.bf16.gmra.mxu0 %vm103_vm0, %v5126_v41  ;;  %3785 = vmatmul.msk.bf16.gmra.mxu1 %vm103_vm0, %v5819_v61  ;;  %v4023_v40 = vor.u32 %v5190_v39, %v4022_v38  ;;  %v5180_v38 = vld [vmem:[%s8342_s2 + $0x84] sm:$0xf] }
  0x28   :  { %3790 = vmatmul.msk.bf16.gmra.mxu2 %vm103_vm0, %v5126_v41  ;;  %483 = vmatpush.bf16.msra.mxu1 %v3803_v48  ;;  %v4031_v48 = vor.u32 %v5191_v45, %v4030_v43  ;;  %v5181_v43 = vld [vmem:[%s8342_s2 + $0x8c] sm:$0xf] }
  0x29   :  { %3794 = vmatmul.msk.bf16.gmra.mxu3 %vm103_vm0, %v5126_v41  ;;  %761 = vmatpush.bf16.msra.mxu2 %v4047_v33 }
  0x2a   :  { %735 = vmatpush.bf16.msra.mxu0 %v4039_v27  ;;  %774 = vmatpush.bf16.msra.mxu3 %v4051_v37  ;;  %v5182_v37 = vld [vmem:[%s8342_s2 + $0x8c] sm:$0xf0] }
  0x2b   :  { %v3991_v39 = vor.u32 %v5182_v37, %v3990_v35  ;;  %v3960_v37 = vld [vmem:[%s8342_s2 + $0x50] sm:$0xf0] }
  0x2c   :  { %748 = vmatpush.bf16.msrb.mxu1 %v4043_v32  ;;  %v4016_v32 = vld [vmem:[%s8342_s2 + $0xb8] sm:$0xf0] }
  0x2d   :  { %762 = vmatpush.bf16.msra.mxu2 %v4031_v48 }
  0x2e   :  { %736 = vmatpush.bf16.msra.mxu0 %v4023_v40  ;;  %775 = vmatpush.bf16.msra.mxu3 %v4035_v50  ;;  %v3998_v40 = vld [vmem:[%s8342_s2 + $0x88] sm:$0xf]  ;;  %v3974_v50 = vld [vmem:[%s8342_s2 + $0x60] sm:$0xf] }
  0x37   :  { %3786 = vmatmul.msk.bf16.gmra.mxu1 %vm103_vm0, %v5126_v41  ;;  %471 = vmatmul.bf16.vlgmr.msrb.gmra.mxu0 %v5627_v49  ;;  %v5188_v41 = vld [vmem:[%s8342_s2 + $0xc4] sm:$0xf] }
  0x38   :  { %3791 = vmatmul.msk.bf16.gmra.mxu2 %vm103_vm0, %v5704_v10  ;;  %v4027_v44 = vor.u32 %v5188_v41, %v4024_v42  ;;  %v5183_v42 = vld [vmem:[%s8342_s2 + $0x94] sm:$0xf0] }
  0x39   :  { %3795 = vmatmul.msk.bf16.gmra.mxu3 %vm103_vm0, %v5704_v10  ;;  %v3999_v46 = vor.u32 %v5183_v42, %v3998_v40  ;;  %v3968_v42 = vld [vmem:[%s8342_s2 + $0x58] sm:$0xf0] }
  0x3a   :  { %749 = vmatpush.bf16.msrb.mxu1 %v4027_v44  ;;  %v4000_v44 = vld [vmem:[%s8342_s2 + $0x98] sm:$0xf0] }
  0x3b   :  { %v4003_v47 = vor.u32 %v5181_v43, %v4000_v44  ;;  %v3942_v43 = vld [vmem:[%s8342_s2 + $0x20] sm:$0xf] }
  0x47   :  { %3787 = vmatmul.msk.bf16.gmra.mxu1 %vm103_vm0, %v5704_v10 }
  0x48   :  { %497 = vmatmul.bf16.vlgmr.msrb.gmra.mxu2 %v5627_v49 }
  0x49   :  { %510 = vmatmul.bf16.vlgmr.msrb.gmra.mxu3 %v5627_v49 }
  0x57   :  { %484 = vmatmul.bf16.vlgmr.msra.gmra.mxu1 %v5627_v49 }
  0x84   :  { %v5949_v52 = vpop.f32.mrf.mxu0  ;;  %v140_v53 = vpop.f32.mrf.mxu1 }
  0x85   :  { %v5952_v54 = vadd.f32 %v140_v53, %v5947_v51 }
  0x8b   :  { %v5954_v55 = vpop.f32.mrf.mxu2 }
  0x8c   :  { %v5956_v10 = vpop.f32.mrf.mxu3  ;;  %v5958_v56 = vpop.f32.mrf.mxu0  ;;  %v184_v44 = vadd.f32 %v5954_v55, %v5971_v63  ;;  %v3950_v55 = vld [vmem:[%s8342_s2 + $0x28] sm:$0xf] }
  0x8d   :  { %v5960_v57 = vpop.f32.mrf.mxu1 }
  0x93   :  { %v5962_v58 = vpop.f32.mrf.mxu2 }
  0x94   :  { %v5964_v59 = vpop.f32.mrf.mxu3  ;;  %v130_v60 = vpop.f32.mrf.mxu0 }
  0x95   :  { %v5967_v61 = vadd.f32 %v130_v60, %v5947_v51  ;;  %v5969_v62 = vpop.f32.mrf.mxu1  ;;  %v4006_v60 = vld [vmem:[%s8342_s2 + $0xa0] sm:$0xf] }
  0x9b   :  { %v188_v1 = vpop.f32.mrf.mxu2 }
  0x9c   :  { %v5976_v2 = vadd.f32 %v188_v1, %v5971_v63  ;;  %v217_v3 = vpop.f32.mrf.mxu3  ;;  %v5978_v4 = vpop.f32.mrf.mxu0  ;;  %v5186_v1 = vld [vmem:[%s8342_s2 + $0xac] sm:$0xf0] }
  0x9d   :  { %v5981_v5 = vadd.f32 %v217_v3, %v5973_v0  ;;  %v5983_v6 = vpop.f32.mrf.mxu1  ;;  %v5184_v3 = vld [vmem:[%s8342_s2 + $0xa4] sm:$0xf]  ;;  %v4007_v22 = vor.u32 %v5186_v1, %v4006_v60 }
  0x9e   :  { %v4011_v29 = vor.u32 %v5184_v3, %v4008_v23  ;;  %v5176_v60 = vld [vmem:[%s8342_s2 + $0x64] sm:$0xf] }
  0x9f   :  { %737 = vmatpush.bf16.msra.mxu0 %v4007_v22 }
  0xa0   :  { %750 = vmatpush.bf16.msrb.mxu1 %v4011_v29  ;;  %v3984_v29 = vld [vmem:[%s8342_s2 + $0x78] sm:$0xf0] }
  0xa3   :  { %v5985_v7 = vpop.f32.mrf.mxu2  ;;  %738 = vmatpush.bf16.msra.mxu0 %v3991_v39  ;;  %v5175_v39 = vld [vmem:[%s8342_s2 + $0x54] sm:$0xf0] }
  0xa4   :  { %v5989_v9 = vpop.f32.mrf.mxu3  ;;  %v135_v11 = vpop.f32.mrf.mxu0 }
  0xa5   :  { %v5992_v12 = vadd.f32 %v135_v11, %v5947_v51  ;;  %v159_v13 = vpop.f32.mrf.mxu1  ;;  %v126_v11 = vadd.f32 %v5949_v52, %v5947_v51  ;;  %v5187_v52 = vld [vmem:[%s8342_s2 + $0xb4] sm:$0xf0] }
  0xa6   :  { %v5995_v14 = vadd.f32 %v159_v13, %v5987_v8  ;;  %v4015_v30 = vor.u32 %v5187_v52, %v4014_v24  ;;  %v5177_v52 = vld [vmem:[%s8342_s2 + $0x6c] sm:$0xf] }
  0xa8   :  { %763 = vmatpush.bf16.msra.mxu2 %v4015_v30 }
  0xab   :  { %v193_v15 = vpop.f32.mrf.mxu2 }
  0xac   :  { %v5998_v16 = vadd.f32 %v193_v15, %v5971_v63  ;;  %v222_v17 = vpop.f32.mrf.mxu3  ;;  %v6000_v18 = vpop.f32.mrf.mxu0  ;;  %764 = vmatpush.bf16.msra.mxu2 %v3999_v46  ;;  %v5170_v46 = vld [vmem:[%s8342_s2 + $0x2c] sm:$0xf0] }
  0xad   :  { %v6003_v19 = vadd.f32 %v222_v17, %v5973_v0  ;;  %v6005_v20 = vpop.f32.mrf.mxu1 }
  0xb3   :  { %v6007_v21 = vpop.f32.mrf.mxu2 }
  0xb4   :  { %v6018_v25 = vpop.f32.mrf.mxu3  ;;  %v472_v26 = vpop.f32.mrf.mxu0 }
  0xb5   :  { %v164_v31 = vpop.f32.mrf.mxu1  ;;  %v515_v33 = vadd.f32 %v472_v26, %v126_v11  ;;  %v3992_v26 = vld [vmem:[%s8342_s2 + $0x90] sm:$0xf0] }
  0xb6   :  { %v6036_v36 = vadd.f32 %v164_v31, %v5987_v8  ;;  %v5185_v31 = vld [vmem:[%s8342_s2 + $0xac] sm:$0xf]  ;;  %v3995_v41 = vor.u32 %v5180_v38, %v3992_v26  ;;  %v3976_v11 = vld [vmem:[%s8342_s2 + $0x70] sm:$0xf0]  ;;  %v3966_v38 = vld [vmem:[%s8342_s2 + $0x48] sm:$0xf] }
  0xb7   :  { %v4019_v34 = vor.u32 %v5185_v31, %v4016_v32  ;;  %v519_v45 = vmul.f32 0.5, %v515_v33  ;;  %v3979_v23 = vor.u32 %v5176_v60, %v3976_v11  ;;  %v3987_v31 = vor.u32 %v5177_v52, %v3984_v29  ;;  %v3958_v32 = vld [vmem:[%s8342_s2 + $0x40] sm:$0xf]  ;;  %v5174_v33 = vld [vmem:[%s8342_s2 + $0x4c] sm:$0xf0] }
  0xb8   :  { %751 = vmatpush.bf16.msrb.mxu1 %v3995_v41  ;;  %v3959_v35 = vor.u32 %v5174_v33, %v3958_v32  ;;  %v3967_v40 = vor.u32 %v5175_v39, %v3966_v38  ;;  %v5173_v41 = vld [vmem:[%s8342_s2 + $0x4c] sm:$0xf]  ;;  %v3943_v60 = vor.u32 %v5170_v46, %v3942_v43  ;;  %v5171_v11 = vld [vmem:[%s8342_s2 + $0x34] sm:$0xf0]  ;;  %v3952_v52 = vld [vmem:[%s8342_s2 + $0x38] sm:$0xf0] }
  0xb9   :  { %776 = vmatpush.bf16.msra.mxu3 %v4019_v34  ;;  %5467 = vtanh.f32 %v519_v45  ;;  %v5172_v34 = vld [vmem:[%s8342_s2 + $0x44] sm:$0xf]  ;;  %v3971_v45 = vor.u32 %v5173_v41, %v3968_v42  ;;  %v3926_v29 = vld [vmem:[%s8342_s2] sm:$0xf]  ;;  %v5167_v39 = vld [vmem:[%s8342_s2 + $0x14] sm:$0xf0] }
  0xba   :  { %v3963_v26 = vor.u32 %v5172_v34, %v3960_v37  ;;  %v5164_v34 = vld [vmem:[%s8342_s2 + $0x4] sm:$0xf]  ;;  %v3934_v37 = vld [vmem:[%s8342_s2 + $0x8] sm:$0xf] }
  0xbb   :  { %v198_v53 = vpop.f32.mrf.mxu2  ;;  %v3935_v43 = vor.u32 %v5167_v39, %v3934_v37 }
  0xbc   :  { %v6074_v13 = vadd.f32 %v198_v53, %v5971_v63  ;;  %v227_v15 = vpop.f32.mrf.mxu3  ;;  %v474_v17 = vpop.f32.mrf.mxu0  ;;  %v5178_v53 = vld [vmem:[%s8342_s2 + $0x6c] sm:$0xf0]  ;;  %752 = vmatpush.bf16.msrb.mxu1 %v3979_v23 }
  0xbd   :  { %v6086_v27 = vadd.f32 %v227_v15, %v5973_v0  ;;  %v6088_v28 = vpop.f32.mrf.mxu1  ;;  %777 = vmatpush.bf16.msra.mxu3 %v4003_v47  ;;  %v3975_v3 = vor.u32 %v5178_v53, %v3974_v50  ;;  %v3982_v15 = vld [vmem:[%s8342_s2 + $0x68] sm:$0xf]  ;;  %v5179_v17 = vld [vmem:[%s8342_s2 + $0x74] sm:$0xf0]  ;;  %v5168_v47 = vld [vmem:[%s8342_s2 + $0x24] sm:$0xf] }
  0xbe   :  { %v3983_v24 = vor.u32 %v5179_v17, %v3982_v15  ;;  %v3944_v50 = vld [vmem:[%s8342_s2 + $0x30] sm:$0xf0]  ;;  %v5169_v15 = vld [vmem:[%s8342_s2 + $0x2c] sm:$0xf] }
  0xbf   :  { %739 = vmatpush.bf16.msra.mxu0 %v3975_v3  ;;  %v3947_v3 = vor.u32 %v5168_v47, %v3944_v50  ;;  %v5468_v17 = vpop.eup %5467  ;;  %v3955_v33 = vor.u32 %v5169_v15, %v3952_v52  ;;  %v155_v50 = vadd.f32 %v5969_v62, %v5987_v8 }
  0xc0   :  { %765 = vmatpush.bf16.msra.mxu2 %v3983_v24  ;;  %753 = vmatpush.bf16.msrb.mxu1 %v3963_v26  ;;  %v3951_v24 = vor.u32 %v5171_v11, %v3950_v55  ;;  %v5165_v26 = vld [vmem:[%s8342_s2 + $0xc] sm:$0xf]  ;;  %v521_v41 = vadd.f32 1.0, %v5468_v17 }
  0xc1   :  { %778 = vmatpush.bf16.msra.mxu3 %v3987_v31  ;;  %v5166_v31 = vld [vmem:[%s8342_s2 + $0xc] sm:$0xf0] }
  0xc2   :  { %v3927_v38 = vor.u32 %v5166_v31, %v3926_v29 }
  0xc3   :  { %v6120_v48 = vpop.f32.mrf.mxu2  ;;  %740 = vmatpush.bf16.msra.mxu0 %v3959_v35  ;;  %v3928_v35 = vld [vmem:[%s8342_s2 + $0x10] sm:$0xf0] }
  0xc4   :  { %v6131_v1 = vpop.f32.mrf.mxu3  ;;  %766 = vmatpush.bf16.msra.mxu2 %v3967_v40  ;;  %v3936_v40 = vld [vmem:[%s8342_s2 + $0x18] sm:$0xf0]  ;;  %754 = vmatpush.bf16.msrb.mxu1 %v3947_v3  ;;  %v3931_v42 = vor.u32 %v5164_v34, %v3928_v35  ;;  %v213_v3 = vadd.f32 %v5956_v10, %v5973_v0 }
  0xc5   :  { %v169_v22 = vpop.f32.mrf.mxu1  ;;  %779 = vmatpush.bf16.msra.mxu3 %v3971_v45  ;;  %v522_v45 = vmul.f32 0.5, %v521_v41 }
  0xc6   :  { %v6149_v30 = vadd.f32 %v169_v22, %v5987_v8 }
  0xc7   :  { %741 = vmatpush.bf16.msra.mxu0 %v3943_v60 }
  0xc8   :  { %767 = vmatpush.bf16.msra.mxu2 %v3951_v24  ;;  %755 = vmatpush.bf16.msrb.mxu1 %v3931_v42  ;;  %v4168_v42 = vld [vmem:[%s8342_s2 + $0xf0] sm:$0xf0] }
  0xc9   :  { %780 = vmatpush.bf16.msra.mxu3 %v3955_v33 }
  0xcb   :  { %v498_v53 = vpop.f32.mrf.mxu2  ;;  %742 = vmatpush.bf16.msra.mxu0 %v3927_v38 }
  0xcc   :  { %v517_v22 = vadd.f32 %v498_v53, %v184_v44  ;;  %v511_v23 = vpop.f32.mrf.mxu3  ;;  %v3939_v44 = vor.u32 %v5165_v26, %v3936_v40  ;;  %768 = vmatpush.bf16.msra.mxu2 %v3935_v43  ;;  %v5226_v26 = vld [vmem:[%s8342_s2 + $0xec] sm:$0xf0]  ;;  %v5224_v40 = vld [vmem:[%s8342_s2 + $0xe4] sm:$0xf]  ;;  %v4174_v43 = vld [vmem:[%s8342_s2 + $0xe8] sm:$0xf] }
  0xcd   :  { %v6207_v32 = vpop.f32.mrf.mxu1  ;;  %v518_v17 = vadd.f32 %v511_v23, %v213_v3  ;;  %v4166_v23 = vld [vmem:[%s8342_s2 + $0xe0] sm:$0xf] }
  0xce   :  { %5469 = vtanh.f32 %v517_v22  ;;  %781 = vmatpush.bf16.msra.mxu3 %v3939_v44  ;;  %v4167_v41 = vor.u32 %v5226_v26, %v4166_v23  ;;  %v5227_v44 = vld [vmem:[%s8342_s2 + $0xf4] sm:$0xf0] }
  0xcf   :  { %v528_v22 = vmul.f32 0.5, %v518_v17  ;;  %v4158_v17 = vld [vmem:[%s8342_s2 + $0xc8] sm:$0xf]  ;;  %v5219_v23 = vld [vmem:[%s8342_s2 + $0xb4] sm:$0xf0] }
  0xd0   :  { %1007 = vmatpush.bf16.msrb.mxu0 %v4167_v41  ;;  %v5217_v41 = vld [vmem:[%s8342_s2 + $0xac] sm:$0xf] }
  0xd3   :  { %v500_v46 = vpop.f32.mrf.mxu2 }
  0xd4   :  { %v5470_v47 = vpop.eup %5469  ;;  %v513_v53 = vpop.f32.mrf.mxu3  ;;  %v4175_v46 = vor.u32 %v5227_v44, %v4174_v43  ;;  %v4118_v44 = vld [vmem:[%s8342_s2 + $0x80] sm:$0xf] }
  0xd5   :  { %v533_v60 = vmul.f32 %v5470_v47, %v522_v45  ;;  %v485_v55 = vpop.f32.mrf.mxu1  ;;  %v4171_v45 = vor.u32 %v5224_v40, %v4168_v42  ;;  %v5225_v47 = vld [vmem:[%s8342_s2 + $0xec] sm:$0xf]  ;;  %v4144_v42 = vld [vmem:[%s8342_s2 + $0xb8] sm:$0xf0] }
  0xd6   :  { %v516_v11 = vadd.f32 %v485_v55, %v155_v50  ;;  %v4176_v50 = vld [vmem:[%s8342_s2 + $0xf8] sm:$0xf0]  ;;  %1033 = vmatpush.bf16.msrb.mxu2 %v4175_v46  ;;  %v5222_v55 = vld [vmem:[%s8342_s2 + $0xcc] sm:$0xf0]  ;;  %v4147_v43 = vor.u32 %v5217_v41, %v4144_v42  ;;  %v5212_v46 = vld [vmem:[%s8342_s2 + $0x84] sm:$0xf] }
  0xd7   :  { %v4179_v53 = vor.u32 %v5225_v47, %v4176_v50  ;;  %1020 = vmatpush.bf16.msra.mxu1 %v4171_v45  ;;  %v5214_v45 = vld [vmem:[%s8342_s2 + $0x8c] sm:$0xf0]  ;;  %v4120_v50 = vld [vmem:[%s8342_s2 + $0x90] sm:$0xf0] }
  0xd8   :  { %v523_v15 = vmul.f32 0.5, %v516_v11  ;;  %v5220_v11 = vld [vmem:[%s8342_s2 + $0xc4] sm:$0xf]  ;;  %v4119_v47 = vor.u32 %v5214_v45, %v4118_v44  ;;  %v4088_v42 = vld [vmem:[%s8342_s2 + $0x50] sm:$0xf0] }
  0xd9   :  { %1046 = vmatpush.bf16.msrb.mxu3 %v4179_v53  ;;  %v4126_v53 = vld [vmem:[%s8342_s2 + $0x88] sm:$0xf]  ;;  %v5207_v44 = vld [vmem:[%s8342_s2 + $0x54] sm:$0xf0] }
  0xda   :  { %5471 = vtanh.f32 %v523_v15  ;;  %v4152_v15 = vld [vmem:[%s8342_s2 + $0xd0] sm:$0xf0] }
  0xdb   :  { %5473 = vtanh.f32 %v528_v22  ;;  %v5223_v22 = vld [vmem:[%s8342_s2 + $0xd4] sm:$0xf0] }
  0xdd   :  { %v487_v24 = vpop.f32.mrf.mxu1 }
  0xde   :  { %v4155_v24 = vor.u32 %v5220_v11, %v4152_v15  ;;  %v4128_v15 = vld [vmem:[%s8342_s2 + $0x98] sm:$0xf0] }
  0xe0   :  { %v5472_v52 = vpop.eup %5471  ;;  %1021 = vmatpush.bf16.msra.mxu1 %v4155_v24  ;;  %v5210_v24 = vld [vmem:[%s8342_s2 + $0x6c] sm:$0xf0] }
  0xe1   :  { %v525_v29 = vadd.f32 1.0, %v5472_v52  ;;  %v5474_v62 = vpop.eup %5473  ;;  %v4159_v52 = vor.u32 %v5223_v22, %v4158_v17  ;;  %v4102_v22 = vld [vmem:[%s8342_s2 + $0x60] sm:$0xf] }
  0xe2   :  { %v530_v35 = vadd.f32 1.0, %v5474_v62  ;;  %v4134_v62 = vld [vmem:[%s8342_s2 + $0xa0] sm:$0xf] }
  0xe3   :  { %v526_v31 = vmul.f32 0.5, %v525_v29  ;;  %v5221_v29 = vld [vmem:[%s8342_s2 + $0xcc] sm:$0xf]  ;;  %1034 = vmatpush.bf16.msrb.mxu2 %v4159_v52  ;;  %v5208_v52 = vld [vmem:[%s8342_s2 + $0x64] sm:$0xf] }
  0xe4   :  { %v531_v37 = vmul.f32 0.5, %v530_v35  ;;  %v5218_v35 = vld [vmem:[%s8342_s2 + $0xac] sm:$0xf0] }
  0xe5   :  { %v532_v33 = vmul.f32 0.0, %v526_v31  ;;  %v4160_v31 = vld [vmem:[%s8342_s2 + $0xd8] sm:$0xf0] }
  0xe7   :  { %v6231_v34 = vadd.f32 %v533_v60, %v532_v33  ;;  %v4150_v60 = vld [vmem:[%s8342_s2 + $0xc0] sm:$0xf]  ;;  %v4163_v33 = vor.u32 %v5221_v29, %v4160_v31  ;;  %v4103_v29 = vor.u32 %v5210_v24, %v4102_v22  ;;  %v4104_v31 = vld [vmem:[%s8342_s2 + $0x70] sm:$0xf0]  ;;  %v5203_v22 = vld [vmem:[%s8342_s2 + $0x34] sm:$0xf0] }
  0xe8   :  { %v4151_v3 = vor.u32 %v5222_v55, %v4150_v60  ;;  %v5215_v60 = vld [vmem:[%s8342_s2 + $0x94] sm:$0xf0]  ;;  %v4123_v55 = vor.u32 %v5212_v46, %v4120_v50  ;;  %v4096_v50 = vld [vmem:[%s8342_s2 + $0x58] sm:$0xf0] }
  0xe9   :  { %5475 = vtanh.f32 %v6231_v34  ;;  %1047 = vmatpush.bf16.msrb.mxu3 %v4163_v33  ;;  %v4127_v11 = vor.u32 %v5215_v60, %v4126_v53  ;;  %v4110_v33 = vld [vmem:[%s8342_s2 + $0x68] sm:$0xf]  ;;  %v4070_v60 = vld [vmem:[%s8342_s2 + $0x20] sm:$0xf] }
  0xea   :  { %1008 = vmatpush.bf16.msrb.mxu0 %v4151_v3  ;;  %v5213_v3 = vld [vmem:[%s8342_s2 + $0x8c] sm:$0xf] }
  0xeb   :  { %v4131_v17 = vor.u32 %v5213_v3, %v4128_v15  ;;  %v4072_v15 = vld [vmem:[%s8342_s2 + $0x30] sm:$0xf0] }
  0xed   :  { %1048 = vmatpush.bf16.msrb.mxu3 %v4147_v43  ;;  %v4094_v43 = vld [vmem:[%s8342_s2 + $0x48] sm:$0xf] }
  0xee   :  { %v4095_v46 = vor.u32 %v5207_v44, %v4094_v43  ;;  %v128_v44 = vadd.f32 %v5958_v56, %v5947_v51 }
  0xef   :  { %v5476_v38 = vpop.eup %5475 }
  0xf0   :  { %v536_v39 = vmul.f32 %v5476_v38, %v531_v37  ;;  %v5216_v37 = vld [vmem:[%s8342_s2 + $0xa4] sm:$0xf]  ;;  %v4135_v38 = vor.u32 %v5218_v35, %v4134_v62  ;;  %v5211_v62 = vld [vmem:[%s8342_s2 + $0x74] sm:$0xf0]  ;;  %v4107_v35 = vor.u32 %v5208_v52, %v4104_v31  ;;  %v4080_v31 = vld [vmem:[%s8342_s2 + $0x38] sm:$0xf0] }
  0xf1   :  { %1049 = vmatpush.bf16.msrb.mxu3 %v4131_v17  ;;  %v4078_v17 = vld [vmem:[%s8342_s2 + $0x28] sm:$0xf] }
  0xf2   :  { %v537_v10 = vpack.c.bf16 %v536_v39, %v536_v39  ;;  %v4136_v39 = vld [vmem:[%s8342_s2 + $0xb0] sm:$0xf0]  ;;  %1009 = vmatpush.bf16.msrb.mxu0 %v4135_v38  ;;  %v5209_v38 = vld [vmem:[%s8342_s2 + $0x6c] sm:$0xf]  ;;  %v4079_v52 = vor.u32 %v5203_v22, %v4078_v17 }
  0xf3   :  { %v4139_v26 = vor.u32 %v5216_v37, %v4136_v39  ;;  %v4111_v37 = vor.u32 %v5211_v62, %v4110_v33  ;;  %v4112_v39 = vld [vmem:[%s8342_s2 + $0x78] sm:$0xf0]  ;;  %v4054_v62 = vld [vmem:[%s8342_s2] sm:$0xf] }
  0xf4   :  { %538 = vst [vmem:[#allocation5] sm:$0xf] %v537_v10  ;;  %743 = vmatmul.bf16.vlgmr.msra.gmra.mxu0 %v537_v10  ;;  %756 = vmatmul.bf16.vlgmr.msrb.gmra.mxu1 %v537_v10 }
  0xf5   :  { %769 = vmatmul.bf16.vlgmr.msra.gmra.mxu2 %v537_v10  ;;  %782 = vmatmul.bf16.vlgmr.msra.gmra.mxu3 %v537_v10  ;;  %v4142_v10 = vld [vmem:[%s8342_s2 + $0xa8] sm:$0xf] }
  0xf6   :  { %v4143_v40 = vor.u32 %v5219_v23, %v4142_v10  ;;  %1022 = vmatpush.bf16.msra.mxu1 %v4139_v26  ;;  %1010 = vmatpush.bf16.msrb.mxu0 %v4119_v47  ;;  %v4115_v10 = vor.u32 %v5209_v38, %v4112_v39  ;;  %v4086_v23 = vld [vmem:[%s8342_s2 + $0x40] sm:$0xf]  ;;  %v5206_v26 = vld [vmem:[%s8342_s2 + $0x4c] sm:$0xf0]  ;;  %v5205_v47 = vld [vmem:[%s8342_s2 + $0x4c] sm:$0xf] }
  0xf7   :  { %v4087_v41 = vor.u32 %v5206_v26, %v4086_v23  ;;  %v4099_v53 = vor.u32 %v5205_v47, %v4096_v50  ;;  %v4056_v39 = vld [vmem:[%s8342_s2 + $0x10] sm:$0xf0]  ;;  %v5199_v23 = vld [vmem:[%s8342_s2 + $0x14] sm:$0xf0] }
  0xf8   :  { %1035 = vmatpush.bf16.msrb.mxu2 %v4143_v40  ;;  %v5204_v40 = vld [vmem:[%s8342_s2 + $0x44] sm:$0xf]  ;;  %1050 = vmatpush.bf16.msrb.mxu3 %v4115_v10  ;;  %v4062_v10 = vld [vmem:[%s8342_s2 + $0x8] sm:$0xf] }
  0xf9   :  { %v4091_v45 = vor.u32 %v5204_v40, %v4088_v42  ;;  %v4063_v40 = vor.u32 %v5199_v23, %v4062_v10  ;;  %v4064_v42 = vld [vmem:[%s8342_s2 + $0x18] sm:$0xf0] }
  0xfa   :  { %1023 = vmatpush.bf16.msra.mxu1 %v4123_v55  ;;  %1011 = vmatpush.bf16.msrb.mxu0 %v4103_v29  ;;  %v5202_v55 = vld [vmem:[%s8342_s2 + $0x2c] sm:$0xf0]  ;;  %v5201_v29 = vld [vmem:[%s8342_s2 + $0x2c] sm:$0xf] }
  0xfb   :  { %v4071_v3 = vor.u32 %v5202_v55, %v4070_v60  ;;  %v4083_v33 = vor.u32 %v5201_v29, %v4080_v31 }
  0xfc   :  { %1036 = vmatpush.bf16.msrb.mxu2 %v4127_v11  ;;  %v5200_v11 = vld [vmem:[%s8342_s2 + $0x24] sm:$0xf]  ;;  %1051 = vmatpush.bf16.msrb.mxu3 %v4099_v53 }
  0xfd   :  { %v4075_v24 = vor.u32 %v5200_v11, %v4072_v15  ;;  %v186_v11 = vadd.f32 %v5962_v58, %v5971_v63 }
  0xfe   :  { %1024 = vmatpush.bf16.msra.mxu1 %v4107_v35  ;;  %1012 = vmatpush.bf16.msrb.mxu0 %v4087_v41  ;;  %v5198_v35 = vld [vmem:[%s8342_s2 + $0xc] sm:$0xf0]  ;;  %v5197_v41 = vld [vmem:[%s8342_s2 + $0xc] sm:$0xf] }
  0xff   :  { %v4055_v38 = vor.u32 %v5198_v35, %v4054_v62  ;;  %v4067_v43 = vor.u32 %v5197_v41, %v4064_v42 }
 0x100   :  { %1037 = vmatpush.bf16.msrb.mxu2 %v4111_v37  ;;  %v5196_v37 = vld [vmem:[%s8342_s2 + $0x4] sm:$0xf]  ;;  %1052 = vmatpush.bf16.msrb.mxu3 %v4083_v33 }
 0x101   :  { %v4059_v26 = vor.u32 %v5196_v37, %v4056_v39 }
 0x102   :  { %1025 = vmatpush.bf16.msra.mxu1 %v4091_v45  ;;  %1013 = vmatpush.bf16.msrb.mxu0 %v4071_v3  ;;  %v157_v45 = vadd.f32 %v5983_v6, %v5987_v8  ;;  %v215_v3 = vadd.f32 %v5964_v59, %v5973_v0 }
 0x104   :  { %1038 = vmatpush.bf16.msrb.mxu2 %v4095_v46  ;;  %1053 = vmatpush.bf16.msrb.mxu3 %v4067_v43 }
 0x106   :  { %1026 = vmatpush.bf16.msra.mxu1 %v4075_v24  ;;  %1014 = vmatpush.bf16.msrb.mxu0 %v4055_v38 }
 0x108   :  { %1039 = vmatpush.bf16.msrb.mxu2 %v4079_v52 }
 0x10a   :  { %1027 = vmatpush.bf16.msra.mxu1 %v4059_v26 }
 0x10c   :  { %1040 = vmatpush.bf16.msrb.mxu2 %v4063_v40 }
 0x171   :  { %v744_v46 = vpop.f32.mrf.mxu0  ;;  %v757_v47 = vpop.f32.mrf.mxu1 }
 0x172   :  { %v787_v50 = vadd.f32 %v744_v46, %v128_v44  ;;  %v788_v53 = vadd.f32 %v757_v47, %v157_v45  ;;  %v5258_v45 = vld [vmem:[%s8342_s2 + $0xec] sm:$0xf0]  ;;  %v5256_v46 = vld [vmem:[%s8342_s2 + $0xe4] sm:$0xf] }
 0x174   :  { %v791_v60 = vmul.f32 0.5, %v787_v50  ;;  %v795_v55 = vmul.f32 0.5, %v788_v53  ;;  %v4296_v50 = vld [vmem:[%s8342_s2 + $0xf0] sm:$0xf0]  ;;  %v4302_v53 = vld [vmem:[%s8342_s2 + $0xe8] sm:$0xf] }
 0x176   :  { %5477 = vtanh.f32 %v791_v60  ;;  %v5259_v60 = vld [vmem:[%s8342_s2 + $0xf4] sm:$0xf0] }
 0x177   :  { %5479 = vtanh.f32 %v795_v55  ;;  %v4299_v55 = vor.u32 %v5256_v46, %v4296_v50  ;;  %v4246_v46 = vld [vmem:[%s8342_s2 + $0x80] sm:$0xf]  ;;  %v5244_v50 = vld [vmem:[%s8342_s2 + $0x84] sm:$0xf] }
 0x178   :  { %v770_v15 = vpop.f32.mrf.mxu2  ;;  %v783_v56 = vpop.f32.mrf.mxu3 }
 0x179   :  { %v789_v17 = vadd.f32 %v770_v15, %v186_v11  ;;  %v790_v22 = vadd.f32 %v783_v56, %v215_v3  ;;  %v746_v6 = vpop.f32.mrf.mxu0  ;;  %v759_v24 = vpop.f32.mrf.mxu1  ;;  %v4303_v11 = vor.u32 %v5259_v60, %v4302_v53  ;;  %v5257_v3 = vld [vmem:[%s8342_s2 + $0xec] sm:$0xf]  ;;  %v4304_v15 = vld [vmem:[%s8342_s2 + $0xf8] sm:$0xf0]  ;;  %1292 = vmatpush.bf16.msrb.mxu1 %v4299_v55  ;;  %v4248_v60 = vld [vmem:[%s8342_s2 + $0x90] sm:$0xf0] }
 0x17a   :  { %v4307_v56 = vor.u32 %v5257_v3, %v4304_v15  ;;  %v5252_v6 = vld [vmem:[%s8342_s2 + $0xc4] sm:$0xf]  ;;  %v4254_v55 = vld [vmem:[%s8342_s2 + $0x88] sm:$0xf]  ;;  %v4251_v3 = vor.u32 %v5244_v50, %v4248_v60  ;;  %v4198_v50 = vld [vmem:[%s8342_s2 + $0x20] sm:$0xf] }
 0x17b   :  { %5481 = vtanh.f32 %v789_v17  ;;  %v800_v52 = vmul.f32 0.5, %v790_v22  ;;  %1305 = vmatpush.bf16.msra.mxu2 %v4303_v11  ;;  %v4278_v17 = vld [vmem:[%s8342_s2 + $0xc0] sm:$0xf]  ;;  %v5254_v22 = vld [vmem:[%s8342_s2 + $0xcc] sm:$0xf0] }
 0x17c   :  { %v5478_v29 = vpop.eup %5477  ;;  %1318 = vmatpush.bf16.msra.mxu3 %v4307_v56  ;;  %v4279_v24 = vor.u32 %v5254_v22, %v4278_v17  ;;  %v5247_v11 = vld [vmem:[%s8342_s2 + $0x94] sm:$0xf0]  ;;  %v5245_v56 = vld [vmem:[%s8342_s2 + $0x8c] sm:$0xf]  ;;  %v4256_v17 = vld [vmem:[%s8342_s2 + $0x98] sm:$0xf0] }
 0x17d   :  { %v5480_v31 = vpop.eup %5479  ;;  %v793_v33 = vadd.f32 1.0, %v5478_v29  ;;  %5483 = vtanh.f32 %v800_v52  ;;  %v4280_v52 = vld [vmem:[%s8342_s2 + $0xd0] sm:$0xf0]  ;;  %v4286_v29 = vld [vmem:[%s8342_s2 + $0xc8] sm:$0xf]  ;;  %v4255_v15 = vor.u32 %v5247_v11, %v4254_v55  ;;  %v4259_v22 = vor.u32 %v5245_v56, %v4256_v17 }
 0x17e   :  { %v797_v62 = vadd.f32 1.0, %v5480_v31  ;;  %v5255_v31 = vld [vmem:[%s8342_s2 + $0xd4] sm:$0xf0]  ;;  %v5232_v60 = vld [vmem:[%s8342_s2 + $0x24] sm:$0xf] }
 0x17f   :  { %v794_v35 = vmul.f32 0.5, %v793_v33  ;;  %v4283_v33 = vor.u32 %v5252_v6, %v4280_v52  ;;  %v4230_v6 = vld [vmem:[%s8342_s2 + $0x60] sm:$0xf]  ;;  %v5240_v52 = vld [vmem:[%s8342_s2 + $0x64] sm:$0xf] }
 0x180   :  { %v798_v37 = vmul.f32 0.5, %v797_v62  ;;  %v772_v58 = vpop.f32.mrf.mxu2  ;;  %v785_v38 = vpop.f32.mrf.mxu3  ;;  %v4287_v62 = vor.u32 %v5255_v31, %v4286_v29  ;;  %v4232_v31 = vld [vmem:[%s8342_s2 + $0x70] sm:$0xf0] }
 0x181   :  { %v5482_v39 = vpop.eup %5481  ;;  %1293 = vmatpush.bf16.msrb.mxu1 %v4283_v33  ;;  %v4262_v38 = vld [vmem:[%s8342_s2 + $0xa0] sm:$0xf]  ;;  %v4238_v33 = vld [vmem:[%s8342_s2 + $0x68] sm:$0xf]  ;;  %v4200_v11 = vld [vmem:[%s8342_s2 + $0x30] sm:$0xf0] }
 0x182   :  { %v804_v59 = vmul.f32 %v798_v37, %v6231_v34  ;;  %v805_v10 = vmul.f32 %v5482_v39, %v794_v35  ;;  %v4294_v34 = vld [vmem:[%s8342_s2 + $0xe0] sm:$0xf]  ;;  %v5253_v35 = vld [vmem:[%s8342_s2 + $0xcc] sm:$0xf]  ;;  %v4288_v37 = vld [vmem:[%s8342_s2 + $0xd8] sm:$0xf0]  ;;  %1306 = vmatpush.bf16.msra.mxu2 %v4287_v62  ;;  %v4203_v56 = vor.u32 %v5232_v60, %v4200_v11 }
 0x183   :  { %v5484_v23 = vpop.eup %5483  ;;  %v4295_v47 = vor.u32 %v5258_v45, %v4294_v34  ;;  %v4291_v58 = vor.u32 %v5253_v35, %v4288_v37  ;;  %v5250_v39 = vld [vmem:[%s8342_s2 + $0xac] sm:$0xf0]  ;;  %v4272_v34 = vld [vmem:[%s8342_s2 + $0xb8] sm:$0xf0]  ;;  %v5243_v62 = vld [vmem:[%s8342_s2 + $0x74] sm:$0xf0]  ;;  %v4235_v35 = vor.u32 %v5240_v52, %v4232_v31 }
 0x184   :  { %v6435_v26 = vadd.f32 %v805_v10, %v804_v59  ;;  %v802_v40 = vadd.f32 1.0, %v5484_v23  ;;  %v5248_v59 = vld [vmem:[%s8342_s2 + $0xa4] sm:$0xf]  ;;  %v4263_v10 = vor.u32 %v5250_v39, %v4262_v38  ;;  %v4264_v23 = vld [vmem:[%s8342_s2 + $0xb0] sm:$0xf0]  ;;  %v4239_v37 = vor.u32 %v5243_v62, %v4238_v33 }
 0x185   :  { %1279 = vmatpush.bf16.msra.mxu0 %v4295_v47  ;;  %1319 = vmatpush.bf16.msra.mxu3 %v4291_v58  ;;  %v5246_v47 = vld [vmem:[%s8342_s2 + $0x8c] sm:$0xf0]  ;;  %v5241_v58 = vld [vmem:[%s8342_s2 + $0x6c] sm:$0xf]  ;;  %v4240_v38 = vld [vmem:[%s8342_s2 + $0x78] sm:$0xf0] }
 0x186   :  { %5485 = vtanh.f32 %v6435_v26  ;;  %v803_v41 = vmul.f32 0.5, %v802_v40  ;;  %v4270_v40 = vld [vmem:[%s8342_s2 + $0xa8] sm:$0xf]  ;;  %v4247_v53 = vor.u32 %v5246_v47, %v4246_v46  ;;  %v4243_v39 = vor.u32 %v5241_v58, %v4240_v38  ;;  %v4224_v46 = vld [vmem:[%s8342_s2 + $0x58] sm:$0xf0] }
 0x187   :  { %v4182_v52 = vld [vmem:[%s8342_s2] sm:$0xf]  ;;  %v5228_v31 = vld [vmem:[%s8342_s2 + $0x4] sm:$0xf]  ;;  %v4184_v62 = vld [vmem:[%s8342_s2 + $0x10] sm:$0xf0] }
 0x188   :  { %v4187_v58 = vor.u32 %v5228_v31, %v4184_v62 }
 0x189   :  { %1280 = vmatpush.bf16.msra.mxu0 %v4279_v24  ;;  %v5242_v24 = vld [vmem:[%s8342_s2 + $0x6c] sm:$0xf0] }
 0x18a   :  { %v4231_v29 = vor.u32 %v5242_v24, %v4230_v6  ;;  %v4208_v6 = vld [vmem:[%s8342_s2 + $0x38] sm:$0xf0] }
 0x18c   :  { %v5486_v42 = vpop.eup %5485 }
 0x18d   :  { %v808_v43 = vmul.f32 %v5486_v42, %v803_v41  ;;  %v5251_v41 = vld [vmem:[%s8342_s2 + $0xb4] sm:$0xf0]  ;;  %v4267_v42 = vor.u32 %v5248_v59, %v4264_v23  ;;  %1281 = vmatpush.bf16.msra.mxu0 %v4263_v10  ;;  %v4214_v59 = vld [vmem:[%s8342_s2 + $0x40] sm:$0xf]  ;;  %v5238_v10 = vld [vmem:[%s8342_s2 + $0x4c] sm:$0xf0] }
 0x18e   :  { %v5236_v23 = vld [vmem:[%s8342_s2 + $0x44] sm:$0xf] }
 0x18f   :  { %v809_v44 = vpack.c.bf16 %v808_v43, %v808_v43  ;;  %v4271_v43 = vor.u32 %v5251_v41, %v4270_v40  ;;  %1294 = vmatpush.bf16.msrb.mxu1 %v4267_v42  ;;  %v4215_v40 = vor.u32 %v5238_v10, %v4214_v59  ;;  %v4216_v41 = vld [vmem:[%s8342_s2 + $0x50] sm:$0xf0]  ;;  %v4222_v42 = vld [vmem:[%s8342_s2 + $0x48] sm:$0xf]  ;;  %v4192_v59 = vld [vmem:[%s8342_s2 + $0x18] sm:$0xf0] }
 0x191   :  { %810 = vst [vmem:[#allocation5 + $0x4] sm:$0xf] %v809_v44  ;;  %1015 = vmatmul.bf16.vlgmr.msrb.gmra.mxu0 %v809_v44  ;;  %1028 = vmatmul.bf16.vlgmr.msra.gmra.mxu1 %v809_v44 }
 0x192   :  { %1041 = vmatmul.bf16.vlgmr.msrb.gmra.mxu2 %v809_v44  ;;  %1054 = vmatmul.bf16.vlgmr.msrb.gmra.mxu3 %v809_v44  ;;  %v5249_v44 = vld [vmem:[%s8342_s2 + $0xac] sm:$0xf] }
 0x193   :  { %v4275_v45 = vor.u32 %v5249_v44, %v4272_v34  ;;  %1307 = vmatpush.bf16.msra.mxu2 %v4271_v43  ;;  %1282 = vmatpush.bf16.msra.mxu0 %v4247_v53  ;;  %v5239_v43 = vld [vmem:[%s8342_s2 + $0x54] sm:$0xf0]  ;;  %v4219_v44 = vor.u32 %v5236_v23, %v4216_v41  ;;  %v5234_v53 = vld [vmem:[%s8342_s2 + $0x2c] sm:$0xf0] }
 0x194   :  { %1295 = vmatpush.bf16.msrb.mxu1 %v4251_v3  ;;  %v4223_v34 = vor.u32 %v5239_v43, %v4222_v42  ;;  %v4199_v55 = vor.u32 %v5234_v53, %v4198_v50  ;;  %v4206_v3 = vld [vmem:[%s8342_s2 + $0x28] sm:$0xf] }
 0x195   :  { %1320 = vmatpush.bf16.msra.mxu3 %v4275_v45  ;;  %v5237_v45 = vld [vmem:[%s8342_s2 + $0x4c] sm:$0xf] }
 0x196   :  { %v4227_v47 = vor.u32 %v5237_v45, %v4224_v46 }
 0x197   :  { %1308 = vmatpush.bf16.msra.mxu2 %v4255_v15  ;;  %1283 = vmatpush.bf16.msra.mxu0 %v4231_v29  ;;  %v5235_v15 = vld [vmem:[%s8342_s2 + $0x34] sm:$0xf0]  ;;  %v5230_v29 = vld [vmem:[%s8342_s2 + $0xc] sm:$0xf0] }
 0x198   :  { %1296 = vmatpush.bf16.msrb.mxu1 %v4235_v35  ;;  %v4207_v17 = vor.u32 %v5235_v15, %v4206_v3  ;;  %v4183_v33 = vor.u32 %v5230_v29, %v4182_v52  ;;  %v4190_v35 = vld [vmem:[%s8342_s2 + $0x8] sm:$0xf] }
 0x199   :  { %1321 = vmatpush.bf16.msra.mxu3 %v4259_v22  ;;  %v5233_v22 = vld [vmem:[%s8342_s2 + $0x2c] sm:$0xf] }
 0x19a   :  { %v4211_v24 = vor.u32 %v5233_v22, %v4208_v6 }
 0x19b   :  { %1309 = vmatpush.bf16.msra.mxu2 %v4239_v37  ;;  %1284 = vmatpush.bf16.msra.mxu0 %v4215_v40  ;;  %v5231_v37 = vld [vmem:[%s8342_s2 + $0x14] sm:$0xf0] }
 0x19c   :  { %1297 = vmatpush.bf16.msrb.mxu1 %v4219_v44  ;;  %v4191_v38 = vor.u32 %v5231_v37, %v4190_v35  ;;  %v5290_v35 = vld [vmem:[%s8342_s2 + $0xec] sm:$0xf0]  ;;  %v5288_v37 = vld [vmem:[%s8342_s2 + $0xe4] sm:$0xf] }
 0x19d   :  { %1322 = vmatpush.bf16.msra.mxu3 %v4243_v39  ;;  %v5229_v39 = vld [vmem:[%s8342_s2 + $0xc] sm:$0xf] }
 0x19e   :  { %v4195_v10 = vor.u32 %v5229_v39, %v4192_v59  ;;  %v4430_v39 = vld [vmem:[%s8342_s2 + $0xe8] sm:$0xf]  ;;  %v5291_v59 = vld [vmem:[%s8342_s2 + $0xf4] sm:$0xf0] }
 0x19f   :  { %1310 = vmatpush.bf16.msra.mxu2 %v4223_v34  ;;  %1285 = vmatpush.bf16.msra.mxu0 %v4199_v55 }
 0x1a0   :  { %1298 = vmatpush.bf16.msrb.mxu1 %v4203_v56 }
 0x1a1   :  { %1323 = vmatpush.bf16.msra.mxu3 %v4227_v47 }
 0x1a3   :  { %1311 = vmatpush.bf16.msra.mxu2 %v4207_v17  ;;  %1286 = vmatpush.bf16.msra.mxu0 %v4183_v33 }
 0x1a4   :  { %1299 = vmatpush.bf16.msrb.mxu1 %v4187_v58 }
 0x1a5   :  { %1324 = vmatpush.bf16.msra.mxu3 %v4211_v24 }
 0x1a7   :  { %1312 = vmatpush.bf16.msra.mxu2 %v4191_v38  ;;  %v4424_v38 = vld [vmem:[%s8342_s2 + $0xf0] sm:$0xf0] }
 0x1a9   :  { %1325 = vmatpush.bf16.msra.mxu3 %v4195_v10  ;;  %v4427_v10 = vor.u32 %v5288_v37, %v4424_v38  ;;  %v4376_v37 = vld [vmem:[%s8342_s2 + $0x90] sm:$0xf0]  ;;  %v5279_v38 = vld [vmem:[%s8342_s2 + $0x94] sm:$0xf0] }
 0x1ab   :  { %1564 = vmatpush.bf16.msra.mxu1 %v4427_v10  ;;  %v5277_v10 = vld [vmem:[%s8342_s2 + $0x8c] sm:$0xf] }
 0x20e   :  { %v1016_v23 = vpop.f32.mrf.mxu0  ;;  %v1029_v40 = vpop.f32.mrf.mxu1 }
 0x20f   :  { %v1059_v41 = vadd.f32 %v1016_v23, %v5967_v61  ;;  %v1060_v42 = vadd.f32 %v1029_v40, %v5995_v14  ;;  %v4431_v23 = vor.u32 %v5291_v59, %v4430_v39  ;;  %v5289_v40 = vld [vmem:[%s8342_s2 + $0xec] sm:$0xf] }
 0x211   :  { %v1063_v43 = vmul.f32 0.5, %v1059_v41  ;;  %v1067_v44 = vmul.f32 0.5, %v1060_v42  ;;  %v4432_v41 = vld [vmem:[%s8342_s2 + $0xf8] sm:$0xf0]  ;;  %1577 = vmatpush.bf16.msrb.mxu2 %v4431_v23 }
 0x212   :  { %v4435_v42 = vor.u32 %v5289_v40, %v4432_v41  ;;  %v4384_v23 = vld [vmem:[%s8342_s2 + $0x98] sm:$0xf0]  ;;  %v4358_v41 = vld [vmem:[%s8342_s2 + $0x60] sm:$0xf] }
 0x213   :  { %5487 = vtanh.f32 %v1063_v43  ;;  %v4406_v43 = vld [vmem:[%s8342_s2 + $0xc0] sm:$0xf]  ;;  %v4387_v40 = vor.u32 %v5277_v10, %v4384_v23 }
 0x214   :  { %5489 = vtanh.f32 %v1067_v44  ;;  %v5286_v44 = vld [vmem:[%s8342_s2 + $0xcc] sm:$0xf0]  ;;  %1590 = vmatpush.bf16.msrb.mxu3 %v4435_v42  ;;  %v4310_v23 = vld [vmem:[%s8342_s2] sm:$0xf] }
 0x215   :  { %v1042_v34 = vpop.f32.mrf.mxu2  ;;  %v1055_v45 = vpop.f32.mrf.mxu3  ;;  %v5274_v42 = vld [vmem:[%s8342_s2 + $0x6c] sm:$0xf0] }
 0x216   :  { %v1061_v46 = vadd.f32 %v1042_v34, %v5976_v2  ;;  %v1062_v47 = vadd.f32 %v1055_v45, %v5981_v5  ;;  %v1018_v50 = vpop.f32.mrf.mxu0  ;;  %v1031_v53 = vpop.f32.mrf.mxu1  ;;  %v5284_v34 = vld [vmem:[%s8342_s2 + $0xc4] sm:$0xf]  ;;  %v4407_v45 = vor.u32 %v5286_v44, %v4406_v43  ;;  %v4359_v44 = vor.u32 %v5274_v42, %v4358_v41 }
 0x217   :  { %v5287_v50 = vld [vmem:[%s8342_s2 + $0xd4] sm:$0xf0]  ;;  %v5272_v43 = vld [vmem:[%s8342_s2 + $0x64] sm:$0xf] }
 0x218   :  { %5491 = vtanh.f32 %v1061_v46  ;;  %v1072_v60 = vmul.f32 0.5, %v1062_v47  ;;  %v4408_v46 = vld [vmem:[%s8342_s2 + $0xd0] sm:$0xf0]  ;;  %v4414_v47 = vld [vmem:[%s8342_s2 + $0xc8] sm:$0xf] }
 0x219   :  { %v5488_v55 = vpop.eup %5487  ;;  %v4411_v53 = vor.u32 %v5284_v34, %v4408_v46  ;;  %v4360_v34 = vld [vmem:[%s8342_s2 + $0x70] sm:$0xf0]  ;;  %v5275_v46 = vld [vmem:[%s8342_s2 + $0x74] sm:$0xf0]  ;;  %v5260_v41 = vld [vmem:[%s8342_s2 + $0x4] sm:$0xf] }
 0x21a   :  { %v5490_v11 = vpop.eup %5489  ;;  %v1065_v3 = vadd.f32 1.0, %v5488_v55  ;;  %5493 = vtanh.f32 %v1072_v60  ;;  %v4415_v60 = vor.u32 %v5287_v50, %v4414_v47  ;;  %v5285_v55 = vld [vmem:[%s8342_s2 + $0xcc] sm:$0xf]  ;;  %v4363_v47 = vor.u32 %v5272_v43, %v4360_v34  ;;  %v4312_v43 = vld [vmem:[%s8342_s2 + $0x10] sm:$0xf0] }
 0x21b   :  { %v1069_v61 = vadd.f32 1.0, %v5490_v11  ;;  %v4416_v11 = vld [vmem:[%s8342_s2 + $0xd8] sm:$0xf0]  ;;  %1565 = vmatpush.bf16.msra.mxu1 %v4411_v53  ;;  %v5273_v53 = vld [vmem:[%s8342_s2 + $0x6c] sm:$0xf] }
 0x21c   :  { %v1066_v14 = vmul.f32 0.5, %v1065_v3  ;;  %v4419_v3 = vor.u32 %v5285_v55, %v4416_v11  ;;  %1578 = vmatpush.bf16.msrb.mxu2 %v4415_v60  ;;  %v4368_v60 = vld [vmem:[%s8342_s2 + $0x78] sm:$0xf0]  ;;  %v4342_v11 = vld [vmem:[%s8342_s2 + $0x40] sm:$0xf] }
 0x21d   :  { %v1070_v15 = vmul.f32 0.5, %v1069_v61  ;;  %v1044_v56 = vpop.f32.mrf.mxu2  ;;  %v1057_v17 = vpop.f32.mrf.mxu3  ;;  %v4390_v61 = vld [vmem:[%s8342_s2 + $0xa0] sm:$0xf]  ;;  %v4371_v55 = vor.u32 %v5273_v53, %v4368_v60  ;;  %v5263_v34 = vld [vmem:[%s8342_s2 + $0x14] sm:$0xf0]  ;;  %v133_v60 = vadd.f32 %v5978_v4, %v5947_v51 }
 0x21e   :  { %v5492_v22 = vpop.eup %5491  ;;  %1591 = vmatpush.bf16.msrb.mxu3 %v4419_v3  ;;  %v4392_v17 = vld [vmem:[%s8342_s2 + $0xb0] sm:$0xf0]  ;;  %v5270_v3 = vld [vmem:[%s8342_s2 + $0x4c] sm:$0xf0] }
 0x21f   :  { %v1076_v6 = vmul.f32 %v1070_v15, %v6435_v26  ;;  %v1077_v24 = vmul.f32 %v5492_v22, %v1066_v14  ;;  %v4422_v26 = vld [vmem:[%s8342_s2 + $0xe0] sm:$0xf]  ;;  %v5282_v14 = vld [vmem:[%s8342_s2 + $0xac] sm:$0xf0]  ;;  %v5280_v15 = vld [vmem:[%s8342_s2 + $0xa4] sm:$0xf] }
 0x220   :  { %v5494_v2 = vpop.eup %5493  ;;  %v4423_v58 = vor.u32 %v5290_v35, %v4422_v26  ;;  %v4391_v56 = vor.u32 %v5282_v14, %v4390_v61  ;;  %v4398_v22 = vld [vmem:[%s8342_s2 + $0xa8] sm:$0xf]  ;;  %v5276_v26 = vld [vmem:[%s8342_s2 + $0x84] sm:$0xf]  ;;  %v4343_v14 = vor.u32 %v5270_v3, %v4342_v11 }
 0x221   :  { %v6635_v52 = vadd.f32 %v1077_v24, %v1076_v6  ;;  %v1074_v5 = vadd.f32 1.0, %v5494_v2  ;;  %v5283_v6 = vld [vmem:[%s8342_s2 + $0xb4] sm:$0xf0]  ;;  %v4395_v24 = vor.u32 %v5280_v15, %v4392_v17  ;;  %v4379_v39 = vor.u32 %v5276_v26, %v4376_v37  ;;  %v5268_v61 = vld [vmem:[%s8342_s2 + $0x44] sm:$0xf] }
 0x222   :  { %1551 = vmatpush.bf16.msrb.mxu0 %v4423_v58  ;;  %v4399_v2 = vor.u32 %v5283_v6, %v4398_v22  ;;  %v4382_v58 = vld [vmem:[%s8342_s2 + $0x88] sm:$0xf]  ;;  %v4344_v15 = vld [vmem:[%s8342_s2 + $0x50] sm:$0xf0]  ;;  %v5271_v17 = vld [vmem:[%s8342_s2 + $0x54] sm:$0xf0] }
 0x223   :  { %5495 = vtanh.f32 %v6635_v52  ;;  %v1075_v29 = vmul.f32 0.5, %v1074_v5  ;;  %v5281_v5 = vld [vmem:[%s8342_s2 + $0xac] sm:$0xf]  ;;  %1566 = vmatpush.bf16.msra.mxu1 %v4395_v24  ;;  %v4383_v59 = vor.u32 %v5279_v38, %v4382_v58  ;;  %v4347_v22 = vor.u32 %v5268_v61, %v4344_v15  ;;  %v4328_v26 = vld [vmem:[%s8342_s2 + $0x30] sm:$0xf0] }
 0x224   :  { %1579 = vmatpush.bf16.msrb.mxu2 %v4399_v2  ;;  %v5269_v24 = vld [vmem:[%s8342_s2 + $0x4c] sm:$0xf]  ;;  %v4352_v2 = vld [vmem:[%s8342_s2 + $0x58] sm:$0xf0]  ;;  %v5267_v37 = vld [vmem:[%s8342_s2 + $0x34] sm:$0xf0] }
 0x226   :  { %1552 = vmatpush.bf16.msrb.mxu0 %v4407_v45  ;;  %v4366_v45 = vld [vmem:[%s8342_s2 + $0x68] sm:$0xf] }
 0x227   :  { %1567 = vmatpush.bf16.msra.mxu1 %v4379_v39  ;;  %v4367_v50 = vor.u32 %v5275_v46, %v4366_v45  ;;  %v5265_v39 = vld [vmem:[%s8342_s2 + $0x2c] sm:$0xf]  ;;  %v4315_v45 = vor.u32 %v5260_v41, %v4312_v43 }
 0x228   :  { %1580 = vmatpush.bf16.msrb.mxu2 %v4383_v59  ;;  %v4336_v59 = vld [vmem:[%s8342_s2 + $0x38] sm:$0xf0] }
 0x229   :  { %v5496_v31 = vpop.eup %5495  ;;  %v4339_v10 = vor.u32 %v5265_v39, %v4336_v59 }
 0x22a   :  { %v1080_v33 = vmul.f32 %v5496_v31, %v1075_v29  ;;  %v4400_v29 = vld [vmem:[%s8342_s2 + $0xb8] sm:$0xf0]  ;;  %1553 = vmatpush.bf16.msrb.mxu0 %v4391_v56  ;;  %v4350_v56 = vld [vmem:[%s8342_s2 + $0x48] sm:$0xf] }
 0x22b   :  { %v4403_v31 = vor.u32 %v5281_v5, %v4400_v29  ;;  %1568 = vmatpush.bf16.msra.mxu1 %v4363_v47  ;;  %v4351_v6 = vor.u32 %v5271_v17, %v4350_v56  ;;  %v4355_v5 = vor.u32 %v5269_v24, %v4352_v2  ;;  %v4326_v29 = vld [vmem:[%s8342_s2 + $0x20] sm:$0xf]  ;;  %v5261_v47 = vld [vmem:[%s8342_s2 + $0xc] sm:$0xf]  ;;  %v191_v17 = vadd.f32 %v5985_v7, %v5971_v63 }
 0x22c   :  { %v1081_v62 = vpack.c.bf16 %v1080_v33, %v1080_v33  ;;  %v4374_v33 = vld [vmem:[%s8342_s2 + $0x80] sm:$0xf]  ;;  %1581 = vmatpush.bf16.msrb.mxu2 %v4367_v50  ;;  %v4320_v50 = vld [vmem:[%s8342_s2 + $0x18] sm:$0xf0] }
 0x22d   :  { %1592 = vmatpush.bf16.msrb.mxu3 %v4403_v31  ;;  %v5266_v31 = vld [vmem:[%s8342_s2 + $0x2c] sm:$0xf0]  ;;  %v4323_v53 = vor.u32 %v5261_v47, %v4320_v50  ;;  %v4558_v47 = vld [vmem:[%s8342_s2 + $0xe8] sm:$0xf]  ;;  %v5323_v50 = vld [vmem:[%s8342_s2 + $0xf4] sm:$0xf0] }
 0x22e   :  { %1082 = vst [vmem:[#allocation5 + $0x8] sm:$0xf] %v1081_v62  ;;  %1287 = vmatmul.bf16.vlgmr.msra.gmra.mxu0 %v1081_v62  ;;  %1300 = vmatmul.bf16.vlgmr.msrb.gmra.mxu1 %v1081_v62 }
 0x22f   :  { %1313 = vmatmul.bf16.vlgmr.msra.gmra.mxu2 %v1081_v62  ;;  %1326 = vmatmul.bf16.vlgmr.msra.gmra.mxu3 %v1081_v62  ;;  %v5278_v62 = vld [vmem:[%s8342_s2 + $0x8c] sm:$0xf0] }
 0x230   :  { %v4375_v35 = vor.u32 %v5278_v62, %v4374_v33  ;;  %1569 = vmatpush.bf16.msra.mxu1 %v4347_v22  ;;  %1582 = vmatpush.bf16.msrb.mxu2 %v4351_v6  ;;  %v5264_v33 = vld [vmem:[%s8342_s2 + $0x24] sm:$0xf]  ;;  %v4327_v62 = vor.u32 %v5266_v31, %v4326_v29  ;;  %v220_v22 = vadd.f32 %v5989_v9, %v5973_v0 }
 0x231   :  { %1593 = vmatpush.bf16.msrb.mxu3 %v4387_v40  ;;  %v4331_v58 = vor.u32 %v5264_v33, %v4328_v26  ;;  %v5262_v40 = vld [vmem:[%s8342_s2 + $0xc] sm:$0xf0] }
 0x232   :  { %1554 = vmatpush.bf16.msrb.mxu0 %v4375_v35  ;;  %v4334_v35 = vld [vmem:[%s8342_s2 + $0x28] sm:$0xf]  ;;  %v4311_v42 = vor.u32 %v5262_v40, %v4310_v23 }
 0x233   :  { %v4335_v38 = vor.u32 %v5267_v37, %v4334_v35 }
 0x234   :  { %1570 = vmatpush.bf16.msra.mxu1 %v4331_v58 }
 0x235   :  { %1594 = vmatpush.bf16.msrb.mxu3 %v4371_v55  ;;  %1583 = vmatpush.bf16.msrb.mxu2 %v4335_v38  ;;  %v162_v55 = vadd.f32 %v6005_v20, %v5987_v8 }
 0x236   :  { %1555 = vmatpush.bf16.msrb.mxu0 %v4359_v44  ;;  %v4318_v44 = vld [vmem:[%s8342_s2 + $0x8] sm:$0xf] }
 0x237   :  { %v4319_v46 = vor.u32 %v5263_v34, %v4318_v44  ;;  %v5322_v44 = vld [vmem:[%s8342_s2 + $0xec] sm:$0xf0]  ;;  %v5320_v34 = vld [vmem:[%s8342_s2 + $0xe4] sm:$0xf] }
 0x238   :  { %1571 = vmatpush.bf16.msra.mxu1 %v4315_v45 }
 0x239   :  { %1595 = vmatpush.bf16.msrb.mxu3 %v4355_v5  ;;  %1584 = vmatpush.bf16.msrb.mxu2 %v4319_v46  ;;  %v4552_v46 = vld [vmem:[%s8342_s2 + $0xf0] sm:$0xf0] }
 0x23a   :  { %1556 = vmatpush.bf16.msrb.mxu0 %v4343_v14 }
 0x23d   :  { %1596 = vmatpush.bf16.msrb.mxu3 %v4339_v10 }
 0x23e   :  { %1557 = vmatpush.bf16.msrb.mxu0 %v4327_v62 }
 0x241   :  { %1597 = vmatpush.bf16.msrb.mxu3 %v4323_v53  ;;  %v4555_v53 = vor.u32 %v5320_v34, %v4552_v46  ;;  %v4512_v46 = vld [vmem:[%s8342_s2 + $0x98] sm:$0xf0] }
 0x242   :  { %1558 = vmatpush.bf16.msrb.mxu0 %v4311_v42 }
 0x243   :  { %1836 = vmatpush.bf16.msrb.mxu1 %v4555_v53  ;;  %v5306_v53 = vld [vmem:[%s8342_s2 + $0x6c] sm:$0xf0] }
 0x2ab   :  { %v1288_v11 = vpop.f32.mrf.mxu0  ;;  %v1301_v3 = vpop.f32.mrf.mxu1 }
 0x2ac   :  { %v1331_v61 = vadd.f32 %v1288_v11, %v133_v60  ;;  %v1332_v14 = vadd.f32 %v1301_v3, %v162_v55  ;;  %v4559_v60 = vor.u32 %v5323_v50, %v4558_v47  ;;  %v5321_v55 = vld [vmem:[%s8342_s2 + $0xec] sm:$0xf]  ;;  %v4560_v11 = vld [vmem:[%s8342_s2 + $0xf8] sm:$0xf0]  ;;  %v4486_v50 = vld [vmem:[%s8342_s2 + $0x60] sm:$0xf] }
 0x2ad   :  { %v4563_v3 = vor.u32 %v5321_v55, %v4560_v11  ;;  %v4487_v55 = vor.u32 %v5306_v53, %v4486_v50  ;;  %v4488_v11 = vld [vmem:[%s8342_s2 + $0x70] sm:$0xf0]  ;;  %v5295_v50 = vld [vmem:[%s8342_s2 + $0x14] sm:$0xf0] }
 0x2ae   :  { %v1335_v15 = vmul.f32 0.5, %v1331_v61  ;;  %v1339_v56 = vmul.f32 0.5, %v1332_v14  ;;  %1849 = vmatpush.bf16.msra.mxu2 %v4559_v60  ;;  %v4534_v61 = vld [vmem:[%s8342_s2 + $0xc0] sm:$0xf]  ;;  %v5318_v14 = vld [vmem:[%s8342_s2 + $0xcc] sm:$0xf0] }
 0x2af   :  { %1862 = vmatpush.bf16.msra.mxu3 %v4563_v3  ;;  %v5304_v60 = vld [vmem:[%s8342_s2 + $0x64] sm:$0xf]  ;;  %v4494_v3 = vld [vmem:[%s8342_s2 + $0x68] sm:$0xf] }
 0x2b0   :  { %5497 = vtanh.f32 %v1335_v15  ;;  %v5316_v15 = vld [vmem:[%s8342_s2 + $0xc4] sm:$0xf] }
 0x2b1   :  { %5499 = vtanh.f32 %v1339_v56  ;;  %v4535_v56 = vor.u32 %v5318_v14, %v4534_v61  ;;  %v5307_v61 = vld [vmem:[%s8342_s2 + $0x74] sm:$0xf0]  ;;  %v4491_v14 = vor.u32 %v5304_v60, %v4488_v11  ;;  %v4448_v11 = vld [vmem:[%s8342_s2 + $0x18] sm:$0xf0] }
 0x2b2   :  { %v1314_v6 = vpop.f32.mrf.mxu2  ;;  %v1327_v4 = vpop.f32.mrf.mxu3 }
 0x2b3   :  { %v1333_v24 = vadd.f32 %v1314_v6, %v191_v17  ;;  %v1334_v2 = vadd.f32 %v1327_v4, %v220_v22  ;;  %v1290_v20 = vpop.f32.mrf.mxu0  ;;  %v1303_v5 = vpop.f32.mrf.mxu1  ;;  %v4536_v17 = vld [vmem:[%s8342_s2 + $0xd0] sm:$0xf0]  ;;  %v4542_v22 = vld [vmem:[%s8342_s2 + $0xc8] sm:$0xf]  ;;  %v5319_v6 = vld [vmem:[%s8342_s2 + $0xd4] sm:$0xf0] }
 0x2b4   :  { %v4539_v4 = vor.u32 %v5316_v15, %v4536_v17  ;;  %v4544_v20 = vld [vmem:[%s8342_s2 + $0xd8] sm:$0xf0]  ;;  %v4495_v15 = vor.u32 %v5307_v61, %v4494_v3 }
 0x2b5   :  { %5501 = vtanh.f32 %v1333_v24  ;;  %v1344_v29 = vmul.f32 0.5, %v1334_v2  ;;  %v4543_v24 = vor.u32 %v5319_v6, %v4542_v22  ;;  %v5317_v2 = vld [vmem:[%s8342_s2 + $0xcc] sm:$0xf]  ;;  %v4496_v17 = vld [vmem:[%s8342_s2 + $0x78] sm:$0xf0] }
 0x2b6   :  { %v5498_v31 = vpop.eup %5497  ;;  %v4547_v5 = vor.u32 %v5317_v2, %v4544_v20  ;;  %1837 = vmatpush.bf16.msrb.mxu1 %v4539_v4  ;;  %v4470_v6 = vld [vmem:[%s8342_s2 + $0x40] sm:$0xf]  ;;  %v5302_v4 = vld [vmem:[%s8342_s2 + $0x4c] sm:$0xf0]  ;;  %v4472_v20 = vld [vmem:[%s8342_s2 + $0x50] sm:$0xf0] }
 0x2b7   :  { %v5500_v33 = vpop.eup %5499  ;;  %v1337_v62 = vadd.f32 1.0, %v5498_v31  ;;  %5503 = vtanh.f32 %v1344_v29  ;;  %1850 = vmatpush.bf16.msra.mxu2 %v4543_v24  ;;  %v4518_v29 = vld [vmem:[%s8342_s2 + $0xa0] sm:$0xf]  ;;  %v5314_v31 = vld [vmem:[%s8342_s2 + $0xac] sm:$0xf0]  ;;  %v4471_v2 = vor.u32 %v5302_v4, %v4470_v6 }
 0x2b8   :  { %v1341_v26 = vadd.f32 1.0, %v5500_v33  ;;  %v5312_v33 = vld [vmem:[%s8342_s2 + $0xa4] sm:$0xf]  ;;  %1863 = vmatpush.bf16.msra.mxu3 %v4547_v5  ;;  %v4478_v5 = vld [vmem:[%s8342_s2 + $0x48] sm:$0xf] }
 0x2b9   :  { %v1338_v35 = vmul.f32 0.5, %v1337_v62  ;;  %v4519_v62 = vor.u32 %v5314_v31, %v4518_v29  ;;  %v5300_v24 = vld [vmem:[%s8342_s2 + $0x44] sm:$0xf]  ;;  %v5303_v29 = vld [vmem:[%s8342_s2 + $0x54] sm:$0xf0] }
 0x2ba   :  { %v1342_v37 = vmul.f32 0.5, %v1341_v26  ;;  %v1316_v7 = vpop.f32.mrf.mxu2  ;;  %v1329_v58 = vpop.f32.mrf.mxu3  ;;  %v4520_v26 = vld [vmem:[%s8342_s2 + $0xb0] sm:$0xf0]  ;;  %v4475_v31 = vor.u32 %v5300_v24, %v4472_v20 }
 0x2bb   :  { %v5502_v38 = vpop.eup %5501  ;;  %v4523_v7 = vor.u32 %v5312_v33, %v4520_v26  ;;  %v4479_v33 = vor.u32 %v5303_v29, %v4478_v5  ;;  %v4480_v26 = vld [vmem:[%s8342_s2 + $0x58] sm:$0xf0] }
 0x2bc   :  { %v1348_v9 = vmul.f32 %v1342_v37, %v6635_v52  ;;  %v1349_v39 = vmul.f32 %v5502_v38, %v1338_v35  ;;  %v4550_v52 = vld [vmem:[%s8342_s2 + $0xe0] sm:$0xf]  ;;  %v4526_v35 = vld [vmem:[%s8342_s2 + $0xa8] sm:$0xf]  ;;  %v5315_v37 = vld [vmem:[%s8342_s2 + $0xb4] sm:$0xf0] }
 0x2bd   :  { %v5504_v59 = vpop.eup %5503  ;;  %v4551_v45 = vor.u32 %v5322_v44, %v4550_v52  ;;  %v4527_v58 = vor.u32 %v5315_v37, %v4526_v35  ;;  %v5313_v38 = vld [vmem:[%s8342_s2 + $0xac] sm:$0xf]  ;;  %1838 = vmatpush.bf16.msrb.mxu1 %v4523_v7  ;;  %v5311_v52 = vld [vmem:[%s8342_s2 + $0x94] sm:$0xf0]  ;;  %v4454_v37 = vld [vmem:[%s8342_s2 + $0x20] sm:$0xf] }
 0x2be   :  { %v6839_v10 = vadd.f32 %v1349_v39, %v1348_v9  ;;  %v1346_v23 = vadd.f32 1.0, %v5504_v59  ;;  %v4528_v9 = vld [vmem:[%s8342_s2 + $0xb8] sm:$0xf0]  ;;  %v4502_v59 = vld [vmem:[%s8342_s2 + $0x80] sm:$0xf] }
 0x2bf   :  { %1823 = vmatpush.bf16.msra.mxu0 %v4551_v45  ;;  %v4531_v39 = vor.u32 %v5313_v38, %v4528_v9  ;;  %1851 = vmatpush.bf16.msra.mxu2 %v4527_v58  ;;  %v5309_v45 = vld [vmem:[%s8342_s2 + $0x8c] sm:$0xf]  ;;  %v5298_v7 = vld [vmem:[%s8342_s2 + $0x2c] sm:$0xf0]  ;;  %v5296_v58 = vld [vmem:[%s8342_s2 + $0x24] sm:$0xf] }
 0x2c0   :  { %5505 = vtanh.f32 %v6839_v10  ;;  %v1347_v40 = vmul.f32 0.5, %v1346_v23  ;;  %v5310_v23 = vld [vmem:[%s8342_s2 + $0x8c] sm:$0xf0]  ;;  %v4515_v47 = vor.u32 %v5309_v45, %v4512_v46  ;;  %v4455_v38 = vor.u32 %v5298_v7, %v4454_v37  ;;  %v4456_v9 = vld [vmem:[%s8342_s2 + $0x30] sm:$0xf0] }
 0x2c1   :  { %1864 = vmatpush.bf16.msra.mxu3 %v4531_v39  ;;  %v4462_v39 = vld [vmem:[%s8342_s2 + $0x28] sm:$0xf]  ;;  %v4440_v46 = vld [vmem:[%s8342_s2 + $0x10] sm:$0xf0] }
 0x2c3   :  { %1824 = vmatpush.bf16.msra.mxu0 %v4535_v56  ;;  %v5305_v56 = vld [vmem:[%s8342_s2 + $0x6c] sm:$0xf] }
 0x2c4   :  { %v4499_v22 = vor.u32 %v5305_v56, %v4496_v17 }
 0x2c5   :  { %1865 = vmatpush.bf16.msra.mxu3 %v4515_v47  ;;  %v4446_v47 = vld [vmem:[%s8342_s2 + $0x8] sm:$0xf] }
 0x2c6   :  { %v5506_v41 = vpop.eup %5505  ;;  %v4447_v60 = vor.u32 %v5295_v50, %v4446_v47  ;;  %v5353_v47 = vld [vmem:[%s8342_s2 + $0xec] sm:$0xf]  ;;  %v4688_v50 = vld [vmem:[%s8342_s2 + $0xf8] sm:$0xf0] }
 0x2c7   :  { %v1352_v42 = vmul.f32 %v5506_v41, %v1347_v40  ;;  %1825 = vmatpush.bf16.msra.mxu0 %v4519_v62  ;;  %v5308_v40 = vld [vmem:[%s8342_s2 + $0x84] sm:$0xf]  ;;  %v4503_v41 = vor.u32 %v5310_v23, %v4502_v59  ;;  %v5301_v62 = vld [vmem:[%s8342_s2 + $0x4c] sm:$0xf]  ;;  %v5299_v59 = vld [vmem:[%s8342_s2 + $0x34] sm:$0xf0]  ;;  %v4459_v23 = vor.u32 %v5296_v58, %v4456_v9 }
 0x2c8   :  { %v4483_v35 = vor.u32 %v5301_v62, %v4480_v26 }
 0x2c9   :  { %v1353_v43 = vpack.c.bf16 %v1352_v42, %v1352_v42  ;;  %v4504_v42 = vld [vmem:[%s8342_s2 + $0x90] sm:$0xf0]  ;;  %1866 = vmatpush.bf16.msra.mxu3 %v4499_v22 }
 0x2ca   :  { %v4507_v44 = vor.u32 %v5308_v40, %v4504_v42  ;;  %v4463_v40 = vor.u32 %v5299_v59, %v4462_v39  ;;  %v4464_v42 = vld [vmem:[%s8342_s2 + $0x38] sm:$0xf0] }
 0x2cb   :  { %1354 = vst [vmem:[#allocation5 + $0xc] sm:$0xf] %v1353_v43  ;;  %1559 = vmatmul.bf16.vlgmr.msrb.gmra.mxu0 %v1353_v43  ;;  %1572 = vmatmul.bf16.vlgmr.msra.gmra.mxu1 %v1353_v43 }
 0x2cc   :  { %1585 = vmatmul.bf16.vlgmr.msrb.gmra.mxu2 %v1353_v43  ;;  %1598 = vmatmul.bf16.vlgmr.msrb.gmra.mxu3 %v1353_v43  ;;  %v4510_v43 = vld [vmem:[%s8342_s2 + $0x88] sm:$0xf] }
 0x2cd   :  { %v4511_v34 = vor.u32 %v5311_v52, %v4510_v43  ;;  %1826 = vmatpush.bf16.msra.mxu0 %v4503_v41  ;;  %1839 = vmatpush.bf16.msrb.mxu1 %v4507_v44  ;;  %v5297_v41 = vld [vmem:[%s8342_s2 + $0x2c] sm:$0xf]  ;;  %v4438_v52 = vld [vmem:[%s8342_s2] sm:$0xf]  ;;  %v5294_v44 = vld [vmem:[%s8342_s2 + $0xc] sm:$0xf0] }
 0x2ce   :  { %1867 = vmatpush.bf16.msra.mxu3 %v4483_v35  ;;  %v4467_v43 = vor.u32 %v5297_v41, %v4464_v42  ;;  %v4439_v45 = vor.u32 %v5294_v44, %v4438_v52  ;;  %v5354_v41 = vld [vmem:[%s8342_s2 + $0xec] sm:$0xf0]  ;;  %v5352_v42 = vld [vmem:[%s8342_s2 + $0xe4] sm:$0xf]  ;;  %v4680_v52 = vld [vmem:[%s8342_s2 + $0xf0] sm:$0xf0] }
 0x2cf   :  { %1852 = vmatpush.bf16.msra.mxu2 %v4511_v34  ;;  %v5292_v34 = vld [vmem:[%s8342_s2 + $0x4] sm:$0xf]  ;;  %v4686_v44 = vld [vmem:[%s8342_s2 + $0xe8] sm:$0xf] }
 0x2d0   :  { %v4443_v53 = vor.u32 %v5292_v34, %v4440_v46  ;;  %v5355_v34 = vld [vmem:[%s8342_s2 + $0xf4] sm:$0xf0] }
 0x2d1   :  { %1827 = vmatpush.bf16.msra.mxu0 %v4487_v55  ;;  %1840 = vmatpush.bf16.msrb.mxu1 %v4491_v14  ;;  %v5293_v55 = vld [vmem:[%s8342_s2 + $0xc] sm:$0xf]  ;;  %v4687_v46 = vor.u32 %v5355_v34, %v4686_v44  ;;  %v4616_v34 = vld [vmem:[%s8342_s2 + $0x70] sm:$0xf0] }
 0x2d2   :  { %1868 = vmatpush.bf16.msra.mxu3 %v4467_v43  ;;  %v4451_v3 = vor.u32 %v5293_v55, %v4448_v11  ;;  %v5350_v55 = vld [vmem:[%s8342_s2 + $0xcc] sm:$0xf0]  ;;  %v5348_v11 = vld [vmem:[%s8342_s2 + $0xc4] sm:$0xf] }
 0x2d3   :  { %1853 = vmatpush.bf16.msra.mxu2 %v4495_v15 }
 0x2d5   :  { %1828 = vmatpush.bf16.msra.mxu0 %v4471_v2  ;;  %1841 = vmatpush.bf16.msrb.mxu1 %v4475_v31 }
 0x2d6   :  { %1869 = vmatpush.bf16.msra.mxu3 %v4451_v3 }
 0x2d7   :  { %1854 = vmatpush.bf16.msra.mxu2 %v4479_v33 }
 0x2d9   :  { %1829 = vmatpush.bf16.msra.mxu0 %v4455_v38  ;;  %1842 = vmatpush.bf16.msrb.mxu1 %v4459_v23 }
 0x2db   :  { %1855 = vmatpush.bf16.msra.mxu2 %v4463_v40 }
 0x2dd   :  { %1830 = vmatpush.bf16.msra.mxu0 %v4439_v45  ;;  %1843 = vmatpush.bf16.msrb.mxu1 %v4443_v53  ;;  %v4683_v45 = vor.u32 %v5352_v42, %v4680_v52  ;;  %v4691_v53 = vor.u32 %v5353_v47, %v4688_v50  ;;  %v4614_v42 = vld [vmem:[%s8342_s2 + $0x60] sm:$0xf]  ;;  %v5336_v52 = vld [vmem:[%s8342_s2 + $0x64] sm:$0xf] }
 0x2de   :  { %v4619_v47 = vor.u32 %v5336_v52, %v4616_v34  ;;  %v138_v52 = vadd.f32 %v6000_v18, %v5947_v51  ;;  %v5384_v18 = vld [vmem:[%s8342_s2 + $0xe4] sm:$0xf] }
 0x2df   :  { %1856 = vmatpush.bf16.msra.mxu2 %v4447_v60  ;;  %v4662_v60 = vld [vmem:[%s8342_s2 + $0xc0] sm:$0xf]  ;;  %2134 = vmatpush.bf16.msrb.mxu3 %v4691_v53  ;;  %v5337_v53 = vld [vmem:[%s8342_s2 + $0x6c] sm:$0xf] }
 0x2e0   :  { %v4663_v3 = vor.u32 %v5350_v55, %v4662_v60  ;;  %v4624_v60 = vld [vmem:[%s8342_s2 + $0x78] sm:$0xf0] }
 0x2e1   :  { %2108 = vmatpush.bf16.msra.mxu1 %v4683_v45  ;;  %v4622_v45 = vld [vmem:[%s8342_s2 + $0x68] sm:$0xf]  ;;  %v4627_v55 = vor.u32 %v5337_v53, %v4624_v60  ;;  %v5386_v53 = vld [vmem:[%s8342_s2 + $0xec] sm:$0xf0] }
 0x2e3   :  { %2121 = vmatpush.bf16.msrb.mxu2 %v4687_v46  ;;  %v5339_v46 = vld [vmem:[%s8342_s2 + $0x74] sm:$0xf0] }
 0x2e4   :  { %v4623_v50 = vor.u32 %v5339_v46, %v4622_v45 }
 0x348   :  { %v1560_v61 = vpop.f32.mrf.mxu0  ;;  %v1573_v14 = vpop.f32.mrf.mxu1 }
 0x349   :  { %v1603_v15 = vadd.f32 %v1560_v61, %v5992_v12  ;;  %v1604_v56 = vadd.f32 %v1573_v14, %v6036_v36  ;;  %v4664_v61 = vld [vmem:[%s8342_s2 + $0xd0] sm:$0xf0]  ;;  %v4670_v14 = vld [vmem:[%s8342_s2 + $0xc8] sm:$0xf] }
 0x34b   :  { %v1607_v17 = vmul.f32 0.5, %v1603_v15  ;;  %v1611_v22 = vmul.f32 0.5, %v1604_v56  ;;  %v5351_v15 = vld [vmem:[%s8342_s2 + $0xd4] sm:$0xf0]  ;;  %v4667_v56 = vor.u32 %v5348_v11, %v4664_v61  ;;  %v4598_v11 = vld [vmem:[%s8342_s2 + $0x40] sm:$0xf] }
 0x34c   :  { %v5332_v61 = vld [vmem:[%s8342_s2 + $0x44] sm:$0xf] }
 0x34d   :  { %5507 = vtanh.f32 %v1607_v17  ;;  %v4671_v17 = vor.u32 %v5351_v15, %v4670_v14  ;;  %2109 = vmatpush.bf16.msra.mxu1 %v4667_v56  ;;  %v4600_v15 = vld [vmem:[%s8342_s2 + $0x50] sm:$0xf0]  ;;  %v4606_v56 = vld [vmem:[%s8342_s2 + $0x48] sm:$0xf] }
 0x34e   :  { %5509 = vtanh.f32 %v1611_v22  ;;  %v5349_v22 = vld [vmem:[%s8342_s2 + $0xcc] sm:$0xf] }
 0x34f   :  { %v1586_v6 = vpop.f32.mrf.mxu2  ;;  %v1599_v4 = vpop.f32.mrf.mxu3  ;;  %2122 = vmatpush.bf16.msrb.mxu2 %v4671_v17  ;;  %v5335_v17 = vld [vmem:[%s8342_s2 + $0x54] sm:$0xf0] }
 0x350   :  { %v1605_v24 = vadd.f32 %v1586_v6, %v5998_v16  ;;  %v1606_v2 = vadd.f32 %v1599_v4, %v6003_v19  ;;  %v1562_v20 = vpop.f32.mrf.mxu0  ;;  %v1575_v5 = vpop.f32.mrf.mxu1  ;;  %v4672_v6 = vld [vmem:[%s8342_s2 + $0xd8] sm:$0xf0] }
 0x351   :  { %v4675_v4 = vor.u32 %v5349_v22, %v4672_v6  ;;  %v5344_v20 = vld [vmem:[%s8342_s2 + $0xa4] sm:$0xf]  ;;  %v4603_v22 = vor.u32 %v5332_v61, %v4600_v15  ;;  %v4607_v6 = vor.u32 %v5335_v17, %v4606_v56  ;;  %v5385_v56 = vld [vmem:[%s8342_s2 + $0xec] sm:$0xf]  ;;  %v4816_v17 = vld [vmem:[%s8342_s2 + $0xf8] sm:$0xf0] }
 0x352   :  { %5511 = vtanh.f32 %v1605_v24  ;;  %v1616_v29 = vmul.f32 0.5, %v1606_v2  ;;  %v4646_v24 = vld [vmem:[%s8342_s2 + $0xa0] sm:$0xf]  ;;  %v5346_v2 = vld [vmem:[%s8342_s2 + $0xac] sm:$0xf0] }
 0x353   :  { %v5508_v31 = vpop.eup %5507  ;;  %2135 = vmatpush.bf16.msrb.mxu3 %v4675_v4  ;;  %v4647_v5 = vor.u32 %v5346_v2, %v4646_v24  ;;  %v5333_v4 = vld [vmem:[%s8342_s2 + $0x4c] sm:$0xf]  ;;  %v4608_v24 = vld [vmem:[%s8342_s2 + $0x58] sm:$0xf0] }
 0x354   :  { %v5510_v33 = vpop.eup %5509  ;;  %v1609_v62 = vadd.f32 1.0, %v5508_v31  ;;  %5513 = vtanh.f32 %v1616_v29  ;;  %v4648_v29 = vld [vmem:[%s8342_s2 + $0xb0] sm:$0xf0]  ;;  %v4654_v31 = vld [vmem:[%s8342_s2 + $0xa8] sm:$0xf]  ;;  %v4611_v2 = vor.u32 %v5333_v4, %v4608_v24 }
 0x355   :  { %v1613_v12 = vadd.f32 1.0, %v5510_v33  ;;  %v5347_v33 = vld [vmem:[%s8342_s2 + $0xb4] sm:$0xf0]  ;;  %v5382_v4 = vld [vmem:[%s8342_s2 + $0xcc] sm:$0xf0] }
 0x356   :  { %v1610_v36 = vmul.f32 0.5, %v1609_v62  ;;  %v4651_v62 = vor.u32 %v5344_v20, %v4648_v29  ;;  %v4582_v20 = vld [vmem:[%s8342_s2 + $0x20] sm:$0xf]  ;;  %v5328_v29 = vld [vmem:[%s8342_s2 + $0x24] sm:$0xf] }
 0x357   :  { %v1614_v26 = vmul.f32 0.5, %v1613_v12  ;;  %v1588_v35 = vpop.f32.mrf.mxu2  ;;  %v1601_v37 = vpop.f32.mrf.mxu3  ;;  %v4655_v12 = vor.u32 %v5347_v33, %v4654_v31  ;;  %v4584_v33 = vld [vmem:[%s8342_s2 + $0x30] sm:$0xf0]  ;;  %v5380_v24 = vld [vmem:[%s8342_s2 + $0xc4] sm:$0xf] }
 0x358   :  { %v5512_v7 = vpop.eup %5511  ;;  %2110 = vmatpush.bf16.msra.mxu1 %v4651_v62  ;;  %v4630_v37 = vld [vmem:[%s8342_s2 + $0x80] sm:$0xf]  ;;  %v4590_v62 = vld [vmem:[%s8342_s2 + $0x28] sm:$0xf] }
 0x359   :  { %v1620_v58 = vmul.f32 %v1614_v26, %v6839_v10  ;;  %v1621_v38 = vmul.f32 %v5512_v7, %v1610_v36  ;;  %v4678_v10 = vld [vmem:[%s8342_s2 + $0xe0] sm:$0xf]  ;;  %v5345_v36 = vld [vmem:[%s8342_s2 + $0xac] sm:$0xf]  ;;  %v4656_v26 = vld [vmem:[%s8342_s2 + $0xb8] sm:$0xf0]  ;;  %2123 = vmatpush.bf16.msrb.mxu2 %v4655_v12 }
 0x35a   :  { %v5514_v16 = vpop.eup %5513  ;;  %v4679_v43 = vor.u32 %v5354_v41, %v4678_v10  ;;  %v4659_v35 = vor.u32 %v5345_v36, %v4656_v26  ;;  %v5342_v7 = vld [vmem:[%s8342_s2 + $0x8c] sm:$0xf0]  ;;  %v4640_v10 = vld [vmem:[%s8342_s2 + $0x98] sm:$0xf0]  ;;  %v5331_v12 = vld [vmem:[%s8342_s2 + $0x34] sm:$0xf0]  ;;  %v4587_v36 = vor.u32 %v5328_v29, %v4584_v33  ;;  %v225_v33 = vadd.f32 %v6018_v25, %v5973_v0 }
 0x35b   :  { %v7039_v9 = vadd.f32 %v1621_v38, %v1620_v58  ;;  %v1618_v19 = vadd.f32 1.0, %v5514_v16  ;;  %v5340_v58 = vld [vmem:[%s8342_s2 + $0x84] sm:$0xf]  ;;  %v4631_v38 = vor.u32 %v5342_v7, %v4630_v37  ;;  %v4632_v16 = vld [vmem:[%s8342_s2 + $0x90] sm:$0xf0]  ;;  %v4591_v26 = vor.u32 %v5331_v12, %v4590_v62 }
 0x35c   :  { %2095 = vmatpush.bf16.msrb.mxu0 %v4679_v43  ;;  %2136 = vmatpush.bf16.msrb.mxu3 %v4659_v35  ;;  %v5338_v43 = vld [vmem:[%s8342_s2 + $0x6c] sm:$0xf0]  ;;  %v5329_v35 = vld [vmem:[%s8342_s2 + $0x2c] sm:$0xf]  ;;  %v4592_v37 = vld [vmem:[%s8342_s2 + $0x38] sm:$0xf0] }
 0x35d   :  { %5515 = vtanh.f32 %v7039_v9  ;;  %v1619_v39 = vmul.f32 0.5, %v1618_v19  ;;  %v4638_v19 = vld [vmem:[%s8342_s2 + $0x88] sm:$0xf]  ;;  %v4615_v44 = vor.u32 %v5338_v43, %v4614_v42  ;;  %v4595_v7 = vor.u32 %v5329_v35, %v4592_v37  ;;  %v4576_v42 = vld [vmem:[%s8342_s2 + $0x18] sm:$0xf0] }
 0x35e   :  { %v4798_v29 = vld [vmem:[%s8342_s2 + $0xc8] sm:$0xf]  ;;  %v5381_v12 = vld [vmem:[%s8342_s2 + $0xcc] sm:$0xf]  ;;  %v5378_v25 = vld [vmem:[%s8342_s2 + $0xac] sm:$0xf0] }
 0x360   :  { %2096 = vmatpush.bf16.msrb.mxu0 %v4663_v3  ;;  %v5334_v3 = vld [vmem:[%s8342_s2 + $0x4c] sm:$0xf0] }
 0x361   :  { %v4599_v14 = vor.u32 %v5334_v3, %v4598_v11  ;;  %v5387_v11 = vld [vmem:[%s8342_s2 + $0xf4] sm:$0xf0] }
 0x363   :  { %v5516_v59 = vpop.eup %5515 }
 0x364   :  { %v1624_v23 = vmul.f32 %v5516_v59, %v1619_v39  ;;  %2097 = vmatpush.bf16.msrb.mxu0 %v4647_v5  ;;  %v5343_v39 = vld [vmem:[%s8342_s2 + $0x94] sm:$0xf0]  ;;  %v4635_v59 = vor.u32 %v5340_v58, %v4632_v16  ;;  %v5330_v5 = vld [vmem:[%s8342_s2 + $0x2c] sm:$0xf0]  ;;  %v4566_v58 = vld [vmem:[%s8342_s2] sm:$0xf] }
 0x365   :  { %v4583_v31 = vor.u32 %v5330_v5, %v4582_v20  ;;  %v5324_v16 = vld [vmem:[%s8342_s2 + $0x4] sm:$0xf]  ;;  %v4792_v5 = vld [vmem:[%s8342_s2 + $0xd0] sm:$0xf0] }
 0x366   :  { %v1625_v40 = vpack.c.bf16 %v1624_v23, %v1624_v23  ;;  %v4639_v23 = vor.u32 %v5343_v39, %v4638_v19  ;;  %2111 = vmatpush.bf16.msra.mxu1 %v4635_v59  ;;  %v4568_v39 = vld [vmem:[%s8342_s2 + $0x10] sm:$0xf0]  ;;  %v4574_v59 = vld [vmem:[%s8342_s2 + $0x8] sm:$0xf] }
 0x368   :  { %1626 = vst [vmem:[#allocation5 + $0x10] sm:$0xf] %v1625_v40  ;;  %1831 = vmatmul.bf16.vlgmr.msra.gmra.mxu0 %v1625_v40  ;;  %1844 = vmatmul.bf16.vlgmr.msrb.gmra.mxu1 %v1625_v40 }
 0x369   :  { %1857 = vmatmul.bf16.vlgmr.msra.gmra.mxu2 %v1625_v40  ;;  %1870 = vmatmul.bf16.vlgmr.msra.gmra.mxu3 %v1625_v40  ;;  %v5341_v40 = vld [vmem:[%s8342_s2 + $0x8c] sm:$0xf] }
 0x36a   :  { %2098 = vmatpush.bf16.msrb.mxu0 %v4631_v38  ;;  %v4643_v41 = vor.u32 %v5341_v40, %v4640_v10  ;;  %2124 = vmatpush.bf16.msrb.mxu2 %v4639_v23  ;;  %v5326_v38 = vld [vmem:[%s8342_s2 + $0xc] sm:$0xf0]  ;;  %v5327_v23 = vld [vmem:[%s8342_s2 + $0x14] sm:$0xf0]  ;;  %v4571_v40 = vor.u32 %v5324_v16, %v4568_v39 }
 0x36b   :  { %2112 = vmatpush.bf16.msra.mxu1 %v4619_v47  ;;  %v4567_v19 = vor.u32 %v5326_v38, %v4566_v58  ;;  %v4575_v10 = vor.u32 %v5327_v23, %v4574_v59  ;;  %v5376_v58 = vld [vmem:[%s8342_s2 + $0xa4] sm:$0xf]  ;;  %v4776_v38 = vld [vmem:[%s8342_s2 + $0xb0] sm:$0xf0] }
 0x36c   :  { %2137 = vmatpush.bf16.msrb.mxu3 %v4643_v41  ;;  %v5325_v41 = vld [vmem:[%s8342_s2 + $0xc] sm:$0xf] }
 0x36d   :  { %v4579_v43 = vor.u32 %v5325_v41, %v4576_v42  ;;  %v5377_v41 = vld [vmem:[%s8342_s2 + $0xac] sm:$0xf]  ;;  %v4779_v42 = vor.u32 %v5376_v58, %v4776_v38  ;;  %v5371_v58 = vld [vmem:[%s8342_s2 + $0x74] sm:$0xf0] }
 0x36e   :  { %2099 = vmatpush.bf16.msrb.mxu0 %v4615_v44  ;;  %2125 = vmatpush.bf16.msrb.mxu2 %v4623_v50  ;;  %v167_v44 = vadd.f32 %v6088_v28, %v5987_v8  ;;  %v4806_v50 = vld [vmem:[%s8342_s2 + $0xe0] sm:$0xf]  ;;  %v4808_v28 = vld [vmem:[%s8342_s2 + $0xf0] sm:$0xf0] }
 0x36f   :  { %2113 = vmatpush.bf16.msra.mxu1 %v4603_v22  ;;  %v4807_v60 = vor.u32 %v5386_v53, %v4806_v50  ;;  %v4819_v22 = vor.u32 %v5385_v56, %v4816_v17  ;;  %v4760_v50 = vld [vmem:[%s8342_s2 + $0x90] sm:$0xf0] }
 0x370   :  { %2138 = vmatpush.bf16.msrb.mxu3 %v4627_v55  ;;  %v4814_v55 = vld [vmem:[%s8342_s2 + $0xe8] sm:$0xf] }
 0x371   :  { %v4815_v15 = vor.u32 %v5387_v11, %v4814_v55 }
 0x372   :  { %2100 = vmatpush.bf16.msrb.mxu0 %v4599_v14  ;;  %2126 = vmatpush.bf16.msrb.mxu2 %v4607_v6  ;;  %v4811_v14 = vor.u32 %v5384_v18, %v4808_v28  ;;  %v4790_v6 = vld [vmem:[%s8342_s2 + $0xc0] sm:$0xf]  ;;  %v4766_v18 = vld [vmem:[%s8342_s2 + $0x88] sm:$0xf]  ;;  %v5373_v28 = vld [vmem:[%s8342_s2 + $0x8c] sm:$0xf] }
 0x373   :  { %2114 = vmatpush.bf16.msra.mxu1 %v4587_v36  ;;  %v4791_v20 = vor.u32 %v5382_v4, %v4790_v6  ;;  %v4800_v36 = vld [vmem:[%s8342_s2 + $0xd8] sm:$0xf0] }
 0x374   :  { %2139 = vmatpush.bf16.msrb.mxu3 %v4611_v2  ;;  %v196_v2 = vadd.f32 %v6007_v21, %v5971_v63  ;;  %v4795_v21 = vor.u32 %v5380_v24, %v4792_v5 }
 0x376   :  { %2101 = vmatpush.bf16.msrb.mxu0 %v4583_v31  ;;  %2127 = vmatpush.bf16.msrb.mxu2 %v4591_v26  ;;  %v5383_v31 = vld [vmem:[%s8342_s2 + $0xd4] sm:$0xf0]  ;;  %v4774_v26 = vld [vmem:[%s8342_s2 + $0xa0] sm:$0xf] }
 0x377   :  { %2115 = vmatpush.bf16.msra.mxu1 %v4571_v40  ;;  %v4799_v62 = vor.u32 %v5383_v31, %v4798_v29  ;;  %v4775_v23 = vor.u32 %v5378_v25, %v4774_v26  ;;  %v4782_v40 = vld [vmem:[%s8342_s2 + $0xa8] sm:$0xf]  ;;  %v5370_v26 = vld [vmem:[%s8342_s2 + $0x6c] sm:$0xf0] }
 0x378   :  { %2140 = vmatpush.bf16.msrb.mxu3 %v4595_v7  ;;  %v4803_v7 = vor.u32 %v5381_v12, %v4800_v36  ;;  %v4750_v25 = vld [vmem:[%s8342_s2 + $0x68] sm:$0xf] }
 0x37a   :  { %2102 = vmatpush.bf16.msrb.mxu0 %v4567_v19  ;;  %2128 = vmatpush.bf16.msrb.mxu2 %v4575_v10  ;;  %v5379_v10 = vld [vmem:[%s8342_s2 + $0xb4] sm:$0xf0] }
 0x37b   :  { %2380 = vmatpush.bf16.msrb.mxu1 %v4811_v14 }
 0x37c   :  { %2141 = vmatpush.bf16.msrb.mxu3 %v4579_v43  ;;  %v4783_v43 = vor.u32 %v5379_v10, %v4782_v40  ;;  %v5366_v40 = vld [vmem:[%s8342_s2 + $0x4c] sm:$0xf0]  ;;  %v5364_v10 = vld [vmem:[%s8342_s2 + $0x44] sm:$0xf] }
 0x37e   :  { %2367 = vmatpush.bf16.msra.mxu0 %v4807_v60  ;;  %2393 = vmatpush.bf16.msra.mxu2 %v4815_v15  ;;  %v5375_v60 = vld [vmem:[%s8342_s2 + $0x94] sm:$0xf0] }
 0x37f   :  { %2381 = vmatpush.bf16.msrb.mxu1 %v4795_v21  ;;  %v4767_v56 = vor.u32 %v5375_v60, %v4766_v18  ;;  %v5360_v18 = vld [vmem:[%s8342_s2 + $0x24] sm:$0xf] }
 0x380   :  { %2406 = vmatpush.bf16.msra.mxu3 %v4819_v22 }
 0x382   :  { %2368 = vmatpush.bf16.msra.mxu0 %v4791_v20  ;;  %2394 = vmatpush.bf16.msra.mxu2 %v4799_v62 }
 0x383   :  { %2382 = vmatpush.bf16.msrb.mxu1 %v4779_v42  ;;  %v4728_v42 = vld [vmem:[%s8342_s2 + $0x50] sm:$0xf0] }
 0x384   :  { %2407 = vmatpush.bf16.msra.mxu3 %v4803_v7  ;;  %v4744_v7 = vld [vmem:[%s8342_s2 + $0x70] sm:$0xf0] }
 0x386   :  { %2369 = vmatpush.bf16.msra.mxu0 %v4775_v23  ;;  %2395 = vmatpush.bf16.msra.mxu2 %v4783_v43  ;;  %v4726_v23 = vld [vmem:[%s8342_s2 + $0x40] sm:$0xf]  ;;  %v4734_v43 = vld [vmem:[%s8342_s2 + $0x48] sm:$0xf] }
 0x38a   :  { %2396 = vmatpush.bf16.msra.mxu2 %v4767_v56 }
 0x3e5   :  { %v1832_v34 = vpop.f32.mrf.mxu0  ;;  %v1845_v45 = vpop.f32.mrf.mxu1 }
 0x3e6   :  { %v1875_v46 = vadd.f32 %v1832_v34, %v138_v52  ;;  %v1876_v47 = vadd.f32 %v1845_v45, %v167_v44  ;;  %v4784_v52 = vld [vmem:[%s8342_s2 + $0xb8] sm:$0xf0]  ;;  %v4758_v44 = vld [vmem:[%s8342_s2 + $0x80] sm:$0xf]  ;;  %v5374_v34 = vld [vmem:[%s8342_s2 + $0x8c] sm:$0xf0] }
 0x3e8   :  { %v1879_v3 = vmul.f32 0.5, %v1875_v46  ;;  %v1883_v61 = vmul.f32 0.5, %v1876_v47  ;;  %v4787_v46 = vor.u32 %v5377_v41, %v4784_v52  ;;  %v5372_v47 = vld [vmem:[%s8342_s2 + $0x84] sm:$0xf]  ;;  %v4727_v41 = vor.u32 %v5366_v40, %v4726_v23  ;;  %v5367_v52 = vld [vmem:[%s8342_s2 + $0x54] sm:$0xf0] }
 0x3e9   :  { %v4763_v15 = vor.u32 %v5372_v47, %v4760_v50  ;;  %v4710_v50 = vld [vmem:[%s8342_s2 + $0x20] sm:$0xf]  ;;  %v5416_v40 = vld [vmem:[%s8344_s4 + $0xc4] sm:$0xf] }
 0x3ea   :  { %5517 = vtanh.f32 %v1879_v3  ;;  %v4759_v3 = vor.u32 %v5374_v34, %v4758_v44  ;;  %2408 = vmatpush.bf16.msra.mxu3 %v4787_v46  ;;  %v4731_v44 = vor.u32 %v5364_v10, %v4728_v42  ;;  %v4735_v34 = vor.u32 %v5367_v52, %v4734_v43  ;;  %v4736_v46 = vld [vmem:[%s8342_s2 + $0x58] sm:$0xf0]  ;;  %v4936_v10 = vld [vmem:[%s8344_s4 + $0xd0] sm:$0xf0]  ;;  %v5419_v43 = vld [vmem:[%s8344_s4 + $0xd4] sm:$0xf0] }
 0x3eb   :  { %5519 = vtanh.f32 %v1883_v61  ;;  %v4768_v61 = vld [vmem:[%s8342_s2 + $0x98] sm:$0xf0]  ;;  %2383 = vmatpush.bf16.msrb.mxu1 %v4763_v15  ;;  %v4939_v42 = vor.u32 %v5416_v40, %v4936_v10  ;;  %v5417_v52 = vld [vmem:[%s8344_s4 + $0xcc] sm:$0xf]  ;;  %v4872_v40 = vld [vmem:[%s8344_s4 + $0x50] sm:$0xf0] }
 0x3ec   :  { %v1858_v35 = vpop.f32.mrf.mxu2  ;;  %v1871_v37 = vpop.f32.mrf.mxu3  ;;  %v4771_v22 = vor.u32 %v5373_v28, %v4768_v61  ;;  %2370 = vmatpush.bf16.msra.mxu0 %v4759_v3  ;;  %v4712_v28 = vld [vmem:[%s8342_s2 + $0x30] sm:$0xf0]  ;;  %v4720_v15 = vld [vmem:[%s8342_s2 + $0x38] sm:$0xf0] }
 0x3ed   :  { %v1877_v16 = vadd.f32 %v1858_v35, %v196_v2  ;;  %v1878_v19 = vadd.f32 %v1871_v37, %v225_v33  ;;  %v1834_v39 = vpop.f32.mrf.mxu0  ;;  %v1847_v59 = vpop.f32.mrf.mxu1  ;;  %v5368_v35 = vld [vmem:[%s8342_s2 + $0x64] sm:$0xf]  ;;  %v4715_v3 = vor.u32 %v5360_v18, %v4712_v28  ;;  %v4920_v18 = vld [vmem:[%s8344_s4 + $0xb0] sm:$0xf0]  ;;  %v5415_v28 = vld [vmem:[%s8344_s4 + $0xb4] sm:$0xf0] }
 0x3ee   :  { %2409 = vmatpush.bf16.msra.mxu3 %v4771_v22  ;;  %v4747_v38 = vor.u32 %v5368_v35, %v4744_v7  ;;  %v4752_v39 = vld [vmem:[%s8342_s2 + $0x78] sm:$0xf0]  ;;  %v5358_v22 = vld [vmem:[%s8342_s2 + $0xc] sm:$0xf0]  ;;  %v4958_v7 = vld [vmem:[%s8344_s4 + $0xe8] sm:$0xf] }
 0x3ef   :  { %5521 = vtanh.f32 %v1877_v16  ;;  %v1888_v45 = vmul.f32 0.5, %v1878_v19  ;;  %v4751_v16 = vor.u32 %v5371_v58, %v4750_v25  ;;  %v5369_v19 = vld [vmem:[%s8342_s2 + $0x6c] sm:$0xf]  ;;  %v5423_v25 = vld [vmem:[%s8344_s4 + $0xf4] sm:$0xf0] }
 0x3f0   :  { %v5518_v53 = vpop.eup %5517  ;;  %v4755_v59 = vor.u32 %v5369_v19, %v4752_v39  ;;  %2384 = vmatpush.bf16.msrb.mxu1 %v4747_v38  ;;  %v5421_v58 = vld [vmem:[%s8344_s4 + $0xec] sm:$0xf]  ;;  %v4959_v38 = vor.u32 %v5423_v25, %v4958_v7  ;;  %v4934_v19 = vld [vmem:[%s8344_s4 + $0xc0] sm:$0xf]  ;;  %v5418_v39 = vld [vmem:[%s8344_s4 + $0xcc] sm:$0xf0] }
 0x3f1   :  { %v5520_v55 = vpop.eup %5519  ;;  %v1881_v11 = vadd.f32 1.0, %v5518_v53  ;;  %5523 = vtanh.f32 %v1888_v45  ;;  %2397 = vmatpush.bf16.msra.mxu2 %v4751_v16  ;;  %v5365_v45 = vld [vmem:[%s8342_s2 + $0x4c] sm:$0xf]  ;;  %v5362_v53 = vld [vmem:[%s8342_s2 + $0x2c] sm:$0xf0]  ;;  %v4935_v23 = vor.u32 %v5418_v39, %v4934_v19 }
 0x3f2   :  { %v1885_v14 = vadd.f32 1.0, %v5520_v55  ;;  %2410 = vmatpush.bf16.msra.mxu3 %v4755_v59  ;;  %v4739_v47 = vor.u32 %v5365_v45, %v4736_v46  ;;  %v4711_v60 = vor.u32 %v5362_v53, %v4710_v50  ;;  %v4718_v55 = vld [vmem:[%s8342_s2 + $0x28] sm:$0xf]  ;;  %v4960_v16 = vld [vmem:[%s8344_s4 + $0xf8] sm:$0xf0] }
 0x3f3   :  { %v1882_v17 = vmul.f32 0.5, %v1881_v11  ;;  %v5363_v11 = vld [vmem:[%s8342_s2 + $0x34] sm:$0xf0]  ;;  %v4963_v59 = vor.u32 %v5421_v58, %v4960_v16  ;;  %v4918_v46 = vld [vmem:[%s8344_s4 + $0xa0] sm:$0xf] }
 0x3f4   :  { %v1886_v6 = vmul.f32 0.5, %v1885_v14  ;;  %v1860_v4 = vpop.f32.mrf.mxu2  ;;  %v1873_v24 = vpop.f32.mrf.mxu3  ;;  %2385 = vmatpush.bf16.msrb.mxu1 %v4731_v44  ;;  %v4719_v61 = vor.u32 %v5363_v11, %v4718_v55  ;;  %v5361_v14 = vld [vmem:[%s8342_s2 + $0x2c] sm:$0xf]  ;;  %v4944_v44 = vld [vmem:[%s8344_s4 + $0xd8] sm:$0xf0] }
 0x3f5   :  { %v5522_v2 = vpop.eup %5521  ;;  %2398 = vmatpush.bf16.msra.mxu2 %v4735_v34  ;;  %v4723_v56 = vor.u32 %v5361_v14, %v4720_v15  ;;  %v4696_v24 = vld [vmem:[%s8342_s2 + $0x10] sm:$0xf0]  ;;  %v4947_v45 = vor.u32 %v5417_v52, %v4944_v44  ;;  %v5412_v50 = vld [vmem:[%s8344_s4 + $0xa4] sm:$0xf]  ;;  %v4902_v15 = vld [vmem:[%s8344_s4 + $0x80] sm:$0xf] }
 0x3f6   :  { %v1892_v20 = vmul.f32 %v1886_v6, %v7039_v9  ;;  %v1893_v5 = vmul.f32 %v5522_v2, %v1882_v17  ;;  %v4742_v9 = vld [vmem:[%s8342_s2 + $0x60] sm:$0xf]  ;;  %2411 = vmatpush.bf16.msra.mxu3 %v4739_v47  ;;  %v5356_v6 = vld [vmem:[%s8342_s2 + $0x4] sm:$0xf]  ;;  %v4702_v2 = vld [vmem:[%s8342_s2 + $0x8] sm:$0xf]  ;;  %v4923_v55 = vor.u32 %v5412_v50, %v4920_v18 }
 0x3f7   :  { %v5524_v29 = vpop.eup %5523  ;;  %v4743_v37 = vor.u32 %v5370_v26, %v4742_v9  ;;  %v4694_v17 = vld [vmem:[%s8342_s2] sm:$0xf]  ;;  %v5420_v9 = vld [vmem:[%s8344_s4 + $0xe4] sm:$0xf]  ;;  %v4952_v26 = vld [vmem:[%s8344_s4 + $0xf0] sm:$0xf0] }
 0x3f8   :  { %v7339_v31 = vadd.f32 %v1893_v5, %v1892_v20  ;;  %v1890_v33 = vadd.f32 1.0, %v5524_v29  ;;  %2386 = vmatpush.bf16.msrb.mxu1 %v4715_v3  ;;  %v4695_v4 = vor.u32 %v5358_v22, %v4694_v17  ;;  %v5359_v20 = vld [vmem:[%s8342_s2 + $0x14] sm:$0xf0]  ;;  %v4699_v5 = vor.u32 %v5356_v6, %v4696_v24  ;;  %v5414_v47 = vld [vmem:[%s8344_s4 + $0xac] sm:$0xf0] }
 0x3f9   :  { %2371 = vmatpush.bf16.msra.mxu0 %v4743_v37  ;;  %2399 = vmatpush.bf16.msra.mxu2 %v4719_v61  ;;  %v4703_v29 = vor.u32 %v5359_v20, %v4702_v2  ;;  %v4955_v37 = vor.u32 %v5420_v9, %v4952_v26  ;;  %v4919_v53 = vor.u32 %v5414_v47, %v4918_v46  ;;  %v5413_v3 = vld [vmem:[%s8344_s4 + $0xac] sm:$0xf]  ;;  %v4928_v61 = vld [vmem:[%s8344_s4 + $0xb8] sm:$0xf0]  ;;  %v5408_v17 = vld [vmem:[%s8344_s4 + $0x84] sm:$0xf] }
 0x3fa   :  { %5525 = vtanh.f32 %v7339_v31  ;;  %v1891_v21 = vmul.f32 0.5, %v1890_v33  ;;  %2412 = vmatpush.bf16.msra.mxu3 %v4723_v56  ;;  %v5357_v33 = vld [vmem:[%s8342_s2 + $0xc] sm:$0xf]  ;;  %v4931_v14 = vor.u32 %v5413_v3, %v4928_v61  ;;  %v5410_v56 = vld [vmem:[%s8344_s4 + $0x8c] sm:$0xf0] }
 0x3fb   :  { %v4903_v22 = vor.u32 %v5410_v56, %v4902_v15  ;;  %v4904_v6 = vld [vmem:[%s8344_s4 + $0x90] sm:$0xf0]  ;;  %v5411_v24 = vld [vmem:[%s8344_s4 + $0x94] sm:$0xf0]  ;;  %v5405_v19 = vld [vmem:[%s8344_s4 + $0x6c] sm:$0xf] }
 0x3fc   :  { %2387 = vmatpush.bf16.msrb.mxu1 %v4699_v5  ;;  %v4907_v2 = vor.u32 %v5408_v17, %v4904_v6  ;;  %v5409_v5 = vld [vmem:[%s8344_s4 + $0x8c] sm:$0xf]  ;;  %v5407_v7 = vld [vmem:[%s8344_s4 + $0x74] sm:$0xf0]  ;;  %v4896_v39 = vld [vmem:[%s8344_s4 + $0x78] sm:$0xf0] }
 0x3fd   :  { %2372 = vmatpush.bf16.msra.mxu0 %v4727_v41  ;;  %2400 = vmatpush.bf16.msra.mxu2 %v4703_v29  ;;  %v4942_v41 = vld [vmem:[%s8344_s4 + $0xc8] sm:$0xf]  ;;  %v4912_v29 = vld [vmem:[%s8344_s4 + $0x98] sm:$0xf0]  ;;  %v5403_v44 = vld [vmem:[%s8344_s4 + $0x54] sm:$0xf0] }
 0x3fe   :  { %v4943_v34 = vor.u32 %v5419_v43, %v4942_v41  ;;  %v4878_v52 = vld [vmem:[%s8344_s4 + $0x48] sm:$0xf]  ;;  %v4880_v46 = vld [vmem:[%s8344_s4 + $0x58] sm:$0xf0]  ;;  %v4854_v47 = vld [vmem:[%s8344_s4 + $0x20] sm:$0xf] }
 0x3ff   :  { %v5396_v18 = vld [vmem:[%s8344_s4 + $0x24] sm:$0xf]  ;;  %v4864_v56 = vld [vmem:[%s8344_s4 + $0x38] sm:$0xf0]  ;;  %v4838_v17 = vld [vmem:[%s8344_s4] sm:$0xf] }
 0x400   :  { %v5526_v62 = vpop.eup %5525 }
 0x401   :  { %v1896_v12 = vmul.f32 %v5526_v62, %v1891_v21  ;;  %2373 = vmatpush.bf16.msra.mxu0 %v4711_v60  ;;  %v4704_v21 = vld [vmem:[%s8342_s2 + $0x18] sm:$0xf0]  ;;  %v4950_v62 = vld [vmem:[%s8344_s4 + $0xe0] sm:$0xf]  ;;  %v4926_v60 = vld [vmem:[%s8344_s4 + $0xa8] sm:$0xf] }
 0x402   :  { %v4927_v11 = vor.u32 %v5415_v28, %v4926_v60  ;;  %v4856_v60 = vld [vmem:[%s8344_s4 + $0x30] sm:$0xf0]  ;;  %v4862_v28 = vld [vmem:[%s8344_s4 + $0x28] sm:$0xf] }
 0x403   :  { %v1897_v36 = vpack.c.bf16 %v1896_v12, %v1896_v12  ;;  %v4707_v12 = vor.u32 %v5357_v33, %v4704_v21  ;;  %v4915_v33 = vor.u32 %v5409_v5, %v4912_v29  ;;  %v4886_v21 = vld [vmem:[%s8344_s4 + $0x60] sm:$0xf]  ;;  %v4859_v15 = vor.u32 %v5396_v18, %v4856_v60  ;;  %v5392_v5 = vld [vmem:[%s8344_s4 + $0x4] sm:$0xf]  ;;  %v4840_v29 = vld [vmem:[%s8344_s4 + $0x10] sm:$0xf0] }
 0x405   :  { %1898 = vst [vmem:[#allocation5 + $0x14] sm:$0xf] %v1897_v36  ;;  %2103 = vmatmul.bf16.vlgmr.msrb.gmra.mxu0 %v1897_v36  ;;  %2116 = vmatmul.bf16.vlgmr.msra.gmra.mxu1 %v1897_v36 }
 0x406   :  { %2129 = vmatmul.bf16.vlgmr.msrb.gmra.mxu2 %v1897_v36  ;;  %2142 = vmatmul.bf16.vlgmr.msrb.gmra.mxu3 %v1897_v36  ;;  %v5422_v36 = vld [vmem:[%s8344_s4 + $0xec] sm:$0xf0] }
 0x407   :  { %2374 = vmatpush.bf16.msra.mxu0 %v4695_v4  ;;  %v4951_v35 = vor.u32 %v5422_v36, %v4950_v62  ;;  %2413 = vmatpush.bf16.msra.mxu3 %v4707_v12  ;;  %v4910_v4 = vld [vmem:[%s8344_s4 + $0x88] sm:$0xf]  ;;  %v5406_v62 = vld [vmem:[%s8344_s4 + $0x6c] sm:$0xf0]  ;;  %v5404_v12 = vld [vmem:[%s8344_s4 + $0x64] sm:$0xf] }
 0x408   :  { %2708 = vmatpush.bf16.msra.mxu1 %v4955_v37  ;;  %2737 = vmatpush.bf16.msrb.mxu2 %v4959_v38  ;;  %v4911_v20 = vor.u32 %v5411_v24, %v4910_v4  ;;  %v4887_v26 = vor.u32 %v5406_v62, %v4886_v21  ;;  %v4894_v37 = vld [vmem:[%s8344_s4 + $0x68] sm:$0xf]  ;;  %v5393_v62 = vld [vmem:[%s8344_s4 + $0xc] sm:$0xf] }
 0x409   :  { %v4895_v16 = vor.u32 %v5407_v7, %v4894_v37 }
 0x40b   :  { %2679 = vmatpush.bf16.msrb.mxu0 %v4951_v35  ;;  %2766 = vmatpush.bf16.msrb.mxu3 %v4963_v59  ;;  %v4888_v35 = vld [vmem:[%s8344_s4 + $0x70] sm:$0xf0]  ;;  %v4870_v59 = vld [vmem:[%s8344_s4 + $0x40] sm:$0xf] }
 0x40c   :  { %2709 = vmatpush.bf16.msra.mxu1 %v4939_v42  ;;  %2738 = vmatpush.bf16.msrb.mxu2 %v4943_v34  ;;  %v4891_v38 = vor.u32 %v5404_v12, %v4888_v35  ;;  %v4879_v34 = vor.u32 %v5403_v44, %v4878_v52  ;;  %v4848_v12 = vld [vmem:[%s8344_s4 + $0x18] sm:$0xf0]  ;;  %v5388_v44 = vld [vmem:[#allocation5] sm:$0xff] }
 0x40f   :  { %2680 = vmatpush.bf16.msrb.mxu0 %v4935_v23  ;;  %2767 = vmatpush.bf16.msrb.mxu3 %v4947_v45  ;;  %v4899_v23 = vor.u32 %v5405_v19, %v4896_v39  ;;  %v5401_v45 = vld [vmem:[%s8344_s4 + $0x4c] sm:$0xf] }
 0x410   :  { %2710 = vmatpush.bf16.msra.mxu1 %v4923_v55  ;;  %2739 = vmatpush.bf16.msrb.mxu2 %v4927_v11  ;;  %v4883_v50 = vor.u32 %v5401_v45, %v4880_v46  ;;  %v5399_v55 = vld [vmem:[%s8344_s4 + $0x34] sm:$0xf0]  ;;  %v5397_v11 = vld [vmem:[%s8344_s4 + $0x2c] sm:$0xf]  ;;  %v5452_v45 = vld [vmem:[%s8345_s5 + $0xe4] sm:$0xf] }
 0x413   :  { %2681 = vmatpush.bf16.msrb.mxu0 %v4919_v53  ;;  %2768 = vmatpush.bf16.msrb.mxu3 %v4931_v14  ;;  %v5398_v53 = vld [vmem:[%s8344_s4 + $0x2c] sm:$0xf0] }
 0x414   :  { %2711 = vmatpush.bf16.msra.mxu1 %v4907_v2  ;;  %2740 = vmatpush.bf16.msrb.mxu2 %v4911_v20  ;;  %v4855_v14 = vor.u32 %v5398_v53, %v4854_v47  ;;  %v4863_v2 = vor.u32 %v5399_v55, %v4862_v28  ;;  %v5394_v20 = vld [vmem:[%s8344_s4 + $0xc] sm:$0xf0]  ;;  %v5080_v47 = vld [vmem:[%s8345_s5 + $0xf0] sm:$0xf0]  ;;  %v5455_v53 = vld [vmem:[%s8345_s5 + $0xf4] sm:$0xf0] }
 0x415   :  { %v7658_v18 = vor.u32 %v5452_v45, %v5080_v47  ;;  %v5453_v28 = vld [vmem:[%s8345_s5 + $0xec] sm:$0xf]  ;;  %v5088_v55 = vld [vmem:[%s8345_s5 + $0xf8] sm:$0xf0]  ;;  %v5436_v45 = vld [vmem:[%s8345_s5 + $0x64] sm:$0xf] }
 0x416   :  { %v5016_v47 = vld [vmem:[%s8345_s5 + $0x70] sm:$0xf0] }
 0x417   :  { %2682 = vmatpush.bf16.msrb.mxu0 %v4903_v22  ;;  %2769 = vmatpush.bf16.msrb.mxu3 %v4915_v33  ;;  %v5395_v33 = vld [vmem:[%s8344_s4 + $0x14] sm:$0xf0] }
 0x418   :  { %2712 = vmatpush.bf16.msra.mxu1 %v4891_v38  ;;  %2741 = vmatpush.bf16.msrb.mxu2 %v4895_v16 }
 0x41b   :  { %2683 = vmatpush.bf16.msrb.mxu0 %v4887_v26  ;;  %2770 = vmatpush.bf16.msrb.mxu3 %v4899_v23  ;;  %v4843_v26 = vor.u32 %v5392_v5, %v4840_v29  ;;  %v5072_v5 = vld [vmem:[%s8345_s5 + $0xd8] sm:$0xf0] }
 0x41c   :  { %2742 = vmatpush.bf16.msrb.mxu2 %v4879_v34  ;;  %v5454_v34 = vld [vmem:[%s8345_s5 + $0xec] sm:$0xf0] }
 0x41f   :  { %2771 = vmatpush.bf16.msrb.mxu3 %v4883_v50  ;;  %v5086_v50 = vld [vmem:[%s8345_s5 + $0xe8] sm:$0xf] }
 0x420   :  { %2743 = vmatpush.bf16.msrb.mxu2 %v4863_v2  ;;  %v7660_v60 = vor.u32 %v5455_v53, %v5086_v50  ;;  %v201_v50 = vadd.f32 %v6120_v48, %v5971_v63  ;;  %v230_v53 = vadd.f32 %v6131_v1, %v5973_v0  ;;  %v5437_v63 = vld [vmem:[%s8345_s5 + $0x6c] sm:$0xf]  ;;  %v7812_v0 = vor.u32 %v5436_v45, %v5016_v47 }
 0x482   :  { %v2104_v36 = vpop.f32.mrf.mxu0  ;;  %v2117_v9 = vpop.f32.mrf.mxu1 }
 0x483   :  { %v2147_v25 = vadd.f32 %v2104_v36, %v5952_v54  ;;  %v2148_v58 = vadd.f32 %v2117_v9, %v6149_v30  ;;  %v5402_v54 = vld [vmem:[%s8344_s4 + $0x4c] sm:$0xf0]  ;;  %v5400_v30 = vld [vmem:[%s8344_s4 + $0x44] sm:$0xf]  ;;  %v4839_v9 = vor.u32 %v5394_v20, %v4838_v17  ;;  %v5449_v20 = vld [vmem:[%s8345_s5 + $0xcc] sm:$0xf] }
 0x484   :  { %v4871_v42 = vor.u32 %v5402_v54, %v4870_v59  ;;  %v4875_v43 = vor.u32 %v5400_v30, %v4872_v40  ;;  %v7707_v29 = vor.u32 %v5449_v20, %v5072_v5 }
 0x485   :  { %v2151_v10 = vmul.f32 0.5, %v2147_v25  ;;  %v2155_v41 = vmul.f32 0.5, %v2148_v58  ;;  %v4851_v58 = vor.u32 %v5393_v62, %v4848_v12  ;;  %v5444_v62 = vld [vmem:[%s8345_s5 + $0xa4] sm:$0xf] }
 0x486   :  { %2684 = vmatpush.bf16.msrb.mxu0 %v4871_v42  ;;  %2713 = vmatpush.bf16.msra.mxu1 %v4875_v43 }
 0x487   :  { %5527 = vtanh.f32 %v2151_v10 }
 0x488   :  { %5529 = vtanh.f32 %v2155_v41 }
 0x489   :  { %v2130_v3 = vpop.f32.mrf.mxu2  ;;  %v2143_v61 = vpop.f32.mrf.mxu3 }
 0x48a   :  { %v2149_v22 = vadd.f32 %v2130_v3, %v6074_v13  ;;  %v2150_v6 = vadd.f32 %v2143_v61, %v6086_v27  ;;  %v2106_v4 = vpop.f32.mrf.mxu0  ;;  %v2119_v24 = vpop.f32.mrf.mxu1  ;;  %v4867_v13 = vor.u32 %v5397_v11, %v4864_v56  ;;  %v4846_v27 = vld [vmem:[%s8344_s4 + $0x8] sm:$0xf]  ;;  %2685 = vmatpush.bf16.msrb.mxu0 %v4855_v14  ;;  %2714 = vmatpush.bf16.msra.mxu1 %v4859_v15  ;;  %v5390_v61 = vld [vmem:[#allocation5 + $0x10] sm:$0xff]  ;;  %v5062_v14 = vld [vmem:[%s8345_s5 + $0xc0] sm:$0xf] }
 0x48b   :  { %v4847_v7 = vor.u32 %v5395_v33, %v4846_v27  ;;  %v7669_v11 = vor.u32 %v5453_v28, %v5088_v55  ;;  %v5389_v3 = vld [vmem:[#allocation5 + $0x8] sm:$0xff]  ;;  %v5450_v15 = vld [vmem:[%s8345_s5 + $0xcc] sm:$0xf0]  ;;  %v5448_v56 = vld [vmem:[%s8345_s5 + $0xc4] sm:$0xf]  ;;  %v172_v27 = vadd.f32 %v6207_v32, %v5987_v8 }
 0x48c   :  { %5531 = vtanh.f32 %v2149_v22  ;;  %v2160_v21 = vmul.f32 0.5, %v2150_v6  ;;  %2772 = vmatpush.bf16.msrb.mxu3 %v4867_v13  ;;  %v7683_v17 = vor.u32 %v5450_v15, %v5062_v14  ;;  %v5064_v22 = vld [vmem:[%s8345_s5 + $0xd0] sm:$0xf0]  ;;  %v5070_v6 = vld [vmem:[%s8345_s5 + $0xc8] sm:$0xf]  ;;  %v143_v13 = vadd.f32 %v5960_v57, %v5947_v51 }
 0x48d   :  { %v5528_v36 = vpop.eup %5527  ;;  %2744 = vmatpush.bf16.msrb.mxu2 %v4847_v7  ;;  %v5451_v4 = vld [vmem:[%s8345_s5 + $0xd4] sm:$0xf0]  ;;  %v7694_v24 = vor.u32 %v5448_v56, %v5064_v22  ;;  %v5046_v33 = vld [vmem:[%s8345_s5 + $0xa0] sm:$0xf]  ;;  %v5048_v51 = vld [vmem:[%s8345_s5 + $0xb0] sm:$0xf0] }
 0x48e   :  { %v5530_v35 = vpop.eup %5529  ;;  %v2153_v37 = vadd.f32 1.0, %v5528_v36  ;;  %5533 = vtanh.f32 %v2160_v21  ;;  %2686 = vmatpush.bf16.msrb.mxu0 %v4839_v9  ;;  %2715 = vmatpush.bf16.msra.mxu1 %v4843_v26  ;;  %v7696_v2 = vor.u32 %v5451_v4, %v5070_v6  ;;  %v5446_v21 = vld [vmem:[%s8345_s5 + $0xac] sm:$0xf0]  ;;  %v5054_v57 = vld [vmem:[%s8345_s5 + $0xa8] sm:$0xf] }
 0x48f   :  { %v2157_v25 = vadd.f32 1.0, %v5530_v35  ;;  %v7723_v9 = vor.u32 %v5446_v21, %v5046_v33  ;;  %v5447_v8 = vld [vmem:[%s8345_s5 + $0xb4] sm:$0xf0]  ;;  %v7734_v35 = vor.u32 %v5444_v62, %v5048_v51  ;;  %v5445_v7 = vld [vmem:[%s8345_s5 + $0xac] sm:$0xf] }
 0x490   :  { %v2154_v38 = vmul.f32 0.5, %v2153_v37  ;;  %2773 = vmatpush.bf16.msrb.mxu3 %v4851_v58  ;;  %v7736_v37 = vor.u32 %v5447_v8, %v5054_v57  ;;  %v5030_v58 = vld [vmem:[%s8345_s5 + $0x80] sm:$0xf]  ;;  %v5022_v55 = vld [vmem:[%s8345_s5 + $0x68] sm:$0xf] }
 0x491   :  { %v2158_v16 = vmul.f32 0.5, %v2157_v25  ;;  %v2132_v19 = vpop.f32.mrf.mxu2  ;;  %v2145_v39 = vpop.f32.mrf.mxu3  ;;  %v5056_v25 = vld [vmem:[%s8345_s5 + $0xb8] sm:$0xf0]  ;;  %v4998_v15 = vld [vmem:[%s8345_s5 + $0x40] sm:$0xf] }
 0x492   :  { %v5532_v59 = vpop.eup %5531  ;;  %v5440_v19 = vld [vmem:[%s8345_s5 + $0x84] sm:$0xf]  ;;  %v5032_v39 = vld [vmem:[%s8345_s5 + $0x90] sm:$0xf0]  ;;  %v5024_v14 = vld [vmem:[%s8345_s5 + $0x78] sm:$0xf0] }
 0x493   :  { %v2164_v23 = vmul.f32 %v2158_v16, %v7339_v31  ;;  %v2165_v54 = vmul.f32 %v5532_v59, %v2154_v38  ;;  %v5078_v31 = vld [vmem:[%s8345_s5 + $0xe0] sm:$0xf]  ;;  %v7748_v38 = vor.u32 %v5445_v7, %v5056_v25  ;;  %v5442_v16 = vld [vmem:[%s8345_s5 + $0x8c] sm:$0xf0]  ;;  %v7826_v5 = vor.u32 %v5437_v63, %v5024_v14  ;;  %v5006_v33 = vld [vmem:[%s8345_s5 + $0x48] sm:$0xf] }
 0x494   :  { %v5534_v30 = vpop.eup %5533  ;;  %v7647_v46 = vor.u32 %v5454_v34, %v5078_v31  ;;  %v5438_v34 = vld [vmem:[%s8345_s5 + $0x6c] sm:$0xf0]  ;;  %v5435_v21 = vld [vmem:[%s8345_s5 + $0x54] sm:$0xf0]  ;;  %v5433_v62 = vld [vmem:[%s8345_s5 + $0x4c] sm:$0xf] }
 0x495   :  { %v7635_v40 = vadd.f32 %v2165_v54, %v2164_v23  ;;  %v2162_v10 = vadd.f32 1.0, %v5534_v30  ;;  %v7761_v54 = vor.u32 %v5442_v16, %v5030_v58  ;;  %v7763_v30 = vor.u32 %v5440_v19, %v5032_v39  ;;  %v5434_v56 = vld [vmem:[%s8345_s5 + $0x4c] sm:$0xf0]  ;;  %v4982_v57 = vld [vmem:[%s8345_s5 + $0x20] sm:$0xf] }
 0x496   :  { %v7847_v51 = vor.u32 %v5434_v56, %v4998_v15  ;;  %v5430_v7 = vld [vmem:[%s8345_s5 + $0x2c] sm:$0xf0]  ;;  %v5428_v25 = vld [vmem:[%s8345_s5 + $0x24] sm:$0xf]  ;;  %v4984_v58 = vld [vmem:[%s8345_s5 + $0x30] sm:$0xf0] }
 0x497   :  { %5535 = vtanh.f32 %v7635_v40  ;;  %v2163_v41 = vmul.f32 0.5, %v2162_v10  ;;  %v5038_v10 = vld [vmem:[%s8345_s5 + $0x88] sm:$0xf]  ;;  %v7881_v45 = vor.u32 %v5428_v25, %v4984_v58  ;;  %v5424_v14 = vld [vmem:[%s8345_s5 + $0x4] sm:$0xf] }
 0x49d   :  { %v5536_v42 = vpop.eup %5535 }
 0x49e   :  { %v2168_v43 = vmul.f32 %v5536_v42, %v2163_v41  ;;  %v5443_v41 = vld [vmem:[%s8345_s5 + $0x94] sm:$0xf0] }
 0x49f   :  { %v7772_v42 = vor.u32 %v5443_v41, %v5038_v10 }
 0x4a0   :  { %v2169_v52 = vpack.c.bf16 %v2168_v43, %v2168_v43  ;;  %v5441_v43 = vld [vmem:[%s8345_s5 + $0x8c] sm:$0xf] }
 0x4a2   :  { %2170 = vst [vmem:[#allocation5 + $0x18] sm:$0xf] %v2169_v52  ;;  %2375 = vmatmul.bf16.vlgmr.msra.gmra.mxu0 %v2169_v52  ;;  %2388 = vmatmul.bf16.vlgmr.msrb.gmra.mxu1 %v2169_v52 }
 0x4a3   :  { %2401 = vmatmul.bf16.vlgmr.msra.gmra.mxu2 %v2169_v52  ;;  %2414 = vmatmul.bf16.vlgmr.msra.gmra.mxu3 %v2169_v52  ;;  %v5040_v52 = vld [vmem:[%s8345_s5 + $0x98] sm:$0xf0] }
 0x4a4   :  { %3028 = vmatpush.bf16.msra.mxu0 %v7647_v46  ;;  %3041 = vmatpush.bf16.msrb.mxu1 %v7658_v18  ;;  %v7783_v31 = vor.u32 %v5441_v43, %v5040_v52  ;;  %v7877_v43 = vor.u32 %v5430_v7, %v4982_v57 }
 0x4a5   :  { %3054 = vmatpush.bf16.msra.mxu2 %v7660_v60  ;;  %3067 = vmatpush.bf16.msra.mxu3 %v7669_v11 }
 0x4a8   :  { %3029 = vmatpush.bf16.msra.mxu0 %v7683_v17  ;;  %3042 = vmatpush.bf16.msrb.mxu1 %v7694_v24 }
 0x4a9   :  { %3055 = vmatpush.bf16.msra.mxu2 %v7696_v2  ;;  %3068 = vmatpush.bf16.msra.mxu3 %v7707_v29 }
 0x4ac   :  { %3030 = vmatpush.bf16.msra.mxu0 %v7723_v9  ;;  %3043 = vmatpush.bf16.msrb.mxu1 %v7734_v35 }
 0x4ad   :  { %3056 = vmatpush.bf16.msra.mxu2 %v7736_v37  ;;  %3069 = vmatpush.bf16.msra.mxu3 %v7748_v38 }
 0x4b0   :  { %3031 = vmatpush.bf16.msra.mxu0 %v7761_v54  ;;  %3044 = vmatpush.bf16.msrb.mxu1 %v7763_v30 }
 0x4b1   :  { %3057 = vmatpush.bf16.msra.mxu2 %v7772_v42  ;;  %3070 = vmatpush.bf16.msra.mxu3 %v7783_v31 }
 0x4b2   :  { %2687 = vmatmul.bf16.vlgmr.msrb.gmra.mxu0 %v5388_v44  ;;  %2716 = vmatmul.bf16.vlgmr.msra.gmra.mxu1 %v5388_v44 }
 0x4b3   :  { %2745 = vmatmul.bf16.vlgmr.msrb.gmra.mxu2 %v5388_v44  ;;  %2774 = vmatmul.bf16.vlgmr.msrb.gmra.mxu3 %v5388_v44  ;;  %v5014_v44 = vld [vmem:[%s8345_s5 + $0x60] sm:$0xf] }
 0x4b4   :  { %v7799_v28 = vor.u32 %v5438_v34, %v5014_v44  ;;  %3045 = vmatpush.bf16.msrb.mxu1 %v7812_v0 }
 0x4b5   :  { %3071 = vmatpush.bf16.msra.mxu3 %v7826_v5 }
 0x4b6   :  { %3032 = vmatpush.bf16.msra.mxu0 %v7799_v28 }
 0x4ba   :  { %3033 = vmatpush.bf16.msra.mxu0 %v7847_v51 }
 0x4be   :  { %3034 = vmatpush.bf16.msra.mxu0 %v7877_v43 }
 0x4c2   :  { %2692 = vmatmul.bf16.gmra.mxu0 %v5389_v3  ;;  %2721 = vmatmul.bf16.gmra.mxu1 %v5389_v3 }
 0x4c3   :  { %2750 = vmatmul.bf16.gmra.mxu2 %v5389_v3  ;;  %2779 = vmatmul.bf16.gmra.mxu3 %v5389_v3  ;;  %v5439_v3 = vld [vmem:[%s8345_s5 + $0x74] sm:$0xf0] }
 0x4c4   :  { %v7814_v1 = vor.u32 %v5439_v3, %v5022_v55  ;;  %v4992_v55 = vld [vmem:[%s8345_s5 + $0x38] sm:$0xf0] }
 0x4c6   :  { %3058 = vmatpush.bf16.msra.mxu2 %v7814_v1 }
 0x4d2   :  { %2697 = vmatmul.bf16.gmra.mxu0 %v5390_v61  ;;  %2726 = vmatmul.bf16.gmra.mxu1 %v5390_v61 }
 0x4d3   :  { %2755 = vmatmul.bf16.gmra.mxu2 %v5390_v61  ;;  %2784 = vmatmul.bf16.gmra.mxu3 %v5390_v61 }
 0x51f   :  { %v2376_v12 = vpop.f32.mrf.mxu0  ;;  %v2389_v36 = vpop.f32.mrf.mxu1 }
 0x520   :  { %v2419_v32 = vadd.f32 %v2376_v12, %v143_v13  ;;  %v2420_v26 = vadd.f32 %v2389_v36, %v172_v27  ;;  %v5432_v13 = vld [vmem:[%s8345_s5 + $0x44] sm:$0xf]  ;;  %v5000_v27 = vld [vmem:[%s8345_s5 + $0x50] sm:$0xf0]  ;;  %v5008_v12 = vld [vmem:[%s8345_s5 + $0x58] sm:$0xf0] }
 0x521   :  { %v7868_v39 = vor.u32 %v5433_v62, %v5008_v12 }
 0x522   :  { %v2423_v59 = vmul.f32 0.5, %v2419_v32  ;;  %v2427_v23 = vmul.f32 0.5, %v2420_v26  ;;  %v7854_v32 = vor.u32 %v5432_v13, %v5000_v27  ;;  %v7856_v26 = vor.u32 %v5435_v21, %v5006_v33  ;;  %v5425_v33 = vld [vmem:[%s8345_s5 + $0xc] sm:$0xf]  ;;  %v4976_v21 = vld [vmem:[%s8345_s5 + $0x18] sm:$0xf0] }
 0x523   :  { %3072 = vmatpush.bf16.msra.mxu3 %v7868_v39  ;;  %v7929_v62 = vor.u32 %v5425_v33, %v4976_v21 }
 0x524   :  { %5537 = vtanh.f32 %v2423_v59  ;;  %v4990_v59 = vld [vmem:[%s8345_s5 + $0x28] sm:$0xf]  ;;  %3046 = vmatpush.bf16.msrb.mxu1 %v7854_v32  ;;  %3059 = vmatpush.bf16.msra.mxu2 %v7856_v26 }
 0x525   :  { %5539 = vtanh.f32 %v2427_v23  ;;  %v5431_v23 = vld [vmem:[%s8345_s5 + $0x34] sm:$0xf0] }
 0x526   :  { %v2402_v48 = vpop.f32.mrf.mxu2  ;;  %v2415_v61 = vpop.f32.mrf.mxu3  ;;  %v7883_v47 = vor.u32 %v5431_v23, %v4990_v59 }
 0x527   :  { %v2421_v22 = vadd.f32 %v2402_v48, %v201_v50  ;;  %v2422_v6 = vadd.f32 %v2415_v61, %v230_v53  ;;  %v2378_v4 = vpop.f32.mrf.mxu0  ;;  %v2391_v20 = vpop.f32.mrf.mxu1  ;;  %v5429_v53 = vld [vmem:[%s8345_s5 + $0x2c] sm:$0xf]  ;;  %v4966_v48 = vld [vmem:[%s8345_s5] sm:$0xf]  ;;  %v5426_v61 = vld [vmem:[%s8345_s5 + $0xc] sm:$0xf0] }
 0x528   :  { %v7903_v15 = vor.u32 %v5429_v53, %v4992_v55  ;;  %v7905_v56 = vor.u32 %v5426_v61, %v4966_v48  ;;  %3047 = vmatpush.bf16.msrb.mxu1 %v7881_v45  ;;  %3060 = vmatpush.bf16.msra.mxu2 %v7883_v47 }
 0x529   :  { %5541 = vtanh.f32 %v2421_v22  ;;  %v2432_v36 = vmul.f32 0.5, %v2422_v6  ;;  %v4974_v22 = vld [vmem:[%s8345_s5 + $0x8] sm:$0xf]  ;;  %v5427_v6 = vld [vmem:[%s8345_s5 + $0x14] sm:$0xf0] }
 0x52a   :  { %v5538_v8 = vpop.eup %5537  ;;  %v7920_v27 = vor.u32 %v5427_v6, %v4974_v22  ;;  %3073 = vmatpush.bf16.msra.mxu3 %v7903_v15  ;;  %3035 = vmatpush.bf16.msra.mxu0 %v7905_v56 }
 0x52b   :  { %v5540_v16 = vpop.eup %5539  ;;  %v2425_v19 = vadd.f32 1.0, %v5538_v8  ;;  %5543 = vtanh.f32 %v2432_v36 }
 0x52c   :  { %v2429_v10 = vadd.f32 1.0, %v5540_v16  ;;  %3061 = vmatpush.bf16.msra.mxu2 %v7920_v27 }
 0x52d   :  { %v2426_v41 = vmul.f32 0.5, %v2425_v19 }
 0x52e   :  { %v2430_v52 = vmul.f32 0.5, %v2429_v10  ;;  %v2404_v44 = vpop.f32.mrf.mxu2  ;;  %v2417_v34 = vpop.f32.mrf.mxu3  ;;  %3074 = vmatpush.bf16.msra.mxu3 %v7929_v62  ;;  %3107 = vmatpush.bf16.msrb.mxu0 %v7647_v46 }
 0x52f   :  { %v5542_v50 = vpop.eup %5541  ;;  %v2717_v58 = vpop.f32.mrf.mxu1 }
 0x530   :  { %v2436_v3 = vmul.f32 %v2430_v52, %v7635_v40  ;;  %v2437_v63 = vmul.f32 %v5542_v50, %v2426_v41  ;;  %v4968_v40 = vld [vmem:[%s8345_s5 + $0x10] sm:$0xf0]  ;;  %3133 = vmatpush.bf16.msrb.mxu2 %v7660_v60 }
 0x531   :  { %v5544_v4 = vpop.eup %5543  ;;  %v7918_v13 = vor.u32 %v5424_v14, %v4968_v40 }
 0x532   :  { %v2438_v20 = vadd.f32 %v2437_v63, %v2436_v3  ;;  %v2434_v12 = vadd.f32 1.0, %v5544_v4  ;;  %3146 = vmatpush.bf16.msrb.mxu3 %v7669_v11  ;;  %3108 = vmatpush.bf16.msrb.mxu0 %v7683_v17 }
 0x533   :  { %3048 = vmatpush.bf16.msrb.mxu1 %v7918_v13 }
 0x534   :  { %5545 = vtanh.f32 %v2438_v20  ;;  %v2435_v36 = vmul.f32 0.5, %v2434_v12  ;;  %3134 = vmatpush.bf16.msrb.mxu2 %v7696_v2 }
 0x536   :  { %3147 = vmatpush.bf16.msrb.mxu3 %v7707_v29  ;;  %3109 = vmatpush.bf16.msrb.mxu0 %v7723_v9  ;;  %v2746_v16 = vpop.f32.mrf.mxu2  ;;  %v2775_v19 = vpop.f32.mrf.mxu3 }
 0x537   :  { %3120 = vmatpush.bf16.msra.mxu1 %v7658_v18  ;;  %v8005_v23 = vpop.f32.mrf.mxu1 }
 0x538   :  { %3135 = vmatpush.bf16.msrb.mxu2 %v7736_v37 }
 0x53a   :  { %v5546_v57 = vpop.eup %5545  ;;  %3148 = vmatpush.bf16.msrb.mxu3 %v7748_v38  ;;  %3110 = vmatpush.bf16.msrb.mxu0 %v7761_v54 }
 0x53b   :  { %v2440_v8 = vmul.f32 %v5546_v57, %v2435_v36  ;;  %3121 = vmatpush.bf16.msra.mxu1 %v7694_v24  ;;  %v2485_v57 = vld [vmem:[%s8346_s6] sm:$0xf] }
 0x53c   :  { %3136 = vmatpush.bf16.msrb.mxu2 %v7772_v42 }
 0x53d   :  { %v2441_v7 = vpack.c.bf16 %v2440_v8, %v2440_v8 }
 0x53e   :  { %3149 = vmatpush.bf16.msrb.mxu3 %v7783_v31  ;;  %3111 = vmatpush.bf16.msrb.mxu0 %v7799_v28  ;;  %v8007_v10 = vpop.f32.mrf.mxu2  ;;  %v8009_v41 = vpop.f32.mrf.mxu3 }
 0x53f   :  { %2442 = vst [vmem:[#allocation5 + $0x1c] sm:$0xf] %v2441_v7  ;;  %3122 = vmatpush.bf16.msra.mxu1 %v7734_v35  ;;  %v8013_v44 = vpop.f32.mrf.mxu1 }
 0x540   :  { %3137 = vmatpush.bf16.msrb.mxu2 %v7814_v1 }
 0x542   :  { %3150 = vmatpush.bf16.msrb.mxu3 %v7826_v5  ;;  %3112 = vmatpush.bf16.msrb.mxu0 %v7847_v51 }
 0x543   :  { %3123 = vmatpush.bf16.msra.mxu1 %v7763_v30 }
 0x544   :  { %3138 = vmatpush.bf16.msrb.mxu2 %v7856_v26 }
 0x546   :  { %v5391_v25 = vld [vmem:[#allocation5 + $0x18] sm:$0xff]  ;;  %3151 = vmatpush.bf16.msrb.mxu3 %v7868_v39  ;;  %3113 = vmatpush.bf16.msrb.mxu0 %v7877_v43  ;;  %v8015_v34 = vpop.f32.mrf.mxu2  ;;  %v8017_v50 = vpop.f32.mrf.mxu3 }
 0x547   :  { %2702 = vmatmul.bf16.gmra.mxu0 %v5391_v25  ;;  %2731 = vmatmul.bf16.gmra.mxu1 %v5391_v25  ;;  %8350 = vst [vmem:[#allocation6_spill] sm:$0xff] %v8015_v34  ;;  %v8021_v55 = vpop.f32.mrf.mxu1 }
 0x548   :  { %2760 = vmatmul.bf16.gmra.mxu2 %v5391_v25  ;;  %2789 = vmatmul.bf16.gmra.mxu3 %v5391_v25  ;;  %8351 = vst [vmem:[#allocation7_spill] sm:$0xff] %v8017_v50  ;;  %v8058_v25 = vperm.slane %v2485_v57, 0 }
 0x549   :  { %3124 = vmatpush.bf16.msra.mxu1 %v7812_v0  ;;  %3139 = vmatpush.bf16.msrb.mxu2 %v7883_v47  ;;  %8353 = vst [vmem:[#allocation9_spill] sm:$0xff] %v8021_v55 }
 0x54a   :  { %3152 = vmatpush.bf16.msrb.mxu3 %v7903_v15  ;;  %3114 = vmatpush.bf16.msrb.mxu0 %v7905_v56 }
 0x54d   :  { %3125 = vmatpush.bf16.msra.mxu1 %v7854_v32  ;;  %3140 = vmatpush.bf16.msrb.mxu2 %v7920_v27 }
 0x54e   :  { %3153 = vmatpush.bf16.msrb.mxu3 %v7929_v62  ;;  %v8023_v3 = vpop.f32.mrf.mxu2  ;;  %v8025_v63 = vpop.f32.mrf.mxu3 }
 0x54f   :  { %8354 = vst [vmem:[#allocation10_spill] sm:$0xff] %v8023_v3  ;;  %v8029_v61 = vpop.f32.mrf.mxu1 }
 0x550   :  { %8355 = vst [vmem:[#allocation11_spill] sm:$0xff] %v8025_v63 }
 0x551   :  { %3126 = vmatpush.bf16.msra.mxu1 %v7881_v45  ;;  %8357 = vst [vmem:[#allocation13_spill] sm:$0xff] %v8029_v61 }
 0x555   :  { %3127 = vmatpush.bf16.msra.mxu1 %v7918_v13 }
 0x556   :  { %v8031_v14 = vpop.f32.mrf.mxu2  ;;  %v8033_v40 = vpop.f32.mrf.mxu3 }
 0x557   :  { %3036 = vmatmul.bf16.vlgmr.msra.gmra.mxu0 %v5627_v49  ;;  %3049 = vmatmul.bf16.vlgmr.msrb.gmra.mxu1 %v5627_v49  ;;  %8358 = vst [vmem:[#allocation14_spill] sm:$0xff] %v8031_v14  ;;  %v8037_v6 = vpop.f32.mrf.mxu1  ;;  %v8068_v14 = vperm.slane %v2485_v57, 2 }
 0x558   :  { %3062 = vmatmul.bf16.vlgmr.msra.gmra.mxu2 %v5627_v49  ;;  %3075 = vmatmul.bf16.vlgmr.msra.gmra.mxu3 %v5627_v49  ;;  %v2688_v49 = vpop.f32.mrf.mxu0  ;;  %8359 = vst [vmem:[#allocation15_spill] sm:$0xff] %v8033_v40 }
 0x559   :  { %3186 = vmatpush.bf16.msra.mxu0 %v7647_v46  ;;  %3199 = vmatpush.bf16.msrb.mxu1 %v7658_v18  ;;  %8361 = vst [vmem:[#allocation17_spill] sm:$0xff] %v8037_v6 }
 0x55a   :  { %3212 = vmatpush.bf16.msra.mxu2 %v7660_v60  ;;  %3225 = vmatpush.bf16.msra.mxu3 %v7669_v11 }
 0x55d   :  { %3187 = vmatpush.bf16.msra.mxu0 %v7683_v17  ;;  %3200 = vmatpush.bf16.msrb.mxu1 %v7694_v24 }
 0x55e   :  { %3213 = vmatpush.bf16.msra.mxu2 %v7696_v2  ;;  %3226 = vmatpush.bf16.msra.mxu3 %v7707_v29  ;;  %v8039_v4 = vpop.f32.mrf.mxu2  ;;  %v8041_v20 = vpop.f32.mrf.mxu3 }
 0x55f   :  { %8362 = vst [vmem:[#allocation18_spill] sm:$0xff] %v8039_v4  ;;  %v8060_v4 = vperm.slane %v2485_v57, 1 }
 0x560   :  { %v8003_v59 = vpop.f32.mrf.mxu0  ;;  %8363 = vst [vmem:[#allocation19_spill] sm:$0xff] %v8041_v20 }
 0x561   :  { %3188 = vmatpush.bf16.msra.mxu0 %v7723_v9  ;;  %3201 = vmatpush.bf16.msrb.mxu1 %v7734_v35 }
 0x562   :  { %3214 = vmatpush.bf16.msra.mxu2 %v7736_v37  ;;  %3227 = vmatpush.bf16.msra.mxu3 %v7748_v38 }
 0x565   :  { %3189 = vmatpush.bf16.msra.mxu0 %v7761_v54  ;;  %3202 = vmatpush.bf16.msrb.mxu1 %v7763_v30 }
 0x566   :  { %3215 = vmatpush.bf16.msra.mxu2 %v7772_v42  ;;  %3228 = vmatpush.bf16.msra.mxu3 %v7783_v31 }
 0x568   :  { %v8011_v52 = vpop.f32.mrf.mxu0 }
 0x569   :  { %3190 = vmatpush.bf16.msra.mxu0 %v7799_v28  ;;  %3203 = vmatpush.bf16.msrb.mxu1 %v7812_v0 }
 0x56a   :  { %3216 = vmatpush.bf16.msra.mxu2 %v7814_v1  ;;  %3229 = vmatpush.bf16.msra.mxu3 %v7826_v5 }
 0x56d   :  { %3191 = vmatpush.bf16.msra.mxu0 %v7847_v51  ;;  %3204 = vmatpush.bf16.msrb.mxu1 %v7854_v32 }
 0x56e   :  { %3217 = vmatpush.bf16.msra.mxu2 %v7856_v26  ;;  %3230 = vmatpush.bf16.msra.mxu3 %v7868_v39 }
 0x570   :  { %v8019_v53 = vpop.f32.mrf.mxu0 }
 0x571   :  { %3192 = vmatpush.bf16.msra.mxu0 %v7877_v43  ;;  %3205 = vmatpush.bf16.msrb.mxu1 %v7881_v45  ;;  %8352 = vst [vmem:[#allocation8_spill] sm:$0xff] %v8019_v53 }
 0x572   :  { %3218 = vmatpush.bf16.msra.mxu2 %v7883_v47  ;;  %3231 = vmatpush.bf16.msra.mxu3 %v7903_v15 }
 0x575   :  { %3193 = vmatpush.bf16.msra.mxu0 %v7905_v56  ;;  %3206 = vmatpush.bf16.msrb.mxu1 %v7918_v13 }
 0x576   :  { %3219 = vmatpush.bf16.msra.mxu2 %v7920_v27  ;;  %3232 = vmatpush.bf16.msra.mxu3 %v7929_v62 }
 0x578   :  { %v8027_v48 = vpop.f32.mrf.mxu0 }
 0x579   :  { %8356 = vst [vmem:[#allocation12_spill] sm:$0xff] %v8027_v48  ;;  %v2747_v48 = vadd.f32 %v2746_v16, %v8068_v14 }
 0x580   :  { %v8035_v22 = vpop.f32.mrf.mxu0 }
 0x581   :  { %8360 = vst [vmem:[#allocation16_spill] sm:$0xff] %v8035_v22 }
 0x5c4   :  { %v8043_v33 = vpop.f32.mrf.mxu0  ;;  %v8045_v21 = vpop.f32.mrf.mxu1 }
 0x5c5   :  { %8364 = vst [vmem:[#allocation20_spill] sm:$0xff] %v8043_v33  ;;  %v2689_v33 = vadd.f32 %v2688_v49, %v8058_v25 }
 0x5c6   :  { %8365 = vst [vmem:[#allocation21_spill] sm:$0xff] %v8045_v21  ;;  %v2718_v21 = vadd.f32 %v2717_v58, %v8060_v4 }
 0x5cb   :  { %v8047_v12 = vpop.f32.mrf.mxu2  ;;  %v8049_v36 = vpop.f32.mrf.mxu3 }
 0x5cc   :  { %8366 = vst [vmem:[#allocation22_spill] sm:$0xff] %v8047_v12  ;;  %v8054_v8 = vpop.f32.mrf.mxu0  ;;  %v8056_v7 = vpop.f32.mrf.mxu1 }
 0x5cd   :  { %8367 = vst [vmem:[#allocation23_spill] sm:$0xff] %v8049_v36 }
 0x5ce   :  { %8368 = vst [vmem:[#allocation24_spill] sm:$0xff] %v8054_v8  ;;  %v8070_v8 = vperm.slane %v2485_v57, 3 }
 0x5cf   :  { %8369 = vst [vmem:[#allocation25_spill] sm:$0xff] %v8056_v7 }
 0x5d0   :  { %v2776_v49 = vadd.f32 %v2775_v19, %v8070_v8 }
 0x5d3   :  { %v8064_v20 = vpop.f32.mrf.mxu2  ;;  %v8066_v12 = vpop.f32.mrf.mxu3 }
 0x5d4   :  { %8370 = vst [vmem:[#allocation26_spill] sm:$0xff] %v8064_v20  ;;  %v3037_v36 = vpop.f32.mrf.mxu0  ;;  %v3050_v6 = vpop.f32.mrf.mxu1 }
 0x5d5   :  { %8371 = vst [vmem:[#allocation27_spill] sm:$0xff] %v8066_v12  ;;  %v3080_v22 = vadd.f32 %v3037_v36, %v2689_v33  ;;  %v3081_v40 = vadd.f32 %v3050_v6, %v2718_v21 }
 0x5d7   :  { %v3084_v7 = vmul.f32 0.5, %v3080_v22  ;;  %v3088_v61 = vmul.f32 0.5, %v3081_v40 }
 0x5d9   :  { %5547 = vtanh.f32 %v3084_v7 }
 0x5da   :  { %5549 = vtanh.f32 %v3088_v61 }
 0x5db   :  { %v3063_v58 = vpop.f32.mrf.mxu2  ;;  %v3076_v20 = vpop.f32.mrf.mxu3 }
 0x5dc   :  { %v3082_v63 = vadd.f32 %v3063_v58, %v2747_v48  ;;  %v3083_v12 = vadd.f32 %v3076_v20, %v2776_v49  ;;  %v3039_v3 = vpop.f32.mrf.mxu0  ;;  %v3052_v55 = vpop.f32.mrf.mxu1 }
 0x5de   :  { %5551 = vtanh.f32 %v3082_v63  ;;  %v3093_v6 = vmul.f32 0.5, %v3083_v12 }
 0x5df   :  { %v5548_v33 = vpop.eup %5547 }
 0x5e0   :  { %v5550_v21 = vpop.eup %5549  ;;  %v3086_v36 = vadd.f32 1.0, %v5548_v33  ;;  %5553 = vtanh.f32 %v3093_v6 }
 0x5e1   :  { %v3090_v57 = vadd.f32 1.0, %v5550_v21 }
 0x5e2   :  { %v3087_v40 = vmul.f32 0.5, %v3086_v36  ;;  %v2749_v36 = vadd.f32 %v8007_v10, %v8068_v14 }
 0x5e3   :  { %v3091_v22 = vmul.f32 0.5, %v3090_v57  ;;  %v3065_v7 = vpop.f32.mrf.mxu2  ;;  %v3078_v16 = vpop.f32.mrf.mxu3  ;;  %v2778_v57 = vadd.f32 %v8009_v41, %v8070_v8 }
 0x5e4   :  { %v5552_v53 = vpop.eup %5551 }
 0x5e5   :  { %v3097_v19 = vmul.f32 0.0, %v3091_v22  ;;  %v3098_v61 = vmul.f32 %v5552_v53, %v3087_v40  ;;  %v2720_v53 = vadd.f32 %v8005_v23, %v8060_v4 }
 0x5e6   :  { %v5554_v50 = vpop.eup %5553 }
 0x5e7   :  { %v8074_v34 = vadd.f32 %v3098_v61, %v3097_v19  ;;  %v3095_v55 = vadd.f32 1.0, %v5554_v50  ;;  %v2691_v50 = vadd.f32 %v8003_v59, %v8058_v25 }
 0x5e9   :  { %5555 = vtanh.f32 %v8074_v34  ;;  %v3096_v3 = vmul.f32 0.5, %v3095_v55 }
 0x5ef   :  { %v5556_v63 = vpop.eup %5555 }
 0x5f0   :  { %v3101_v48 = vmul.f32 %v5556_v63, %v3096_v3 }
 0x5f2   :  { %v3106_v20 = vpack.c.bf16 %v3101_v48, %v3101_v48 }
 0x5f4   :  { %3115 = vmatmul.bf16.vlgmr.msrb.gmra.mxu0 %v3106_v20  ;;  %3128 = vmatmul.bf16.vlgmr.msra.gmra.mxu1 %v3106_v20 }
 0x5f5   :  { %3141 = vmatmul.bf16.vlgmr.msrb.gmra.mxu2 %v3106_v20  ;;  %3154 = vmatmul.bf16.vlgmr.msrb.gmra.mxu3 %v3106_v20 }
 0x5f6   :  { %3265 = vmatpush.bf16.msrb.mxu0 %v7647_v46  ;;  %3278 = vmatpush.bf16.msra.mxu1 %v7658_v18 }
 0x5f7   :  { %3291 = vmatpush.bf16.msrb.mxu2 %v7660_v60  ;;  %3304 = vmatpush.bf16.msrb.mxu3 %v7669_v11 }
 0x5fa   :  { %3266 = vmatpush.bf16.msrb.mxu0 %v7683_v17  ;;  %3279 = vmatpush.bf16.msra.mxu1 %v7694_v24 }
 0x5fb   :  { %3292 = vmatpush.bf16.msrb.mxu2 %v7696_v2  ;;  %3305 = vmatpush.bf16.msrb.mxu3 %v7707_v29 }
 0x5fe   :  { %3267 = vmatpush.bf16.msrb.mxu0 %v7723_v9  ;;  %3280 = vmatpush.bf16.msra.mxu1 %v7734_v35 }
 0x5ff   :  { %3293 = vmatpush.bf16.msrb.mxu2 %v7736_v37  ;;  %3306 = vmatpush.bf16.msrb.mxu3 %v7748_v38 }
 0x602   :  { %3268 = vmatpush.bf16.msrb.mxu0 %v7761_v54  ;;  %3281 = vmatpush.bf16.msra.mxu1 %v7763_v30 }
 0x603   :  { %3294 = vmatpush.bf16.msrb.mxu2 %v7772_v42  ;;  %3307 = vmatpush.bf16.msrb.mxu3 %v7783_v31 }
 0x606   :  { %3269 = vmatpush.bf16.msrb.mxu0 %v7799_v28  ;;  %3282 = vmatpush.bf16.msra.mxu1 %v7812_v0 }
 0x607   :  { %3295 = vmatpush.bf16.msrb.mxu2 %v7814_v1  ;;  %3308 = vmatpush.bf16.msrb.mxu3 %v7826_v5 }
 0x60a   :  { %3270 = vmatpush.bf16.msrb.mxu0 %v7847_v51  ;;  %3283 = vmatpush.bf16.msra.mxu1 %v7854_v32 }
 0x60b   :  { %3296 = vmatpush.bf16.msrb.mxu2 %v7856_v26  ;;  %3309 = vmatpush.bf16.msrb.mxu3 %v7868_v39 }
 0x60e   :  { %3271 = vmatpush.bf16.msrb.mxu0 %v7877_v43  ;;  %3284 = vmatpush.bf16.msra.mxu1 %v7881_v45 }
 0x60f   :  { %3297 = vmatpush.bf16.msrb.mxu2 %v7883_v47  ;;  %3310 = vmatpush.bf16.msrb.mxu3 %v7903_v15 }
 0x612   :  { %3272 = vmatpush.bf16.msrb.mxu0 %v7905_v56  ;;  %3285 = vmatpush.bf16.msra.mxu1 %v7918_v13 }
 0x613   :  { %3298 = vmatpush.bf16.msrb.mxu2 %v7920_v27  ;;  %3311 = vmatpush.bf16.msrb.mxu3 %v7929_v62 }
 0x671   :  { %v3116_v12 = vpop.f32.mrf.mxu0  ;;  %v3129_v49 = vpop.f32.mrf.mxu1 }
 0x672   :  { %v3159_v58 = vadd.f32 %v3116_v12, %v2691_v50  ;;  %v3160_v6 = vadd.f32 %v3129_v49, %v2720_v53 }
 0x674   :  { %v3163_v33 = vmul.f32 0.5, %v3159_v58  ;;  %v3167_v21 = vmul.f32 0.5, %v3160_v6 }
 0x676   :  { %5557 = vtanh.f32 %v3163_v33 }
 0x677   :  { %5559 = vtanh.f32 %v3167_v21 }
 0x678   :  { %v3142_v40 = vpop.f32.mrf.mxu2  ;;  %v3155_v22 = vpop.f32.mrf.mxu3 }
 0x679   :  { %v3161_v59 = vadd.f32 %v3142_v40, %v2749_v36  ;;  %v3162_v7 = vadd.f32 %v3155_v22, %v2778_v57  ;;  %v3118_v16 = vpop.f32.mrf.mxu0  ;;  %v3131_v23 = vpop.f32.mrf.mxu1  ;;  %v2723_v40 = vadd.f32 %v8013_v44, %v8060_v4 }
 0x67b   :  { %5561 = vtanh.f32 %v3161_v59  ;;  %v3172_v19 = vmul.f32 0.5, %v3162_v7 }
 0x67c   :  { %v5558_v61 = vpop.eup %5557 }
 0x67d   :  { %v5560_v55 = vpop.eup %5559  ;;  %v3165_v3 = vadd.f32 1.0, %v5558_v61  ;;  %5563 = vtanh.f32 %v3172_v19  ;;  %v8372_v61 = vld [vmem:[#allocation6_spill] sm:$0xff] }
 0x67e   :  { %v3169_v63 = vadd.f32 1.0, %v5560_v55  ;;  %v2752_v55 = vadd.f32 %v8372_v61, %v8068_v14 }
 0x67f   :  { %v3166_v48 = vmul.f32 0.5, %v3165_v3  ;;  %v8373_v3 = vld [vmem:[#allocation7_spill] sm:$0xff] }
 0x680   :  { %v3170_v20 = vmul.f32 0.5, %v3169_v63  ;;  %v3144_v10 = vpop.f32.mrf.mxu2  ;;  %v3157_v50 = vpop.f32.mrf.mxu3  ;;  %v2781_v63 = vadd.f32 %v8373_v3, %v8070_v8 }
 0x681   :  { %v5562_v53 = vpop.eup %5561 }
 0x682   :  { %v3176_v41 = vmul.f32 %v3170_v20, %v8074_v34  ;;  %v3177_v12 = vmul.f32 %v5562_v53, %v3166_v48  ;;  %v2694_v34 = vadd.f32 %v8011_v52, %v8058_v25 }
 0x683   :  { %v5564_v49 = vpop.eup %5563 }
 0x684   :  { %v8118_v58 = vadd.f32 %v3177_v12, %v3176_v41  ;;  %v3174_v6 = vadd.f32 1.0, %v5564_v49 }
 0x686   :  { %5565 = vtanh.f32 %v8118_v58  ;;  %v3175_v33 = vmul.f32 0.5, %v3174_v6 }
 0x68c   :  { %v5566_v21 = vpop.eup %5565 }
 0x68d   :  { %v3180_v36 = vmul.f32 %v5566_v21, %v3175_v33 }
 0x68f   :  { %v3185_v57 = vpack.c.bf16 %v3180_v36, %v3180_v36 }
 0x691   :  { %3194 = vmatmul.bf16.vlgmr.msra.gmra.mxu0 %v3185_v57  ;;  %3207 = vmatmul.bf16.vlgmr.msrb.gmra.mxu1 %v3185_v57 }
 0x692   :  { %3220 = vmatmul.bf16.vlgmr.msra.gmra.mxu2 %v3185_v57  ;;  %3233 = vmatmul.bf16.vlgmr.msra.gmra.mxu3 %v3185_v57 }
 0x693   :  { %3344 = vmatpush.bf16.msra.mxu0 %v7647_v46  ;;  %3357 = vmatpush.bf16.msrb.mxu1 %v7658_v18 }
 0x694   :  { %3370 = vmatpush.bf16.msra.mxu2 %v7660_v60  ;;  %3383 = vmatpush.bf16.msra.mxu3 %v7669_v11 }
 0x697   :  { %3345 = vmatpush.bf16.msra.mxu0 %v7683_v17  ;;  %3358 = vmatpush.bf16.msrb.mxu1 %v7694_v24 }
 0x698   :  { %3371 = vmatpush.bf16.msra.mxu2 %v7696_v2  ;;  %3384 = vmatpush.bf16.msra.mxu3 %v7707_v29 }
 0x69b   :  { %3346 = vmatpush.bf16.msra.mxu0 %v7723_v9  ;;  %3359 = vmatpush.bf16.msrb.mxu1 %v7734_v35 }
 0x69c   :  { %3372 = vmatpush.bf16.msra.mxu2 %v7736_v37  ;;  %3385 = vmatpush.bf16.msra.mxu3 %v7748_v38 }
 0x69f   :  { %3347 = vmatpush.bf16.msra.mxu0 %v7761_v54  ;;  %3360 = vmatpush.bf16.msrb.mxu1 %v7763_v30 }
 0x6a0   :  { %3373 = vmatpush.bf16.msra.mxu2 %v7772_v42  ;;  %3386 = vmatpush.bf16.msra.mxu3 %v7783_v31 }
 0x6a3   :  { %3348 = vmatpush.bf16.msra.mxu0 %v7799_v28  ;;  %3361 = vmatpush.bf16.msrb.mxu1 %v7812_v0 }
 0x6a4   :  { %3374 = vmatpush.bf16.msra.mxu2 %v7814_v1  ;;  %3387 = vmatpush.bf16.msra.mxu3 %v7826_v5 }
 0x6a7   :  { %3349 = vmatpush.bf16.msra.mxu0 %v7847_v51  ;;  %3362 = vmatpush.bf16.msrb.mxu1 %v7854_v32 }
 0x6a8   :  { %3375 = vmatpush.bf16.msra.mxu2 %v7856_v26  ;;  %3388 = vmatpush.bf16.msra.mxu3 %v7868_v39 }
 0x6ab   :  { %3350 = vmatpush.bf16.msra.mxu0 %v7877_v43  ;;  %3363 = vmatpush.bf16.msrb.mxu1 %v7881_v45 }
 0x6ac   :  { %3376 = vmatpush.bf16.msra.mxu2 %v7883_v47  ;;  %3389 = vmatpush.bf16.msra.mxu3 %v7903_v15 }
 0x6af   :  { %3351 = vmatpush.bf16.msra.mxu0 %v7905_v56  ;;  %3364 = vmatpush.bf16.msrb.mxu1 %v7918_v13 }
 0x6b0   :  { %3377 = vmatpush.bf16.msra.mxu2 %v7920_v27  ;;  %3390 = vmatpush.bf16.msra.mxu3 %v7929_v62 }
 0x70e   :  { %v3195_v22 = vpop.f32.mrf.mxu0  ;;  %v3208_v59 = vpop.f32.mrf.mxu1 }
 0x70f   :  { %v3238_v7 = vadd.f32 %v3195_v22, %v2694_v34  ;;  %v3239_v16 = vadd.f32 %v3208_v59, %v2723_v40 }
 0x711   :  { %v3242_v23 = vmul.f32 0.5, %v3238_v7  ;;  %v3246_v19 = vmul.f32 0.5, %v3239_v16 }
 0x713   :  { %5567 = vtanh.f32 %v3242_v23 }
 0x714   :  { %5569 = vtanh.f32 %v3246_v19 }
 0x715   :  { %v3221_v48 = vpop.f32.mrf.mxu2  ;;  %v3234_v20 = vpop.f32.mrf.mxu3 }
 0x716   :  { %v3240_v52 = vadd.f32 %v3221_v48, %v2752_v55  ;;  %v3241_v10 = vadd.f32 %v3234_v20, %v2781_v63  ;;  %v3197_v50 = vpop.f32.mrf.mxu0  ;;  %v3210_v44 = vpop.f32.mrf.mxu1  ;;  %v8375_v63 = vld [vmem:[#allocation9_spill] sm:$0xff] }
 0x717   :  { %v2725_v48 = vadd.f32 %v8375_v63, %v8060_v4 }
 0x718   :  { %5571 = vtanh.f32 %v3240_v52  ;;  %v3251_v53 = vmul.f32 0.5, %v3241_v10 }
 0x719   :  { %v5568_v41 = vpop.eup %5567 }
 0x71a   :  { %v5570_v12 = vpop.eup %5569  ;;  %v3244_v49 = vadd.f32 1.0, %v5568_v41  ;;  %5573 = vtanh.f32 %v3251_v53  ;;  %v8376_v41 = vld [vmem:[#allocation10_spill] sm:$0xff] }
 0x71b   :  { %v3248_v6 = vadd.f32 1.0, %v5570_v12  ;;  %v2754_v12 = vadd.f32 %v8376_v41, %v8068_v14 }
 0x71c   :  { %v3245_v33 = vmul.f32 0.5, %v3244_v49  ;;  %v8377_v49 = vld [vmem:[#allocation11_spill] sm:$0xff] }
 0x71d   :  { %v3249_v21 = vmul.f32 0.5, %v3248_v6  ;;  %v3223_v36 = vpop.f32.mrf.mxu2  ;;  %v3236_v57 = vpop.f32.mrf.mxu3  ;;  %v2783_v6 = vadd.f32 %v8377_v49, %v8070_v8 }
 0x71e   :  { %v5572_v34 = vpop.eup %5571 }
 0x71f   :  { %v3255_v40 = vmul.f32 %v3249_v21, %v8118_v58  ;;  %v3256_v22 = vmul.f32 %v5572_v34, %v3245_v33  ;;  %v8374_v58 = vld [vmem:[#allocation8_spill] sm:$0xff] }
 0x720   :  { %v5574_v59 = vpop.eup %5573  ;;  %v2696_v3 = vadd.f32 %v8374_v58, %v8058_v25 }
 0x721   :  { %v8162_v7 = vadd.f32 %v3256_v22, %v3255_v40  ;;  %v3253_v16 = vadd.f32 1.0, %v5574_v59 }
 0x723   :  { %5575 = vtanh.f32 %v8162_v7  ;;  %v3254_v23 = vmul.f32 0.5, %v3253_v16 }
 0x729   :  { %v5576_v19 = vpop.eup %5575 }
 0x72a   :  { %v3259_v61 = vmul.f32 %v5576_v19, %v3254_v23 }
 0x72c   :  { %v3264_v55 = vpack.c.bf16 %v3259_v61, %v3259_v61 }
 0x72e   :  { %3273 = vmatmul.bf16.vlgmr.msrb.gmra.mxu0 %v3264_v55  ;;  %3286 = vmatmul.bf16.vlgmr.msra.gmra.mxu1 %v3264_v55 }
 0x72f   :  { %3299 = vmatmul.bf16.vlgmr.msrb.gmra.mxu2 %v3264_v55  ;;  %3312 = vmatmul.bf16.vlgmr.msrb.gmra.mxu3 %v3264_v55 }
 0x730   :  { %3423 = vmatpush.bf16.msrb.mxu0 %v7647_v46  ;;  %3436 = vmatpush.bf16.msra.mxu1 %v7658_v18 }
 0x731   :  { %3449 = vmatpush.bf16.msrb.mxu2 %v7660_v60  ;;  %3462 = vmatpush.bf16.msrb.mxu3 %v7669_v11 }
 0x734   :  { %3424 = vmatpush.bf16.msrb.mxu0 %v7683_v17  ;;  %3437 = vmatpush.bf16.msra.mxu1 %v7694_v24 }
 0x735   :  { %3450 = vmatpush.bf16.msrb.mxu2 %v7696_v2  ;;  %3463 = vmatpush.bf16.msrb.mxu3 %v7707_v29 }
 0x738   :  { %3425 = vmatpush.bf16.msrb.mxu0 %v7723_v9  ;;  %3438 = vmatpush.bf16.msra.mxu1 %v7734_v35 }
 0x739   :  { %3451 = vmatpush.bf16.msrb.mxu2 %v7736_v37  ;;  %3464 = vmatpush.bf16.msrb.mxu3 %v7748_v38 }
 0x73c   :  { %3426 = vmatpush.bf16.msrb.mxu0 %v7761_v54  ;;  %3439 = vmatpush.bf16.msra.mxu1 %v7763_v30 }
 0x73d   :  { %3452 = vmatpush.bf16.msrb.mxu2 %v7772_v42  ;;  %3465 = vmatpush.bf16.msrb.mxu3 %v7783_v31 }
 0x740   :  { %3427 = vmatpush.bf16.msrb.mxu0 %v7799_v28  ;;  %3440 = vmatpush.bf16.msra.mxu1 %v7812_v0 }
 0x741   :  { %3453 = vmatpush.bf16.msrb.mxu2 %v7814_v1  ;;  %3466 = vmatpush.bf16.msrb.mxu3 %v7826_v5 }
 0x744   :  { %3428 = vmatpush.bf16.msrb.mxu0 %v7847_v51  ;;  %3441 = vmatpush.bf16.msra.mxu1 %v7854_v32 }
 0x745   :  { %3454 = vmatpush.bf16.msrb.mxu2 %v7856_v26  ;;  %3467 = vmatpush.bf16.msrb.mxu3 %v7868_v39 }
 0x748   :  { %3429 = vmatpush.bf16.msrb.mxu0 %v7877_v43  ;;  %3442 = vmatpush.bf16.msra.mxu1 %v7881_v45 }
 0x749   :  { %3455 = vmatpush.bf16.msrb.mxu2 %v7883_v47  ;;  %3468 = vmatpush.bf16.msrb.mxu3 %v7903_v15 }
 0x74c   :  { %3430 = vmatpush.bf16.msrb.mxu0 %v7905_v56  ;;  %3443 = vmatpush.bf16.msra.mxu1 %v7918_v13 }
 0x74d   :  { %3456 = vmatpush.bf16.msrb.mxu2 %v7920_v27  ;;  %3469 = vmatpush.bf16.msrb.mxu3 %v7929_v62 }
 0x7ab   :  { %v3274_v20 = vpop.f32.mrf.mxu0  ;;  %v3287_v52 = vpop.f32.mrf.mxu1 }
 0x7ac   :  { %v3317_v10 = vadd.f32 %v3274_v20, %v2696_v3  ;;  %v3318_v50 = vadd.f32 %v3287_v52, %v2725_v48 }
 0x7ae   :  { %v3321_v44 = vmul.f32 0.5, %v3317_v10  ;;  %v3325_v53 = vmul.f32 0.5, %v3318_v50 }
 0x7b0   :  { %5577 = vtanh.f32 %v3321_v44 }
 0x7b1   :  { %5579 = vtanh.f32 %v3325_v53 }
 0x7b2   :  { %v3300_v33 = vpop.f32.mrf.mxu2  ;;  %v3313_v21 = vpop.f32.mrf.mxu3 }
 0x7b3   :  { %v3319_v36 = vadd.f32 %v3300_v33, %v2754_v12  ;;  %v3320_v57 = vadd.f32 %v3313_v21, %v2783_v6  ;;  %v3276_v34 = vpop.f32.mrf.mxu0  ;;  %v3289_v40 = vpop.f32.mrf.mxu1  ;;  %v8379_v6 = vld [vmem:[#allocation13_spill] sm:$0xff] }
 0x7b4   :  { %v2728_v33 = vadd.f32 %v8379_v6, %v8060_v4 }
 0x7b5   :  { %5581 = vtanh.f32 %v3319_v36  ;;  %v3330_v22 = vmul.f32 0.5, %v3320_v57 }
 0x7b6   :  { %v5578_v59 = vpop.eup %5577 }
 0x7b7   :  { %v5580_v16 = vpop.eup %5579  ;;  %v3323_v23 = vadd.f32 1.0, %v5578_v59  ;;  %5583 = vtanh.f32 %v3330_v22  ;;  %v8380_v59 = vld [vmem:[#allocation14_spill] sm:$0xff] }
 0x7b8   :  { %v3327_v19 = vadd.f32 1.0, %v5580_v16  ;;  %v2757_v16 = vadd.f32 %v8380_v59, %v8068_v14 }
 0x7b9   :  { %v3324_v61 = vmul.f32 0.5, %v3323_v23  ;;  %v8381_v23 = vld [vmem:[#allocation15_spill] sm:$0xff] }
 0x7ba   :  { %v3328_v55 = vmul.f32 0.5, %v3327_v19  ;;  %v3302_v58 = vpop.f32.mrf.mxu2  ;;  %v3315_v3 = vpop.f32.mrf.mxu3  ;;  %v2786_v19 = vadd.f32 %v8381_v23, %v8070_v8 }
 0x7bb   :  { %v5582_v63 = vpop.eup %5581 }
 0x7bc   :  { %v3334_v48 = vmul.f32 %v3328_v55, %v8162_v7  ;;  %v3335_v20 = vmul.f32 %v5582_v63, %v3324_v61  ;;  %v8378_v7 = vld [vmem:[#allocation12_spill] sm:$0xff] }
 0x7bd   :  { %v5584_v52 = vpop.eup %5583  ;;  %v2699_v49 = vadd.f32 %v8378_v7, %v8058_v25 }
 0x7be   :  { %v8206_v10 = vadd.f32 %v3335_v20, %v3334_v48  ;;  %v3332_v50 = vadd.f32 1.0, %v5584_v52 }
 0x7c0   :  { %5585 = vtanh.f32 %v8206_v10  ;;  %v3333_v44 = vmul.f32 0.5, %v3332_v50 }
 0x7c6   :  { %v5586_v53 = vpop.eup %5585 }
 0x7c7   :  { %v3338_v41 = vmul.f32 %v5586_v53, %v3333_v44 }
 0x7c9   :  { %v3343_v12 = vpack.c.bf16 %v3338_v41, %v3338_v41 }
 0x7cb   :  { %3352 = vmatmul.bf16.vlgmr.msra.gmra.mxu0 %v3343_v12  ;;  %3365 = vmatmul.bf16.vlgmr.msrb.gmra.mxu1 %v3343_v12 }
 0x7cc   :  { %3378 = vmatmul.bf16.vlgmr.msra.gmra.mxu2 %v3343_v12  ;;  %3391 = vmatmul.bf16.vlgmr.msra.gmra.mxu3 %v3343_v12 }
 0x7cd   :  { %3502 = vmatpush.bf16.msra.mxu0 %v7647_v46  ;;  %3515 = vmatpush.bf16.msrb.mxu1 %v7658_v18 }
 0x7ce   :  { %3528 = vmatpush.bf16.msra.mxu2 %v7660_v60  ;;  %3541 = vmatpush.bf16.msra.mxu3 %v7669_v11 }
 0x7d1   :  { %3503 = vmatpush.bf16.msra.mxu0 %v7683_v17  ;;  %3516 = vmatpush.bf16.msrb.mxu1 %v7694_v24 }
 0x7d2   :  { %3529 = vmatpush.bf16.msra.mxu2 %v7696_v2  ;;  %3542 = vmatpush.bf16.msra.mxu3 %v7707_v29 }
 0x7d5   :  { %3504 = vmatpush.bf16.msra.mxu0 %v7723_v9  ;;  %3517 = vmatpush.bf16.msrb.mxu1 %v7734_v35 }
 0x7d6   :  { %3530 = vmatpush.bf16.msra.mxu2 %v7736_v37  ;;  %3543 = vmatpush.bf16.msra.mxu3 %v7748_v38 }
 0x7d9   :  { %3505 = vmatpush.bf16.msra.mxu0 %v7761_v54  ;;  %3518 = vmatpush.bf16.msrb.mxu1 %v7763_v30 }
 0x7da   :  { %3531 = vmatpush.bf16.msra.mxu2 %v7772_v42  ;;  %3544 = vmatpush.bf16.msra.mxu3 %v7783_v31 }
 0x7dd   :  { %3506 = vmatpush.bf16.msra.mxu0 %v7799_v28  ;;  %3519 = vmatpush.bf16.msrb.mxu1 %v7812_v0 }
 0x7de   :  { %3532 = vmatpush.bf16.msra.mxu2 %v7814_v1  ;;  %3545 = vmatpush.bf16.msra.mxu3 %v7826_v5 }
 0x7e1   :  { %3507 = vmatpush.bf16.msra.mxu0 %v7847_v51  ;;  %3520 = vmatpush.bf16.msrb.mxu1 %v7854_v32 }
 0x7e2   :  { %3533 = vmatpush.bf16.msra.mxu2 %v7856_v26  ;;  %3546 = vmatpush.bf16.msra.mxu3 %v7868_v39 }
 0x7e5   :  { %3508 = vmatpush.bf16.msra.mxu0 %v7877_v43  ;;  %3521 = vmatpush.bf16.msrb.mxu1 %v7881_v45 }
 0x7e6   :  { %3534 = vmatpush.bf16.msra.mxu2 %v7883_v47  ;;  %3547 = vmatpush.bf16.msra.mxu3 %v7903_v15 }
 0x7e9   :  { %3509 = vmatpush.bf16.msra.mxu0 %v7905_v56  ;;  %3522 = vmatpush.bf16.msrb.mxu1 %v7918_v13 }
 0x7ea   :  { %3535 = vmatpush.bf16.msra.mxu2 %v7920_v27  ;;  %3548 = vmatpush.bf16.msra.mxu3 %v7929_v62 }
 0x848   :  { %v3353_v21 = vpop.f32.mrf.mxu0  ;;  %v3366_v36 = vpop.f32.mrf.mxu1 }
 0x849   :  { %v3396_v57 = vadd.f32 %v3353_v21, %v2699_v49  ;;  %v3397_v34 = vadd.f32 %v3366_v36, %v2728_v33 }
 0x84b   :  { %v3400_v40 = vmul.f32 0.5, %v3396_v57  ;;  %v3404_v22 = vmul.f32 0.5, %v3397_v34 }
 0x84d   :  { %5587 = vtanh.f32 %v3400_v40 }
 0x84e   :  { %5589 = vtanh.f32 %v3404_v22 }
 0x84f   :  { %v3379_v61 = vpop.f32.mrf.mxu2  ;;  %v3392_v55 = vpop.f32.mrf.mxu3 }
 0x850   :  { %v3398_v58 = vadd.f32 %v3379_v61, %v2757_v16  ;;  %v3399_v3 = vadd.f32 %v3392_v55, %v2786_v19  ;;  %v3355_v63 = vpop.f32.mrf.mxu0  ;;  %v3368_v48 = vpop.f32.mrf.mxu1 }
 0x851   :  { %v8386_v63 = vld [vmem:[#allocation20_spill] sm:$0xff] }
 0x852   :  { %5591 = vtanh.f32 %v3398_v58  ;;  %v3409_v20 = vmul.f32 0.5, %v3399_v3  ;;  %v2704_v48 = vadd.f32 %v8386_v63, %v8058_v25 }
 0x853   :  { %v5588_v52 = vpop.eup %5587 }
 0x854   :  { %v5590_v50 = vpop.eup %5589  ;;  %v3402_v44 = vadd.f32 1.0, %v5588_v52  ;;  %5593 = vtanh.f32 %v3409_v20  ;;  %v8387_v20 = vld [vmem:[#allocation21_spill] sm:$0xff] }
 0x855   :  { %v3406_v53 = vadd.f32 1.0, %v5590_v50  ;;  %v2733_v52 = vadd.f32 %v8387_v20, %v8060_v4 }
 0x856   :  { %v3403_v41 = vmul.f32 0.5, %v3402_v44 }
 0x857   :  { %v3407_v12 = vmul.f32 0.5, %v3406_v53  ;;  %v3381_v7 = vpop.f32.mrf.mxu2  ;;  %v3394_v49 = vpop.f32.mrf.mxu3 }
 0x858   :  { %v5592_v6 = vpop.eup %5591  ;;  %v8388_v49 = vld [vmem:[#allocation22_spill] sm:$0xff] }
 0x859   :  { %v3413_v33 = vmul.f32 %v3407_v12, %v8206_v10  ;;  %v3414_v21 = vmul.f32 %v5592_v6, %v3403_v41  ;;  %v2762_v6 = vadd.f32 %v8388_v49, %v8068_v14 }
 0x85a   :  { %v5594_v36 = vpop.eup %5593 }
 0x85b   :  { %v8250_v57 = vadd.f32 %v3414_v21, %v3413_v33  ;;  %v3411_v34 = vadd.f32 1.0, %v5594_v36  ;;  %v8389_v33 = vld [vmem:[#allocation23_spill] sm:$0xff] }
 0x85c   :  { %v2791_v21 = vadd.f32 %v8389_v33, %v8070_v8 }
 0x85d   :  { %5595 = vtanh.f32 %v8250_v57  ;;  %v3412_v40 = vmul.f32 0.5, %v3411_v34 }
 0x863   :  { %v5596_v22 = vpop.eup %5595 }
 0x864   :  { %v3417_v59 = vmul.f32 %v5596_v22, %v3412_v40 }
 0x866   :  { %v3422_v16 = vpack.c.bf16 %v3417_v59, %v3417_v59 }
 0x868   :  { %3431 = vmatmul.bf16.vlgmr.msrb.gmra.mxu0 %v3422_v16  ;;  %3444 = vmatmul.bf16.vlgmr.msra.gmra.mxu1 %v3422_v16 }
 0x869   :  { %3457 = vmatmul.bf16.vlgmr.msrb.gmra.mxu2 %v3422_v16  ;;  %3470 = vmatmul.bf16.vlgmr.msrb.gmra.mxu3 %v3422_v16 }
 0x86a   :  { %3581 = vmatpush.bf16.msrb.mxu0 %v7647_v46  ;;  %3594 = vmatpush.bf16.msra.mxu1 %v7658_v18  ;;  %v8382_v46 = vld [vmem:[#allocation16_spill] sm:$0xff] }
 0x86b   :  { %3607 = vmatpush.bf16.msrb.mxu2 %v7660_v60  ;;  %3620 = vmatpush.bf16.msrb.mxu3 %v7669_v11  ;;  %v2701_v18 = vadd.f32 %v8382_v46, %v8058_v25  ;;  %v8383_v60 = vld [vmem:[#allocation17_spill] sm:$0xff] }
 0x86c   :  { %v2730_v11 = vadd.f32 %v8383_v60, %v8060_v4 }
 0x86e   :  { %3582 = vmatpush.bf16.msrb.mxu0 %v7683_v17  ;;  %3595 = vmatpush.bf16.msra.mxu1 %v7694_v24 }
 0x86f   :  { %3608 = vmatpush.bf16.msrb.mxu2 %v7696_v2  ;;  %3621 = vmatpush.bf16.msrb.mxu3 %v7707_v29 }
 0x872   :  { %3583 = vmatpush.bf16.msrb.mxu0 %v7723_v9  ;;  %3596 = vmatpush.bf16.msra.mxu1 %v7734_v35 }
 0x873   :  { %3609 = vmatpush.bf16.msrb.mxu2 %v7736_v37  ;;  %3622 = vmatpush.bf16.msrb.mxu3 %v7748_v38  ;;  %v8384_v37 = vld [vmem:[#allocation18_spill] sm:$0xff] }
 0x874   :  { %v2759_v38 = vadd.f32 %v8384_v37, %v8068_v14 }
 0x876   :  { %3584 = vmatpush.bf16.msrb.mxu0 %v7761_v54  ;;  %3597 = vmatpush.bf16.msra.mxu1 %v7763_v30  ;;  %v8385_v54 = vld [vmem:[#allocation19_spill] sm:$0xff] }
 0x877   :  { %3610 = vmatpush.bf16.msrb.mxu2 %v7772_v42  ;;  %3623 = vmatpush.bf16.msrb.mxu3 %v7783_v31  ;;  %v2788_v30 = vadd.f32 %v8385_v54, %v8070_v8 }
 0x87a   :  { %3585 = vmatpush.bf16.msrb.mxu0 %v7799_v28  ;;  %3598 = vmatpush.bf16.msra.mxu1 %v7812_v0 }
 0x87b   :  { %3611 = vmatpush.bf16.msrb.mxu2 %v7814_v1  ;;  %3624 = vmatpush.bf16.msrb.mxu3 %v7826_v5 }
 0x87e   :  { %3586 = vmatpush.bf16.msrb.mxu0 %v7847_v51  ;;  %3599 = vmatpush.bf16.msra.mxu1 %v7854_v32 }
 0x87f   :  { %3612 = vmatpush.bf16.msrb.mxu2 %v7856_v26  ;;  %3625 = vmatpush.bf16.msrb.mxu3 %v7868_v39 }
 0x882   :  { %3587 = vmatpush.bf16.msrb.mxu0 %v7877_v43  ;;  %3600 = vmatpush.bf16.msra.mxu1 %v7881_v45 }
 0x883   :  { %3613 = vmatpush.bf16.msrb.mxu2 %v7883_v47  ;;  %3626 = vmatpush.bf16.msrb.mxu3 %v7903_v15 }
 0x886   :  { %3588 = vmatpush.bf16.msrb.mxu0 %v7905_v56  ;;  %3601 = vmatpush.bf16.msra.mxu1 %v7918_v13 }
 0x887   :  { %3614 = vmatpush.bf16.msrb.mxu2 %v7920_v27  ;;  %3627 = vmatpush.bf16.msrb.mxu3 %v7929_v62 }
 0x8e5   :  { %v3432_v17 = vpop.f32.mrf.mxu0  ;;  %v3445_v24 = vpop.f32.mrf.mxu1 }
 0x8e6   :  { %v3475_v2 = vadd.f32 %v3432_v17, %v2701_v18  ;;  %v3476_v29 = vadd.f32 %v3445_v24, %v2730_v11 }
 0x8e8   :  { %v3479_v9 = vmul.f32 0.5, %v3475_v2  ;;  %v3483_v35 = vmul.f32 0.5, %v3476_v29 }
 0x8ea   :  { %5597 = vtanh.f32 %v3479_v9 }
 0x8eb   :  { %5599 = vtanh.f32 %v3483_v35 }
 0x8ec   :  { %v3458_v42 = vpop.f32.mrf.mxu2  ;;  %v3471_v31 = vpop.f32.mrf.mxu3 }
 0x8ed   :  { %v3477_v28 = vadd.f32 %v3458_v42, %v2759_v38  ;;  %v3478_v0 = vadd.f32 %v3471_v31, %v2788_v30  ;;  %v3434_v1 = vpop.f32.mrf.mxu0  ;;  %v3447_v5 = vpop.f32.mrf.mxu1 }
 0x8ee   :  { %v5463_v1 = vld [vmem:[%s8348_s7 + $0x38] sm:$0xff]  ;;  %v5462_v5 = vld [vmem:[%s8348_s7 + $0x30] sm:$0xff] }
 0x8ef   :  { %5601 = vtanh.f32 %v3477_v28  ;;  %v3488_v51 = vmul.f32 0.5, %v3478_v0 }
 0x8f0   :  { %v5598_v32 = vpop.eup %5597 }
 0x8f1   :  { %v5600_v26 = vpop.eup %5599  ;;  %v3481_v39 = vadd.f32 1.0, %v5598_v32  ;;  %5603 = vtanh.f32 %v3488_v51  ;;  %v5461_v51 = vld [vmem:[%s8348_s7 + $0x28] sm:$0xff]  ;;  %v5460_v32 = vld [vmem:[%s8348_s7 + $0x20] sm:$0xff] }
 0x8f2   :  { %v3485_v43 = vadd.f32 1.0, %v5600_v26  ;;  %v5459_v26 = vld [vmem:[%s8348_s7 + $0x18] sm:$0xff] }
 0x8f3   :  { %v3482_v45 = vmul.f32 0.5, %v3481_v39  ;;  %v5458_v39 = vld [vmem:[%s8348_s7 + $0x10] sm:$0xff] }
 0x8f4   :  { %v3486_v47 = vmul.f32 0.5, %v3485_v43  ;;  %v3460_v15 = vpop.f32.mrf.mxu2  ;;  %v3473_v56 = vpop.f32.mrf.mxu3  ;;  %v5457_v43 = vld [vmem:[%s8348_s7 + $0x8] sm:$0xff] }
 0x8f5   :  { %v5602_v13 = vpop.eup %5601  ;;  %v8391_v56 = vld [vmem:[#allocation25_spill] sm:$0xff] }
 0x8f6   :  { %v3492_v27 = vmul.f32 %v3486_v47, %v8250_v57  ;;  %v3493_v62 = vmul.f32 %v5602_v13, %v3482_v45  ;;  %v5456_v45 = vld [vmem:[%s8348_s7] sm:$0xff]  ;;  %v8390_v47 = vld [vmem:[#allocation24_spill] sm:$0xff]  ;;  %v2735_v13 = vadd.f32 %v8391_v56, %v8060_v4 }
 0x8f7   :  { %v5604_v10 = vpop.eup %5603  ;;  %v2706_v15 = vadd.f32 %v8390_v47, %v8058_v25 }
 0x8f8   :  { %v3494_v23 = vadd.f32 %v3493_v62, %v3492_v27  ;;  %v3490_v19 = vadd.f32 1.0, %v5604_v10 }
 0x8fa   :  { %5605 = vtanh.f32 %v3494_v23  ;;  %v3491_v61 = vmul.f32 0.5, %v3490_v19 }
 0x900   :  { %v5606_v55 = vpop.eup %5605 }
 0x901   :  { %v3496_v58 = vmul.f32 %v5606_v55, %v3491_v61  ;;  %v8392_v55 = vld [vmem:[#allocation26_spill] sm:$0xff] }
 0x903   :  { %v3501_v3 = vpack.c.bf16 %v3496_v58, %v3496_v58  ;;  %v2764_v58 = vadd.f32 %v8392_v55, %v8068_v14 }
 0x905   :  { %3510 = vmatmul.bf16.vlgmr.msra.gmra.mxu0 %v3501_v3  ;;  %3523 = vmatmul.bf16.vlgmr.msrb.gmra.mxu1 %v3501_v3 }
 0x906   :  { %3536 = vmatmul.bf16.vlgmr.msra.gmra.mxu2 %v3501_v3  ;;  %3549 = vmatmul.bf16.vlgmr.msra.gmra.mxu3 %v3501_v3  ;;  %v8393_v3 = vld [vmem:[#allocation27_spill] sm:$0xff] }
 0x907   :  { %3730 = vmatpush.bf16.msra.mxu0 %v5463_v1  ;;  %v2793_v63 = vadd.f32 %v8393_v3, %v8070_v8 }
 0x90b   :  { %3731 = vmatpush.bf16.msra.mxu0 %v5462_v5 }
 0x90f   :  { %3732 = vmatpush.bf16.msra.mxu0 %v5461_v51 }
 0x913   :  { %3733 = vmatpush.bf16.msra.mxu0 %v5460_v32 }
 0x917   :  { %3734 = vmatpush.bf16.msra.mxu0 %v5459_v26 }
 0x91b   :  { %3735 = vmatpush.bf16.msra.mxu0 %v5458_v39 }
 0x91f   :  { %3736 = vmatpush.bf16.msra.mxu0 %v5457_v43 }
 0x923   :  { %3737 = vmatpush.bf16.msra.mxu0 %v5456_v45 }
 0x982   :  { %v3511_v50 = vpop.f32.mrf.mxu0  ;;  %v3524_v44 = vpop.f32.mrf.mxu1 }
 0x983   :  { %v3554_v53 = vadd.f32 %v3511_v50, %v2704_v48  ;;  %v3555_v41 = vadd.f32 %v3524_v44, %v2733_v52 }
 0x985   :  { %v3558_v12 = vmul.f32 0.5, %v3554_v53  ;;  %v3562_v7 = vmul.f32 0.5, %v3555_v41 }
 0x987   :  { %5607 = vtanh.f32 %v3558_v12 }
 0x988   :  { %5609 = vtanh.f32 %v3562_v7 }
 0x989   :  { %v3537_v36 = vpop.f32.mrf.mxu2  ;;  %v3550_v57 = vpop.f32.mrf.mxu3 }
 0x98a   :  { %v3556_v34 = vadd.f32 %v3537_v36, %v2762_v6  ;;  %v3557_v40 = vadd.f32 %v3550_v57, %v2791_v21  ;;  %v3513_v22 = vpop.f32.mrf.mxu0  ;;  %v3526_v59 = vpop.f32.mrf.mxu1 }
 0x98c   :  { %5611 = vtanh.f32 %v3556_v34  ;;  %v3567_v16 = vmul.f32 0.5, %v3557_v40 }
 0x98d   :  { %v5608_v46 = vpop.eup %5607 }
 0x98e   :  { %v5610_v18 = vpop.eup %5609  ;;  %v3560_v60 = vadd.f32 1.0, %v5608_v46  ;;  %5613 = vtanh.f32 %v3567_v16 }
 0x98f   :  { %v3564_v11 = vadd.f32 1.0, %v5610_v18  ;;  %v5466_v18 = vld [vmem:[%s8347_s8] ss:$0 sm:$0xff] }
 0x990   :  { %v3561_v17 = vmul.f32 0.5, %v3560_v60 }
 0x991   :  { %v3565_v24 = vmul.f32 0.5, %v3564_v11  ;;  %v3539_v2 = vpop.f32.mrf.mxu2  ;;  %v3552_v29 = vpop.f32.mrf.mxu3 }
 0x992   :  { %v5612_v9 = vpop.eup %5611 }
 0x993   :  { %v3571_v35 = vmul.f32 %v3565_v24, %v3494_v23  ;;  %v3572_v37 = vmul.f32 %v5612_v9, %v3561_v17 }
 0x994   :  { %v5614_v38 = vpop.eup %5613 }
 0x995   :  { %v3573_v54 = vadd.f32 %v3572_v37, %v3571_v35  ;;  %v3569_v30 = vadd.f32 1.0, %v5614_v38 }
 0x997   :  { %5615 = vtanh.f32 %v3573_v54  ;;  %v3570_v42 = vmul.f32 0.5, %v3569_v30 }
 0x99d   :  { %v5616_v31 = vpop.eup %5615 }
 0x99e   :  { %v3575_v28 = vmul.f32 %v5616_v31, %v3570_v42 }
 0x9a0   :  { %v3580_v0 = vpack.c.bf16 %v3575_v28, %v3575_v28 }
 0x9a2   :  { %3589 = vmatmul.bf16.vlgmr.msrb.gmra.mxu0 %v3580_v0  ;;  %3602 = vmatmul.bf16.vlgmr.msra.gmra.mxu1 %v3580_v0 }
 0x9a3   :  { %3615 = vmatmul.bf16.vlgmr.msrb.gmra.mxu2 %v3580_v0  ;;  %3628 = vmatmul.bf16.vlgmr.msrb.gmra.mxu3 %v3580_v0 }
 0xa1f   :  { %v3590_v27 = vpop.f32.mrf.mxu0  ;;  %v3603_v62 = vpop.f32.mrf.mxu1 }
 0xa20   :  { %v3633_v10 = vadd.f32 %v3590_v27, %v2706_v15  ;;  %v3634_v23 = vadd.f32 %v3603_v62, %v2735_v13 }
 0xa22   :  { %v3637_v19 = vmul.f32 0.5, %v3633_v10  ;;  %v3641_v61 = vmul.f32 0.5, %v3634_v23 }
 0xa24   :  { %5617 = vtanh.f32 %v3637_v19 }
 0xa25   :  { %5619 = vtanh.f32 %v3641_v61 }
 0xa26   :  { %v3616_v48 = vpop.f32.mrf.mxu2  ;;  %v3629_v20 = vpop.f32.mrf.mxu3 }
 0xa27   :  { %v3635_v25 = vadd.f32 %v3616_v48, %v2764_v58  ;;  %v3636_v52 = vadd.f32 %v3629_v20, %v2793_v63  ;;  %v3592_v50 = vpop.f32.mrf.mxu0  ;;  %v3605_v4 = vpop.f32.mrf.mxu1 }
 0xa29   :  { %5621 = vtanh.f32 %v3635_v25  ;;  %v3646_v44 = vmul.f32 0.5, %v3636_v52 }
 0xa2a   :  { %v5618_v53 = vpop.eup %5617 }
 0xa2b   :  { %v5620_v41 = vpop.eup %5619  ;;  %v3639_v12 = vadd.f32 1.0, %v5618_v53  ;;  %5623 = vtanh.f32 %v3646_v44 }
 0xa2c   :  { %v3643_v7 = vadd.f32 1.0, %v5620_v41 }
 0xa2d   :  { %v3640_v49 = vmul.f32 0.5, %v3639_v12 }
 0xa2e   :  { %v3644_v6 = vmul.f32 0.5, %v3643_v7  ;;  %v3618_v14 = vpop.f32.mrf.mxu2  ;;  %v3631_v33 = vpop.f32.mrf.mxu3 }
 0xa2f   :  { %v5622_v21 = vpop.eup %5621 }
 0xa30   :  { %v3650_v8 = vmul.f32 %v3644_v6, %v3573_v54  ;;  %v3651_v36 = vmul.f32 %v5622_v21, %v3640_v49 }
 0xa31   :  { %v5624_v57 = vpop.eup %5623 }
 0xa32   :  { %v3652_v34 = vadd.f32 %v3651_v36, %v3650_v8  ;;  %v3648_v40 = vadd.f32 1.0, %v5624_v57 }
 0xa34   :  { %5625 = vtanh.f32 %v3652_v34  ;;  %v3649_v22 = vmul.f32 0.5, %v3648_v40 }
 0xa3a   :  { %v5626_v59 = vpop.eup %5625 }
 0xa3b   :  { %v3654_v16 = vmul.f32 %v5626_v59, %v3649_v22 }
 0xa3d   :  { %v3661_v46 = vpack.c.bf16 %v3654_v16, %v3654_v16 }
 0xa3f   :  { %3738 = vmatmul.bf16.vlgmr.msra.gmra.mxu0 %v3661_v46 }
 0xabc   :  { %v3739_v60 = vpop.f32.mrf.mxu0 }
 0xabd   :  { %v3740_v11 = vadd.f32 %v5466_v18, %v3739_v60 }
 0xabf   :  { %3743 = vst [vmem:[%s8349_s9] sm:$0xff] %v3740_v11 }
 0xac4   :  { %v3741_v17 = vpop.f32.mrf.mxu0 }

</bundles_post_ra>
